<compile_context>
chip_gen: v5e
topology: v5e:2x2
jax: 0.10.0
libtpu: 0.0.40
codegen_flags: <defaults>
</compile_context>

<pallas_src>
import functools
import math

import numpy as np
import jax
import jax.numpy as jnp
from jax.experimental import pallas as pl
from jax.experimental.pallas import tpu as pltpu

# -----------------------------------------------------------------------------
# Config (consistent with the module: time_layer=Linear(64,256) forces
# model_dim=256; selection_layer=Linear(1,64) forces the time dim to 64).
# -----------------------------------------------------------------------------
VOCAB_SIZE = 50
MAX_SEQ_LEN = 16
MODEL_DIM = 256
NUM_HEADS = 4
FFN_DIM = 1024
NUM_LAYERS = 1
TIME_DIM = 64
LN_EPS = 1e-5
HEAD_DIM = MODEL_DIM // NUM_HEADS

B, S, C = 2, 8, 5            # batch, seq_len (== max(input_len)), codes per visit
N = B * S
G = B * NUM_HEADS            # attention groups produced by torch's .view()

assert MODEL_DIM % NUM_HEADS == 0
# the .view(B*H, -1, Dh) grouping packs S // NUM_HEADS original rows per group
assert S % NUM_HEADS == 0


# -----------------------------------------------------------------------------
# Kernel 1: time feature + embedding reduction + positional add + fused QKV
# -----------------------------------------------------------------------------
def _embed_qkv_kernel(t_ref, sw_ref, sb_ref, tw_ref, tb_ref,
                      emb_ref, mc_ref, be_ref, pos_ref,
                      wqkv_ref, bqkv_ref,
                      x_ref, qkv_ref):
    # time_feature = time_layer(1 - tanh(selection_layer(t)^2))
    sel = t_ref[...] * sw_ref[...] + sb_ref[...]                       # [N, 64]
    tf = jnp.dot(1.0 - jnp.tanh(sel * sel), tw_ref[...],
                 preferred_element_type=jnp.float32) + tb_ref[...]     # [N, D]
    # (pre_embedding(codes) * mask_code).sum(dim=2) + bias + time + pos
    x = jnp.sum(emb_ref[...] * mc_ref[...], axis=1)                    # [N, D]
    x = x + be_ref[...] + tf + pos_ref[...]
    x_ref[...] = x
    # fused Q|K|V projection ([D, 3D]); attention scale already folded into Q
    qkv_ref[...] = jnp.dot(x, wqkv_ref[...],
                           preferred_element_type=jnp.float32) + bqkv_ref[...]


def embed_and_qkv(t, sel_w, sel_b, time_w, time_b, emb, mcode, bias, pos_enc,
                  wqkv, bqkv):
    n = t.shape[0]
    c = emb.shape[1]
    d = time_w.shape[1]
    tdim = time_w.shape[0]
    d3 = wqkv.shape[1]
    return pl.pallas_call(
        _embed_qkv_kernel,
        out_shape=(jax.ShapeDtypeStruct((n, d), jnp.float32),
                   jax.ShapeDtypeStruct((n, d3), jnp.float32)),
        grid=(1,),
        in_specs=[
            pl.BlockSpec((n, 1), lambda i: (0, 0)),
            pl.BlockSpec((1, tdim), lambda i: (0, 0)),
            pl.BlockSpec((1, tdim), lambda i: (0, 0)),
            pl.BlockSpec((tdim, d), lambda i: (0, 0)),
            pl.BlockSpec((1, d), lambda i: (0, 0)),
            pl.BlockSpec((n, c, d), lambda i: (0, 0, 0)),
            pl.BlockSpec((n, c, 1), lambda i: (0, 0, 0)),
            pl.BlockSpec((1, d), lambda i: (0, 0)),
            pl.BlockSpec((n, d), lambda i: (0, 0)),
            pl.BlockSpec((d, d3), lambda i: (0, 0)),
            pl.BlockSpec((1, d3), lambda i: (0, 0)),
        ],
        out_specs=(pl.BlockSpec((n, d), lambda i: (0, 0)),
                   pl.BlockSpec((n, d3), lambda i: (0, 0))),
    )(t, sel_w, sel_b, time_w, time_b, emb, mcode, bias, pos_enc, wqkv, bqkv)


# -----------------------------------------------------------------------------
# QKV projection for layers >= 1 (not used when NUM_LAYERS == 1)
# -----------------------------------------------------------------------------
def _qkv_kernel(x_ref, w_ref, b_ref, o_ref):
    o_ref[...] = jnp.dot(x_ref[...], w_ref[...],
                         preferred_element_type=jnp.float32) + b_ref[...]


def qkv_project(x, w, b):
    n, d = x.shape
    m = w.shape[1]
    return pl.pallas_call(
        _qkv_kernel,
        out_shape=jax.ShapeDtypeStruct((n, m), jnp.float32),
        grid=(1,),
        in_specs=[pl.BlockSpec((n, d), lambda i: (0, 0)),
                  pl.BlockSpec((d, m), lambda i: (0, 0)),
                  pl.BlockSpec((1, m), lambda i: (0, 0))],
        out_specs=pl.BlockSpec((n, m), lambda i: (0, 0)),
    )(x, w, b)


# -----------------------------------------------------------------------------
# Kernel 2: whole encoder layer (attention + out-proj + LN1 + FFN + LN2)
# -----------------------------------------------------------------------------
def _encoder_layer_kernel(x_ref, q_ref, k_ref, v_ref, mb_ref,
                          wo_ref, bo_ref, g1_ref, b1_ref,
                          w1_ref, c1_ref, w2_ref, c2_ref, g2_ref, b2_ref,
                          o_ref, proj_ref):
    n, d = x_ref.shape
    g_cnt, s_len, dh = q_ref.shape
    nh = d // dh                 # number of heads
    rpg = s_len // nh            # original flat rows held by each view group

    wo_all = wo_ref[...]         # [Dh, nh*D]  (Wo row-quarters laid side by side)
    bo_all = bo_ref[...]         # [1, D]

    # ---- multi-head attention, torch .view() grouping, no reshapes ----------
    for gi in range(g_cnt):                       # static unroll over B*H groups
        qg = q_ref[gi]                            # [S, Dh]  (Q already scaled)
        kg = k_ref[gi]                            # [S, Dh]
        vg = v_ref[gi]                            # [S, Dh]
        scores = jax.lax.dot_general(
            qg, kg, (((1,), (1,)), ((), ())),
            preferred_element_type=jnp.float32)   # [S, S]
        scores = scores + mb_ref[gi]              # additive key-pad mask (-1e30)
        mx = jnp.max(scores, axis=-1, keepdims=True)
        p = jnp.exp(scores - mx)
        p = p / jnp.sum(p, axis=-1, keepdims=True)
        cg = jnp.dot(p, vg, preferred_element_type=jnp.float32)      # [S, Dh]
        # Output projection of ctx.view(B, S, D) @ Wo, computed per group:
        # flat row (gi*rpg + r) = sum_q dg[r*nh + q, q*D:(q+1)*D] + bo
        dg = jnp.dot(cg, wo_all, preferred_element_type=jnp.float32)  # [S, nh*D]
        for r in range(rpg):
            acc = bo_all                                              # [1, D]
            for qd in range(nh):
                s_idx = r * nh + qd
                acc = acc + dg[s_idx:s_idx + 1, qd * d:(qd + 1) * d]
            row = gi * rpg + r
            proj_ref[row:row + 1, :] = acc

    # ---- residual + LayerNorm 1 ---------------------------------------------
    z = x_ref[...] + proj_ref[...]
    mu = jnp.mean(z, axis=-1, keepdims=True)
    var = jnp.mean(jnp.square(z - mu), axis=-1, keepdims=True)
    z1 = (z - mu) * jax.lax.rsqrt(var + LN_EPS) * g1_ref[...] + b1_ref[...]

    # ---- position-wise FFN (Conv1d kernel=1 == matmul over channels) --------
    h1 = jnp.dot(z1, w1_ref[...], preferred_element_type=jnp.float32) + c1_ref[...]
    h1 = jnp.maximum(h1, 0.0)
    f2 = jnp.dot(h1, w2_ref[...], preferred_element_type=jnp.float32) + c2_ref[...]

    # ---- residual + LayerNorm 2 ---------------------------------------------
    z2 = z1 + f2
    mu2 = jnp.mean(z2, axis=-1, keepdims=True)
    var2 = jnp.mean(jnp.square(z2 - mu2), axis=-1, keepdims=True)
    o_ref[...] = (z2 - mu2) * jax.lax.rsqrt(var2 + LN_EPS) * g2_ref[...] + b2_ref[...]


def encoder_layer(x, q3, k3, v3, mask_bias, lp):
    n, d = x.shape
    g, s, dh = q3.shape
    ffn = lp["w1"].shape[1]
    nh = lp["wo_big"].shape[1] // d
    return pl.pallas_call(
        _encoder_layer_kernel,
        out_shape=jax.ShapeDtypeStruct((n, d), jnp.float32),
        grid=(1,),
        in_specs=[
            pl.BlockSpec((n, d), lambda i: (0, 0)),
            pl.BlockSpec((g, s, dh), lambda i: (0, 0, 0)),
            pl.BlockSpec((g, s, dh), lambda i: (0, 0, 0)),
            pl.BlockSpec((g, s, dh), lambda i: (0, 0, 0)),
            pl.BlockSpec((g, 1, s), lambda i: (0, 0, 0)),
            pl.BlockSpec((dh, nh * d), lambda i: (0, 0)),
            pl.BlockSpec((1, d), lambda i: (0, 0)),
            pl.BlockSpec((1, d), lambda i: (0, 0)),
            pl.BlockSpec((1, d), lambda i: (0, 0)),
            pl.BlockSpec((d, ffn), lambda i: (0, 0)),
            pl.BlockSpec((1, ffn), lambda i: (0, 0)),
            pl.BlockSpec((ffn, d), lambda i: (0, 0)),
            pl.BlockSpec((1, d), lambda i: (0, 0)),
            pl.BlockSpec((1, d), lambda i: (0, 0)),
            pl.BlockSpec((1, d), lambda i: (0, 0)),
        ],
        out_specs=pl.BlockSpec((n, d), lambda i: (0, 0)),
        scratch_shapes=[pltpu.VMEM((n, d), jnp.float32)],
    )(x, q3, k3, v3, mask_bias,
      lp["wo_big"], lp["bo"], lp["ln1_g"], lp["ln1_b"],
      lp["w1"], lp["b1"], lp["w2"], lp["b2"], lp["ln2_g"], lp["ln2_b"])


# -----------------------------------------------------------------------------
# Parameters (deterministic synthetic init; shapes from EncoderNew.__init__)
# -----------------------------------------------------------------------------
def init_params(key):
    keys = jax.random.split(key, 8)

    def u(k, shape, bound):
        return jax.random.uniform(k, shape, jnp.float32, -bound, bound)

    p = {}
    p["embed"] = u(keys[0], (VOCAB_SIZE, MODEL_DIM), 1.0 / math.sqrt(MODEL_DIM))
    p["bias_embedding"] = u(keys[1], (MODEL_DIM,), 1.0 / math.sqrt(VOCAB_SIZE))
    # selection_layer: Linear(1, 64); stored transposed as [in, out]
    p["sel_w"] = u(keys[2], (1, TIME_DIM), 1.0)
    p["sel_b"] = u(keys[3], (1, TIME_DIM), 1.0)
    # time_layer: Linear(64, 256)
    p["time_w"] = u(keys[4], (TIME_DIM, MODEL_DIM), 1.0 / math.sqrt(TIME_DIM))
    p["time_b"] = u(keys[5], (1, MODEL_DIM), 1.0 / math.sqrt(TIME_DIM))

    # Sinusoidal positional table (row 0 is the pad row), as in PositionalEncoding.
    pe = np.array(
        [[pos / np.power(10000, 2.0 * (j // 2) / MODEL_DIM) for j in range(MODEL_DIM)]
         for pos in range(MAX_SEQ_LEN)])
    pe[:, 0::2] = np.sin(pe[:, 0::2])
    pe[:, 1::2] = np.cos(pe[:, 1::2])
    pe = np.concatenate([np.zeros((1, MODEL_DIM)), pe], axis=0)
    p["pos_table"] = jnp.asarray(pe, dtype=jnp.float32)

    layers = []
    layer_keys = jax.random.split(keys[6], NUM_LAYERS)
    for li in range(NUM_LAYERS):
        lk = jax.random.split(layer_keys[li], 12)
        bd = 1.0 / math.sqrt(MODEL_DIM)
        bf = 1.0 / math.sqrt(FFN_DIM)
        layers.append({
            "wq": u(lk[0], (MODEL_DIM, MODEL_DIM), bd), "bq": u(lk[1], (1, MODEL_DIM), bd),
            "wk": u(lk[2], (MODEL_DIM, MODEL_DIM), bd), "bk": u(lk[3], (1, MODEL_DIM), bd),
            "wv": u(lk[4], (MODEL_DIM, MODEL_DIM), bd), "bv": u(lk[5], (1, MODEL_DIM), bd),
            "wo": u(lk[6], (MODEL_DIM, MODEL_DIM), bd), "bo": u(lk[7], (1, MODEL_DIM), bd),
            "ln1_g": jnp.ones((1, MODEL_DIM), jnp.float32),
            "ln1_b": jnp.zeros((1, MODEL_DIM), jnp.float32),
            "w1": u(lk[8], (MODEL_DIM, FFN_DIM), bd), "b1": u(lk[9], (1, FFN_DIM), bd),
            "w2": u(lk[10], (FFN_DIM, MODEL_DIM), bf), "b2": u(lk[11], (1, MODEL_DIM), bf),
            "ln2_g": jnp.ones((1, MODEL_DIM), jnp.float32),
            "ln2_b": jnp.zeros((1, MODEL_DIM), jnp.float32),
        })
    p["layers"] = layers
    return p


def prepare_params(params):
    """One-time (outside the hot path) folding of weights into kernel layout:
    attention scale folded into Q, Q|K|V concatenated, Wo row-quarters laid
    side by side for the reshape-free per-group output projection."""
    scale = float((HEAD_DIM // NUM_HEADS) ** (-0.5))   # matches the torch module
    kp = {
        "sel_w": params["sel_w"], "sel_b": params["sel_b"],
        "time_w": params["time_w"], "time_b": params["time_b"],
        "embed": params["embed"],
        "bias_embedding": params["bias_embedding"].reshape(1, MODEL_DIM),
        "pos_table": params["pos_table"],
    }
    layers = []
    for lp in params["layers"]:
        wqkv = jnp.concatenate([lp["wq"] * scale, lp["wk"], lp["wv"]], axis=1)
        bqkv = jnp.concatenate([lp["bq"] * scale, lp["bk"], lp["bv"]], axis=1)
        wo_big = jnp.concatenate(
            [lp["wo"][i * HEAD_DIM:(i + 1) * HEAD_DIM, :] for i in range(NUM_HEADS)],
            axis=1)                                     # [Dh, H*D]
        layers.append({
            "wqkv": wqkv, "bqkv": bqkv, "wo_big": wo_big, "bo": lp["bo"],
            "ln1_g": lp["ln1_g"], "ln1_b": lp["ln1_b"],
            "w1": lp["w1"], "b1": lp["b1"], "w2": lp["w2"], "b2": lp["b2"],
            "ln2_g": lp["ln2_g"], "ln2_b": lp["ln2_b"],
        })
    kp["layers"] = layers
    return kp


# -----------------------------------------------------------------------------
# Forward pass (2 pallas_calls for NUM_LAYERS=1 + tiny XLA glue)
# -----------------------------------------------------------------------------
@jax.jit
def encoder_new_forward(kparams, diagnosis_codes, mask, mask_code, seq_time_step,
                        input_len):
    del mask  # `mask` argument is unused by the PyTorch forward as well
    b, s, c = diagnosis_codes.shape
    d, h = MODEL_DIM, NUM_HEADS
    dh = d // h
    g = b * h
    n = b * s

    t = seq_time_step.reshape(n, 1).astype(jnp.float32)

    # ind_pos / positional encoding (vectorized equivalent of the python loops)
    ar = jnp.arange(1, s + 1, dtype=jnp.int32)[None, :]                    # [1, S]
    pos = jnp.where(ar <= input_len[:, None].astype(jnp.int32), ar, 0)     # [B, S]
    pos_enc = kparams["pos_table"][pos].reshape(n, d)                      # gather (glue)

    emb = kparams["embed"][diagnosis_codes].reshape(n, c, d)               # gather (glue)
    mcode = mask_code.reshape(n, c, 1).astype(jnp.float32)

    layer0 = kparams["layers"][0]
    x, qkv = embed_and_qkv(t, kparams["sel_w"], kparams["sel_b"],
                           kparams["time_w"], kparams["time_b"],
                           emb, mcode, kparams["bias_embedding"], pos_enc,
                           layer0["wqkv"], layer0["bqkv"])

    # key-padding mask as an additive bias in the torch repeat(H,1,1) group order
    pad = (pos == 0).astype(jnp.float32)                                   # [B, S]
    mask_bias = (jnp.tile(pad, (h, 1)) * jnp.float32(-1e30))[:, None, :]   # [G, 1, S]

    out = x
    for li, lp in enumerate(kparams["layers"]):
        if li > 0:
            qkv = qkv_project(out, lp["wqkv"], lp["bqkv"])
        # torch's raw .view(B*H, -1, Dh) == row-major reshape (XLA glue)
        q3 = qkv[:, :d].reshape(g, s, dh)
        k3 = qkv[:, d:2 * d].reshape(g, s, dh)
        v3 = qkv[:, 2 * d:].reshape(g, s, dh)
        out = encoder_layer(out, q3, k3, v3, mask_bias, lp)                # Pallas
    return out.reshape(b, s, d)


# -----------------------------------------------------------------------------
# Pure-JAX reference (mirrors the PyTorch forward) for correctness checking
# -----------------------------------------------------------------------------
def _ref_ln(z, gma, bta):
    mu = jnp.mean(z, axis=-1, keepdims=True)
    var = jnp.mean(jnp.square(z - mu), axis=-1, keepdims=True)
    return (z - mu) * jax.lax.rsqrt(var + LN_EPS) * gma + bta


def reference_forward(params, diagnosis_codes, mask, mask_code, seq_time_step, input_len):
    del mask
    bb, ss, cc = diagnosis_codes.shape
    d, h = MODEL_DIM, NUM_HEADS
    dh = d // h
    hp = jax.lax.Precision.HIGHEST
    sel = jnp.matmul(seq_time_step, params["sel_w"], precision=hp) + params["sel_b"]
    tf = jnp.matmul(1.0 - jnp.tanh(sel ** 2), params["time_w"], precision=hp) + params["time_b"]
    emb = params["embed"][diagnosis_codes]
    x = jnp.sum(emb * mask_code, axis=2) + params["bias_embedding"]
    x = x + tf
    ar = jnp.arange(1, ss + 1, dtype=jnp.int32)[None, :]
    pos = jnp.where(ar <= input_len[:, None].astype(jnp.int32), ar, 0)
    x = x + params["pos_table"][pos]
    attn_mask = jnp.tile(jnp.broadcast_to((pos == 0)[:, None, :], (bb, ss, ss)), (h, 1, 1))
    scale = (dh // h) ** (-0.5)
    out = x
    for layer in params["layers"]:
        flat = out.reshape(bb * ss, d)
        q = (jnp.matmul(flat, layer["wq"], precision=hp) + layer["bq"]).reshape(bb * h, ss, dh)
        k = (jnp.matmul(flat, layer["wk"], precision=hp) + layer["bk"]).reshape(bb * h, ss, dh)
        v = (jnp.matmul(flat, layer["wv"], precision=hp) + layer["bv"]).reshape(bb * h, ss, dh)
        scores = jnp.einsum("gqd,gkd->gqk", q, k, precision=hp) * scale
        scores = jnp.where(attn_mask, -jnp.inf, scores)
        attn = jax.nn.softmax(scores, axis=-1)
        ctx = jnp.einsum("gqk,gkd->gqd", attn, v, precision=hp).reshape(bb * ss, d)
        o = jnp.matmul(ctx, layer["wo"], precision=hp) + layer["bo"]
        z = _ref_ln(flat + o, layer["ln1_g"], layer["ln1_b"])
        hdn = jnp.maximum(jnp.matmul(z, layer["w1"], precision=hp) + layer["b1"], 0.0)
        f = jnp.matmul(hdn, layer["w2"], precision=hp) + layer["b2"]
        out = _ref_ln(z + f, layer["ln2_g"], layer["ln2_b"]).reshape(bb, ss, d)
    return out


# -----------------------------------------------------------------------------
if __name__ == "__main__":
    key = jax.random.PRNGKey(0)
    pkey, dkey = jax.random.split(key)
    params = init_params(pkey)
    kparams = prepare_params(params)          # weight folding hoisted out of the hot path

    ks = jax.random.split(dkey, 4)
    diagnosis_codes = jax.random.randint(ks[0], (B, S, C), 0, VOCAB_SIZE, dtype=jnp.int32)
    mask = jnp.ones((B, S, 1), jnp.float32)                 # unused (matches torch forward)
    mask_code = (jax.random.uniform(ks[1], (B, S, C, 1)) > 0.3).astype(jnp.float32)
    seq_time_step = jax.random.uniform(ks[2], (B, S, 1), dtype=jnp.float32)
    input_len = jnp.array([S, 5], dtype=jnp.int32)          # max(input_len) == S

    out = encoder_new_forward(kparams, diagnosis_codes, mask, mask_code,
                              seq_time_step, input_len)
    out = jax.block_until_ready(out)

    ref = reference_forward(params, diagnosis_codes, mask, mask_code,
                            seq_time_step, input_len)
    assert out.shape == (B, S, MODEL_DIM), out.shape
    assert bool(jnp.all(jnp.isfinite(out)))
    if not bool(jnp.allclose(out, ref, atol=5e-3, rtol=5e-3)):
        raise SystemExit("Pallas output mismatch vs JAX reference")
    print("KERNEL_OK")
</pallas_src>

<mosaic_0001>
module attributes {stable_mosaic.version = 11 : i64} {
  func.func @_embed_qkv_kernel(%arg0: i32, %arg1: memref<16x1xf32, #tpu.memory_space<vmem>>, %arg2: memref<1x64xf32, #tpu.memory_space<vmem>>, %arg3: memref<1x64xf32, #tpu.memory_space<vmem>>, %arg4: memref<64x256xf32, #tpu.memory_space<vmem>>, %arg5: memref<1x256xf32, #tpu.memory_space<vmem>>, %arg6: memref<16x5x256xf32, #tpu.memory_space<vmem>>, %arg7: memref<16x5x1xf32, #tpu.memory_space<vmem>>, %arg8: memref<1x256xf32, #tpu.memory_space<vmem>>, %arg9: memref<16x256xf32, #tpu.memory_space<vmem>>, %arg10: memref<256x768xf32, #tpu.memory_space<vmem>>, %arg11: memref<1x768xf32, #tpu.memory_space<vmem>>, %arg12: memref<16x256xf32, #tpu.memory_space<vmem>>, %arg13: memref<16x768xf32, #tpu.memory_space<vmem>>) attributes {dimension_semantics = [#tpu.dimension_semantics<arbitrary>], iteration_bounds = array<i64: 1>, scalar_prefetch = 0 : i64, scratch_operands = 0 : i64, tpu.core_type = #tpu.core_type<tc>, window_params = [{pipeline_mode = #tpu.pipeline_mode<synchronous>, transform_indices = @transform_0, window_bounds = array<i64: 16, 1>}, {pipeline_mode = #tpu.pipeline_mode<synchronous>, transform_indices = @transform_1, window_bounds = array<i64: 1, 64>}, {pipeline_mode = #tpu.pipeline_mode<synchronous>, transform_indices = @transform_2, window_bounds = array<i64: 1, 64>}, {pipeline_mode = #tpu.pipeline_mode<synchronous>, transform_indices = @transform_3, window_bounds = array<i64: 64, 256>}, {pipeline_mode = #tpu.pipeline_mode<synchronous>, transform_indices = @transform_4, window_bounds = array<i64: 1, 256>}, {pipeline_mode = #tpu.pipeline_mode<synchronous>, transform_indices = @transform_5, window_bounds = array<i64: 16, 5, 256>}, {pipeline_mode = #tpu.pipeline_mode<synchronous>, transform_indices = @transform_6, window_bounds = array<i64: 16, 5, 1>}, {pipeline_mode = #tpu.pipeline_mode<synchronous>, transform_indices = @transform_7, window_bounds = array<i64: 1, 256>}, {pipeline_mode = #tpu.pipeline_mode<synchronous>, transform_indices = @transform_8, window_bounds = array<i64: 16, 256>}, {pipeline_mode = #tpu.pipeline_mode<synchronous>, transform_indices = @transform_9, window_bounds = array<i64: 256, 768>}, {pipeline_mode = #tpu.pipeline_mode<synchronous>, transform_indices = @transform_10, window_bounds = array<i64: 1, 768>}, {pipeline_mode = #tpu.pipeline_mode<synchronous>, transform_indices = @transform_11, window_bounds = array<i64: 16, 256>}, {pipeline_mode = #tpu.pipeline_mode<synchronous>, transform_indices = @transform_12, window_bounds = array<i64: 16, 768>}]} {
    %c0 = arith.constant 0 : index
    %c0_0 = arith.constant 0 : index
    %0 = vector.load %arg1[%c0, %c0_0] : memref<16x1xf32, #tpu.memory_space<vmem>>, vector<16x1xf32>
    %c0_1 = arith.constant 0 : index
    %c0_2 = arith.constant 0 : index
    %1 = vector.load %arg2[%c0_1, %c0_2] : memref<1x64xf32, #tpu.memory_space<vmem>>, vector<1x64xf32>
    %2 = vector.broadcast %0 : vector<16x1xf32> to vector<16x64xf32>
    %3 = vector.broadcast %1 : vector<1x64xf32> to vector<16x64xf32>
    %4 = arith.mulf %2, %3 : vector<16x64xf32>
    %c0_3 = arith.constant 0 : index
    %c0_4 = arith.constant 0 : index
    %5 = vector.load %arg3[%c0_3, %c0_4] : memref<1x64xf32, #tpu.memory_space<vmem>>, vector<1x64xf32>
    %6 = vector.broadcast %5 : vector<1x64xf32> to vector<16x64xf32>
    %7 = arith.addf %4, %6 : vector<16x64xf32>
    %8 = arith.mulf %7, %7 : vector<16x64xf32>
    %9 = math.tanh %8 : vector<16x64xf32>
    %cst = arith.constant 1.000000e+00 : f32
    %10 = vector.broadcast %cst : f32 to vector<16x64xf32>
    %11 = arith.subf %10, %9 : vector<16x64xf32>
    %c0_5 = arith.constant 0 : index
    %c0_6 = arith.constant 0 : index
    %12 = vector.load %arg4[%c0_5, %c0_6] : memref<64x256xf32, #tpu.memory_space<vmem>>, vector<64x256xf32>
    %cst_7 = arith.constant dense<0.000000e+00> : vector<16x256xf32>
    %13 = tpu.matmul %11, %12, %cst_7 {dimension_numbers = #tpu.dot_dimension_numbers<[1], [0], [0], [1], [0, 0, 1, 1], [], []>} : vector<16x64xf32>, vector<64x256xf32>, vector<16x256xf32> -> vector<16x256xf32>
    %c0_8 = arith.constant 0 : index
    %c0_9 = arith.constant 0 : index
    %14 = vector.load %arg5[%c0_8, %c0_9] : memref<1x256xf32, #tpu.memory_space<vmem>>, vector<1x256xf32>
    %15 = vector.broadcast %14 : vector<1x256xf32> to vector<16x256xf32>
    %16 = arith.addf %13, %15 : vector<16x256xf32>
    %c0_10 = arith.constant 0 : index
    %c0_11 = arith.constant 0 : index
    %c0_12 = arith.constant 0 : index
    %17 = vector.load %arg6[%c0_10, %c0_11, %c0_12] : memref<16x5x256xf32, #tpu.memory_space<vmem>>, vector<16x5x256xf32>
    %c0_13 = arith.constant 0 : index
    %c0_14 = arith.constant 0 : index
    %c0_15 = arith.constant 0 : index
    %18 = vector.load %arg7[%c0_13, %c0_14, %c0_15] : memref<16x5x1xf32, #tpu.memory_space<vmem>>, vector<16x5x1xf32>
    %19 = vector.broadcast %18 : vector<16x5x1xf32> to vector<16x5x256xf32>
    %20 = arith.mulf %17, %19 : vector<16x5x256xf32>
    %cst_16 = arith.constant dense<0.000000e+00> : vector<16x256xf32>
    %21 = vector.multi_reduction <add>, %20, %cst_16 [1] : vector<16x5x256xf32> to vector<16x256xf32>
    %c0_17 = arith.constant 0 : index
    %c0_18 = arith.constant 0 : index
    %22 = vector.load %arg8[%c0_17, %c0_18] : memref<1x256xf32, #tpu.memory_space<vmem>>, vector<1x256xf32>
    %23 = vector.broadcast %22 : vector<1x256xf32> to vector<16x256xf32>
    %24 = arith.addf %21, %23 : vector<16x256xf32>
    %25 = arith.addf %24, %16 : vector<16x256xf32>
    %c0_19 = arith.constant 0 : index
    %c0_20 = arith.constant 0 : index
    %26 = vector.load %arg9[%c0_19, %c0_20] : memref<16x256xf32, #tpu.memory_space<vmem>>, vector<16x256xf32>
    %27 = arith.addf %25, %26 : vector<16x256xf32>
    %c0_21 = arith.constant 0 : index
    %c0_22 = arith.constant 0 : index
    %28 = vector.load %arg12[%c0_21, %c0_22] : memref<16x256xf32, #tpu.memory_space<vmem>>, vector<16x256xf32>
    tpu.vector_store %arg12[%c0_21, %c0_22], %27 {strides = array<i32>} : memref<16x256xf32, #tpu.memory_space<vmem>>, vector<16x256xf32>,
    %c0_23 = arith.constant 0 : index
    %c0_24 = arith.constant 0 : index
    %29 = vector.load %arg10[%c0_23, %c0_24] : memref<256x768xf32, #tpu.memory_space<vmem>>, vector<256x768xf32>
    %cst_25 = arith.constant dense<0.000000e+00> : vector<16x768xf32>
    %30 = tpu.matmul %27, %29, %cst_25 {dimension_numbers = #tpu.dot_dimension_numbers<[1], [0], [0], [1], [0, 0, 1, 1], [], []>} : vector<16x256xf32>, vector<256x768xf32>, vector<16x768xf32> -> vector<16x768xf32>
    %c0_26 = arith.constant 0 : index
    %c0_27 = arith.constant 0 : index
    %31 = vector.load %arg11[%c0_26, %c0_27] : memref<1x768xf32, #tpu.memory_space<vmem>>, vector<1x768xf32>
    %32 = vector.broadcast %31 : vector<1x768xf32> to vector<16x768xf32>
    %33 = arith.addf %30, %32 : vector<16x768xf32>
    %c0_28 = arith.constant 0 : index
    %c0_29 = arith.constant 0 : index
    %34 = vector.load %arg13[%c0_28, %c0_29] : memref<16x768xf32, #tpu.memory_space<vmem>>, vector<16x768xf32>
    tpu.vector_store %arg13[%c0_28, %c0_29], %33 {strides = array<i32>} : memref<16x768xf32, #tpu.memory_space<vmem>>, vector<16x768xf32>,
    return
  }
  func.func @transform_0(%arg0: i32) -> (i32, i32) {
    %c0_i32 = arith.constant 0 : i32
    %c0_i32_0 = arith.constant 0 : i32
    %c0_i32_1 = arith.constant 0 : i32
    return %c0_i32, %c0_i32_0 : i32, i32
  }
  func.func @transform_1(%arg0: i32) -> (i32, i32) {
    %c0_i32 = arith.constant 0 : i32
    %c0_i32_0 = arith.constant 0 : i32
    %c0_i32_1 = arith.constant 0 : i32
    return %c0_i32, %c0_i32_0 : i32, i32
  }
  func.func @transform_2(%arg0: i32) -> (i32, i32) {
    %c0_i32 = arith.constant 0 : i32
    %c0_i32_0 = arith.constant 0 : i32
    %c0_i32_1 = arith.constant 0 : i32
    return %c0_i32, %c0_i32_0 : i32, i32
  }
  func.func @transform_3(%arg0: i32) -> (i32, i32) {
    %c0_i32 = arith.constant 0 : i32
    %c0_i32_0 = arith.constant 0 : i32
    %c0_i32_1 = arith.constant 0 : i32
    return %c0_i32, %c0_i32_0 : i32, i32
  }
  func.func @transform_4(%arg0: i32) -> (i32, i32) {
    %c0_i32 = arith.constant 0 : i32
    %c0_i32_0 = arith.constant 0 : i32
    %c0_i32_1 = arith.constant 0 : i32
    return %c0_i32, %c0_i32_0 : i32, i32
  }
  func.func @transform_5(%arg0: i32) -> (i32, i32, i32) {
    %c0_i32 = arith.constant 0 : i32
    %c0_i32_0 = arith.constant 0 : i32
    %c0_i32_1 = arith.constant 0 : i32
    %c0_i32_2 = arith.constant 0 : i32
    return %c0_i32, %c0_i32_0, %c0_i32_1 : i32, i32, i32
  }
  func.func @transform_6(%arg0: i32) -> (i32, i32, i32) {
    %c0_i32 = arith.constant 0 : i32
    %c0_i32_0 = arith.constant 0 : i32
    %c0_i32_1 = arith.constant 0 : i32
    %c0_i32_2 = arith.constant 0 : i32
    return %c0_i32, %c0_i32_0, %c0_i32_1 : i32, i32, i32
  }
  func.func @transform_7(%arg0: i32) -> (i32, i32) {
    %c0_i32 = arith.constant 0 : i32
    %c0_i32_0 = arith.constant 0 : i32
    %c0_i32_1 = arith.constant 0 : i32
    return %c0_i32, %c0_i32_0 : i32, i32
  }
  func.func @transform_8(%arg0: i32) -> (i32, i32) {
    %c0_i32 = arith.constant 0 : i32
    %c0_i32_0 = arith.constant 0 : i32
    %c0_i32_1 = arith.constant 0 : i32
    return %c0_i32, %c0_i32_0 : i32, i32
  }
  func.func @transform_9(%arg0: i32) -> (i32, i32) {
    %c0_i32 = arith.constant 0 : i32
    %c0_i32_0 = arith.constant 0 : i32
    %c0_i32_1 = arith.constant 0 : i32
    return %c0_i32, %c0_i32_0 : i32, i32
  }
  func.func @transform_10(%arg0: i32) -> (i32, i32) {
    %c0_i32 = arith.constant 0 : i32
    %c0_i32_0 = arith.constant 0 : i32
    %c0_i32_1 = arith.constant 0 : i32
    return %c0_i32, %c0_i32_0 : i32, i32
  }
  func.func @transform_11(%arg0: i32) -> (i32, i32) {
    %c0_i32 = arith.constant 0 : i32
    %c0_i32_0 = arith.constant 0 : i32
    %c0_i32_1 = arith.constant 0 : i32
    return %c0_i32, %c0_i32_0 : i32, i32
  }
  func.func @transform_12(%arg0: i32) -> (i32, i32) {
    %c0_i32 = arith.constant 0 : i32
    %c0_i32_0 = arith.constant 0 : i32
    %c0_i32_1 = arith.constant 0 : i32
    return %c0_i32, %c0_i32_0 : i32, i32
  }
}

module attributes {stable_mosaic.version = 11 : i64} {
  func.func @_encoder_layer_kernel(%arg0: i32, %arg1: memref<16x256xf32, #tpu.memory_space<vmem>>, %arg2: memref<8x8x64xf32, #tpu.memory_space<vmem>>, %arg3: memref<8x8x64xf32, #tpu.memory_space<vmem>>, %arg4: memref<8x8x64xf32, #tpu.memory_space<vmem>>, %arg5: memref<8x1x8xf32, #tpu.memory_space<vmem>>, %arg6: memref<64x1024xf32, #tpu.memory_space<vmem>>, %arg7: memref<1x256xf32, #tpu.memory_space<vmem>>, %arg8: memref<1x256xf32, #tpu.memory_space<vmem>>, %arg9: memref<1x256xf32, #tpu.memory_space<vmem>>, %arg10: memref<256x1024xf32, #tpu.memory_space<vmem>>, %arg11: memref<1x1024xf32, #tpu.memory_space<vmem>>, %arg12: memref<1024x256xf32, #tpu.memory_space<vmem>>, %arg13: memref<1x256xf32, #tpu.memory_space<vmem>>, %arg14: memref<1x256xf32, #tpu.memory_space<vmem>>, %arg15: memref<1x256xf32, #tpu.memory_space<vmem>>, %arg16: memref<16x256xf32, #tpu.memory_space<vmem>>, %arg17: memref<16x256xf32, #tpu.memory_space<vmem>>) attributes {dimension_semantics = [#tpu.dimension_semantics<arbitrary>], iteration_bounds = array<i64: 1>, scalar_prefetch = 0 : i64, scratch_operands = 1 : i64, tpu.core_type = #tpu.core_type<tc>, window_params = [{pipeline_mode = #tpu.pipeline_mode<synchronous>, transform_indices = @transform_0, window_bounds = array<i64: 16, 256>}, {pipeline_mode = #tpu.pipeline_mode<synchronous>, transform_indices = @transform_1, window_bounds = array<i64: 8, 8, 64>}, {pipeline_mode = #tpu.pipeline_mode<synchronous>, transform_indices = @transform_2, window_bounds = array<i64: 8, 8, 64>}, {pipeline_mode = #tpu.pipeline_mode<synchronous>, transform_indices = @transform_3, window_bounds = array<i64: 8, 8, 64>}, {pipeline_mode = #tpu.pipeline_mode<synchronous>, transform_indices = @transform_4, window_bounds = array<i64: 8, 1, 8>}, {pipeline_mode = #tpu.pipeline_mode<synchronous>, transform_indices = @transform_5, window_bounds = array<i64: 64, 1024>}, {pipeline_mode = #tpu.pipeline_mode<synchronous>, transform_indices = @transform_6, window_bounds = array<i64: 1, 256>}, {pipeline_mode = #tpu.pipeline_mode<synchronous>, transform_indices = @transform_7, window_bounds = array<i64: 1, 256>}, {pipeline_mode = #tpu.pipeline_mode<synchronous>, transform_indices = @transform_8, window_bounds = array<i64: 1, 256>}, {pipeline_mode = #tpu.pipeline_mode<synchronous>, transform_indices = @transform_9, window_bounds = array<i64: 256, 1024>}, {pipeline_mode = #tpu.pipeline_mode<synchronous>, transform_indices = @transform_10, window_bounds = array<i64: 1, 1024>}, {pipeline_mode = #tpu.pipeline_mode<synchronous>, transform_indices = @transform_11, window_bounds = array<i64: 1024, 256>}, {pipeline_mode = #tpu.pipeline_mode<synchronous>, transform_indices = @transform_12, window_bounds = array<i64: 1, 256>}, {pipeline_mode = #tpu.pipeline_mode<synchronous>, transform_indices = @transform_13, window_bounds = array<i64: 1, 256>}, {pipeline_mode = #tpu.pipeline_mode<synchronous>, transform_indices = @transform_14, window_bounds = array<i64: 1, 256>}, {pipeline_mode = #tpu.pipeline_mode<synchronous>, transform_indices = @transform_15, window_bounds = array<i64: 16, 256>}]} {
    %c0 = arith.constant 0 : index
    %c0_0 = arith.constant 0 : index
    %0 = vector.load %arg6[%c0, %c0_0] : memref<64x1024xf32, #tpu.memory_space<vmem>>, vector<64x1024xf32>
    %c0_1 = arith.constant 0 : index
    %c0_2 = arith.constant 0 : index
    %1 = vector.load %arg7[%c0_1, %c0_2] : memref<1x256xf32, #tpu.memory_space<vmem>>, vector<1x256xf32>
    %c0_3 = arith.constant 0 : index
    %c0_4 = arith.constant 0 : index
    %c0_5 = arith.constant 0 : index
    %2 = vector.load %arg2[%c0_3, %c0_4, %c0_5] : memref<8x8x64xf32, #tpu.memory_space<vmem>>, vector<1x8x64xf32>
    %3 = vector.shape_cast %2 : vector<1x8x64xf32> to vector<8x64xf32>
    %c0_6 = arith.constant 0 : index
    %c0_7 = arith.constant 0 : index
    %c0_8 = arith.constant 0 : index
    %4 = vector.load %arg3[%c0_6, %c0_7, %c0_8] : memref<8x8x64xf32, #tpu.memory_space<vmem>>, vector<1x8x64xf32>
    %5 = vector.shape_cast %4 : vector<1x8x64xf32> to vector<8x64xf32>
    %c0_9 = arith.constant 0 : index
    %c0_10 = arith.constant 0 : index
    %c0_11 = arith.constant 0 : index
    %6 = vector.load %arg4[%c0_9, %c0_10, %c0_11] : memref<8x8x64xf32, #tpu.memory_space<vmem>>, vector<1x8x64xf32>
    %7 = vector.shape_cast %6 : vector<1x8x64xf32> to vector<8x64xf32>
    %cst = arith.constant dense<0.000000e+00> : vector<8x8xf32>
    %8 = tpu.matmul %3, %5, %cst {dimension_numbers = #tpu.dot_dimension_numbers<[1], [1], [0], [0], [0, 0, 1, 0], [], []>} : vector<8x64xf32>, vector<8x64xf32>, vector<8x8xf32> -> vector<8x8xf32>
    %c0_12 = arith.constant 0 : index
    %c0_13 = arith.constant 0 : index
    %c0_14 = arith.constant 0 : index
    %9 = vector.load %arg5[%c0_12, %c0_13, %c0_14] : memref<8x1x8xf32, #tpu.memory_space<vmem>>, vector<1x1x8xf32>
    %10 = vector.shape_cast %9 : vector<1x1x8xf32> to vector<1x8xf32>
    %11 = vector.broadcast %10 : vector<1x8xf32> to vector<8x8xf32>
    %12 = arith.addf %8, %11 : vector<8x8xf32>
    %cst_15 = arith.constant dense<0xFF800000> : vector<8xf32>
    %13 = vector.multi_reduction <maximumf>, %12, %cst_15 [1] : vector<8x8xf32> to vector<8xf32>
    %14 = vector.shape_cast %13 : vector<8xf32> to vector<8x1xf32>
    %15 = vector.broadcast %14 : vector<8x1xf32> to vector<8x8xf32>
    %16 = arith.subf %12, %15 : vector<8x8xf32>
    %17 = math.exp %16 : vector<8x8xf32>
    %cst_16 = arith.constant dense<0.000000e+00> : vector<8xf32>
    %18 = vector.multi_reduction <add>, %17, %cst_16 [1] : vector<8x8xf32> to vector<8xf32>
    %19 = vector.shape_cast %18 : vector<8xf32> to vector<8x1xf32>
    %20 = vector.broadcast %19 : vector<8x1xf32> to vector<8x8xf32>
    %21 = arith.divf %17, %20 : vector<8x8xf32>
    %cst_17 = arith.constant dense<0.000000e+00> : vector<8x64xf32>
    %22 = tpu.matmul %21, %7, %cst_17 {dimension_numbers = #tpu.dot_dimension_numbers<[1], [0], [0], [1], [0, 0, 1, 1], [], []>} : vector<8x8xf32>, vector<8x64xf32>, vector<8x64xf32> -> vector<8x64xf32>
    %cst_18 = arith.constant dense<0.000000e+00> : vector<8x1024xf32>
    %23 = tpu.matmul %22, %0, %cst_18 {dimension_numbers = #tpu.dot_dimension_numbers<[1], [0], [0], [1], [0, 0, 1, 1], [], []>} : vector<8x64xf32>, vector<64x1024xf32>, vector<8x1024xf32> -> vector<8x1024xf32>
    %24 = vector.extract_strided_slice %23 {offsets = [0, 0], sizes = [1, 256], strides = [1, 1]} : vector<8x1024xf32> to vector<1x256xf32>
    %25 = arith.addf %1, %24 : vector<1x256xf32>
    %26 = vector.extract_strided_slice %23 {offsets = [1, 256], sizes = [1, 256], strides = [1, 1]} : vector<8x1024xf32> to vector<1x256xf32>
    %27 = arith.addf %25, %26 : vector<1x256xf32>
    %28 = vector.extract_strided_slice %23 {offsets = [2, 512], sizes = [1, 256], strides = [1, 1]} : vector<8x1024xf32> to vector<1x256xf32>
    %29 = arith.addf %27, %28 : vector<1x256xf32>
    %30 = vector.extract_strided_slice %23 {offsets = [3, 768], sizes = [1, 256], strides = [1, 1]} : vector<8x1024xf32> to vector<1x256xf32>
    %31 = arith.addf %29, %30 : vector<1x256xf32>
    %c0_19 = arith.constant 0 : index
    %c0_20 = arith.constant 0 : index
    %32 = vector.load %arg17[%c0_19, %c0_20] : memref<16x256xf32, #tpu.memory_space<vmem>>, vector<1x256xf32>
    tpu.vector_store %arg17[%c0_19, %c0_20], %31 {strides = array<i32>} : memref<16x256xf32, #tpu.memory_space<vmem>>, vector<1x256xf32>,
    %33 = vector.extract_strided_slice %23 {offsets = [4, 0], sizes = [1, 256], strides = [1, 1]} : vector<8x1024xf32> to vector<1x256xf32>
    %34 = arith.addf %1, %33 : vector<1x256xf32>
    %35 = vector.extract_strided_slice %23 {offsets = [5, 256], sizes = [1, 256], strides = [1, 1]} : vector<8x1024xf32> to vector<1x256xf32>
    %36 = arith.addf %34, %35 : vector<1x256xf32>
    %37 = vector.extract_strided_slice %23 {offsets = [6, 512], sizes = [1, 256], strides = [1, 1]} : vector<8x1024xf32> to vector<1x256xf32>
    %38 = arith.addf %36, %37 : vector<1x256xf32>
    %39 = vector.extract_strided_slice %23 {offsets = [7, 768], sizes = [1, 256], strides = [1, 1]} : vector<8x1024xf32> to vector<1x256xf32>
    %40 = arith.addf %38, %39 : vector<1x256xf32>
    %c1 = arith.constant 1 : index
    %c0_21 = arith.constant 0 : index
    %41 = vector.load %arg17[%c1, %c0_21] : memref<16x256xf32, #tpu.memory_space<vmem>>, vector<1x256xf32>
    tpu.vector_store %arg17[%c1, %c0_21], %40 {strides = array<i32>} : memref<16x256xf32, #tpu.memory_space<vmem>>, vector<1x256xf32>,
    %c1_22 = arith.constant 1 : index
    %c0_23 = arith.constant 0 : index
    %c0_24 = arith.constant 0 : index
    %42 = vector.load %arg2[%c1_22, %c0_23, %c0_24] : memref<8x8x64xf32, #tpu.memory_space<vmem>>, vector<1x8x64xf32>
    %43 = vector.shape_cast %42 : vector<1x8x64xf32> to vector<8x64xf32>
    %c1_25 = arith.constant 1 : index
    %c0_26 = arith.constant 0 : index
    %c0_27 = arith.constant 0 : index
    %44 = vector.load %arg3[%c1_25, %c0_26, %c0_27] : memref<8x8x64xf32, #tpu.memory_space<vmem>>, vector<1x8x64xf32>
    %45 = vector.shape_cast %44 : vector<1x8x64xf32> to vector<8x64xf32>
    %c1_28 = arith.constant 1 : index
    %c0_29 = arith.constant 0 : index
    %c0_30 = arith.constant 0 : index
    %46 = vector.load %arg4[%c1_28, %c0_29, %c0_30] : memref<8x8x64xf32, #tpu.memory_space<vmem>>, vector<1x8x64xf32>
    %47 = vector.shape_cast %46 : vector<1x8x64xf32> to vector<8x64xf32>
    %cst_31 = arith.constant dense<0.000000e+00> : vector<8x8xf32>
    %48 = tpu.matmul %43, %45, %cst_31 {dimension_numbers = #tpu.dot_dimension_numbers<[1], [1], [0], [0], [0, 0, 1, 0], [], []>} : vector<8x64xf32>, vector<8x64xf32>, vector<8x8xf32> -> vector<8x8xf32>
    %c1_32 = arith.constant 1 : index
    %c0_33 = arith.constant 0 : index
    %c0_34 = arith.constant 0 : index
    %49 = vector.load %arg5[%c1_32, %c0_33, %c0_34] : memref<8x1x8xf32, #tpu.memory_space<vmem>>, vector<1x1x8xf32>
    %50 = vector.shape_cast %49 : vector<1x1x8xf32> to vector<1x8xf32>
    %51 = vector.broadcast %50 : vector<1x8xf32> to vector<8x8xf32>
    %52 = arith.addf %48, %51 : vector<8x8xf32>
    %cst_35 = arith.constant dense<0xFF800000> : vector<8xf32>
    %53 = vector.multi_reduction <maximumf>, %52, %cst_35 [1] : vector<8x8xf32> to vector<8xf32>
    %54 = vector.shape_cast %53 : vector<8xf32> to vector<8x1xf32>
    %55 = vector.broadcast %54 : vector<8x1xf32> to vector<8x8xf32>
    %56 = arith.subf %52, %55 : vector<8x8xf32>
    %57 = math.exp %56 : vector<8x8xf32>
    %cst_36 = arith.constant dense<0.000000e+00> : vector<8xf32>
    %58 = vector.multi_reduction <add>, %57, %cst_36 [1] : vector<8x8xf32> to vector<8xf32>
    %59 = vector.shape_cast %58 : vector<8xf32> to vector<8x1xf32>
    %60 = vector.broadcast %59 : vector<8x1xf32> to vector<8x8xf32>
    %61 = arith.divf %57, %60 : vector<8x8xf32>
    %cst_37 = arith.constant dense<0.000000e+00> : vector<8x64xf32>
    %62 = tpu.matmul %61, %47, %cst_37 {dimension_numbers = #tpu.dot_dimension_numbers<[1], [0], [0], [1], [0, 0, 1, 1], [], []>} : vector<8x8xf32>, vector<8x64xf32>, vector<8x64xf32> -> vector<8x64xf32>
    %cst_38 = arith.constant dense<0.000000e+00> : vector<8x1024xf32>
    %63 = tpu.matmul %62, %0, %cst_38 {dimension_numbers = #tpu.dot_dimension_numbers<[1], [0], [0], [1], [0, 0, 1, 1], [], []>} : vector<8x64xf32>, vector<64x1024xf32>, vector<8x1024xf32> -> vector<8x1024xf32>
    %64 = vector.extract_strided_slice %63 {offsets = [0, 0], sizes = [1, 256], strides = [1, 1]} : vector<8x1024xf32> to vector<1x256xf32>
    %65 = arith.addf %1, %64 : vector<1x256xf32>
    %66 = vector.extract_strided_slice %63 {offsets = [1, 256], sizes = [1, 256], strides = [1, 1]} : vector<8x1024xf32> to vector<1x256xf32>
    %67 = arith.addf %65, %66 : vector<1x256xf32>
    %68 = vector.extract_strided_slice %63 {offsets = [2, 512], sizes = [1, 256], strides = [1, 1]} : vector<8x1024xf32> to vector<1x256xf32>
    %69 = arith.addf %67, %68 : vector<1x256xf32>
    %70 = vector.extract_strided_slice %63 {offsets = [3, 768], sizes = [1, 256], strides = [1, 1]} : vector<8x1024xf32> to vector<1x256xf32>
    %71 = arith.addf %69, %70 : vector<1x256xf32>
    %c2 = arith.constant 2 : index
    %c0_39 = arith.constant 0 : index
    %72 = vector.load %arg17[%c2, %c0_39] : memref<16x256xf32, #tpu.memory_space<vmem>>, vector<1x256xf32>
    tpu.vector_store %arg17[%c2, %c0_39], %71 {strides = array<i32>} : memref<16x256xf32, #tpu.memory_space<vmem>>, vector<1x256xf32>,
    %73 = vector.extract_strided_slice %63 {offsets = [4, 0], sizes = [1, 256], strides = [1, 1]} : vector<8x1024xf32> to vector<1x256xf32>
    %74 = arith.addf %1, %73 : vector<1x256xf32>
    %75 = vector.extract_strided_slice %63 {offsets = [5, 256], sizes = [1, 256], strides = [1, 1]} : vector<8x1024xf32> to vector<1x256xf32>
    %76 = arith.addf %74, %75 : vector<1x256xf32>
    %77 = vector.extract_strided_slice %63 {offsets = [6, 512], sizes = [1, 256], strides = [1, 1]} : vector<8x1024xf32> to vector<1x256xf32>
    %78 = arith.addf %76, %77 : vector<1x256xf32>
    %79 = vector.extract_strided_slice %63 {offsets = [7, 768], sizes = [1, 256], strides = [1, 1]} : vector<8x1024xf32> to vector<1x256xf32>
    %80 = arith.addf %78, %79 : vector<1x256xf32>
    %c3 = arith.constant 3 : index
    %c0_40 = arith.constant 0 : index
    %81 = vector.load %arg17[%c3, %c0_40] : memref<16x256xf32, #tpu.memory_space<vmem>>, vector<1x256xf32>
    tpu.vector_store %arg17[%c3, %c0_40], %80 {strides = array<i32>} : memref<16x256xf32, #tpu.memory_space<vmem>>, vector<1x256xf32>,
    %c2_41 = arith.constant 2 : index
    %c0_42 = arith.constant 0 : index
    %c0_43 = arith.constant 0 : index
    %82 = vector.load %arg2[%c2_41, %c0_42, %c0_43] : memref<8x8x64xf32, #tpu.memory_space<vmem>>, vector<1x8x64xf32>
    %83 = vector.shape_cast %82 : vector<1x8x64xf32> to vector<8x64xf32>
    %c2_44 = arith.constant 2 : index
    %c0_45 = arith.constant 0 : index
    %c0_46 = arith.constant 0 : index
    %84 = vector.load %arg3[%c2_44, %c0_45, %c0_46] : memref<8x8x64xf32, #tpu.memory_space<vmem>>, vector<1x8x64xf32>
    %85 = vector.shape_cast %84 : vector<1x8x64xf32> to vector<8x64xf32>
    %c2_47 = arith.constant 2 : index
    %c0_48 = arith.constant 0 : index
    %c0_49 = arith.constant 0 : index
    %86 = vector.load %arg4[%c2_47, %c0_48, %c0_49] : memref<8x8x64xf32, #tpu.memory_space<vmem>>, vector<1x8x64xf32>
    %87 = vector.shape_cast %86 : vector<1x8x64xf32> to vector<8x64xf32>
    %cst_50 = arith.constant dense<0.000000e+00> : vector<8x8xf32>
    %88 = tpu.matmul %83, %85, %cst_50 {dimension_numbers = #tpu.dot_dimension_numbers<[1], [1], [0], [0], [0, 0, 1, 0], [], []>} : vector<8x64xf32>, vector<8x64xf32>, vector<8x8xf32> -> vector<8x8xf32>
    %c2_51 = arith.constant 2 : index
    %c0_52 = arith.constant 0 : index
    %c0_53 = arith.constant 0 : index
    %89 = vector.load %arg5[%c2_51, %c0_52, %c0_53] : memref<8x1x8xf32, #tpu.memory_space<vmem>>, vector<1x1x8xf32>
    %90 = vector.shape_cast %89 : vector<1x1x8xf32> to vector<1x8xf32>
    %91 = vector.broadcast %90 : vector<1x8xf32> to vector<8x8xf32>
    %92 = arith.addf %88, %91 : vector<8x8xf32>
    %cst_54 = arith.constant dense<0xFF800000> : vector<8xf32>
    %93 = vector.multi_reduction <maximumf>, %92, %cst_54 [1] : vector<8x8xf32> to vector<8xf32>
    %94 = vector.shape_cast %93 : vector<8xf32> to vector<8x1xf32>
    %95 = vector.broadcast %94 : vector<8x1xf32> to vector<8x8xf32>
    %96 = arith.subf %92, %95 : vector<8x8xf32>
    %97 = math.exp %96 : vector<8x8xf32>
    %cst_55 = arith.constant dense<0.000000e+00> : vector<8xf32>
    %98 = vector.multi_reduction <add>, %97, %cst_55 [1] : vector<8x8xf32> to vector<8xf32>
    %99 = vector.shape_cast %98 : vector<8xf32> to vector<8x1xf32>
    %100 = vector.broadcast %99 : vector<8x1xf32> to vector<8x8xf32>
    %101 = arith.divf %97, %100 : vector<8x8xf32>
    %cst_56 = arith.constant dense<0.000000e+00> : vector<8x64xf32>
    %102 = tpu.matmul %101, %87, %cst_56 {dimension_numbers = #tpu.dot_dimension_numbers<[1], [0], [0], [1], [0, 0, 1, 1], [], []>} : vector<8x8xf32>, vector<8x64xf32>, vector<8x64xf32> -> vector<8x64xf32>
    %cst_57 = arith.constant dense<0.000000e+00> : vector<8x1024xf32>
    %103 = tpu.matmul %102, %0, %cst_57 {dimension_numbers = #tpu.dot_dimension_numbers<[1], [0], [0], [1], [0, 0, 1, 1], [], []>} : vector<8x64xf32>, vector<64x1024xf32>, vector<8x1024xf32> -> vector<8x1024xf32>
    %104 = vector.extract_strided_slice %103 {offsets = [0, 0], sizes = [1, 256], strides = [1, 1]} : vector<8x1024xf32> to vector<1x256xf32>
    %105 = arith.addf %1, %104 : vector<1x256xf32>
    %106 = vector.extract_strided_slice %103 {offsets = [1, 256], sizes = [1, 256], strides = [1, 1]} : vector<8x1024xf32> to vector<1x256xf32>
    %107 = arith.addf %105, %106 : vector<1x256xf32>
    %108 = vector.extract_strided_slice %103 {offsets = [2, 512], sizes = [1, 256], strides = [1, 1]} : vector<8x1024xf32> to vector<1x256xf32>
    %109 = arith.addf %107, %108 : vector<1x256xf32>
    %110 = vector.extract_strided_slice %103 {offsets = [3, 768], sizes = [1, 256], strides = [1, 1]} : vector<8x1024xf32> to vector<1x256xf32>
    %111 = arith.addf %109, %110 : vector<1x256xf32>
    %c4 = arith.constant 4 : index
    %c0_58 = arith.constant 0 : index
    %112 = vector.load %arg17[%c4, %c0_58] : memref<16x256xf32, #tpu.memory_space<vmem>>, vector<1x256xf32>
    tpu.vector_store %arg17[%c4, %c0_58], %111 {strides = array<i32>} : memref<16x256xf32, #tpu.memory_space<vmem>>, vector<1x256xf32>,
    %113 = vector.extract_strided_slice %103 {offsets = [4, 0], sizes = [1, 256], strides = [1, 1]} : vector<8x1024xf32> to vector<1x256xf32>
    %114 = arith.addf %1, %113 : vector<1x256xf32>
    %115 = vector.extract_strided_slice %103 {offsets = [5, 256], sizes = [1, 256], strides = [1, 1]} : vector<8x1024xf32> to vector<1x256xf32>
    %116 = arith.addf %114, %115 : vector<1x256xf32>
    %117 = vector.extract_strided_slice %103 {offsets = [6, 512], sizes = [1, 256], strides = [1, 1]} : vector<8x1024xf32> to vector<1x256xf32>
    %118 = arith.addf %116, %117 : vector<1x256xf32>
    %119 = vector.extract_strided_slice %103 {offsets = [7, 768], sizes = [1, 256], strides = [1, 1]} : vector<8x1024xf32> to vector<1x256xf32>
    %120 = arith.addf %118, %119 : vector<1x256xf32>
    %c5 = arith.constant 5 : index
    %c0_59 = arith.constant 0 : index
    %121 = vector.load %arg17[%c5, %c0_59] : memref<16x256xf32, #tpu.memory_space<vmem>>, vector<1x256xf32>
    tpu.vector_store %arg17[%c5, %c0_59], %120 {strides = array<i32>} : memref<16x256xf32, #tpu.memory_space<vmem>>, vector<1x256xf32>,
    %c3_60 = arith.constant 3 : index
    %c0_61 = arith.constant 0 : index
    %c0_62 = arith.constant 0 : index
    %122 = vector.load %arg2[%c3_60, %c0_61, %c0_62] : memref<8x8x64xf32, #tpu.memory_space<vmem>>, vector<1x8x64xf32>
    %123 = vector.shape_cast %122 : vector<1x8x64xf32> to vector<8x64xf32>
    %c3_63 = arith.constant 3 : index
    %c0_64 = arith.constant 0 : index
    %c0_65 = arith.constant 0 : index
    %124 = vector.load %arg3[%c3_63, %c0_64, %c0_65] : memref<8x8x64xf32, #tpu.memory_space<vmem>>, vector<1x8x64xf32>
    %125 = vector.shape_cast %124 : vector<1x8x64xf32> to vector<8x64xf32>
    %c3_66 = arith.constant 3 : index
    %c0_67 = arith.constant 0 : index
    %c0_68 = arith.constant 0 : index
    %126 = vector.load %arg4[%c3_66, %c0_67, %c0_68] : memref<8x8x64xf32, #tpu.memory_space<vmem>>, vector<1x8x64xf32>
    %127 = vector.shape_cast %126 : vector<1x8x64xf32> to vector<8x64xf32>
    %cst_69 = arith.constant dense<0.000000e+00> : vector<8x8xf32>
    %128 = tpu.matmul %123, %125, %cst_69 {dimension_numbers = #tpu.dot_dimension_numbers<[1], [1], [0], [0], [0, 0, 1, 0], [], []>} : vector<8x64xf32>, vector<8x64xf32>, vector<8x8xf32> -> vector<8x8xf32>
    %c3_70 = arith.constant 3 : index
    %c0_71 = arith.constant 0 : index
    %c0_72 = arith.constant 0 : index
    %129 = vector.load %arg5[%c3_70, %c0_71, %c0_72] : memref<8x1x8xf32, #tpu.memory_space<vmem>>, vector<1x1x8xf32>
    %130 = vector.shape_cast %129 : vector<1x1x8xf32> to vector<1x8xf32>
    %131 = vector.broadcast %130 : vector<1x8xf32> to vector<8x8xf32>
    %132 = arith.addf %128, %131 : vector<8x8xf32>
    %cst_73 = arith.constant dense<0xFF800000> : vector<8xf32>
    %133 = vector.multi_reduction <maximumf>, %132, %cst_73 [1] : vector<8x8xf32> to vector<8xf32>
    %134 = vector.shape_cast %133 : vector<8xf32> to vector<8x1xf32>
    %135 = vector.broadcast %134 : vector<8x1xf32> to vector<8x8xf32>
    %136 = arith.subf %132, %135 : vector<8x8xf32>
    %137 = math.exp %136 : vector<8x8xf32>
    %cst_74 = arith.constant dense<0.000000e+00> : vector<8xf32>
    %138 = vector.multi_reduction <add>, %137, %cst_74 [1] : vector<8x8xf32> to vector<8xf32>
    %139 = vector.shape_cast %138 : vector<8xf32> to vector<8x1xf32>
    %140 = vector.broadcast %139 : vector<8x1xf32> to vector<8x8xf32>
    %141 = arith.divf %137, %140 : vector<8x8xf32>
    %cst_75 = arith.constant dense<0.000000e+00> : vector<8x64xf32>
    %142 = tpu.matmul %141, %127, %cst_75 {dimension_numbers = #tpu.dot_dimension_numbers<[1], [0], [0], [1], [0, 0, 1, 1], [], []>} : vector<8x8xf32>, vector<8x64xf32>, vector<8x64xf32> -> vector<8x64xf32>
    %cst_76 = arith.constant dense<0.000000e+00> : vector<8x1024xf32>
    %143 = tpu.matmul %142, %0, %cst_76 {dimension_numbers = #tpu.dot_dimension_numbers<[1], [0], [0], [1], [0, 0, 1, 1], [], []>} : vector<8x64xf32>, vector<64x1024xf32>, vector<8x1024xf32> -> vector<8x1024xf32>
    %144 = vector.extract_strided_slice %143 {offsets = [0, 0], sizes = [1, 256], strides = [1, 1]} : vector<8x1024xf32> to vector<1x256xf32>
    %145 = arith.addf %1, %144 : vector<1x256xf32>
    %146 = vector.extract_strided_slice %143 {offsets = [1, 256], sizes = [1, 256], strides = [1, 1]} : vector<8x1024xf32> to vector<1x256xf32>
    %147 = arith.addf %145, %146 : vector<1x256xf32>
    %148 = vector.extract_strided_slice %143 {offsets = [2, 512], sizes = [1, 256], strides = [1, 1]} : vector<8x1024xf32> to vector<1x256xf32>
    %149 = arith.addf %147, %148 : vector<1x256xf32>
    %150 = vector.extract_strided_slice %143 {offsets = [3, 768], sizes = [1, 256], strides = [1, 1]} : vector<8x1024xf32> to vector<1x256xf32>
    %151 = arith.addf %149, %150 : vector<1x256xf32>
    %c6 = arith.constant 6 : index
    %c0_77 = arith.constant 0 : index
    %152 = vector.load %arg17[%c6, %c0_77] : memref<16x256xf32, #tpu.memory_space<vmem>>, vector<1x256xf32>
    tpu.vector_store %arg17[%c6, %c0_77], %151 {strides = array<i32>} : memref<16x256xf32, #tpu.memory_space<vmem>>, vector<1x256xf32>,
    %153 = vector.extract_strided_slice %143 {offsets = [4, 0], sizes = [1, 256], strides = [1, 1]} : vector<8x1024xf32> to vector<1x256xf32>
    %154 = arith.addf %1, %153 : vector<1x256xf32>
    %155 = vector.extract_strided_slice %143 {offsets = [5, 256], sizes = [1, 256], strides = [1, 1]} : vector<8x1024xf32> to vector<1x256xf32>
    %156 = arith.addf %154, %155 : vector<1x256xf32>
    %157 = vector.extract_strided_slice %143 {offsets = [6, 512], sizes = [1, 256], strides = [1, 1]} : vector<8x1024xf32> to vector<1x256xf32>
    %158 = arith.addf %156, %157 : vector<1x256xf32>
    %159 = vector.extract_strided_slice %143 {offsets = [7, 768], sizes = [1, 256], strides = [1, 1]} : vector<8x1024xf32> to vector<1x256xf32>
    %160 = arith.addf %158, %159 : vector<1x256xf32>
    %c7 = arith.constant 7 : index
    %c0_78 = arith.constant 0 : index
    %161 = vector.load %arg17[%c7, %c0_78] : memref<16x256xf32, #tpu.memory_space<vmem>>, vector<1x256xf32>
    tpu.vector_store %arg17[%c7, %c0_78], %160 {strides = array<i32>} : memref<16x256xf32, #tpu.memory_space<vmem>>, vector<1x256xf32>,
    %c4_79 = arith.constant 4 : index
    %c0_80 = arith.constant 0 : index
    %c0_81 = arith.constant 0 : index
    %162 = vector.load %arg2[%c4_79, %c0_80, %c0_81] : memref<8x8x64xf32, #tpu.memory_space<vmem>>, vector<1x8x64xf32>
    %163 = vector.shape_cast %162 : vector<1x8x64xf32> to vector<8x64xf32>
    %c4_82 = arith.constant 4 : index
    %c0_83 = arith.constant 0 : index
    %c0_84 = arith.constant 0 : index
    %164 = vector.load %arg3[%c4_82, %c0_83, %c0_84] : memref<8x8x64xf32, #tpu.memory_space<vmem>>, vector<1x8x64xf32>
    %165 = vector.shape_cast %164 : vector<1x8x64xf32> to vector<8x64xf32>
    %c4_85 = arith.constant 4 : index
    %c0_86 = arith.constant 0 : index
    %c0_87 = arith.constant 0 : index
    %166 = vector.load %arg4[%c4_85, %c0_86, %c0_87] : memref<8x8x64xf32, #tpu.memory_space<vmem>>, vector<1x8x64xf32>
    %167 = vector.shape_cast %166 : vector<1x8x64xf32> to vector<8x64xf32>
    %cst_88 = arith.constant dense<0.000000e+00> : vector<8x8xf32>
    %168 = tpu.matmul %163, %165, %cst_88 {dimension_numbers = #tpu.dot_dimension_numbers<[1], [1], [0], [0], [0, 0, 1, 0], [], []>} : vector<8x64xf32>, vector<8x64xf32>, vector<8x8xf32> -> vector<8x8xf32>
    %c4_89 = arith.constant 4 : index
    %c0_90 = arith.constant 0 : index
    %c0_91 = arith.constant 0 : index
    %169 = vector.load %arg5[%c4_89, %c0_90, %c0_91] : memref<8x1x8xf32, #tpu.memory_space<vmem>>, vector<1x1x8xf32>
    %170 = vector.shape_cast %169 : vector<1x1x8xf32> to vector<1x8xf32>
    %171 = vector.broadcast %170 : vector<1x8xf32> to vector<8x8xf32>
    %172 = arith.addf %168, %171 : vector<8x8xf32>
    %cst_92 = arith.constant dense<0xFF800000> : vector<8xf32>
    %173 = vector.multi_reduction <maximumf>, %172, %cst_92 [1] : vector<8x8xf32> to vector<8xf32>
    %174 = vector.shape_cast %173 : vector<8xf32> to vector<8x1xf32>
    %175 = vector.broadcast %174 : vector<8x1xf32> to vector<8x8xf32>
    %176 = arith.subf %172, %175 : vector<8x8xf32>
    %177 = math.exp %176 : vector<8x8xf32>
    %cst_93 = arith.constant dense<0.000000e+00> : vector<8xf32>
    %178 = vector.multi_reduction <add>, %177, %cst_93 [1] : vector<8x8xf32> to vector<8xf32>
    %179 = vector.shape_cast %178 : vector<8xf32> to vector<8x1xf32>
    %180 = vector.broadcast %179 : vector<8x1xf32> to vector<8x8xf32>
    %181 = arith.divf %177, %180 : vector<8x8xf32>
    %cst_94 = arith.constant dense<0.000000e+00> : vector<8x64xf32>
    %182 = tpu.matmul %181, %167, %cst_94 {dimension_numbers = #tpu.dot_dimension_numbers<[1], [0], [0], [1], [0, 0, 1, 1], [], []>} : vector<8x8xf32>, vector<8x64xf32>, vector<8x64xf32> -> vector<8x64xf32>
    %cst_95 = arith.constant dense<0.000000e+00> : vector<8x1024xf32>
    %183 = tpu.matmul %182, %0, %cst_95 {dimension_numbers = #tpu.dot_dimension_numbers<[1], [0], [0], [1], [0, 0, 1, 1], [], []>} : vector<8x64xf32>, vector<64x1024xf32>, vector<8x1024xf32> -> vector<8x1024xf32>
    %184 = vector.extract_strided_slice %183 {offsets = [0, 0], sizes = [1, 256], strides = [1, 1]} : vector<8x1024xf32> to vector<1x256xf32>
    %185 = arith.addf %1, %184 : vector<1x256xf32>
    %186 = vector.extract_strided_slice %183 {offsets = [1, 256], sizes = [1, 256], strides = [1, 1]} : vector<8x1024xf32> to vector<1x256xf32>
    %187 = arith.addf %185, %186 : vector<1x256xf32>
    %188 = vector.extract_strided_slice %183 {offsets = [2, 512], sizes = [1, 256], strides = [1, 1]} : vector<8x1024xf32> to vector<1x256xf32>
    %189 = arith.addf %187, %188 : vector<1x256xf32>
    %190 = vector.extract_strided_slice %183 {offsets = [3, 768], sizes = [1, 256], strides = [1, 1]} : vector<8x1024xf32> to vector<1x256xf32>
    %191 = arith.addf %189, %190 : vector<1x256xf32>
    %c8 = arith.constant 8 : index
    %c0_96 = arith.constant 0 : index
    %192 = vector.load %arg17[%c8, %c0_96] : memref<16x256xf32, #tpu.memory_space<vmem>>, vector<1x256xf32>
    tpu.vector_store %arg17[%c8, %c0_96], %191 {strides = array<i32>} : memref<16x256xf32, #tpu.memory_space<vmem>>, vector<1x256xf32>,
    %193 = vector.extract_strided_slice %183 {offsets = [4, 0], sizes = [1, 256], strides = [1, 1]} : vector<8x1024xf32> to vector<1x256xf32>
    %194 = arith.addf %1, %193 : vector<1x256xf32>
    %195 = vector.extract_strided_slice %183 {offsets = [5, 256], sizes = [1, 256], strides = [1, 1]} : vector<8x1024xf32> to vector<1x256xf32>
    %196 = arith.addf %194, %195 : vector<1x256xf32>
    %197 = vector.extract_strided_slice %183 {offsets = [6, 512], sizes = [1, 256], strides = [1, 1]} : vector<8x1024xf32> to vector<1x256xf32>
    %198 = arith.addf %196, %197 : vector<1x256xf32>
    %199 = vector.extract_strided_slice %183 {offsets = [7, 768], sizes = [1, 256], strides = [1, 1]} : vector<8x1024xf32> to vector<1x256xf32>
    %200 = arith.addf %198, %199 : vector<1x256xf32>
    %c9 = arith.constant 9 : index
    %c0_97 = arith.constant 0 : index
    %201 = vector.load %arg17[%c9, %c0_97] : memref<16x256xf32, #tpu.memory_space<vmem>>, vector<1x256xf32>
    tpu.vector_store %arg17[%c9, %c0_97], %200 {strides = array<i32>} : memref<16x256xf32, #tpu.memory_space<vmem>>, vector<1x256xf32>,
    %c5_98 = arith.constant 5 : index
    %c0_99 = arith.constant 0 : index
    %c0_100 = arith.constant 0 : index
    %202 = vector.load %arg2[%c5_98, %c0_99, %c0_100] : memref<8x8x64xf32, #tpu.memory_space<vmem>>, vector<1x8x64xf32>
    %203 = vector.shape_cast %202 : vector<1x8x64xf32> to vector<8x64xf32>
    %c5_101 = arith.constant 5 : index
    %c0_102 = arith.constant 0 : index
    %c0_103 = arith.constant 0 : index
    %204 = vector.load %arg3[%c5_101, %c0_102, %c0_103] : memref<8x8x64xf32, #tpu.memory_space<vmem>>, vector<1x8x64xf32>
    %205 = vector.shape_cast %204 : vector<1x8x64xf32> to vector<8x64xf32>
    %c5_104 = arith.constant 5 : index
    %c0_105 = arith.constant 0 : index
    %c0_106 = arith.constant 0 : index
    %206 = vector.load %arg4[%c5_104, %c0_105, %c0_106] : memref<8x8x64xf32, #tpu.memory_space<vmem>>, vector<1x8x64xf32>
    %207 = vector.shape_cast %206 : vector<1x8x64xf32> to vector<8x64xf32>
    %cst_107 = arith.constant dense<0.000000e+00> : vector<8x8xf32>
    %208 = tpu.matmul %203, %205, %cst_107 {dimension_numbers = #tpu.dot_dimension_numbers<[1], [1], [0], [0], [0, 0, 1, 0], [], []>} : vector<8x64xf32>, vector<8x64xf32>, vector<8x8xf32> -> vector<8x8xf32>
    %c5_108 = arith.constant 5 : index
    %c0_109 = arith.constant 0 : index
    %c0_110 = arith.constant 0 : index
    %209 = vector.load %arg5[%c5_108, %c0_109, %c0_110] : memref<8x1x8xf32, #tpu.memory_space<vmem>>, vector<1x1x8xf32>
    %210 = vector.shape_cast %209 : vector<1x1x8xf32> to vector<1x8xf32>
    %211 = vector.broadcast %210 : vector<1x8xf32> to vector<8x8xf32>
    %212 = arith.addf %208, %211 : vector<8x8xf32>
    %cst_111 = arith.constant dense<0xFF800000> : vector<8xf32>
    %213 = vector.multi_reduction <maximumf>, %212, %cst_111 [1] : vector<8x8xf32> to vector<8xf32>
    %214 = vector.shape_cast %213 : vector<8xf32> to vector<8x1xf32>
    %215 = vector.broadcast %214 : vector<8x1xf32> to vector<8x8xf32>
    %216 = arith.subf %212, %215 : vector<8x8xf32>
    %217 = math.exp %216 : vector<8x8xf32>
    %cst_112 = arith.constant dense<0.000000e+00> : vector<8xf32>
    %218 = vector.multi_reduction <add>, %217, %cst_112 [1] : vector<8x8xf32> to vector<8xf32>
    %219 = vector.shape_cast %218 : vector<8xf32> to vector<8x1xf32>
    %220 = vector.broadcast %219 : vector<8x1xf32> to vector<8x8xf32>
    %221 = arith.divf %217, %220 : vector<8x8xf32>
    %cst_113 = arith.constant dense<0.000000e+00> : vector<8x64xf32>
    %222 = tpu.matmul %221, %207, %cst_113 {dimension_numbers = #tpu.dot_dimension_numbers<[1], [0], [0], [1], [0, 0, 1, 1], [], []>} : vector<8x8xf32>, vector<8x64xf32>, vector<8x64xf32> -> vector<8x64xf32>
    %cst_114 = arith.constant dense<0.000000e+00> : vector<8x1024xf32>
    %223 = tpu.matmul %222, %0, %cst_114 {dimension_numbers = #tpu.dot_dimension_numbers<[1], [0], [0], [1], [0, 0, 1, 1], [], []>} : vector<8x64xf32>, vector<64x1024xf32>, vector<8x1024xf32> -> vector<8x1024xf32>
    %224 = vector.extract_strided_slice %223 {offsets = [0, 0], sizes = [1, 256], strides = [1, 1]} : vector<8x1024xf32> to vector<1x256xf32>
    %225 = arith.addf %1, %224 : vector<1x256xf32>
    %226 = vector.extract_strided_slice %223 {offsets = [1, 256], sizes = [1, 256], strides = [1, 1]} : vector<8x1024xf32> to vector<1x256xf32>
    %227 = arith.addf %225, %226 : vector<1x256xf32>
    %228 = vector.extract_strided_slice %223 {offsets = [2, 512], sizes = [1, 256], strides = [1, 1]} : vector<8x1024xf32> to vector<1x256xf32>
    %229 = arith.addf %227, %228 : vector<1x256xf32>
    %230 = vector.extract_strided_slice %223 {offsets = [3, 768], sizes = [1, 256], strides = [1, 1]} : vector<8x1024xf32> to vector<1x256xf32>
    %231 = arith.addf %229, %230 : vector<1x256xf32>
    %c10 = arith.constant 10 : index
    %c0_115 = arith.constant 0 : index
    %232 = vector.load %arg17[%c10, %c0_115] : memref<16x256xf32, #tpu.memory_space<vmem>>, vector<1x256xf32>
    tpu.vector_store %arg17[%c10, %c0_115], %231 {strides = array<i32>} : memref<16x256xf32, #tpu.memory_space<vmem>>, vector<1x256xf32>,
    %233 = vector.extract_strided_slice %223 {offsets = [4, 0], sizes = [1, 256], strides = [1, 1]} : vector<8x1024xf32> to vector<1x256xf32>
    %234 = arith.addf %1, %233 : vector<1x256xf32>
    %235 = vector.extract_strided_slice %223 {offsets = [5, 256], sizes = [1, 256], strides = [1, 1]} : vector<8x1024xf32> to vector<1x256xf32>
    %236 = arith.addf %234, %235 : vector<1x256xf32>
    %237 = vector.extract_strided_slice %223 {offsets = [6, 512], sizes = [1, 256], strides = [1, 1]} : vector<8x1024xf32> to vector<1x256xf32>
    %238 = arith.addf %236, %237 : vector<1x256xf32>
    %239 = vector.extract_strided_slice %223 {offsets = [7, 768], sizes = [1, 256], strides = [1, 1]} : vector<8x1024xf32> to vector<1x256xf32>
    %240 = arith.addf %238, %239 : vector<1x256xf32>
    %c11 = arith.constant 11 : index
    %c0_116 = arith.constant 0 : index
    %241 = vector.load %arg17[%c11, %c0_116] : memref<16x256xf32, #tpu.memory_space<vmem>>, vector<1x256xf32>
    tpu.vector_store %arg17[%c11, %c0_116], %240 {strides = array<i32>} : memref<16x256xf32, #tpu.memory_space<vmem>>, vector<1x256xf32>,
    %c6_117 = arith.constant 6 : index
    %c0_118 = arith.constant 0 : index
    %c0_119 = arith.constant 0 : index
    %242 = vector.load %arg2[%c6_117, %c0_118, %c0_119] : memref<8x8x64xf32, #tpu.memory_space<vmem>>, vector<1x8x64xf32>
    %243 = vector.shape_cast %242 : vector<1x8x64xf32> to vector<8x64xf32>
    %c6_120 = arith.constant 6 : index
    %c0_121 = arith.constant 0 : index
    %c0_122 = arith.constant 0 : index
    %244 = vector.load %arg3[%c6_120, %c0_121, %c0_122] : memref<8x8x64xf32, #tpu.memory_space<vmem>>, vector<1x8x64xf32>
    %245 = vector.shape_cast %244 : vector<1x8x64xf32> to vector<8x64xf32>
    %c6_123 = arith.constant 6 : index
    %c0_124 = arith.constant 0 : index
    %c0_125 = arith.constant 0 : index
    %246 = vector.load %arg4[%c6_123, %c0_124, %c0_125] : memref<8x8x64xf32, #tpu.memory_space<vmem>>, vector<1x8x64xf32>
    %247 = vector.shape_cast %246 : vector<1x8x64xf32> to vector<8x64xf32>
    %cst_126 = arith.constant dense<0.000000e+00> : vector<8x8xf32>
    %248 = tpu.matmul %243, %245, %cst_126 {dimension_numbers = #tpu.dot_dimension_numbers<[1], [1], [0], [0], [0, 0, 1, 0], [], []>} : vector<8x64xf32>, vector<8x64xf32>, vector<8x8xf32> -> vector<8x8xf32>
    %c6_127 = arith.constant 6 : index
    %c0_128 = arith.constant 0 : index
    %c0_129 = arith.constant 0 : index
    %249 = vector.load %arg5[%c6_127, %c0_128, %c0_129] : memref<8x1x8xf32, #tpu.memory_space<vmem>>, vector<1x1x8xf32>
    %250 = vector.shape_cast %249 : vector<1x1x8xf32> to vector<1x8xf32>
    %251 = vector.broadcast %250 : vector<1x8xf32> to vector<8x8xf32>
    %252 = arith.addf %248, %251 : vector<8x8xf32>
    %cst_130 = arith.constant dense<0xFF800000> : vector<8xf32>
    %253 = vector.multi_reduction <maximumf>, %252, %cst_130 [1] : vector<8x8xf32> to vector<8xf32>
    %254 = vector.shape_cast %253 : vector<8xf32> to vector<8x1xf32>
    %255 = vector.broadcast %254 : vector<8x1xf32> to vector<8x8xf32>
    %256 = arith.subf %252, %255 : vector<8x8xf32>
    %257 = math.exp %256 : vector<8x8xf32>
    %cst_131 = arith.constant dense<0.000000e+00> : vector<8xf32>
    %258 = vector.multi_reduction <add>, %257, %cst_131 [1] : vector<8x8xf32> to vector<8xf32>
    %259 = vector.shape_cast %258 : vector<8xf32> to vector<8x1xf32>
    %260 = vector.broadcast %259 : vector<8x1xf32> to vector<8x8xf32>
    %261 = arith.divf %257, %260 : vector<8x8xf32>
    %cst_132 = arith.constant dense<0.000000e+00> : vector<8x64xf32>
    %262 = tpu.matmul %261, %247, %cst_132 {dimension_numbers = #tpu.dot_dimension_numbers<[1], [0], [0], [1], [0, 0, 1, 1], [], []>} : vector<8x8xf32>, vector<8x64xf32>, vector<8x64xf32> -> vector<8x64xf32>
    %cst_133 = arith.constant dense<0.000000e+00> : vector<8x1024xf32>
    %263 = tpu.matmul %262, %0, %cst_133 {dimension_numbers = #tpu.dot_dimension_numbers<[1], [0], [0], [1], [0, 0, 1, 1], [], []>} : vector<8x64xf32>, vector<64x1024xf32>, vector<8x1024xf32> -> vector<8x1024xf32>
    %264 = vector.extract_strided_slice %263 {offsets = [0, 0], sizes = [1, 256], strides = [1, 1]} : vector<8x1024xf32> to vector<1x256xf32>
    %265 = arith.addf %1, %264 : vector<1x256xf32>
    %266 = vector.extract_strided_slice %263 {offsets = [1, 256], sizes = [1, 256], strides = [1, 1]} : vector<8x1024xf32> to vector<1x256xf32>
    %267 = arith.addf %265, %266 : vector<1x256xf32>
    %268 = vector.extract_strided_slice %263 {offsets = [2, 512], sizes = [1, 256], strides = [1, 1]} : vector<8x1024xf32> to vector<1x256xf32>
    %269 = arith.addf %267, %268 : vector<1x256xf32>
    %270 = vector.extract_strided_slice %263 {offsets = [3, 768], sizes = [1, 256], strides = [1, 1]} : vector<8x1024xf32> to vector<1x256xf32>
    %271 = arith.addf %269, %270 : vector<1x256xf32>
    %c12 = arith.constant 12 : index
    %c0_134 = arith.constant 0 : index
    %272 = vector.load %arg17[%c12, %c0_134] : memref<16x256xf32, #tpu.memory_space<vmem>>, vector<1x256xf32>
    tpu.vector_store %arg17[%c12, %c0_134], %271 {strides = array<i32>} : memref<16x256xf32, #tpu.memory_space<vmem>>, vector<1x256xf32>,
    %273 = vector.extract_strided_slice %263 {offsets = [4, 0], sizes = [1, 256], strides = [1, 1]} : vector<8x1024xf32> to vector<1x256xf32>
    %274 = arith.addf %1, %273 : vector<1x256xf32>
    %275 = vector.extract_strided_slice %263 {offsets = [5, 256], sizes = [1, 256], strides = [1, 1]} : vector<8x1024xf32> to vector<1x256xf32>
    %276 = arith.addf %274, %275 : vector<1x256xf32>
    %277 = vector.extract_strided_slice %263 {offsets = [6, 512], sizes = [1, 256], strides = [1, 1]} : vector<8x1024xf32> to vector<1x256xf32>
    %278 = arith.addf %276, %277 : vector<1x256xf32>
    %279 = vector.extract_strided_slice %263 {offsets = [7, 768], sizes = [1, 256], strides = [1, 1]} : vector<8x1024xf32> to vector<1x256xf32>
    %280 = arith.addf %278, %279 : vector<1x256xf32>
    %c13 = arith.constant 13 : index
    %c0_135 = arith.constant 0 : index
    %281 = vector.load %arg17[%c13, %c0_135] : memref<16x256xf32, #tpu.memory_space<vmem>>, vector<1x256xf32>
    tpu.vector_store %arg17[%c13, %c0_135], %280 {strides = array<i32>} : memref<16x256xf32, #tpu.memory_space<vmem>>, vector<1x256xf32>,
    %c7_136 = arith.constant 7 : index
    %c0_137 = arith.constant 0 : index
    %c0_138 = arith.constant 0 : index
    %282 = vector.load %arg2[%c7_136, %c0_137, %c0_138] : memref<8x8x64xf32, #tpu.memory_space<vmem>>, vector<1x8x64xf32>
    %283 = vector.shape_cast %282 : vector<1x8x64xf32> to vector<8x64xf32>
    %c7_139 = arith.constant 7 : index
    %c0_140 = arith.constant 0 : index
    %c0_141 = arith.constant 0 : index
    %284 = vector.load %arg3[%c7_139, %c0_140, %c0_141] : memref<8x8x64xf32, #tpu.memory_space<vmem>>, vector<1x8x64xf32>
    %285 = vector.shape_cast %284 : vector<1x8x64xf32> to vector<8x64xf32>
    %c7_142 = arith.constant 7 : index
    %c0_143 = arith.constant 0 : index
    %c0_144 = arith.constant 0 : index
    %286 = vector.load %arg4[%c7_142, %c0_143, %c0_144] : memref<8x8x64xf32, #tpu.memory_space<vmem>>, vector<1x8x64xf32>
    %287 = vector.shape_cast %286 : vector<1x8x64xf32> to vector<8x64xf32>
    %cst_145 = arith.constant dense<0.000000e+00> : vector<8x8xf32>
    %288 = tpu.matmul %283, %285, %cst_145 {dimension_numbers = #tpu.dot_dimension_numbers<[1], [1], [0], [0], [0, 0, 1, 0], [], []>} : vector<8x64xf32>, vector<8x64xf32>, vector<8x8xf32> -> vector<8x8xf32>
    %c7_146 = arith.constant 7 : index
    %c0_147 = arith.constant 0 : index
    %c0_148 = arith.constant 0 : index
    %289 = vector.load %arg5[%c7_146, %c0_147, %c0_148] : memref<8x1x8xf32, #tpu.memory_space<vmem>>, vector<1x1x8xf32>
    %290 = vector.shape_cast %289 : vector<1x1x8xf32> to vector<1x8xf32>
    %291 = vector.broadcast %290 : vector<1x8xf32> to vector<8x8xf32>
    %292 = arith.addf %288, %291 : vector<8x8xf32>
    %cst_149 = arith.constant dense<0xFF800000> : vector<8xf32>
    %293 = vector.multi_reduction <maximumf>, %292, %cst_149 [1] : vector<8x8xf32> to vector<8xf32>
    %294 = vector.shape_cast %293 : vector<8xf32> to vector<8x1xf32>
    %295 = vector.broadcast %294 : vector<8x1xf32> to vector<8x8xf32>
    %296 = arith.subf %292, %295 : vector<8x8xf32>
    %297 = math.exp %296 : vector<8x8xf32>
    %cst_150 = arith.constant dense<0.000000e+00> : vector<8xf32>
    %298 = vector.multi_reduction <add>, %297, %cst_150 [1] : vector<8x8xf32> to vector<8xf32>
    %299 = vector.shape_cast %298 : vector<8xf32> to vector<8x1xf32>
    %300 = vector.broadcast %299 : vector<8x1xf32> to vector<8x8xf32>
    %301 = arith.divf %297, %300 : vector<8x8xf32>
    %cst_151 = arith.constant dense<0.000000e+00> : vector<8x64xf32>
    %302 = tpu.matmul %301, %287, %cst_151 {dimension_numbers = #tpu.dot_dimension_numbers<[1], [0], [0], [1], [0, 0, 1, 1], [], []>} : vector<8x8xf32>, vector<8x64xf32>, vector<8x64xf32> -> vector<8x64xf32>
    %cst_152 = arith.constant dense<0.000000e+00> : vector<8x1024xf32>
    %303 = tpu.matmul %302, %0, %cst_152 {dimension_numbers = #tpu.dot_dimension_numbers<[1], [0], [0], [1], [0, 0, 1, 1], [], []>} : vector<8x64xf32>, vector<64x1024xf32>, vector<8x1024xf32> -> vector<8x1024xf32>
    %304 = vector.extract_strided_slice %303 {offsets = [0, 0], sizes = [1, 256], strides = [1, 1]} : vector<8x1024xf32> to vector<1x256xf32>
    %305 = arith.addf %1, %304 : vector<1x256xf32>
    %306 = vector.extract_strided_slice %303 {offsets = [1, 256], sizes = [1, 256], strides = [1, 1]} : vector<8x1024xf32> to vector<1x256xf32>
    %307 = arith.addf %305, %306 : vector<1x256xf32>
    %308 = vector.extract_strided_slice %303 {offsets = [2, 512], sizes = [1, 256], strides = [1, 1]} : vector<8x1024xf32> to vector<1x256xf32>
    %309 = arith.addf %307, %308 : vector<1x256xf32>
    %310 = vector.extract_strided_slice %303 {offsets = [3, 768], sizes = [1, 256], strides = [1, 1]} : vector<8x1024xf32> to vector<1x256xf32>
    %311 = arith.addf %309, %310 : vector<1x256xf32>
    %c14 = arith.constant 14 : index
    %c0_153 = arith.constant 0 : index
    %312 = vector.load %arg17[%c14, %c0_153] : memref<16x256xf32, #tpu.memory_space<vmem>>, vector<1x256xf32>
    tpu.vector_store %arg17[%c14, %c0_153], %311 {strides = array<i32>} : memref<16x256xf32, #tpu.memory_space<vmem>>, vector<1x256xf32>,
    %313 = vector.extract_strided_slice %303 {offsets = [4, 0], sizes = [1, 256], strides = [1, 1]} : vector<8x1024xf32> to vector<1x256xf32>
    %314 = arith.addf %1, %313 : vector<1x256xf32>
    %315 = vector.extract_strided_slice %303 {offsets = [5, 256], sizes = [1, 256], strides = [1, 1]} : vector<8x1024xf32> to vector<1x256xf32>
    %316 = arith.addf %314, %315 : vector<1x256xf32>
    %317 = vector.extract_strided_slice %303 {offsets = [6, 512], sizes = [1, 256], strides = [1, 1]} : vector<8x1024xf32> to vector<1x256xf32>
    %318 = arith.addf %316, %317 : vector<1x256xf32>
    %319 = vector.extract_strided_slice %303 {offsets = [7, 768], sizes = [1, 256], strides = [1, 1]} : vector<8x1024xf32> to vector<1x256xf32>
    %320 = arith.addf %318, %319 : vector<1x256xf32>
    %c15 = arith.constant 15 : index
    %c0_154 = arith.constant 0 : index
    %321 = vector.load %arg17[%c15, %c0_154] : memref<16x256xf32, #tpu.memory_space<vmem>>, vector<1x256xf32>
    tpu.vector_store %arg17[%c15, %c0_154], %320 {strides = array<i32>} : memref<16x256xf32, #tpu.memory_space<vmem>>, vector<1x256xf32>,
    %c0_155 = arith.constant 0 : index
    %c0_156 = arith.constant 0 : index
    %322 = vector.load %arg1[%c0_155, %c0_156] : memref<16x256xf32, #tpu.memory_space<vmem>>, vector<16x256xf32>
    %c0_157 = arith.constant 0 : index
    %c0_158 = arith.constant 0 : index
    %323 = vector.load %arg17[%c0_157, %c0_158] : memref<16x256xf32, #tpu.memory_space<vmem>>, vector<16x256xf32>
    %324 = arith.addf %322, %323 : vector<16x256xf32>
    %cst_159 = arith.constant dense<0.000000e+00> : vector<16xf32>
    %325 = vector.multi_reduction <add>, %324, %cst_159 [1] : vector<16x256xf32> to vector<16xf32>
    %326 = vector.shape_cast %325 : vector<16xf32> to vector<16x1xf32>
    %cst_160 = arith.constant 2.560000e+02 : f32
    %327 = vector.broadcast %cst_160 : f32 to vector<16x1xf32>
    %328 = arith.divf %326, %327 : vector<16x1xf32>
    %329 = vector.broadcast %328 : vector<16x1xf32> to vector<16x256xf32>
    %330 = arith.subf %324, %329 : vector<16x256xf32>
    %331 = arith.mulf %330, %330 : vector<16x256xf32>
    %cst_161 = arith.constant dense<0.000000e+00> : vector<16xf32>
    %332 = vector.multi_reduction <add>, %331, %cst_161 [1] : vector<16x256xf32> to vector<16xf32>
    %333 = vector.shape_cast %332 : vector<16xf32> to vector<16x1xf32>
    %cst_162 = arith.constant 2.560000e+02 : f32
    %334 = vector.broadcast %cst_162 : f32 to vector<16x1xf32>
    %335 = arith.divf %333, %334 : vector<16x1xf32>
    %336 = vector.broadcast %328 : vector<16x1xf32> to vector<16x256xf32>
    %337 = arith.subf %324, %336 : vector<16x256xf32>
    %cst_163 = arith.constant 9.99999974E-6 : f32
    %338 = vector.broadcast %cst_163 : f32 to vector<16x1xf32>
    %339 = arith.addf %335, %338 : vector<16x1xf32>
    %340 = math.rsqrt %339 : vector<16x1xf32>
    %341 = vector.broadcast %340 : vector<16x1xf32> to vector<16x256xf32>
    %342 = arith.mulf %337, %341 : vector<16x256xf32>
    %c0_164 = arith.constant 0 : index
    %c0_165 = arith.constant 0 : index
    %343 = vector.load %arg8[%c0_164, %c0_165] : memref<1x256xf32, #tpu.memory_space<vmem>>, vector<1x256xf32>
    %344 = vector.broadcast %343 : vector<1x256xf32> to vector<16x256xf32>
    %345 = arith.mulf %342, %344 : vector<16x256xf32>
    %c0_166 = arith.constant 0 : index
    %c0_167 = arith.constant 0 : index
    %346 = vector.load %arg9[%c0_166, %c0_167] : memref<1x256xf32, #tpu.memory_space<vmem>>, vector<1x256xf32>
    %347 = vector.broadcast %346 : vector<1x256xf32> to vector<16x256xf32>
    %348 = arith.addf %345, %347 : vector<16x256xf32>
    %c0_168 = arith.constant 0 : index
    %c0_169 = arith.constant 0 : index
    %349 = vector.load %arg10[%c0_168, %c0_169] : memref<256x1024xf32, #tpu.memory_space<vmem>>, vector<256x1024xf32>
    %cst_170 = arith.constant dense<0.000000e+00> : vector<16x1024xf32>
    %350 = tpu.matmul %348, %349, %cst_170 {dimension_numbers = #tpu.dot_dimension_numbers<[1], [0], [0], [1], [0, 0, 1, 1], [], []>} : vector<16x256xf32>, vector<256x1024xf32>, vector<16x1024xf32> -> vector<16x1024xf32>
    %c0_171 = arith.constant 0 : index
    %c0_172 = arith.constant 0 : index
    %351 = vector.load %arg11[%c0_171, %c0_172] : memref<1x1024xf32, #tpu.memory_space<vmem>>, vector<1x1024xf32>
    %352 = vector.broadcast %351 : vector<1x1024xf32> to vector<16x1024xf32>
    %353 = arith.addf %350, %352 : vector<16x1024xf32>
    %cst_173 = arith.constant 0.000000e+00 : f32
    %354 = vector.broadcast %cst_173 : f32 to vector<16x1024xf32>
    %355 = arith.maximumf %353, %354 : vector<16x1024xf32>
    %c0_174 = arith.constant 0 : index
    %c0_175 = arith.constant 0 : index
    %356 = vector.load %arg12[%c0_174, %c0_175] : memref<1024x256xf32, #tpu.memory_space<vmem>>, vector<1024x256xf32>
    %cst_176 = arith.constant dense<0.000000e+00> : vector<16x256xf32>
    %357 = tpu.matmul %355, %356, %cst_176 {dimension_numbers = #tpu.dot_dimension_numbers<[1], [0], [0], [1], [0, 0, 1, 1], [], []>} : vector<16x1024xf32>, vector<1024x256xf32>, vector<16x256xf32> -> vector<16x256xf32>
    %c0_177 = arith.constant 0 : index
    %c0_178 = arith.constant 0 : index
    %358 = vector.load %arg13[%c0_177, %c0_178] : memref<1x256xf32, #tpu.memory_space<vmem>>, vector<1x256xf32>
    %359 = vector.broadcast %358 : vector<1x256xf32> to vector<16x256xf32>
    %360 = arith.addf %357, %359 : vector<16x256xf32>
    %361 = arith.addf %348, %360 : vector<16x256xf32>
    %cst_179 = arith.constant dense<0.000000e+00> : vector<16xf32>
    %362 = vector.multi_reduction <add>, %361, %cst_179 [1] : vector<16x256xf32> to vector<16xf32>
    %363 = vector.shape_cast %362 : vector<16xf32> to vector<16x1xf32>
    %cst_180 = arith.constant 2.560000e+02 : f32
    %364 = vector.broadcast %cst_180 : f32 to vector<16x1xf32>
    %365 = arith.divf %363, %364 : vector<16x1xf32>
    %366 = vector.broadcast %365 : vector<16x1xf32> to vector<16x256xf32>
    %367 = arith.subf %361, %366 : vector<16x256xf32>
    %368 = arith.mulf %367, %367 : vector<16x256xf32>
    %cst_181 = arith.constant dense<0.000000e+00> : vector<16xf32>
    %369 = vector.multi_reduction <add>, %368, %cst_181 [1] : vector<16x256xf32> to vector<16xf32>
    %370 = vector.shape_cast %369 : vector<16xf32> to vector<16x1xf32>
    %cst_182 = arith.constant 2.560000e+02 : f32
    %371 = vector.broadcast %cst_182 : f32 to vector<16x1xf32>
    %372 = arith.divf %370, %371 : vector<16x1xf32>
    %373 = vector.broadcast %365 : vector<16x1xf32> to vector<16x256xf32>
    %374 = arith.subf %361, %373 : vector<16x256xf32>
    %cst_183 = arith.constant 9.99999974E-6 : f32
    %375 = vector.broadcast %cst_183 : f32 to vector<16x1xf32>
    %376 = arith.addf %372, %375 : vector<16x1xf32>
    %377 = math.rsqrt %376 : vector<16x1xf32>
    %378 = vector.broadcast %377 : vector<16x1xf32> to vector<16x256xf32>
    %379 = arith.mulf %374, %378 : vector<16x256xf32>
    %c0_184 = arith.constant 0 : index
    %c0_185 = arith.constant 0 : index
    %380 = vector.load %arg14[%c0_184, %c0_185] : memref<1x256xf32, #tpu.memory_space<vmem>>, vector<1x256xf32>
    %381 = vector.broadcast %380 : vector<1x256xf32> to vector<16x256xf32>
    %382 = arith.mulf %379, %381 : vector<16x256xf32>
    %c0_186 = arith.constant 0 : index
    %c0_187 = arith.constant 0 : index
    %383 = vector.load %arg15[%c0_186, %c0_187] : memref<1x256xf32, #tpu.memory_space<vmem>>, vector<1x256xf32>
    %384 = vector.broadcast %383 : vector<1x256xf32> to vector<16x256xf32>
    %385 = arith.addf %382, %384 : vector<16x256xf32>
    %c0_188 = arith.constant 0 : index
    %c0_189 = arith.constant 0 : index
    %386 = vector.load %arg16[%c0_188, %c0_189] : memref<16x256xf32, #tpu.memory_space<vmem>>, vector<16x256xf32>
    tpu.vector_store %arg16[%c0_188, %c0_189], %385 {strides = array<i32>} : memref<16x256xf32, #tpu.memory_space<vmem>>, vector<16x256xf32>,
    return
  }
  func.func @transform_0(%arg0: i32) -> (i32, i32) {
    %c0_i32 = arith.constant 0 : i32
    %c0_i32_0 = arith.constant 0 : i32
    %c0_i32_1 = arith.constant 0 : i32
    return %c0_i32, %c0_i32_0 : i32, i32
  }
  func.func @transform_1(%arg0: i32) -> (i32, i32, i32) {
    %c0_i32 = arith.constant 0 : i32
    %c0_i32_0 = arith.constant 0 : i32
    %c0_i32_1 = arith.constant 0 : i32
    %c0_i32_2 = arith.constant 0 : i32
    return %c0_i32, %c0_i32_0, %c0_i32_1 : i32, i32, i32
  }
  func.func @transform_2(%arg0: i32) -> (i32, i32, i32) {
    %c0_i32 = arith.constant 0 : i32
    %c0_i32_0 = arith.constant 0 : i32
    %c0_i32_1 = arith.constant 0 : i32
    %c0_i32_2 = arith.constant 0 : i32
    return %c0_i32, %c0_i32_0, %c0_i32_1 : i32, i32, i32
  }
  func.func @transform_3(%arg0: i32) -> (i32, i32, i32) {
    %c0_i32 = arith.constant 0 : i32
    %c0_i32_0 = arith.constant 0 : i32
    %c0_i32_1 = arith.constant 0 : i32
    %c0_i32_2 = arith.constant 0 : i32
    return %c0_i32, %c0_i32_0, %c0_i32_1 : i32, i32, i32
  }
  func.func @transform_4(%arg0: i32) -> (i32, i32, i32) {
    %c0_i32 = arith.constant 0 : i32
    %c0_i32_0 = arith.constant 0 : i32
    %c0_i32_1 = arith.constant 0 : i32
    %c0_i32_2 = arith.constant 0 : i32
    return %c0_i32, %c0_i32_0, %c0_i32_1 : i32, i32, i32
  }
  func.func @transform_5(%arg0: i32) -> (i32, i32) {
    %c0_i32 = arith.constant 0 : i32
    %c0_i32_0 = arith.constant 0 : i32
    %c0_i32_1 = arith.constant 0 : i32
    return %c0_i32, %c0_i32_0 : i32, i32
  }
  func.func @transform_6(%arg0: i32) -> (i32, i32) {
    %c0_i32 = arith.constant 0 : i32
    %c0_i32_0 = arith.constant 0 : i32
    %c0_i32_1 = arith.constant 0 : i32
    return %c0_i32, %c0_i32_0 : i32, i32
  }
  func.func @transform_7(%arg0: i32) -> (i32, i32) {
    %c0_i32 = arith.constant 0 : i32
    %c0_i32_0 = arith.constant 0 : i32
    %c0_i32_1 = arith.constant 0 : i32
    return %c0_i32, %c0_i32_0 : i32, i32
  }
  func.func @transform_8(%arg0: i32) -> (i32, i32) {
    %c0_i32 = arith.constant 0 : i32
    %c0_i32_0 = arith.constant 0 : i32
    %c0_i32_1 = arith.constant 0 : i32
    return %c0_i32, %c0_i32_0 : i32, i32
  }
  func.func @transform_9(%arg0: i32) -> (i32, i32) {
    %c0_i32 = arith.constant 0 : i32
    %c0_i32_0 = arith.constant 0 : i32
    %c0_i32_1 = arith.constant 0 : i32
    return %c0_i32, %c0_i32_0 : i32, i32
  }
  func.func @transform_10(%arg0: i32) -> (i32, i32) {
    %c0_i32 = arith.constant 0 : i32
    %c0_i32_0 = arith.constant 0 : i32
    %c0_i32_1 = arith.constant 0 : i32
    return %c0_i32, %c0_i32_0 : i32, i32
  }
  func.func @transform_11(%arg0: i32) -> (i32, i32) {
    %c0_i32 = arith.constant 0 : i32
    %c0_i32_0 = arith.constant 0 : i32
    %c0_i32_1 = arith.constant 0 : i32
    return %c0_i32, %c0_i32_0 : i32, i32
  }
  func.func @transform_12(%arg0: i32) -> (i32, i32) {
    %c0_i32 = arith.constant 0 : i32
    %c0_i32_0 = arith.constant 0 : i32
    %c0_i32_1 = arith.constant 0 : i32
    return %c0_i32, %c0_i32_0 : i32, i32
  }
  func.func @transform_13(%arg0: i32) -> (i32, i32) {
    %c0_i32 = arith.constant 0 : i32
    %c0_i32_0 = arith.constant 0 : i32
    %c0_i32_1 = arith.constant 0 : i32
    return %c0_i32, %c0_i32_0 : i32, i32
  }
  func.func @transform_14(%arg0: i32) -> (i32, i32) {
    %c0_i32 = arith.constant 0 : i32
    %c0_i32_0 = arith.constant 0 : i32
    %c0_i32_1 = arith.constant 0 : i32
    return %c0_i32, %c0_i32_0 : i32, i32
  }
  func.func @transform_15(%arg0: i32) -> (i32, i32) {
    %c0_i32 = arith.constant 0 : i32
    %c0_i32_0 = arith.constant 0 : i32
    %c0_i32_1 = arith.constant 0 : i32
    return %c0_i32, %c0_i32_0 : i32, i32
  }
}

</mosaic_0001>

<bundles_post_ra>
// kernel: encoder_new_forward.2
= control target key start
LH: loop header
LB: loop body
LE: loop exit
PB: predicated region body
PF: predicated region fallthrough
CT: control target
= control target key end

     0   :  { %18 = vsyncpa [#allocation3], 0  ;;  %s1429_s24 = smov [#allocation2]   ;;  %s1430_s26 = smov 768   ;;  %s2285_s0 = inlined_call_operand.vmem [shape: f32[16,1], index: 0, kind: input, shape index: {}]   ;;  %s2286_s1 = inlined_call_operand.vmem [shape: f32[1,64], index: 1, kind: input, shape index: {}]   ;;  %s2287_s2 = inlined_call_operand.vmem [shape: f32[1,64], index: 2, kind: input, shape index: {}]   ;;  %s2288_s3 = inlined_call_operand.vmem [shape: f32[64,256], index: 3, kind: input, shape index: {}]   ;;  %s2289_s4 = inlined_call_operand.vmem [shape: f32[1,256], index: 4, kind: input, shape index: {}]   ;;  %s2290_s5 = inlined_call_operand.vmem [shape: f32[16,5,256], index: 5, kind: input, shape index: {}]   ;;  %s2291_s6 = inlined_call_operand.vmem [shape: f32[16,5,1], index: 6, kind: input, shape index: {}]   ;;  %s2292_s7 = inlined_call_operand.vmem [shape: f32[1,256], index: 7, kind: input, shape index: {}]   ;;  %s2293_s8 = inlined_call_operand.vmem [shape: f32[16,256], index: 8, kind: input, shape index: {}]   ;;  %s2294_s9 = inlined_call_operand.hbm [shape: f32[256,768], index: 9, kind: input, shape index: {}]   ;;  %s2295_s10 = inlined_call_operand.vmem [shape: f32[1,768], index: 10, kind: input, shape index: {}]   ;;  %s2296_s11 = inlined_call_operand.vmem [shape: f32[16,256], index: 11, kind: output, shape index: {0}]   ;;  %s2297_s12 = inlined_call_operand.vmem [shape: f32[16,768], index: 12, kind: output, shape index: {1}]  }
   0x1   :  { %s41_s23 = sshll.u32 %s2294_s9, 4  ;;  %s43_s25 = sshll.u32 %s1429_s24, 4  ;;  %s42_s23 = int_to_ptr.hbm [resolvable:$true] %s41_s23  ;;  %s44_s25 = int_to_ptr.vmem [resolvable:$true] %s43_s25 }
   0x2   :  { %s1431_s27 = smov 48  }
   0x3   :  { %49 = dma.hbm_to_vmem [thread:$0]  %s42_s23, 24576, %s44_s25, [#allocation3], %s1430_s26, %s1430_s26, %s1431_s27  }
   0x4   :  { %1427 = dma.done.wait [#allocation3], 24576  }
   0x5   :  { %1428 = vsyncadd [#allocation3], 4294942720  ;;  %v1432_v0 = vmov 0   ;;  %v56_v1 = vld [vmem:[%s2285_s0] sm:$0xff]  ;;  %v57_v2 = vld [vmem:[%s2285_s0 + $0x8] sm:$0xff]  ;;  %vm108_vm0 = vcmask 523264  }
   0x6   :  { %1394 = vset.pattern.permute.xlu0 %v1432_v0  ;;  %1395 = vset.pattern.permute.xlu1 %v1432_v0  ;;  %v194_v3 = vld [vmem:[%s2291_s6 + $0x8] sm:$0x1f]  ;;  %v193_v4 = vld [vmem:[%s2291_s6] sm:$0x1f]  ;;  %v195_v6 = vld [vmem:[%s2291_s6 + $0x10] sm:$0x1f] }
   0x7   :  { %1396 = vset.pattern.permute.xlu2 %v1432_v0  ;;  %61 = vperm.xlu0 %1394, %v56_v1   ;;  %v197_v5 = vld [vmem:[%s2291_s6 + $0x20] sm:$0x1f]  ;;  %v196_v7 = vld [vmem:[%s2291_s6 + $0x18] sm:$0x1f]  ;;  %v198_v9 = vld [vmem:[%s2291_s6 + $0x28] sm:$0x1f] }
   0x8   :  { %216 = vperm.xlu1 %1395, %v194_v3   ;;  %211 = vperm.xlu2 %1396, %v193_v4   ;;  %v200_v8 = vld [vmem:[%s2291_s6 + $0x38] sm:$0x1f]  ;;  %v199_v10 = vld [vmem:[%s2291_s6 + $0x30] sm:$0x1f]  ;;  %v201_v11 = vld [vmem:[%s2291_s6 + $0x40] sm:$0x1f] }
   0x9   :  { %v202_v12 = vld [vmem:[%s2291_s6 + $0x48] sm:$0x1f]  ;;  %v203_v13 = vld [vmem:[%s2291_s6 + $0x50] sm:$0x1f]  ;;  %v204_v15 = vld [vmem:[%s2291_s6 + $0x58] sm:$0x1f] }
   0xa   :  { %v206_v14 = vld [vmem:[%s2291_s6 + $0x68] sm:$0x1f]  ;;  %v205_v16 = vld [vmem:[%s2291_s6 + $0x60] sm:$0x1f]  ;;  %v207_v17 = vld [vmem:[%s2291_s6 + $0x70] sm:$0x1f] }
   0xb   :  { %v100_v18 = vld [vmem:[%s2288_s3 + $0x70] sm:$0xff]  ;;  %v101_v19 = vld [vmem:[%s2288_s3 + $0x78] sm:$0xff]  ;;  %v98_v20 = vld [vmem:[%s2288_s3 + $0x60] sm:$0xff]  ;;  %vm321_vm1 = vcmask 1044480   ;;  %vm813_vm2 = vcmask 1041409   ;;  %vm816_vm3 = vcmask 1042434  }
   0xc   :  { %123 = vmatpush.msra.mxu0 %v100_v18  ;;  %146 = vmatpush.msra.mxu1 %v101_v19  ;;  %v99_v21 = vld [vmem:[%s2288_s3 + $0x68] sm:$0xff]  ;;  %v96_v22 = vld [vmem:[%s2288_s3 + $0x50] sm:$0xff]  ;;  %v97_v23 = vld [vmem:[%s2288_s3 + $0x58] sm:$0xff]  ;;  %vm819_vm4 = vcmask 1043459   ;;  %vm822_vm5 = vcmask 1044484   ;;  %vm825_vm6 = vcmask 1045509  }
   0xd   :  { %v208_v24 = vld [vmem:[%s2291_s6 + $0x78] sm:$0x1f]  ;;  %v94_v25 = vld [vmem:[%s2288_s3 + $0x40] sm:$0xff]  ;;  %v95_v26 = vld [vmem:[%s2288_s3 + $0x48] sm:$0xff]  ;;  %vm828_vm7 = vcmask 1046534   ;;  %vm831_vm8 = vcmask 1047559  }
   0xe   :  { %124 = vmatpush.msra.mxu0 %v98_v20  ;;  %147 = vmatpush.msra.mxu1 %v99_v21  ;;  %v92_v27 = vld [vmem:[%s2288_s3 + $0x30] sm:$0xff]  ;;  %v93_v28 = vld [vmem:[%s2288_s3 + $0x38] sm:$0xff]  ;;  %v90_v29 = vld [vmem:[%s2288_s3 + $0x20] sm:$0xff] }
   0xf   :  { %66 = vperm.xlu0 %1394, %v57_v2   ;;  %v91_v30 = vld [vmem:[%s2288_s3 + $0x28] sm:$0xff]  ;;  %v88_v31 = vld [vmem:[%s2288_s3 + $0x10] sm:$0xff]  ;;  %v89_v32 = vld [vmem:[%s2288_s3 + $0x18] sm:$0xff] }
  0x10   :  { %221 = vperm.xlu1 %1395, %v195_v6   ;;  %226 = vperm.xlu2 %1396, %v196_v7   ;;  %v86_v33 = vld [vmem:[%s2288_s3] sm:$0xff]  ;;  %v87_v34 = vld [vmem:[%s2288_s3 + $0x8] sm:$0xff]  ;;  %v175_v60 = vld [vmem:[%s2290_s5 + $0x70] sm:$0x1f] }
  0x11   :  { %125 = vmatpush.msra.mxu0 %v96_v22  ;;  %148 = vmatpush.msra.mxu1 %v97_v23  ;;  %v1397_v35 = vld [vmem:[%s2286_s1] ss:$0 sm:$0xff]  ;;  %v170_v51 = vld [vmem:[%s2290_s5 + $0x48] sm:$0x1f]  ;;  %v176_v62 = vld [vmem:[%s2290_s5 + $0x78] sm:$0x1f] }
  0x12   :  { %v1398_v36 = vld [vmem:[%s2287_s2] ss:$0 sm:$0xff]  ;;  %v163_v1 = vld [vmem:[%s2290_s5 + $0x10] sm:$0x1f]  ;;  %v164_v3 = vld [vmem:[%s2290_s5 + $0x18] sm:$0x1f] }
  0x13   :  { %126 = vmatpush.msra.mxu0 %v94_v25  ;;  %149 = vmatpush.msra.mxu1 %v95_v26  ;;  %v169_v50 = vld [vmem:[%s2290_s5 + $0x40] sm:$0x1f]  ;;  %v162_v18 = vld [vmem:[%s2290_s5 + $0x8] sm:$0x1f]  ;;  %v187_v21 = vld [vmem:[%s2290_s5 + $0xd0] sm:$0x1f] }
  0x14   :  { %v188_v22 = vld [vmem:[%s2290_s5 + $0xd8] sm:$0x1f]  ;;  %v1069_v25 = vld [vmem:[#allocation2 + $0x5d0] sm:$0xff] }
  0x15   :  { %127 = vmatpush.msra.mxu0 %v92_v27  ;;  %150 = vmatpush.msra.mxu1 %v93_v28  ;;  %v974_v26 = vld [vmem:[#allocation2 + $0x2d8] sm:$0xff]  ;;  %v546_v27 = vld [vmem:[%s2292_s7] sm:$0x3] }
  0x16   :  { %1112 = vmatpush.msra.mxu3 %v1069_v25 }
  0x17   :  { %231 = vperm.xlu0 %1394, %v197_v5   ;;  %128 = vmatpush.msra.mxu0 %v90_v29 }
  0x18   :  { %236 = vperm.xlu1 %1395, %v198_v9   ;;  %241 = vperm.xlu2 %1396, %v199_v10  }
  0x19   :  { %151 = vmatpush.msra.mxu1 %v91_v30  ;;  %129 = vmatpush.msra.mxu0 %v88_v31  ;;  %v165_v30 = vld [vmem:[%s2290_s5 + $0x20] sm:$0x1f]  ;;  %v166_v31 = vld [vmem:[%s2290_s5 + $0x28] sm:$0x1f] }
  0x1b   :  { %152 = vmatpush.msra.mxu1 %v89_v32  ;;  %130 = vmatpush.msra.mxu0 %v86_v33  ;;  %v1070_v32 = vld [vmem:[#allocation2 + $0x5d8] sm:$0xff] }
  0x1d   :  { %153 = vmatpush.msra.mxu1 %v87_v34  ;;  %1135 = vmatpush.msrb.mxu0 %v974_v26 }
  0x1f   :  { %246 = vperm.xlu0 %1394, %v200_v8   ;;  %1158 = vmatpush.msrb.mxu1 %v1070_v32 }
  0x20   :  { %256 = vperm.xlu1 %1395, %v202_v12   ;;  %261 = vperm.xlu2 %1396, %v203_v13  }
  0x27   :  { %251 = vperm.xlu0 %1394, %v201_v11   ;;  %v161_v11 = vld [vmem:[%s2290_s5] sm:$0x1f] }
  0x28   :  { %266 = vperm.xlu1 %1395, %v204_v15   ;;  %271 = vperm.xlu2 %1396, %v205_v16   ;;  %v177_v15 = vld [vmem:[%s2290_s5 + $0x80] sm:$0x1f]  ;;  %v178_v16 = vld [vmem:[%s2290_s5 + $0x88] sm:$0x1f] }
  0x2f   :  { %276 = vperm.xlu0 %1394, %v206_v14  }
  0x30   :  { %281 = vperm.xlu1 %1395, %v207_v17   ;;  %286 = vperm.xlu2 %1396, %v208_v24   ;;  %v973_v24 = vld [vmem:[#allocation2 + $0x2d0] sm:$0xff] }
  0x31   :  { %1089 = vmatpush.msra.mxu2 %v973_v24 }
  0x62   :  { %v212_v59 = vpop.permute.xlu2 %211 }
  0x63   :  { %v289_v29 = vmul.f32 %v212_v59, %v161_v11 }
  0x6a   :  { %v1634_v13 = vpop.permute.xlu2 %226 }
  0x79   :  { %v62_v37 = vpop.permute.xlu0 %61 }
  0x7a   :  { %v72_v38 = vmul.f32 %v1397_v35, %v62_v37  ;;  %v217_v58 = vpop.permute.xlu1 %216  ;;  %v968_v37 = vld [vmem:[#allocation2 + $0x2a8] sm:$0xff] }
  0x7b   :  { %v291_v6 = vmul.f32 %v217_v58, %v163_v1  ;;  %v292_v8 = vmul.f32 %v217_v58, %v164_v3  ;;  %1136 = vmatpush.msrb.mxu0 %v968_v37 }
  0x7c   :  { %v78_v39 = vadd.f32 %v1398_v36, %v72_v38 }
  0x7d   :  { %v336_v17 = vsel %vm321_vm1, %v291_v6, 0.0  ;;  %v343_v23 = vsel %vm321_vm1, %v292_v8, 0.0  ;;  %v1678_v8 = vpop.permute.xlu2 %241 }
  0x7e   :  { %v80_v40 = vmul.f32 %v78_v39, %v78_v39  ;;  %v337_v34 = vrot.slane %v336_v17, 4  ;;  %v344_v39 = vrot.slane %v343_v23, 4 }
  0x80   :  { %1399 = vtanh.f32 %v80_v40  ;;  %v290_v40 = vmul.f32 %v212_v59, %v162_v18 }
  0x81   :  { %v67_v41 = vpop.permute.xlu0 %66 }
  0x82   :  { %v73_v42 = vmul.f32 %v1397_v35, %v67_v41  ;;  %v222_v12 = vpop.permute.xlu1 %221  ;;  %v967_v35 = vld [vmem:[#allocation2 + $0x2a0] sm:$0xff]  ;;  %v1064_v41 = vld [vmem:[#allocation2 + $0x5a8] sm:$0xff]  ;;  %v329_v1 = vsel %vm321_vm1, %v290_v40, 0.0 }
  0x83   :  { %1090 = vmatpush.msra.mxu2 %v967_v35  ;;  %1159 = vmatpush.msrb.mxu1 %v1064_v41  ;;  %v293_v58 = vmul.f32 %v222_v12, %v165_v30  ;;  %v294_v59 = vmul.f32 %v222_v12, %v166_v31 }
  0x84   :  { %v79_v43 = vadd.f32 %v1398_v36, %v73_v42  ;;  %v1063_v36 = vld [vmem:[#allocation2 + $0x5a0] sm:$0xff]  ;;  %v961_v42 = vld [vmem:[#allocation2 + $0x270] sm:$0xff] }
  0x85   :  { %1113 = vmatpush.msra.mxu3 %v1063_v36  ;;  %1091 = vmatpush.msra.mxu2 %v961_v42  ;;  %v168_v42 = vld [vmem:[%s2290_s5 + $0x38] sm:$0x1f] }
  0x86   :  { %v1400_v44 = vpop.eup %1399  ;;  %v81_v45 = vmul.f32 %v79_v43, %v79_v43  ;;  %v1057_v43 = vld [vmem:[#allocation2 + $0x570] sm:$0xff] }
  0x87   :  { %v84_v46 = vsub.f32 1.0, %v1400_v44  ;;  %1114 = vmatpush.msra.mxu3 %v1057_v43 }
  0x88   :  { %1401 = vtanh.f32 %v81_v45 }
  0x89   :  { %1386 = vmatmul.msk.f32.vlgmr.msra.gmra.mxu0 %vm108_vm0, %v84_v46  ;;  %1388 = vmatmul.msk.f32.vlgmr.msra.gmra.mxu1 %vm108_vm0, %v84_v46  ;;  %v232_v49 = vpop.permute.xlu0 %231 }
  0x8a   :  { %v297_v52 = vmul.f32 %v232_v49, %v169_v50  ;;  %v298_v54 = vmul.f32 %v232_v49, %v170_v51  ;;  %v1058_v49 = vld [vmem:[#allocation2 + $0x578] sm:$0xff] }
  0x8b   :  { %1160 = vmatpush.msrb.mxu1 %v1058_v49 }
  0x8c   :  { %v378_v55 = vsel %vm321_vm1, %v297_v52, 0.0  ;;  %v385_v57 = vsel %vm321_vm1, %v298_v54, 0.0  ;;  %v955_v54 = vld [vmem:[#allocation2 + $0x240] sm:$0xff] }
  0x8d   :  { %v379_v56 = vrot.slane %v378_v55, 4  ;;  %v386_v61 = vrot.slane %v385_v57, 4  ;;  %1092 = vmatpush.msra.mxu2 %v955_v54 }
  0x8e   :  { %v1402_v47 = vpop.eup %1401 }
  0x8f   :  { %v85_v48 = vsub.f32 1.0, %v1402_v47  ;;  %v380_v63 = vadd.f32 %v379_v56, %v378_v55  ;;  %v387_v5 = vadd.f32 %v386_v61, %v385_v57  ;;  %v1051_v55 = vld [vmem:[#allocation2 + $0x540] sm:$0xff]  ;;  %v1668_v56 = vperm.slane %v546_v27, 0  ;;  %v1052_v61 = vld [vmem:[#allocation2 + $0x548] sm:$0xff] }
  0x90   :  { %v338_v57 = vadd.f32 %v337_v34, %v336_v17  ;;  %1115 = vmatpush.msra.mxu3 %v1051_v55  ;;  %1161 = vmatpush.msrb.mxu1 %v1052_v61  ;;  %v1046_v17 = vld [vmem:[#allocation2 + $0x518] sm:$0xff]  ;;  %v937_v34 = vld [vmem:[#allocation2 + $0x1b0] sm:$0xff] }
  0x91   :  { %1387 = vmatmul.msk.f32.gmra.mxu0 %vm108_vm0, %v85_v48  ;;  %1389 = vmatmul.msk.f32.gmra.mxu1 %vm108_vm0, %v85_v48  ;;  %v247_v53 = vpop.permute.xlu0 %246  ;;  %v381_v7 = vrot.slane %v380_v63, 2  ;;  %v388_v14 = vrot.slane %v387_v5, 2  ;;  %v962_v48 = vld [vmem:[#allocation2 + $0x278] sm:$0xff] }
  0x92   :  { %v303_v2 = vmul.f32 %v247_v53, %v175_v60  ;;  %v304_v4 = vmul.f32 %v247_v53, %v176_v62  ;;  %v322_v53 = vsel %vm321_vm1, %v289_v29, 0.0  ;;  %v956_v60 = vld [vmem:[#allocation2 + $0x248] sm:$0xff]  ;;  %v1670_v62 = vperm.slane %v546_v27, 1  ;;  %1137 = vmatpush.msrb.mxu0 %v962_v48  ;;  %1162 = vmatpush.msrb.mxu1 %v1046_v17 }
  0x93   :  { %v1646_v19 = vadd.f32 %v381_v7, %v380_v63  ;;  %v1664_v38 = vadd.f32 %v388_v14, %v387_v5  ;;  %v323_v6 = vrot.slane %v322_v53, 4  ;;  %v1676_v7 = vpop.permute.xlu1 %236  ;;  %v339_v18 = vrot.slane %v338_v57, 2  ;;  %v1040_v29 = vld [vmem:[#allocation2 + $0x4e8] sm:$0xff] }
  0x94   :  { %v420_v9 = vsel %vm321_vm1, %v303_v2, 0.0  ;;  %v427_v10 = vsel %vm321_vm1, %v304_v4, 0.0  ;;  %v949_v2 = vld [vmem:[#allocation2 + $0x210] sm:$0xff]  ;;  %1138 = vmatpush.msrb.mxu0 %v956_v60  ;;  %1163 = vmatpush.msrb.mxu1 %v1040_v29 }
  0x95   :  { %v421_v20 = vrot.slane %v420_v9, 4  ;;  %v428_v28 = vrot.slane %v427_v10, 4  ;;  %v383_v44 = vrot.slane %v1646_v19, 1  ;;  %v390_v63 = vrot.slane %v1664_v38, 1  ;;  %1093 = vmatpush.msra.mxu2 %v949_v2 }
  0x96   :  { %v340_v40 = vadd.f32 %v339_v18, %v338_v57 }
  0x97   :  { %v422_v45 = vadd.f32 %v421_v20, %v420_v9  ;;  %v429_v50 = vadd.f32 %v428_v28, %v427_v10  ;;  %v1045_v9 = vld [vmem:[#allocation2 + $0x510] sm:$0xff]  ;;  %v384_v10 = vadd.f32 %v383_v44, %v1646_v19  ;;  %v330_v20 = vrot.slane %v329_v1, 4  ;;  %v943_v19 = vld [vmem:[#allocation2 + $0x1e0] sm:$0xff]  ;;  %v944_v28 = vld [vmem:[#allocation2 + $0x1e8] sm:$0xff] }
  0x98   :  { %v391_v24 = vadd.f32 %v390_v63, %v1664_v38  ;;  %1116 = vmatpush.msra.mxu3 %v1045_v9  ;;  %1094 = vmatpush.msra.mxu2 %v943_v19  ;;  %v938_v44 = vld [vmem:[#allocation2 + $0x1b8] sm:$0xff]  ;;  %v296_v63 = vmul.f32 %v1634_v13, %v168_v42  ;;  %v341_v2 = vrot.slane %v340_v40, 1  ;;  %v925_v9 = vld [vmem:[#allocation2 + $0x150] sm:$0xff]  ;;  %v1015_v19 = vld [vmem:[#allocation2 + $0x420] sm:$0xff] }
  0x99   :  { %v252_v0 = vpop.permute.xlu0 %251  ;;  %v423_v3 = vrot.slane %v422_v45, 2  ;;  %v430_v11 = vrot.slane %v429_v50, 2  ;;  %v1690_v35 = vadd.f32 %v1668_v56, %v384_v10  ;;  %v331_v41 = vadd.f32 %v330_v20, %v329_v1  ;;  %v1021_v10 = vld [vmem:[#allocation2 + $0x450] sm:$0xff] }
  0x9a   :  { %v305_v46 = vmul.f32 %v252_v0, %v177_v15  ;;  %v306_v47 = vmul.f32 %v252_v0, %v178_v16  ;;  %v345_v0 = vadd.f32 %v344_v39, %v343_v23  ;;  %v167_v15 = vld [vmem:[%s2290_s5 + $0x30] sm:$0x1f]  ;;  %v950_v16 = vld [vmem:[#allocation2 + $0x218] sm:$0xff]  ;;  %v1039_v23 = vld [vmem:[#allocation2 + $0x4e0] sm:$0xff]  ;;  %1095 = vmatpush.msra.mxu2 %v937_v34 }
  0x9b   :  { %v424_v30 = vadd.f32 %v423_v3, %v422_v45  ;;  %1139 = vmatpush.msrb.mxu0 %v950_v16  ;;  %v1692_v36 = vadd.f32 %v430_v11, %v429_v50  ;;  %1117 = vmatpush.msra.mxu3 %v1039_v23  ;;  %v1033_v39 = vld [vmem:[#allocation2 + $0x4b0] sm:$0xff]  ;;  %v295_v43 = vmul.f32 %v1634_v13, %v167_v15  ;;  %v1034_v45 = vld [vmem:[#allocation2 + $0x4b8] sm:$0xff]  ;;  %v332_v3 = vrot.slane %v331_v41, 2 }
  0x9c   :  { %v434_v4 = vsel %vm321_vm1, %v305_v46, 0.0  ;;  %v441_v5 = vsel %vm321_vm1, %v306_v47, 0.0  ;;  %v346_v27 = vrot.slane %v345_v0, 2  ;;  %v1699_v46 = vadd.f32 %v1670_v62, %v391_v24  ;;  %v171_v50 = vld [vmem:[%s2290_s5 + $0x50] sm:$0x1f]  ;;  %1164 = vmatpush.msrb.mxu1 %v1034_v45  ;;  %v926_v15 = vld [vmem:[#allocation2 + $0x158] sm:$0xff] }
  0x9d   :  { %v435_v25 = vrot.slane %v434_v4, 4  ;;  %v442_v26 = vrot.slane %v441_v5, 4  ;;  %1140 = vmatpush.msrb.mxu0 %v944_v28  ;;  %1118 = vmatpush.msra.mxu3 %v1033_v39  ;;  %v432_v1 = vrot.slane %v1692_v36, 1  ;;  %v299_v13 = vmul.f32 %v1676_v7, %v171_v50  ;;  %v1022_v16 = vld [vmem:[#allocation2 + $0x458] sm:$0xff]  ;;  %v1009_v39 = vld [vmem:[#allocation2 + $0x3f0] sm:$0xff]  ;;  %v907_v45 = vld [vmem:[#allocation2 + $0xc0] sm:$0xff] }
  0x9e   :  { %v1701_v49 = vadd.f32 %v346_v27, %v345_v0  ;;  %v1028_v0 = vld [vmem:[#allocation2 + $0x488] sm:$0xff]  ;;  %v342_v28 = vadd.f32 %v341_v2, %v340_v40 }
  0x9f   :  { %v436_v47 = vadd.f32 %v435_v25, %v434_v4  ;;  %v443_v48 = vadd.f32 %v442_v26, %v441_v5  ;;  %1141 = vmatpush.msrb.mxu0 %v938_v44  ;;  %v364_v4 = vsel %vm321_vm1, %v295_v43, 0.0  ;;  %v1712_v5 = vpop.permute.xlu1 %256  ;;  %1165 = vmatpush.msrb.mxu1 %v1028_v0  ;;  %v371_v26 = vsel %vm321_vm1, %v296_v63, 0.0  ;;  %v920_v27 = vld [vmem:[#allocation2 + $0x128] sm:$0xff]  ;;  %v1010_v44 = vld [vmem:[#allocation2 + $0x3f8] sm:$0xff] }
  0xa0   :  { %v365_v25 = vrot.slane %v364_v4, 4  ;;  %v348_v29 = vrot.slane %v1701_v49, 1  ;;  %v372_v43 = vrot.slane %v371_v26, 4 }
  0xa1   :  { %v277_v33 = vpop.permute.xlu0 %276  ;;  %v437_v11 = vrot.slane %v436_v47, 2  ;;  %1166 = vmatpush.msrb.mxu1 %v1022_v16 }
  0xa2   :  { %v315_v51 = vmul.f32 %v277_v33, %v187_v21  ;;  %v316_v52 = vmul.f32 %v277_v33, %v188_v22  ;;  %v350_v21 = vsel %vm321_vm1, %v293_v58, 0.0  ;;  %v357_v22 = vsel %vm321_vm1, %v294_v59, 0.0  ;;  %v172_v58 = vld [vmem:[%s2290_s5 + $0x58] sm:$0x1f]  ;;  %v932_v59 = vld [vmem:[#allocation2 + $0x188] sm:$0xff] }
  0xa3   :  { %v324_v33 = vadd.f32 %v323_v6, %v322_v53  ;;  %v351_v37 = vrot.slane %v350_v21, 4  ;;  %v358_v38 = vrot.slane %v357_v22, 4  ;;  %v425_v53 = vrot.slane %v424_v30, 1  ;;  %v1714_v6 = vpop.permute.xlu2 %261  ;;  %1142 = vmatpush.msrb.mxu0 %v932_v59  ;;  %v901_v59 = vld [vmem:[#allocation2 + $0x90] sm:$0xff] }
  0xa4   :  { %v504_v12 = vsel %vm321_vm1, %v315_v51, 0.0  ;;  %v511_v14 = vsel %vm321_vm1, %v316_v52, 0.0  ;;  %v931_v51 = vld [vmem:[#allocation2 + $0x180] sm:$0xff]  ;;  %v1735_v50 = vadd.f32 %v365_v25, %v364_v4  ;;  %v889_v25 = vld [vmem:[#allocation2 + $0x30] sm:$0xff] }
  0xa5   :  { %v505_v31 = vrot.slane %v504_v12, 4  ;;  %v512_v32 = vrot.slane %v511_v14, 4  ;;  %v1027_v52 = vld [vmem:[#allocation2 + $0x480] sm:$0xff]  ;;  %v325_v57 = vrot.slane %v324_v33, 2  ;;  %v352_v60 = vadd.f32 %v351_v37, %v350_v21  ;;  %1096 = vmatpush.msra.mxu2 %v931_v51  ;;  %1143 = vmatpush.msrb.mxu0 %v926_v15 }
  0xa6   :  { %v359_v61 = vadd.f32 %v358_v38, %v357_v22  ;;  %1119 = vmatpush.msra.mxu3 %v1027_v52  ;;  %v426_v17 = vadd.f32 %v425_v53, %v424_v30  ;;  %v919_v22 = vld [vmem:[#allocation2 + $0x120] sm:$0xff]  ;;  %v333_v30 = vadd.f32 %v332_v3, %v331_v41  ;;  %v392_v37 = vsel %vm321_vm1, %v299_v13, 0.0  ;;  %v908_v52 = vld [vmem:[#allocation2 + $0xc8] sm:$0xff] }
  0xa7   :  { %v506_v54 = vadd.f32 %v505_v31, %v504_v12  ;;  %v513_v55 = vadd.f32 %v512_v32, %v511_v14  ;;  %v444_v12 = vrot.slane %v443_v48, 2  ;;  %v300_v14 = vmul.f32 %v1676_v7, %v172_v58  ;;  %1097 = vmatpush.msra.mxu2 %v925_v9  ;;  %v1016_v31 = vld [vmem:[#allocation2 + $0x428] sm:$0xff]  ;;  %v913_v32 = vld [vmem:[#allocation2 + $0xf0] sm:$0xff]  ;;  %1144 = vmatpush.msrb.mxu0 %v920_v27  ;;  %v1003_v51 = vld [vmem:[#allocation2 + $0x3c0] sm:$0xff] }
  0xa8   :  { %v326_v21 = vadd.f32 %v325_v57, %v324_v33  ;;  %v353_v23 = vrot.slane %v352_v60, 2  ;;  %v360_v24 = vrot.slane %v359_v61, 2  ;;  %1120 = vmatpush.msra.mxu3 %v1021_v10  ;;  %v433_v7 = vadd.f32 %v432_v1, %v1692_v36  ;;  %v914_v36 = vld [vmem:[#allocation2 + $0xf8] sm:$0xff]  ;;  %1167 = vmatpush.msrb.mxu1 %v1016_v31  ;;  %v1004_v58 = vld [vmem:[#allocation2 + $0x3c8] sm:$0xff]  ;;  %v1750_v10 = vpop.permute.xlu1 %266  ;;  %v895_v13 = vld [vmem:[#allocation2 + $0x60] sm:$0xff] }
  0xa9   :  { %v507_v18 = vrot.slane %v506_v54, 2  ;;  %v514_v20 = vrot.slane %v513_v55, 2  ;;  %v1721_v33 = vadd.f32 %v437_v11, %v436_v47  ;;  %v1723_v34 = vadd.f32 %v444_v12, %v443_v48  ;;  %1098 = vmatpush.msra.mxu2 %v919_v22  ;;  %1145 = vmatpush.msrb.mxu0 %v914_v36  ;;  %v902_v1 = vld [vmem:[#allocation2 + $0x98] sm:$0xff] }
  0xaa   :  { %v399_v38 = vsel %vm321_vm1, %v300_v14, 0.0  ;;  %1121 = vmatpush.msra.mxu3 %v1015_v19  ;;  %v327_v41 = vrot.slane %v326_v21, 1  ;;  %v1731_v47 = vadd.f32 %v353_v23, %v352_v60  ;;  %v1733_v48 = vadd.f32 %v360_v24, %v359_v61  ;;  %1168 = vmatpush.msrb.mxu1 %v1010_v44  ;;  %v998_v12 = vld [vmem:[#allocation2 + $0x398] sm:$0xff]  ;;  %v173_v23 = vld [vmem:[%s2290_s5 + $0x60] sm:$0x1f]  ;;  %v992_v24 = vld [vmem:[#allocation2 + $0x368] sm:$0xff] }
  0xab   :  { %v1727_v40 = vadd.f32 %v507_v18, %v506_v54  ;;  %v1729_v42 = vadd.f32 %v514_v20, %v513_v55  ;;  %1099 = vmatpush.msra.mxu2 %v913_v32  ;;  %v349_v53 = vadd.f32 %v348_v29, %v1701_v49  ;;  %v334_v54 = vrot.slane %v333_v30, 1  ;;  %v997_v49 = vld [vmem:[#allocation2 + $0x390] sm:$0xff]  ;;  %v1752_v11 = vpop.permute.xlu2 %271  ;;  %1146 = vmatpush.msrb.mxu0 %v908_v52  ;;  %v991_v18 = vld [vmem:[#allocation2 + $0x360] sm:$0xff]  ;;  %v896_v20 = vld [vmem:[#allocation2 + $0x68] sm:$0xff] }
  0xac   :  { %v393_v55 = vrot.slane %v392_v37, 4  ;;  %v400_v57 = vrot.slane %v399_v38, 4  ;;  %1122 = vmatpush.msra.mxu3 %v1009_v39  ;;  %v1739_v60 = vadd.f32 %v1668_v56, %v426_v17  ;;  %v1742_v61 = vadd.f32 %v1670_v62, %v433_v7  ;;  %1169 = vmatpush.msrb.mxu1 %v1004_v58  ;;  %v985_v29 = vld [vmem:[#allocation2 + $0x330] sm:$0xff]  ;;  %v883_v39 = vld [vmem:[#allocation2] sm:$0xff]  ;;  %v884_v44 = vld [vmem:[#allocation2 + $0x8] sm:$0xff] }
  0xad   :  { %v439_v63 = vrot.slane %v1721_v33, 1  ;;  %v446_v0 = vrot.slane %v1723_v34, 1  ;;  %1100 = vmatpush.msra.mxu2 %v907_v45  ;;  %v509_v2 = vrot.slane %v1727_v40, 1  ;;  %v516_v3 = vrot.slane %v1729_v42, 1  ;;  %1147 = vmatpush.msrb.mxu0 %v902_v1  ;;  %v182_v52 = vld [vmem:[%s2290_s5 + $0xa8] sm:$0x1f] }
  0xae   :  { %v328_v4 = vadd.f32 %v327_v41, %v326_v21  ;;  %v1748_v9 = vadd.f32 %v372_v43, %v371_v26  ;;  %1123 = vmatpush.msra.mxu3 %v1003_v51  ;;  %v1755_v14 = vadd.f32 %v1668_v56, %v342_v28  ;;  %v355_v15 = vrot.slane %v1731_v47, 1  ;;  %v174_v28 = vld [vmem:[%s2290_s5 + $0x68] sm:$0x1f]  ;;  %1170 = vmatpush.msrb.mxu1 %v998_v12  ;;  %v979_v43 = vld [vmem:[#allocation2 + $0x300] sm:$0xff] }
  0xaf   :  { %v362_v16 = vrot.slane %v1733_v48, 1  ;;  %v367_v17 = vrot.slane %v1735_v50, 2  ;;  %1101 = vmatpush.msra.mxu2 %v901_v59  ;;  %v335_v21 = vadd.f32 %v334_v54, %v333_v30  ;;  %v1760_v22 = vadd.f32 %v393_v55, %v392_v37  ;;  %v890_v30 = vld [vmem:[#allocation2 + $0x38] sm:$0xff]  ;;  %1148 = vmatpush.msrb.mxu0 %v896_v20  ;;  %v980_v54 = vld [vmem:[#allocation2 + $0x308] sm:$0xff]  ;;  %v975_v55 = vld [vmem:[#allocation2 + $0x2e0] sm:$0xff] }
  0xb0   :  { %v1762_v19 = vadd.f32 %v400_v57, %v399_v38  ;;  %1124 = vmatpush.msra.mxu3 %v997_v49  ;;  %v440_v26 = vadd.f32 %v439_v63, %v1721_v33  ;;  %v447_v27 = vadd.f32 %v446_v0, %v1723_v34  ;;  %v1770_v7 = vadd.f32 %v1670_v62, %v349_v53  ;;  %v179_v34 = vld [vmem:[%s2290_s5 + $0x90] sm:$0x1f]  ;;  %v986_v38 = vld [vmem:[#allocation2 + $0x338] sm:$0xff]  ;;  %v185_v0 = vld [vmem:[%s2290_s5 + $0xc0] sm:$0x1f] }
  0xb1   :  { %1102 = vmatpush.msra.mxu2 %v895_v13  ;;  %v510_v31 = vadd.f32 %v509_v2, %v1727_v40  ;;  %v517_v32 = vadd.f32 %v516_v3, %v1729_v42  ;;  %v1778_v37 = vadd.f32 %v1668_v56, %v328_v4  ;;  %v374_v33 = vrot.slane %v1748_v9, 2  ;;  %v180_v42 = vld [vmem:[%s2290_s5 + $0x98] sm:$0x1f]  ;;  %1171 = vmatpush.msrb.mxu1 %v992_v24  ;;  %v183_v53 = vld [vmem:[%s2290_s5 + $0xb0] sm:$0x1f]  ;;  %v1071_v1 = vld [vmem:[#allocation2 + $0x5e0] sm:$0xff] }
  0xb2   :  { %1125 = vmatpush.msra.mxu3 %v991_v18  ;;  %v356_v36 = vadd.f32 %v355_v15, %v1731_v47  ;;  %v363_v41 = vadd.f32 %v362_v16, %v1733_v48  ;;  %v1787_v40 = vadd.f32 %v367_v17, %v1735_v50  ;;  %v1793_v45 = vadd.f32 %v1670_v62, %v335_v21  ;;  %v181_v50 = vld [vmem:[%s2290_s5 + $0xa0] sm:$0x1f]  ;;  %v184_v63 = vld [vmem:[%s2290_s5 + $0xb8] sm:$0x1f]  ;;  %v186_v49 = vld [vmem:[%s2290_s5 + $0xc8] sm:$0x1f] }
  0xb3   :  { %1103 = vmatpush.msra.mxu2 %v889_v25  ;;  %v395_v51 = vrot.slane %v1760_v22, 2  ;;  %v402_v47 = vrot.slane %v1762_v19, 2  ;;  %v301_v48 = vmul.f32 %v1678_v8, %v173_v23  ;;  %1149 = vmatpush.msrb.mxu0 %v890_v30  ;;  %v1808_v57 = vadd.f32 %v1668_v56, %v440_v26  ;;  %v976_v2 = vld [vmem:[#allocation2 + $0x2e8] sm:$0xff]  ;;  %v189_v12 = vld [vmem:[%s2290_s5 + $0xe0] sm:$0x1f]  ;;  %v969_v15 = vld [vmem:[#allocation2 + $0x2b0] sm:$0xff] }
  0xb4   :  { %1126 = vmatpush.msra.mxu3 %v985_v29  ;;  %v1811_v58 = vadd.f32 %v1670_v62, %v447_v27  ;;  %v302_v59 = vmul.f32 %v1678_v8, %v174_v28  ;;  %1172 = vmatpush.msrb.mxu1 %v986_v38  ;;  %v1824_v3 = vadd.f32 %v1668_v56, %v510_v31  ;;  %v1072_v13 = vld [vmem:[#allocation2 + $0x5e8] sm:$0xff]  ;;  %v369_v18 = vrot.slane %v1787_v40, 1  ;;  %v1065_v21 = vld [vmem:[#allocation2 + $0x5b0] sm:$0xff]  ;;  %v970_v23 = vld [vmem:[#allocation2 + $0x2b8] sm:$0xff]  ;;  %v282_v28 = vpop.permute.xlu1 %281  ;;  %v287_v29 = vpop.permute.xlu2 %286 }
  0xb5   :  { %1104 = vmatpush.msra.mxu2 %v883_v39  ;;  %v1827_v8 = vadd.f32 %v1670_v62, %v517_v32  ;;  %v1830_v4 = vadd.f32 %v374_v33, %v1748_v9  ;;  %1150 = vmatpush.msrb.mxu0 %v884_v44  ;;  %v1836_v16 = vadd.f32 %v1668_v56, %v356_v36  ;;  %v190_v9 = vld [vmem:[%s2290_s5 + $0xe8] sm:$0x1f]  ;;  %v1853_v26 = vsel %vm321_vm1, %v301_v48, 0.0  ;;  %v191_v30 = vld [vmem:[%s2290_s5 + $0xf0] sm:$0x1f]  ;;  %v1066_v31 = vld [vmem:[#allocation2 + $0x5b8] sm:$0xff] }
  0xb6   :  { %1127 = vmatpush.msra.mxu3 %v979_v43  ;;  %v1839_v17 = vadd.f32 %v1670_v62, %v363_v41  ;;  %v307_v20 = vmul.f32 %v1712_v5, %v179_v34  ;;  %1173 = vmatpush.msrb.mxu1 %v980_v54  ;;  %v1847_v24 = vadd.f32 %v395_v51, %v1760_v22  ;;  %v963_v32 = vld [vmem:[#allocation2 + $0x280] sm:$0xff]  ;;  %v1860_v22 = vsel %vm321_vm1, %v302_v59, 0.0  ;;  %v964_v39 = vld [vmem:[#allocation2 + $0x288] sm:$0xff]  ;;  %v957_v44 = vld [vmem:[#allocation2 + $0x250] sm:$0xff] }
  0xb7   :  { %1181 = vmatpush.msrb.mxu2 %v975_v55  ;;  %v1850_v25 = vadd.f32 %v402_v47, %v1762_v19  ;;  %v308_v27 = vmul.f32 %v1712_v5, %v180_v42  ;;  %1227 = vmatpush.msra.mxu0 %v976_v2  ;;  %v309_v19 = vmul.f32 %v1714_v6, %v181_v50  ;;  %v192_v5 = vld [vmem:[%s2290_s5 + $0xf8] sm:$0x1f]  ;;  %v1059_v38 = vld [vmem:[#allocation2 + $0x580] sm:$0xff]  ;;  %v376_v36 = vrot.slane %v1830_v4, 1 }
  0xb8   :  { %1204 = vmatpush.msrb.mxu3 %v1071_v1  ;;  %v310_v33 = vmul.f32 %v1714_v6, %v182_v52  ;;  %v311_v34 = vmul.f32 %v1750_v10, %v183_v53  ;;  %1250 = vmatpush.msra.mxu1 %v1072_v13  ;;  %v312_v41 = vmul.f32 %v1750_v10, %v184_v63  ;;  %v1060_v6 = vld [vmem:[#allocation2 + $0x588] sm:$0xff]  ;;  %v1873_v51 = vsel %vm321_vm1, %v307_v20, 0.0  ;;  %v1053_v52 = vld [vmem:[#allocation2 + $0x550] sm:$0xff]  ;;  %v958_v53 = vld [vmem:[#allocation2 + $0x258] sm:$0xff] }
  0xb9   :  { %1182 = vmatpush.msrb.mxu2 %v969_v15  ;;  %v313_v42 = vmul.f32 %v1752_v11, %v185_v0  ;;  %v314_v43 = vmul.f32 %v1752_v11, %v186_v49  ;;  %1228 = vmatpush.msra.mxu0 %v970_v23  ;;  %v317_v47 = vmul.f32 %v282_v28, %v189_v12  ;;  %v407_v10 = vrot.slane %v1853_v26, 4  ;;  %v1054_v59 = vld [vmem:[#allocation2 + $0x558] sm:$0xff]  ;;  %v951_v63 = vld [vmem:[#allocation2 + $0x220] sm:$0xff]  ;;  %v952_v13 = vld [vmem:[#allocation2 + $0x228] sm:$0xff] }
  0xba   :  { %1205 = vmatpush.msrb.mxu3 %v1065_v21  ;;  %v318_v48 = vmul.f32 %v282_v28, %v190_v9  ;;  %v319_v50 = vmul.f32 %v287_v29, %v191_v30  ;;  %1251 = vmatpush.msra.mxu1 %v1066_v31  ;;  %v414_v54 = vrot.slane %v1860_v22, 4  ;;  %v455_v11 = vsel %vm321_vm1, %v308_v27, 0.0  ;;  %v1047_v12 = vld [vmem:[#allocation2 + $0x520] sm:$0xff]  ;;  %v1041_v30 = vld [vmem:[#allocation2 + $0x4f0] sm:$0xff]  ;;  %v946_v31 = vld [vmem:[#allocation2 + $0x1f8] sm:$0xff] }
  0xbb   :  { %1183 = vmatpush.msrb.mxu2 %v963_v32  ;;  %v320_v55 = vmul.f32 %v287_v29, %v192_v5  ;;  %1229 = vmatpush.msra.mxu0 %v964_v39  ;;  %v1879_v0 = vadd.f32 %v369_v18, %v1787_v40  ;;  %v462_v49 = vsel %vm321_vm1, %v309_v19, 0.0  ;;  %v469_v1 = vsel %vm321_vm1, %v310_v33, 0.0  ;;  %v1048_v40 = vld [vmem:[#allocation2 + $0x528] sm:$0xff]  ;;  %v945_v18 = vld [vmem:[#allocation2 + $0x1f0] sm:$0xff]  ;;  %v1042_v5 = vld [vmem:[#allocation2 + $0x4f8] sm:$0xff] }
  0xbc   :  { %1206 = vmatpush.msrb.mxu3 %v1059_v38  ;;  %v476_v2 = vsel %vm321_vm1, %v311_v34, 0.0  ;;  %1252 = vmatpush.msra.mxu1 %v1060_v6  ;;  %v449_v15 = vrot.slane %v1873_v51, 4  ;;  %v483_v20 = vsel %vm321_vm1, %v312_v41, 0.0  ;;  %v490_v9 = vsel %vm321_vm1, %v313_v42, 0.0  ;;  %v939_v38 = vld [vmem:[#allocation2 + $0x1c0] sm:$0xff] }
  0xbd   :  { %1184 = vmatpush.msrb.mxu2 %v957_v44  ;;  %v497_v21 = vsel %vm321_vm1, %v314_v43, 0.0  ;;  %1230 = vmatpush.msra.mxu0 %v958_v53  ;;  %v456_v23 = vrot.slane %v455_v11, 4  ;;  %v518_v27 = vsel %vm321_vm1, %v317_v47, 0.0  ;;  %v525_v28 = vsel %vm321_vm1, %v318_v48, 0.0  ;;  %v1035_v6 = vld [vmem:[#allocation2 + $0x4c0] sm:$0xff]  ;;  %v940_v44 = vld [vmem:[#allocation2 + $0x1c8] sm:$0xff] }
  0xbe   :  { %1207 = vmatpush.msrb.mxu3 %v1053_v52  ;;  %v532_v29 = vsel %vm321_vm1, %v319_v50, 0.0  ;;  %1253 = vmatpush.msra.mxu1 %v1054_v59  ;;  %v463_v32 = vrot.slane %v462_v49, 4  ;;  %v470_v19 = vrot.slane %v469_v1, 4  ;;  %v477_v33 = vrot.slane %v476_v2, 4  ;;  %v1036_v53 = vld [vmem:[#allocation2 + $0x4c8] sm:$0xff] }
  0xbf   :  { %1185 = vmatpush.msrb.mxu2 %v951_v63  ;;  %v539_v34 = vsel %vm321_vm1, %v320_v55, 0.0  ;;  %1231 = vmatpush.msra.mxu0 %v952_v13  ;;  %v377_v39 = vadd.f32 %v376_v36, %v1830_v4  ;;  %v484_v41 = vrot.slane %v483_v20, 4  ;;  %v491_v42 = vrot.slane %v490_v9, 4  ;;  %v933_v55 = vld [vmem:[#allocation2 + $0x190] sm:$0xff]  ;;  %v934_v13 = vld [vmem:[#allocation2 + $0x198] sm:$0xff] }
  0xc0   :  { %1208 = vmatpush.msrb.mxu3 %v1047_v12  ;;  %v498_v43 = vrot.slane %v497_v21, 4  ;;  %1254 = vmatpush.msra.mxu1 %v1048_v40  ;;  %v408_v47 = vadd.f32 %v407_v10, %v1853_v26  ;;  %v519_v48 = vrot.slane %v518_v27, 4  ;;  %v526_v50 = vrot.slane %v525_v28, 4  ;;  %v1029_v12 = vld [vmem:[#allocation2 + $0x490] sm:$0xff] }
  0xc1   :  { %1186 = vmatpush.msrb.mxu2 %v945_v18  ;;  %v533_v52 = vrot.slane %v532_v29, 4  ;;  %1232 = vmatpush.msra.mxu0 %v946_v31  ;;  %v415_v59 = vadd.f32 %v414_v54, %v1860_v22  ;;  %v450_v4 = vadd.f32 %v449_v15, %v1873_v51  ;;  %v457_v36 = vadd.f32 %v456_v23, %v455_v11  ;;  %v1030_v18 = vld [vmem:[#allocation2 + $0x498] sm:$0xff]  ;;  %v1023_v54 = vld [vmem:[#allocation2 + $0x460] sm:$0xff]  ;;  %v928_v11 = vld [vmem:[#allocation2 + $0x168] sm:$0xff] }
  0xc2   :  { %1209 = vmatpush.msrb.mxu3 %v1041_v30  ;;  %v540_v63 = vrot.slane %v539_v34, 4  ;;  %1255 = vmatpush.msra.mxu1 %v1042_v5  ;;  %v1896_v40 = vadd.f32 %v463_v32, %v462_v49  ;;  %v1898_v26 = vadd.f32 %v470_v19, %v469_v1  ;;  %v1900_v10 = vadd.f32 %v477_v33, %v476_v2  ;;  %v927_v30 = vld [vmem:[#allocation2 + $0x160] sm:$0xff]  ;;  %v1024_v23 = vld [vmem:[#allocation2 + $0x468] sm:$0xff]  ;;  %v1017_v33 = vld [vmem:[#allocation2 + $0x430] sm:$0xff] }
  0xc3   :  { %1187 = vmatpush.msrb.mxu2 %v939_v38  ;;  %1233 = vmatpush.msra.mxu0 %v940_v44  ;;  %v1902_v31 = vadd.f32 %v484_v41, %v483_v20  ;;  %v1904_v22 = vadd.f32 %v491_v42, %v490_v9  ;;  %v1906_v51 = vadd.f32 %v498_v43, %v497_v21  ;;  %v409_v49 = vrot.slane %v408_v47, 2  ;;  %v921_v20 = vld [vmem:[#allocation2 + $0x130] sm:$0xff]  ;;  %v922_v5 = vld [vmem:[#allocation2 + $0x138] sm:$0xff]  ;;  %v915_v42 = vld [vmem:[#allocation2 + $0x100] sm:$0xff] }
  0xc4   :  { %1210 = vmatpush.msrb.mxu3 %v1035_v6  ;;  %1256 = vmatpush.msra.mxu1 %v1036_v53  ;;  %v1908_v15 = vadd.f32 %v519_v48, %v518_v27  ;;  %v1910_v1 = vadd.f32 %v526_v50, %v525_v28  ;;  %v1912_v2 = vadd.f32 %v533_v52, %v532_v29  ;;  %v416_v32 = vrot.slane %v415_v59, 2  ;;  %v1018_v41 = vld [vmem:[#allocation2 + $0x438] sm:$0xff]  ;;  %v1011_v44 = vld [vmem:[#allocation2 + $0x400] sm:$0xff]  ;;  %v916_v48 = vld [vmem:[#allocation2 + $0x108] sm:$0xff] }
  0xc5   :  { %1188 = vmatpush.msrb.mxu2 %v933_v55  ;;  %1234 = vmatpush.msra.mxu0 %v934_v13  ;;  %v451_v9 = vrot.slane %v450_v4, 2  ;;  %v458_v19 = vrot.slane %v457_v36, 2  ;;  %v1914_v21 = vadd.f32 %v540_v63, %v539_v34  ;;  %v1918_v27 = vadd.f32 %v1668_v56, %v1879_v0  ;;  %v909_v63 = vld [vmem:[#allocation2 + $0xd0] sm:$0xff] }
  0xc6   :  { %1211 = vmatpush.msrb.mxu3 %v1029_v12  ;;  %1257 = vmatpush.msra.mxu1 %v1030_v18  ;;  %v465_v28 = vrot.slane %v1896_v40, 2  ;;  %v472_v29 = vrot.slane %v1898_v26, 2  ;;  %v479_v38 = vrot.slane %v1900_v10, 2  ;;  %v1924_v34 = vadd.f32 %v1670_v62, %v377_v39  ;;  %v1012_v39 = vld [vmem:[#allocation2 + $0x408] sm:$0xff] }
  0xc7   :  { %1189 = vmatpush.msrb.mxu2 %v927_v30  ;;  %1235 = vmatpush.msra.mxu0 %v928_v11  ;;  %v486_v43 = vrot.slane %v1902_v31, 2  ;;  %v493_v6 = vrot.slane %v1904_v22, 2  ;;  %v500_v0 = vrot.slane %v1906_v51, 2  ;;  %v1929_v50 = vadd.f32 %v409_v49, %v408_v47  ;;  %v1005_v47 = vld [vmem:[#allocation2 + $0x3d0] sm:$0xff] }
  0xc8   :  { %1212 = vmatpush.msrb.mxu3 %v1023_v54  ;;  %1258 = vmatpush.msra.mxu1 %v1024_v23  ;;  %v521_v52 = vrot.slane %v1908_v15, 2  ;;  %v528_v53 = vrot.slane %v1910_v1, 2  ;;  %v535_v55 = vrot.slane %v1912_v2, 2  ;;  %v1934_v12 = vadd.f32 %v416_v32, %v415_v59  ;;  %v910_v54 = vld [vmem:[#allocation2 + $0xd8] sm:$0xff] }
  0xc9   :  { %1190 = vmatpush.msrb.mxu2 %v921_v20  ;;  %1236 = vmatpush.msra.mxu0 %v922_v5  ;;  %v1936_v13 = vadd.f32 %v451_v9, %v450_v4  ;;  %v1938_v18 = vadd.f32 %v458_v19, %v457_v36  ;;  %v542_v30 = vrot.slane %v1914_v21, 2  ;;  %v397_v11 = vrot.slane %v1847_v24, 1  ;;  %v1006_v59 = vld [vmem:[#allocation2 + $0x3d8] sm:$0xff]  ;;  %v903_v4 = vld [vmem:[#allocation2 + $0xa0] sm:$0xff] }
  0xca   :  { %1213 = vmatpush.msrb.mxu3 %v1017_v33  ;;  %1259 = vmatpush.msra.mxu1 %v1018_v41  ;;  %v466_v49 = vadd.f32 %v465_v28, %v1896_v40  ;;  %v473_v23 = vadd.f32 %v472_v29, %v1898_v26  ;;  %v480_v20 = vadd.f32 %v479_v38, %v1900_v10  ;;  %v999_v19 = vld [vmem:[#allocation2 + $0x3a0] sm:$0xff]  ;;  %v904_v33 = vld [vmem:[#allocation2 + $0xa8] sm:$0xff]  ;;  %v404_v40 = vrot.slane %v1850_v25, 1  ;;  %v993_v41 = vld [vmem:[#allocation2 + $0x370] sm:$0xff] }
  0xcb   :  { %1191 = vmatpush.msrb.mxu2 %v915_v42  ;;  %1237 = vmatpush.msra.mxu0 %v916_v48  ;;  %v487_v36 = vadd.f32 %v486_v43, %v1902_v31  ;;  %v494_v32 = vadd.f32 %v493_v6, %v1904_v22  ;;  %v501_v9 = vadd.f32 %v500_v0, %v1906_v51  ;;  %v1000_v28 = vld [vmem:[#allocation2 + $0x3a8] sm:$0xff]  ;;  %v897_v31 = vld [vmem:[#allocation2 + $0x70] sm:$0xff]  ;;  %v411_v22 = vrot.slane %v1929_v50, 1  ;;  %v994_v6 = vld [vmem:[#allocation2 + $0x378] sm:$0xff] }
  0xcc   :  { %1214 = vmatpush.msrb.mxu3 %v1011_v44  ;;  %1260 = vmatpush.msra.mxu1 %v1012_v39  ;;  %v522_v26 = vadd.f32 %v521_v52, %v1908_v15  ;;  %v529_v10 = vadd.f32 %v528_v53, %v1910_v1  ;;  %v536_v5 = vadd.f32 %v535_v55, %v1912_v2  ;;  %v418_v51 = vrot.slane %v1934_v12, 1  ;;  %v898_v15 = vld [vmem:[#allocation2 + $0x78] sm:$0xff]  ;;  %v891_v0 = vld [vmem:[#allocation2 + $0x40] sm:$0xff]  ;;  %v892_v55 = vld [vmem:[#allocation2 + $0x48] sm:$0xff] }
  0xcd   :  { %1192 = vmatpush.msrb.mxu2 %v909_v63  ;;  %1238 = vmatpush.msra.mxu0 %v910_v54  ;;  %v453_v29 = vrot.slane %v1936_v13, 1  ;;  %v543_v38 = vadd.f32 %v542_v30, %v1914_v21  ;;  %v398_v1 = vadd.f32 %v397_v11, %v1847_v24  ;;  %v460_v2 = vrot.slane %v1938_v18, 1  ;;  %v987_v21 = vld [vmem:[#allocation2 + $0x340] sm:$0xff] }
  0xce   :  { %1215 = vmatpush.msrb.mxu3 %v1005_v47  ;;  %1261 = vmatpush.msra.mxu1 %v1006_v59  ;;  %v467_v42 = vrot.slane %v466_v49, 1  ;;  %v474_v43 = vrot.slane %v473_v23, 1  ;;  %v481_v44 = vrot.slane %v480_v20, 1  ;;  %v488_v48 = vrot.slane %v487_v36, 1  ;;  %v988_v47 = vld [vmem:[#allocation2 + $0x348] sm:$0xff] }
  0xcf   :  { %1193 = vmatpush.msrb.mxu2 %v903_v4  ;;  %1239 = vmatpush.msra.mxu0 %v904_v33  ;;  %v495_v52 = vrot.slane %v494_v32, 1  ;;  %v502_v53 = vrot.slane %v501_v9, 1  ;;  %v405_v39 = vadd.f32 %v404_v40, %v1850_v25  ;;  %v523_v63 = vrot.slane %v522_v26, 1 }
  0xd0   :  { %1216 = vmatpush.msrb.mxu3 %v999_v19  ;;  %1262 = vmatpush.msra.mxu1 %v1000_v28  ;;  %v530_v24 = vrot.slane %v529_v10, 1  ;;  %v537_v30 = vrot.slane %v536_v5, 1  ;;  %v412_v54 = vadd.f32 %v411_v22, %v1929_v50  ;;  %v419_v11 = vadd.f32 %v418_v51, %v1934_v12 }
  0xd1   :  { %1194 = vmatpush.msrb.mxu2 %v897_v31  ;;  %1240 = vmatpush.msra.mxu0 %v898_v15  ;;  %v454_v59 = vadd.f32 %v453_v29, %v1936_v13  ;;  %v544_v4 = vrot.slane %v543_v38, 1  ;;  %v461_v19 = vadd.f32 %v460_v2, %v1938_v18  ;;  %v468_v33 = vadd.f32 %v467_v42, %v466_v49 }
  0xd2   :  { %1217 = vmatpush.msrb.mxu3 %v993_v41  ;;  %1263 = vmatpush.msra.mxu1 %v994_v6  ;;  %v475_v28 = vadd.f32 %v474_v43, %v473_v23  ;;  %v482_v25 = vadd.f32 %v481_v44, %v480_v20  ;;  %v489_v40 = vadd.f32 %v488_v48, %v487_v36  ;;  %v1978_v20 = vld [vmem:[%s2289_s4] sm:$0x3]  ;;  %v981_v44 = vld [vmem:[#allocation2 + $0x310] sm:$0xff]  ;;  %v886_v48 = vld [vmem:[#allocation2 + $0x18] sm:$0xff] }
  0xd3   :  { %1195 = vmatpush.msrb.mxu2 %v891_v0  ;;  %1241 = vmatpush.msra.mxu0 %v892_v55  ;;  %v496_v31 = vadd.f32 %v495_v52, %v494_v32  ;;  %v503_v41 = vadd.f32 %v502_v53, %v501_v9  ;;  %v1964_v50 = vadd.f32 %v1668_v56, %v398_v1  ;;  %v2012_v1 = vld [vmem:[%s2293_s8 + $0x8] sm:$0xff]  ;;  %v104_v6 = vperm.slane %v1978_v20, 0  ;;  %v885_v0 = vld [vmem:[#allocation2 + $0x10] sm:$0xff] }
  0xd4   :  { %1218 = vmatpush.msrb.mxu3 %v987_v21  ;;  %1264 = vmatpush.msra.mxu1 %v988_v47  ;;  %v524_v12 = vadd.f32 %v523_v63, %v522_v26  ;;  %v531_v22 = vadd.f32 %v530_v24, %v529_v10  ;;  %v538_v13 = vadd.f32 %v537_v30, %v536_v5  ;;  %v1995_v10 = vld [vmem:[%s2293_s8] sm:$0xff]  ;;  %v2298_v53 = vperm.slane %v1978_v20, 1 }
  0xd5   :  { %v1967_v51 = vadd.f32 %v1670_v62, %v405_v39  ;;  %v1970_v18 = vadd.f32 %v1668_v56, %v412_v54  ;;  %v1973_v49 = vadd.f32 %v1670_v62, %v419_v11  ;;  %v545_v23 = vadd.f32 %v544_v4, %v543_v38  ;;  %1196 = vmatpush.msrb.mxu2 %v885_v0  ;;  %v982_v39 = vld [vmem:[#allocation2 + $0x318] sm:$0xff] }
  0xd6   :  { %v1981_v36 = vadd.f32 %v1668_v56, %v454_v59  ;;  %v1984_v32 = vadd.f32 %v1670_v62, %v461_v19  ;;  %v1987_v9 = vadd.f32 %v1668_v56, %v468_v33  ;;  %v1990_v26 = vadd.f32 %v1670_v62, %v475_v28  ;;  %1219 = vmatpush.msrb.mxu3 %v981_v44 }
  0xd7   :  { %v1998_v5 = vadd.f32 %v1668_v56, %v482_v25  ;;  %v2001_v29 = vadd.f32 %v1670_v62, %v489_v40  ;;  %v2004_v38 = vadd.f32 %v1668_v56, %v496_v31  ;;  %v2007_v15 = vadd.f32 %v1670_v62, %v503_v41  ;;  %1242 = vmatpush.msra.mxu0 %v886_v48 }
  0xd8   :  { %v2015_v2 = vadd.f32 %v1668_v56, %v524_v12  ;;  %v2018_v42 = vadd.f32 %v1670_v62, %v531_v22  ;;  %v2021_v43 = vadd.f32 %v1668_v56, %v538_v13  ;;  %v2025_v52 = vadd.f32 %v1670_v62, %v545_v23  ;;  %1265 = vmatpush.msra.mxu1 %v982_v39  ;;  %v2037_v62 = vld [vmem:[%s2293_s8 + $0x10] sm:$0xff] }
  0xd9   :  { %v688_v21 = vrot.slane %v1995_v10, 1  ;;  %v690_v55 = vrot.slane %v1995_v10, 2  ;;  %v692_v56 = vrot.slane %v1995_v10, 3  ;;  %v694_v63 = vrot.slane %v1995_v10, 4 }
  0xda   :  { %v696_v24 = vrot.slane %v1995_v10, 5  ;;  %v698_v30 = vrot.slane %v1995_v10, 6  ;;  %v700_v47 = vrot.slane %v1995_v10, 7 }
 0x106   :  { %v132_v4 = vpop.f32.mrf.mxu0  ;;  %v155_v19 = vpop.f32.mrf.mxu1 }
 0x107   :  { %v133_v31 = vadd.f32 %v132_v4, %v104_v6  ;;  %v156_v39 = vadd.f32 %v155_v19, %v2298_v53 }
 0x109   :  { %v588_v48 = vrot.slane %v133_v31, 1  ;;  %v590_v4 = vrot.slane %v133_v31, 2  ;;  %v592_v40 = vrot.slane %v133_v31, 3  ;;  %v594_v41 = vrot.slane %v133_v31, 4 }
 0x10a   :  { %v596_v12 = vrot.slane %v133_v31, 5  ;;  %v598_v25 = vrot.slane %v133_v31, 6  ;;  %v600_v22 = vrot.slane %v133_v31, 7  ;;  %v648_v13 = vadd.f32 %v1778_v37, %v133_v31 }
 0x10b   :  { %v650_v23 = vadd.f32 %v588_v48, %v1755_v14  ;;  %v652_v0 = vadd.f32 %v590_v4, %v1836_v16  ;;  %v654_v44 = vadd.f32 %v592_v40, %v1918_v27  ;;  %v656_v28 = vadd.f32 %v594_v41, %v1690_v35 }
 0x10c   :  { %v658_v19 = vadd.f32 %v596_v12, %v1964_v50  ;;  %v660_v33 = vadd.f32 %v598_v25, %v1970_v18  ;;  %v662_v59 = vadd.f32 %v600_v22, %v1739_v60  ;;  %v589_v11 = vrot.slane %v156_v39, 1 }
 0x10d   :  { %v750_v54 = vadd.f32 %v688_v21, %v650_v23  ;;  %v752_v53 = vadd.f32 %v690_v55, %v652_v0  ;;  %v754_v37 = vadd.f32 %v692_v56, %v654_v44  ;;  %v756_v48 = vadd.f32 %v694_v63, %v656_v28 }
 0x10e   :  { %v135_v31 = vpop.f32.mrf.mxu0  ;;  %v158_v14 = vpop.f32.mrf.mxu1  ;;  %v758_v16 = vadd.f32 %v696_v24, %v658_v19  ;;  %v760_v4 = vadd.f32 %v698_v30, %v660_v33  ;;  %v762_v27 = vadd.f32 %v700_v47, %v662_v59  ;;  %v748_v50 = vadd.f32 %v1995_v10, %v648_v13 }
 0x10f   :  { %v2068_v35 = vadd.f32 %v135_v31, %v104_v6  ;;  %v812_v18 = vrot.slane %v750_v54, 7  ;;  %v815_v25 = vrot.slane %v752_v53, 6  ;;  %v2299_v60 = vperm.slane %v1978_v20, 1 }
 0x110   :  { %v818_v21 = vrot.slane %v754_v37, 5  ;;  %v821_v55 = vrot.slane %v756_v48, 4  ;;  %v824_v56 = vrot.slane %v758_v16, 3  ;;  %v827_v30 = vrot.slane %v760_v4, 2 }
 0x111   :  { %v2073_v40 = vadd.f32 %v158_v14, %v2299_v60  ;;  %v602_v63 = vrot.slane %v2068_v35, 1  ;;  %v814_v24 = vsel %vm813_vm2, %v812_v18, %v748_v50  ;;  %v830_v47 = vrot.slane %v762_v27, 1  ;;  %v972_v60 = vld [vmem:[#allocation2 + $0x2c8] sm:$0xff] }
 0x112   :  { %v817_v6 = vsel %vm816_vm3, %v815_v25, %v814_v24  ;;  %v591_v59 = vrot.slane %v156_v39, 2  ;;  %v593_v33 = vrot.slane %v156_v39, 3  ;;  %v595_v10 = vrot.slane %v156_v39, 4  ;;  %v971_v25 = vld [vmem:[#allocation2 + $0x2c0] sm:$0xff] }
 0x113   :  { %v820_v53 = vsel %vm819_vm4, %v818_v21, %v817_v6  ;;  %v597_v54 = vrot.slane %v156_v39, 5  ;;  %v599_v20 = vrot.slane %v156_v39, 6  ;;  %v601_v28 = vrot.slane %v156_v39, 7 }
 0x114   :  { %v823_v41 = vsel %vm822_vm5, %v821_v55, %v820_v53  ;;  %v649_v12 = vadd.f32 %v1793_v45, %v156_v39  ;;  %v651_v22 = vadd.f32 %v589_v11, %v1770_v7  ;;  %v653_v13 = vadd.f32 %v591_v59, %v1839_v17  ;;  %v977_v39 = vld [vmem:[#allocation2 + $0x2f0] sm:$0xff]  ;;  %v978_v7 = vld [vmem:[#allocation2 + $0x2f8] sm:$0xff] }
 0x115   :  { %v826_v23 = vsel %vm825_vm6, %v824_v56, %v823_v41  ;;  %v655_v0 = vadd.f32 %v593_v33, %v1924_v34  ;;  %v657_v44 = vadd.f32 %v595_v10, %v1699_v46  ;;  %v659_v19 = vadd.f32 %v597_v54, %v1967_v51  ;;  %v965_v33 = vld [vmem:[#allocation2 + $0x290] sm:$0xff]  ;;  %v966_v10 = vld [vmem:[#allocation2 + $0x298] sm:$0xff] }
 0x116   :  { %v603_v37 = vrot.slane %v2073_v40, 1  ;;  %v829_v31 = vsel %vm828_vm7, %v827_v30, %v826_v23  ;;  %v661_v14 = vadd.f32 %v599_v20, %v1973_v49  ;;  %v663_v45 = vadd.f32 %v601_v28, %v1742_v61 }
 0x117   :  { %v2092_v17 = vsel %vm831_vm8, %v830_v47, %v829_v31  ;;  %v2300_v11 = vrot.slane %v2012_v1, 1  ;;  %v2301_v46 = vrot.slane %v2012_v1, 2  ;;  %v2302_v51 = vrot.slane %v2012_v1, 3 }
 0x118   :  { %879 = vst [vmem:[%s2296_s11] sm:$0xff] %v2092_v17  ;;  %1105 = vmatmul.f32.vlgmr.msra.gmra.mxu2 %v2092_v17  ;;  %v2303_v61 = vrot.slane %v2012_v1, 4  ;;  %v2304_v4 = vrot.slane %v2012_v1, 5  ;;  %v2305_v50 = vrot.slane %v2012_v1, 6  ;;  %1151 = vmatmul.f32.vlgmr.msrb.gmra.mxu0 %v2092_v17  ;;  %v749_v21 = vadd.f32 %v2012_v1, %v649_v12  ;;  %v959_v12 = vld [vmem:[#allocation2 + $0x260] sm:$0xff] }
 0x119   :  { %v751_v34 = vadd.f32 %v2300_v11, %v651_v22  ;;  %v753_v48 = vadd.f32 %v2301_v46, %v653_v13  ;;  %v755_v16 = vadd.f32 %v2302_v51, %v655_v0  ;;  %v2306_v55 = vrot.slane %v2012_v1, 7  ;;  %1273 = vmatpush.msra.mxu2 %v977_v39  ;;  %1319 = vmatpush.msrb.mxu0 %v978_v7  ;;  %v960_v22 = vld [vmem:[#allocation2 + $0x268] sm:$0xff]  ;;  %v1074_v51 = vld [vmem:[#allocation2 + $0x5f8] sm:$0xff] }
 0x11a   :  { %v757_v49 = vadd.f32 %v2303_v61, %v657_v44  ;;  %v759_v27 = vadd.f32 %v2304_v4, %v659_v19  ;;  %v761_v18 = vadd.f32 %v2305_v50, %v661_v14  ;;  %v604_v53 = vrot.slane %v2068_v35, 2 }
 0x11b   :  { %v763_v56 = vadd.f32 %v2306_v55, %v663_v45  ;;  %v833_v24 = vrot.slane %v751_v34, 7  ;;  %v835_v30 = vrot.slane %v753_v48, 6  ;;  %v837_v47 = vrot.slane %v755_v16, 5  ;;  %1274 = vmatpush.msra.mxu2 %v971_v25  ;;  %1320 = vmatpush.msrb.mxu0 %v972_v60  ;;  %v953_v34 = vld [vmem:[#allocation2 + $0x230] sm:$0xff]  ;;  %v1067_v25 = vld [vmem:[#allocation2 + $0x5c0] sm:$0xff]  ;;  %v1068_v60 = vld [vmem:[#allocation2 + $0x5c8] sm:$0xff] }
 0x11c   :  { %v839_v6 = vrot.slane %v757_v49, 4  ;;  %v841_v59 = vrot.slane %v759_v27, 3  ;;  %v843_v20 = vrot.slane %v761_v18, 2  ;;  %v606_v28 = vrot.slane %v2068_v35, 3  ;;  %v954_v18 = vld [vmem:[#allocation2 + $0x238] sm:$0xff] }
 0x11d   :  { %v834_v54 = vsel %vm813_vm2, %v833_v24, %v749_v21  ;;  %v608_v1 = vrot.slane %v2068_v35, 4  ;;  %v610_v13 = vrot.slane %v2068_v35, 5  ;;  %v612_v23 = vrot.slane %v2068_v35, 6  ;;  %1275 = vmatpush.msra.mxu2 %v965_v33  ;;  %1321 = vmatpush.msrb.mxu0 %v966_v10 }
 0x11e   :  { %v836_v41 = vsel %vm816_vm3, %v835_v30, %v834_v54  ;;  %v614_v0 = vrot.slane %v2068_v35, 7  ;;  %v845_v19 = vrot.slane %v763_v56, 1  ;;  %v664_v31 = vadd.f32 %v1808_v57, %v2068_v35  ;;  %v948_v54 = vld [vmem:[#allocation2 + $0x208] sm:$0xff] }
 0x11f   :  { %v838_v44 = vsel %vm819_vm4, %v837_v47, %v836_v41  ;;  %v666_v14 = vadd.f32 %v602_v63, %v1981_v36  ;;  %v668_v39 = vadd.f32 %v604_v53, %v1987_v9  ;;  %v670_v7 = vadd.f32 %v606_v28, %v1998_v5  ;;  %1276 = vmatpush.msra.mxu2 %v959_v12  ;;  %v1073_v63 = vld [vmem:[#allocation2 + $0x5f0] sm:$0xff] }
 0x120   :  { %v840_v45 = vsel %vm822_vm5, %v839_v6, %v838_v44  ;;  %v672_v11 = vadd.f32 %v608_v1, %v2004_v38  ;;  %1322 = vmatpush.msrb.mxu0 %v960_v22  ;;  %v674_v48 = vadd.f32 %v610_v13, %v1824_v3  ;;  %v676_v57 = vadd.f32 %v612_v23, %v2015_v2  ;;  %v1061_v6 = vld [vmem:[#allocation2 + $0x590] sm:$0xff]  ;;  %v2168_v22 = vld [vmem:[%s2293_s8 + $0x18] sm:$0xff] }
 0x121   :  { %v842_v46 = vsel %vm825_vm6, %v841_v59, %v840_v45  ;;  %v605_v35 = vrot.slane %v2073_v40, 2  ;;  %v678_v9 = vadd.f32 %v614_v0, %v2021_v43  ;;  %v2307_v5 = vrot.slane %v2037_v62, 1  ;;  %1277 = vmatpush.msra.mxu2 %v953_v34  ;;  %v947_v43 = vld [vmem:[#allocation2 + $0x200] sm:$0xff]  ;;  %v941_v44 = vld [vmem:[#allocation2 + $0x1d0] sm:$0xff] }
 0x122   :  { %v844_v36 = vsel %vm828_vm7, %v843_v20, %v842_v46  ;;  %v607_v16 = vrot.slane %v2073_v40, 3  ;;  %v2308_v3 = vrot.slane %v2037_v62, 2  ;;  %v2309_v2 = vrot.slane %v2037_v62, 3  ;;  %v1062_v20 = vld [vmem:[#allocation2 + $0x598] sm:$0xff]  ;;  %1323 = vmatpush.msrb.mxu0 %v954_v18  ;;  %v1044_v18 = vld [vmem:[#allocation2 + $0x508] sm:$0xff] }
 0x123   :  { %v766_v38 = vadd.f32 %v2307_v5, %v666_v14  ;;  %v2143_v61 = vsel %vm831_vm8, %v845_v19, %v844_v36  ;;  %v2310_v27 = vrot.slane %v2037_v62, 4  ;;  %v2311_v21 = vrot.slane %v2037_v62, 5  ;;  %1278 = vmatpush.msra.mxu2 %v947_v43  ;;  %v1055_v19 = vld [vmem:[#allocation2 + $0x560] sm:$0xff]  ;;  %v1050_v5 = vld [vmem:[#allocation2 + $0x538] sm:$0xff]  ;;  %v1037_v43 = vld [vmem:[#allocation2 + $0x4d0] sm:$0xff] }
 0x124   :  { %v768_v49 = vadd.f32 %v2308_v3, %v668_v39  ;;  %v770_v4 = vadd.f32 %v2309_v2, %v670_v7  ;;  %880 = vst [vmem:[%s2296_s11 + $0x8] sm:$0xff] %v2143_v61  ;;  %1128 = vmatmul.f32.vlgmr.msra.gmra.mxu3 %v2143_v61  ;;  %1174 = vmatmul.f32.vlgmr.msrb.gmra.mxu1 %v2143_v61  ;;  %v2312_v56 = vrot.slane %v2037_v62, 6  ;;  %v2313_v30 = vrot.slane %v2037_v62, 7  ;;  %v935_v36 = vld [vmem:[#allocation2 + $0x1a0] sm:$0xff] }
 0x125   :  { %v772_v50 = vadd.f32 %v2310_v27, %v672_v11  ;;  %v774_v55 = vadd.f32 %v2311_v21, %v674_v48  ;;  %1296 = vmatpush.msra.mxu3 %v1073_v63  ;;  %1342 = vmatpush.msrb.mxu1 %v1074_v51  ;;  %v764_v59 = vadd.f32 %v2037_v62, %v664_v31  ;;  %v847_v33 = vrot.slane %v766_v38, 7  ;;  %v1056_v31 = vld [vmem:[#allocation2 + $0x568] sm:$0xff]  ;;  %v1043_v38 = vld [vmem:[#allocation2 + $0x500] sm:$0xff]  ;;  %v929_v27 = vld [vmem:[#allocation2 + $0x170] sm:$0xff] }
 0x126   :  { %v776_v24 = vadd.f32 %v2312_v56, %v676_v57  ;;  %v778_v47 = vadd.f32 %v2313_v30, %v678_v9  ;;  %v849_v10 = vrot.slane %v768_v49, 6  ;;  %v851_v53 = vrot.slane %v770_v4, 5  ;;  %1324 = vmatpush.msrb.mxu0 %v948_v54  ;;  %v942_v57 = vld [vmem:[#allocation2 + $0x1d8] sm:$0xff]  ;;  %1279 = vmatpush.msra.mxu2 %v941_v44  ;;  %v936_v4 = vld [vmem:[#allocation2 + $0x1a8] sm:$0xff]  ;;  %v917_v54 = vld [vmem:[#allocation2 + $0x110] sm:$0xff] }
 0x127   :  { %v853_v28 = vrot.slane %v772_v50, 4  ;;  %v855_v1 = vrot.slane %v774_v55, 3  ;;  %v609_v12 = vrot.slane %v2073_v40, 4  ;;  %1297 = vmatpush.msra.mxu3 %v1067_v25  ;;  %1343 = vmatpush.msrb.mxu1 %v1068_v60  ;;  %v848_v62 = vsel %vm813_vm2, %v847_v33, %v764_v59  ;;  %v930_v56 = vld [vmem:[#allocation2 + $0x178] sm:$0xff] }
 0x128   :  { %v857_v41 = vrot.slane %v776_v24, 2  ;;  %v859_v13 = vrot.slane %v778_v47, 1  ;;  %v611_v23 = vrot.slane %v2073_v40, 5  ;;  %v613_v0 = vrot.slane %v2073_v40, 6  ;;  %1325 = vmatpush.msrb.mxu0 %v942_v57  ;;  %1280 = vmatpush.msra.mxu2 %v935_v36  ;;  %v923_v24 = vld [vmem:[#allocation2 + $0x140] sm:$0xff]  ;;  %v1038_v47 = vld [vmem:[#allocation2 + $0x4d8] sm:$0xff] }
 0x129   :  { %v850_v14 = vsel %vm816_vm3, %v849_v10, %v848_v62  ;;  %v615_v45 = vrot.slane %v2073_v40, 7  ;;  %v665_v39 = vadd.f32 %v1811_v58, %v2073_v40  ;;  %v667_v7 = vadd.f32 %v603_v37, %v1984_v32  ;;  %1298 = vmatpush.msra.mxu3 %v1061_v6  ;;  %1344 = vmatpush.msrb.mxu1 %v1062_v20  ;;  %v1049_v37 = vld [vmem:[#allocation2 + $0x530] sm:$0xff]  ;;  %v1031_v6 = vld [vmem:[#allocation2 + $0x4a0] sm:$0xff]  ;;  %v1008_v36 = vld [vmem:[#allocation2 + $0x3e8] sm:$0xff] }
 0x12a   :  { %v852_v11 = vsel %vm819_vm4, %v851_v53, %v850_v14  ;;  %v669_v34 = vadd.f32 %v605_v35, %v1990_v26  ;;  %v671_v46 = vadd.f32 %v607_v16, %v2001_v29  ;;  %v703_v48 = vrot.slane %v2168_v22, 1  ;;  %1326 = vmatpush.msrb.mxu0 %v936_v4  ;;  %1281 = vmatpush.msra.mxu2 %v929_v27  ;;  %v924_v53 = vld [vmem:[#allocation2 + $0x148] sm:$0xff]  ;;  %v905_v57 = vld [vmem:[#allocation2 + $0xb0] sm:$0xff] }
 0x12b   :  { %v854_v63 = vsel %vm822_vm5, %v853_v28, %v852_v11  ;;  %v673_v58 = vadd.f32 %v609_v12, %v2007_v15  ;;  %v675_v40 = vadd.f32 %v611_v23, %v1827_v8  ;;  %v677_v32 = vadd.f32 %v613_v0, %v2018_v42  ;;  %1299 = vmatpush.msra.mxu3 %v1055_v19  ;;  %v1026_v23 = vld [vmem:[#allocation2 + $0x478] sm:$0xff]  ;;  %v1019_v0 = vld [vmem:[#allocation2 + $0x440] sm:$0xff]  ;;  %v1020_v14 = vld [vmem:[#allocation2 + $0x448] sm:$0xff] }
 0x12c   :  { %1345 = vmatpush.msrb.mxu1 %v1056_v31  ;;  %v856_v26 = vsel %vm825_vm6, %v855_v1, %v854_v63  ;;  %v705_v29 = vrot.slane %v2168_v22, 2  ;;  %v707_v35 = vrot.slane %v2168_v22, 3  ;;  %v709_v51 = vrot.slane %v2168_v22, 4  ;;  %v1032_v1 = vld [vmem:[#allocation2 + $0x4a8] sm:$0xff]  ;;  %1327 = vmatpush.msrb.mxu0 %v930_v56  ;;  %v911_v11 = vld [vmem:[#allocation2 + $0xe0] sm:$0xff]  ;;  %v1001_v63 = vld [vmem:[#allocation2 + $0x3b0] sm:$0xff] }
 0x12d   :  { %v858_v9 = vsel %vm828_vm7, %v857_v41, %v856_v26  ;;  %v679_v15 = vadd.f32 %v615_v45, %v2025_v52  ;;  %v711_v8 = vrot.slane %v2168_v22, 5  ;;  %v713_v42 = vrot.slane %v2168_v22, 6  ;;  %1300 = vmatpush.msra.mxu3 %v1049_v37  ;;  %v1025_v41 = vld [vmem:[#allocation2 + $0x470] sm:$0xff]  ;;  %1282 = vmatpush.msra.mxu2 %v923_v24  ;;  %v995_v37 = vld [vmem:[#allocation2 + $0x380] sm:$0xff]  ;;  %v900_v26 = vld [vmem:[#allocation2 + $0x88] sm:$0xff] }
 0x12e   :  { %v2197_v16 = vsel %vm831_vm8, %v859_v13, %v858_v9  ;;  %v715_v3 = vrot.slane %v2168_v22, 7  ;;  %v767_v49 = vadd.f32 %v703_v48, %v667_v7  ;;  %v769_v2 = vadd.f32 %v705_v29, %v669_v34  ;;  %1346 = vmatpush.msrb.mxu1 %v1050_v5  ;;  %1328 = vmatpush.msrb.mxu0 %v924_v53  ;;  %v1013_v45 = vld [vmem:[#allocation2 + $0x410] sm:$0xff]  ;;  %v918_v7 = vld [vmem:[#allocation2 + $0x118] sm:$0xff]  ;;  %v912_v48 = vld [vmem:[#allocation2 + $0xe8] sm:$0xff] }
 0x12f   :  { %881 = vst [vmem:[%s2296_s11 + $0x10] sm:$0xff] %v2197_v16  ;;  %1108 = vmatmul.f32.gmra.mxu2 %v2197_v16  ;;  %v771_v52 = vadd.f32 %v707_v35, %v671_v46  ;;  %v773_v50 = vadd.f32 %v709_v51, %v673_v58  ;;  %1154 = vmatmul.f32.gmra.mxu0 %v2197_v16  ;;  %v1014_v34 = vld [vmem:[#allocation2 + $0x418] sm:$0xff]  ;;  %v1007_v46 = vld [vmem:[#allocation2 + $0x3e0] sm:$0xff]  ;;  %v996_v29 = vld [vmem:[#allocation2 + $0x388] sm:$0xff] }
 0x130   :  { %v765_v25 = vadd.f32 %v2168_v22, %v665_v39  ;;  %v775_v60 = vadd.f32 %v711_v8, %v675_v40  ;;  %v861_v21 = vrot.slane %v767_v49, 7  ;;  %v863_v55 = vrot.slane %v769_v2, 6  ;;  %1301 = vmatpush.msra.mxu3 %v1043_v38  ;;  %1347 = vmatpush.msrb.mxu1 %v1044_v18  ;;  %v906_v58 = vld [vmem:[#allocation2 + $0xb8] sm:$0xff]  ;;  %v893_v35 = vld [vmem:[#allocation2 + $0x50] sm:$0xff]  ;;  %v887_v8 = vld [vmem:[#allocation2 + $0x20] sm:$0xff] }
 0x131   :  { %v777_v30 = vadd.f32 %v713_v42, %v677_v32  ;;  %v779_v59 = vadd.f32 %v715_v3, %v679_v15  ;;  %v865_v10 = vrot.slane %v771_v52, 5  ;;  %v867_v28 = vrot.slane %v773_v50, 4  ;;  %1283 = vmatpush.msra.mxu2 %v917_v54  ;;  %1329 = vmatpush.msrb.mxu0 %v918_v7  ;;  %v1002_v40 = vld [vmem:[#allocation2 + $0x3b8] sm:$0xff]  ;;  %v899_v32 = vld [vmem:[#allocation2 + $0x80] sm:$0xff]  ;;  %v989_v51 = vld [vmem:[#allocation2 + $0x350] sm:$0xff] }
 0x132   :  { %v862_v33 = vsel %vm813_vm2, %v861_v21, %v765_v25  ;;  %1302 = vmatpush.msra.mxu3 %v1037_v43  ;;  %v869_v22 = vrot.slane %v775_v60, 3  ;;  %1348 = vmatpush.msrb.mxu1 %v1038_v47  ;;  %v894_v9 = vld [vmem:[#allocation2 + $0x58] sm:$0xff]  ;;  %v983_v42 = vld [vmem:[#allocation2 + $0x320] sm:$0xff]  ;;  %v888_v5 = vld [vmem:[#allocation2 + $0x28] sm:$0xff] }
 0x133   :  { %v864_v20 = vsel %vm816_vm3, %v863_v55, %v862_v33  ;;  %v871_v13 = vrot.slane %v777_v30, 2  ;;  %v873_v19 = vrot.slane %v779_v59, 1  ;;  %1284 = vmatpush.msra.mxu2 %v911_v11  ;;  %1330 = vmatpush.msrb.mxu0 %v912_v48  ;;  %v990_v15 = vld [vmem:[#allocation2 + $0x358] sm:$0xff]  ;;  %v984_v38 = vld [vmem:[#allocation2 + $0x328] sm:$0xff] }
 0x134   :  { %v866_v12 = vsel %vm819_vm4, %v865_v10, %v864_v20  ;;  %1303 = vmatpush.msra.mxu3 %v1031_v6  ;;  %1349 = vmatpush.msrb.mxu1 %v1032_v1 }
 0x135   :  { %v868_v62 = vsel %vm822_vm5, %v867_v28, %v866_v12  ;;  %1285 = vmatpush.msra.mxu2 %v905_v57  ;;  %1331 = vmatpush.msrb.mxu0 %v906_v58 }
 0x136   :  { %v870_v44 = vsel %vm825_vm6, %v869_v22, %v868_v62  ;;  %1304 = vmatpush.msra.mxu3 %v1025_v41  ;;  %1350 = vmatpush.msrb.mxu1 %v1026_v23 }
 0x137   :  { %v872_v31 = vsel %vm828_vm7, %v871_v13, %v870_v44  ;;  %1197 = vmatmul.f32.vlgmr.msrb.gmra.mxu2 %v2092_v17  ;;  %1243 = vmatmul.f32.vlgmr.msra.gmra.mxu0 %v2092_v17 }
 0x138   :  { %v2216_v39 = vsel %vm831_vm8, %v873_v19, %v872_v31  ;;  %1305 = vmatpush.msra.mxu3 %v1019_v0  ;;  %1351 = vmatpush.msrb.mxu1 %v1020_v14 }
 0x139   :  { %882 = vst [vmem:[%s2296_s11 + $0x18] sm:$0xff] %v2216_v39  ;;  %1131 = vmatmul.f32.gmra.mxu3 %v2216_v39  ;;  %1177 = vmatmul.f32.gmra.mxu1 %v2216_v39 }
 0x13a   :  { %1306 = vmatpush.msra.mxu3 %v1013_v45  ;;  %1352 = vmatpush.msrb.mxu1 %v1014_v34 }
 0x13b   :  { %1286 = vmatpush.msra.mxu2 %v899_v32  ;;  %1332 = vmatpush.msrb.mxu0 %v900_v26 }
 0x13c   :  { %1307 = vmatpush.msra.mxu3 %v1007_v46  ;;  %1353 = vmatpush.msrb.mxu1 %v1008_v36 }
 0x13d   :  { %1287 = vmatpush.msra.mxu2 %v893_v35  ;;  %1333 = vmatpush.msrb.mxu0 %v894_v9 }
 0x13e   :  { %1308 = vmatpush.msra.mxu3 %v1001_v63  ;;  %1354 = vmatpush.msrb.mxu1 %v1002_v40 }
 0x13f   :  { %1200 = vmatmul.f32.gmra.mxu2 %v2197_v16  ;;  %1246 = vmatmul.f32.gmra.mxu0 %v2197_v16 }
 0x140   :  { %1309 = vmatpush.msra.mxu3 %v995_v37  ;;  %1355 = vmatpush.msrb.mxu1 %v996_v29 }
 0x141   :  { %1220 = vmatmul.f32.vlgmr.msrb.gmra.mxu3 %v2143_v61  ;;  %1266 = vmatmul.f32.vlgmr.msra.gmra.mxu1 %v2143_v61 }
 0x142   :  { %1310 = vmatpush.msra.mxu3 %v989_v51  ;;  %1356 = vmatpush.msrb.mxu1 %v990_v15 }
 0x143   :  { %1288 = vmatpush.msra.mxu2 %v887_v8  ;;  %1334 = vmatpush.msrb.mxu0 %v888_v5 }
 0x144   :  { %1311 = vmatpush.msra.mxu3 %v983_v42  ;;  %1357 = vmatpush.msrb.mxu1 %v984_v38 }
 0x147   :  { %1289 = vmatmul.f32.vlgmr.msra.gmra.mxu2 %v2092_v17  ;;  %1335 = vmatmul.f32.vlgmr.msrb.gmra.mxu0 %v2092_v17  ;;  %v2241_v17 = vld [vmem:[%s2295_s10] sm:$0x3f] }
 0x148   :  { %v1078_v3 = vperm.slane %v2241_v17, 1  ;;  %v1077_v4 = vperm.slane %v2241_v17, 0  ;;  %v1080_v24 = vperm.slane %v2241_v17, 3  ;;  %v1079_v53 = vperm.slane %v2241_v17, 2 }
 0x149   :  { %1223 = vmatmul.f32.gmra.mxu3 %v2216_v39  ;;  %1269 = vmatmul.f32.gmra.mxu1 %v2216_v39  ;;  %v1082_v0 = vperm.slane %v2241_v17, 5 }
 0x14f   :  { %1292 = vmatmul.f32.gmra.mxu2 %v2197_v16  ;;  %1338 = vmatmul.f32.gmra.mxu0 %v2197_v16 }
 0x151   :  { %1312 = vmatmul.f32.vlgmr.msra.gmra.mxu3 %v2143_v61  ;;  %1358 = vmatmul.f32.vlgmr.msrb.gmra.mxu1 %v2143_v61 }
 0x159   :  { %1315 = vmatmul.f32.gmra.mxu3 %v2216_v39  ;;  %1361 = vmatmul.f32.gmra.mxu1 %v2216_v39  ;;  %v1081_v39 = vperm.slane %v2241_v17, 4 }
 0x195   :  { %v1152_v49 = vpop.f32.mrf.mxu0 }
 0x196   :  { %v1153_v2 = vadd.f32 %v1152_v49, %v1078_v3 }
 0x19b   :  { %v1106_v27 = vpop.f32.mrf.mxu2 }
 0x19c   :  { %v1107_v61 = vadd.f32 %v1106_v27, %v1077_v4 }
 0x1a1   :  { %v1175_v16 = vpop.f32.mrf.mxu1 }
 0x1a2   :  { %v1176_v52 = vadd.f32 %v1175_v16, %v1153_v2 }
 0x1a4   :  { %1366 = vst [vmem:[%s2297_s12 + $0x8] sm:$0xff] %v1176_v52 }
 0x1a7   :  { %v1129_v50 = vpop.f32.mrf.mxu3 }
 0x1a8   :  { %v1130_v18 = vadd.f32 %v1129_v50, %v1107_v61 }
 0x1aa   :  { %1365 = vst [vmem:[%s2297_s12] sm:$0xff] %v1130_v18 }
 0x1ac   :  { %v1155_v43 = vpop.f32.mrf.mxu0 }
 0x1ad   :  { %v1156_v60 = vadd.f32 %v1155_v43, %v1078_v3 }
 0x1b2   :  { %v1109_v25 = vpop.f32.mrf.mxu2 }
 0x1b3   :  { %v1110_v30 = vadd.f32 %v1109_v25, %v1077_v4 }
 0x1b4   :  { %v1244_v21 = vpop.f32.mrf.mxu0 }
 0x1b5   :  { %v1245_v6 = vadd.f32 %v1244_v21, %v1080_v24 }
 0x1b6   :  { %v1178_v55 = vpop.f32.mrf.mxu1 }
 0x1b7   :  { %v1179_v56 = vadd.f32 %v1178_v55, %v1156_v60 }
 0x1b9   :  { %1372 = vst [vmem:[%s2297_s12 + $0x38] sm:$0xff] %v1179_v56 }
 0x1ba   :  { %v1198_v47 = vpop.f32.mrf.mxu2 }
 0x1bb   :  { %v1199_v28 = vadd.f32 %v1198_v47, %v1079_v53 }
 0x1bc   :  { %v1132_v59 = vpop.f32.mrf.mxu3  ;;  %v1247_v33 = vpop.f32.mrf.mxu0 }
 0x1bd   :  { %v1133_v10 = vadd.f32 %v1132_v59, %v1110_v30  ;;  %v1248_v41 = vadd.f32 %v1247_v33, %v1080_v24 }
 0x1be   :  { %v1267_v54 = vpop.f32.mrf.mxu1 }
 0x1bf   :  { %1371 = vst [vmem:[%s2297_s12 + $0x30] sm:$0xff] %v1133_v10  ;;  %v1268_v20 = vadd.f32 %v1267_v54, %v1245_v6 }
 0x1c1   :  { %1368 = vst [vmem:[%s2297_s12 + $0x18] sm:$0xff] %v1268_v20 }
 0x1c2   :  { %v1201_v1 = vpop.f32.mrf.mxu2 }
 0x1c3   :  { %v1202_v44 = vadd.f32 %v1201_v1, %v1079_v53 }
 0x1c4   :  { %v1221_v12 = vpop.f32.mrf.mxu3  ;;  %v1336_v13 = vpop.f32.mrf.mxu0 }
 0x1c5   :  { %v1222_v22 = vadd.f32 %v1221_v12, %v1199_v28  ;;  %v1337_v19 = vadd.f32 %v1336_v13, %v1082_v0 }
 0x1c6   :  { %v1270_v62 = vpop.f32.mrf.mxu1 }
 0x1c7   :  { %1367 = vst [vmem:[%s2297_s12 + $0x10] sm:$0xff] %v1222_v22  ;;  %v1271_v23 = vadd.f32 %v1270_v62, %v1248_v41 }
 0x1c9   :  { %1374 = vst [vmem:[%s2297_s12 + $0x48] sm:$0xff] %v1271_v23 }
 0x1ca   :  { %v1290_v14 = vpop.f32.mrf.mxu2 }
 0x1cb   :  { %v1291_v46 = vadd.f32 %v1290_v14, %v1081_v39 }
 0x1cc   :  { %v1224_v31 = vpop.f32.mrf.mxu3  ;;  %v1339_v34 = vpop.f32.mrf.mxu0 }
 0x1cd   :  { %v1225_v45 = vadd.f32 %v1224_v31, %v1202_v44  ;;  %v1340_v48 = vadd.f32 %v1339_v34, %v1082_v0 }
 0x1ce   :  { %v1359_v7 = vpop.f32.mrf.mxu1 }
 0x1cf   :  { %1373 = vst [vmem:[%s2297_s12 + $0x40] sm:$0xff] %v1225_v45  ;;  %v1360_v11 = vadd.f32 %v1359_v7, %v1337_v19 }
 0x1d1   :  { %1370 = vst [vmem:[%s2297_s12 + $0x28] sm:$0xff] %v1360_v11 }
 0x1d2   :  { %v1293_v58 = vpop.f32.mrf.mxu2 }
 0x1d3   :  { %v1294_v32 = vadd.f32 %v1293_v58, %v1081_v39 }
 0x1d4   :  { %v1313_v57 = vpop.f32.mrf.mxu3 }
 0x1d5   :  { %v1314_v36 = vadd.f32 %v1313_v57, %v1291_v46 }
 0x1d6   :  { %v1362_v63 = vpop.f32.mrf.mxu1 }
 0x1d7   :  { %1369 = vst [vmem:[%s2297_s12 + $0x20] sm:$0xff] %v1314_v36  ;;  %v1363_v40 = vadd.f32 %v1362_v63, %v1340_v48 }
 0x1d9   :  { %1376 = vst [vmem:[%s2297_s12 + $0x58] sm:$0xff] %v1363_v40 }
 0x1dc   :  { %v1316_v37 = vpop.f32.mrf.mxu3 }
 0x1dd   :  { %v1317_v26 = vadd.f32 %v1316_v37, %v1294_v32 }
 0x1df   :  { %1375 = vst [vmem:[%s2297_s12 + $0x50] sm:$0xff] %v1317_v26 }
 0x1e0   :  { %1385 = vsyncpa [#allocation3], 1 }

// kernel: encoder_new_forward.3
= control target key start
LH: loop header
LB: loop body
LE: loop exit
PB: predicated region body
PF: predicated region fallthrough
CT: control target
= control target key end

     0   :  { %20 = vsyncpa [#allocation4], 0  ;;  %s6960_s0 = inlined_call_operand.vmem [shape: f32[16,256], index: 0, kind: input, shape index: {}]   ;;  %s6961_s1 = inlined_call_operand.vmem [shape: f32[8,8,64], index: 1, kind: input, shape index: {}]   ;;  %s6962_s2 = inlined_call_operand.vmem [shape: f32[8,8,64], index: 2, kind: input, shape index: {}]   ;;  %s6963_s3 = inlined_call_operand.vmem [shape: f32[8,8,64], index: 3, kind: input, shape index: {}]   ;;  %s6964_s4 = inlined_call_operand.vmem [shape: f32[8,1,8], index: 4, kind: input, shape index: {}]   ;;  %s6965_s5 = inlined_call_operand.vmem [shape: f32[64,1024], index: 5, kind: input, shape index: {}]   ;;  %s6966_s6 = inlined_call_operand.vmem [shape: f32[1,256], index: 6, kind: input, shape index: {}]   ;;  %s6967_s7 = inlined_call_operand.vmem [shape: f32[1,256], index: 7, kind: input, shape index: {}]   ;;  %s6968_s8 = inlined_call_operand.vmem [shape: f32[1,256], index: 8, kind: input, shape index: {}]   ;;  %s6969_s9 = inlined_call_operand.vmem [shape: f32[256,1024], index: 9, kind: input, shape index: {}]   ;;  %s6970_s10 = inlined_call_operand.vmem [shape: f32[1,1024], index: 10, kind: input, shape index: {}]   ;;  %s6971_s11 = inlined_call_operand.hbm [shape: f32[1024,256], index: 11, kind: input, shape index: {}]   ;;  %s6972_s12 = inlined_call_operand.vmem [shape: f32[1,256], index: 12, kind: input, shape index: {}]   ;;  %s6973_s13 = inlined_call_operand.vmem [shape: f32[1,256], index: 13, kind: input, shape index: {}]   ;;  %s6974_s14 = inlined_call_operand.vmem [shape: f32[1,256], index: 14, kind: input, shape index: {}]   ;;  %s6975_s15 = inlined_call_operand.hbm [shape: f32[16,256], index: 15, kind: output, shape index: {}]  }
   0x1   :  { %21 = vsyncpa [#allocation5], 0  ;;  %s48_s20 = sshll.u32 %s6971_s11, 4  ;;  %s4364_s21 = smov [#allocation3]   ;;  %s49_s20 = int_to_ptr.hbm [resolvable:$true] %s48_s20 }
   0x2   :  { %s50_s22 = sshll.u32 %s4364_s21, 4  ;;  %s4365_s23 = smov 256   ;;  %s51_s22 = int_to_ptr.vmem [resolvable:$true] %s50_s22 }
   0x3   :  { %s4366_s24 = smov 16  }
   0x4   :  { %56 = dma.hbm_to_vmem [thread:$0]  %s49_s20, 32768, %s51_s22, [#allocation4], %s4365_s23, %s4365_s23, %s4366_s24  }
   0x5   :  { %4360 = dma.done.wait [#allocation4], 32768  }
   0x6   :  { %4361 = vsyncadd [#allocation4], 4294934528  ;;  %vm139_vm0 = vcmask 523264   ;;  %v133_v0 = vld [vmem:[%s6962_s2] sm:$0xff]  ;;  %vm166_vm1 = vcmask 64512   ;;  %v4482_v13 = vld [vmem:[%s6965_s5 + $0x1c8] sm:$0xff] }
   0x7   :  { %v132_v1 = vld [vmem:[%s6961_s1] sm:$0xff]  ;;  %4064 = vmatpush.xpose.msk.msra.mxu0 %vm139_vm0, %v133_v0  ;;  %v4487_v14 = vld [vmem:[%s6965_s5 + $0x1d0] sm:$0xff]  ;;  %245 = vmatpush.msra.mxu3 %v4482_v13  ;;  %v4494_v15 = vld [vmem:[%s6965_s5 + $0x1d8] sm:$0xff]  ;;  %vm380_vm6 = vcmask 1040384  }
   0x8   :  { %v4185_v2 = vld [vmem:[%s6964_s4] ss:$0 sm:$0xff]  ;;  %v4504_v17 = vld [vmem:[%s6965_s5 + $0x188] sm:$0xff]  ;;  %v4511_v18 = vld [vmem:[%s6965_s5 + $0x190] sm:$0xff] }
   0x9   :  { %v134_v11 = vld [vmem:[%s6963_s3] sm:$0xff]  ;;  %v4516_v19 = vld [vmem:[%s6965_s5 + $0x198] sm:$0xff]  ;;  %246 = vmatpush.msra.mxu3 %v4504_v17  ;;  %v4528_v21 = vld [vmem:[%s6965_s5 + $0x148] sm:$0xff] }
   0xa   :  { %4065 = vmatmul.msk.f32.vlgmr.msra.gmra.mxu0 %vm139_vm0, %v132_v1  ;;  %209 = vmatpush.msra.mxu1 %v134_v11  ;;  %v4477_v12 = vld [vmem:[%s6965_s5 + $0x1c0] sm:$0xff]  ;;  %v4533_v22 = vld [vmem:[%s6965_s5 + $0x150] sm:$0xff]  ;;  %v4538_v23 = vld [vmem:[%s6965_s5 + $0x158] sm:$0xff] }
   0xb   :  { %225 = vmatpush.msra.mxu2 %v4477_v12  ;;  %v4499_v16 = vld [vmem:[%s6965_s5 + $0x180] sm:$0xff]  ;;  %285 = vmatpush.msrb.mxu0 %v4494_v15  ;;  %v4550_v25 = vld [vmem:[%s6965_s5 + $0x108] sm:$0xff]  ;;  %v4557_v26 = vld [vmem:[%s6965_s5 + $0x110] sm:$0xff] }
   0xc   :  { %265 = vmatpush.msrb.mxu1 %v4487_v14  ;;  %v4521_v20 = vld [vmem:[%s6965_s5 + $0x140] sm:$0xff]  ;;  %247 = vmatpush.msra.mxu3 %v4528_v21  ;;  %v4562_v27 = vld [vmem:[%s6965_s5 + $0x118] sm:$0xff]  ;;  %v4574_v29 = vld [vmem:[%s6965_s5 + $0xc8] sm:$0xff] }
   0xd   :  { %226 = vmatpush.msra.mxu2 %v4499_v16  ;;  %286 = vmatpush.msrb.mxu0 %v4516_v19  ;;  %v4545_v24 = vld [vmem:[%s6965_s5 + $0x100] sm:$0xff]  ;;  %v4581_v30 = vld [vmem:[%s6965_s5 + $0xd0] sm:$0xff]  ;;  %v4586_v31 = vld [vmem:[%s6965_s5 + $0xd8] sm:$0xff] }
   0xe   :  { %266 = vmatpush.msrb.mxu1 %v4511_v18  ;;  %v4569_v28 = vld [vmem:[%s6965_s5 + $0xc0] sm:$0xff]  ;;  %248 = vmatpush.msra.mxu3 %v4550_v25  ;;  %v4598_v33 = vld [vmem:[%s6965_s5 + $0x88] sm:$0xff]  ;;  %v4605_v34 = vld [vmem:[%s6965_s5 + $0x90] sm:$0xff] }
   0xf   :  { %227 = vmatpush.msra.mxu2 %v4521_v20  ;;  %287 = vmatpush.msrb.mxu0 %v4538_v23  ;;  %v4593_v32 = vld [vmem:[%s6965_s5 + $0x80] sm:$0xff]  ;;  %v4610_v35 = vld [vmem:[%s6965_s5 + $0x98] sm:$0xff]  ;;  %v4622_v37 = vld [vmem:[%s6965_s5 + $0x48] sm:$0xff] }
  0x10   :  { %267 = vmatpush.msrb.mxu1 %v4533_v22  ;;  %249 = vmatpush.msra.mxu3 %v4574_v29  ;;  %v4617_v36 = vld [vmem:[%s6965_s5 + $0x40] sm:$0xff]  ;;  %v4629_v38 = vld [vmem:[%s6965_s5 + $0x50] sm:$0xff]  ;;  %v4634_v39 = vld [vmem:[%s6965_s5 + $0x58] sm:$0xff] }
  0x11   :  { %228 = vmatpush.msra.mxu2 %v4545_v24  ;;  %288 = vmatpush.msrb.mxu0 %v4562_v27  ;;  %7069 = vst [vmem:[#allocation9_spill] sm:$0xff] %v4629_v38  ;;  %v4641_v41 = vld [vmem:[%s6965_s5] sm:$0xff]  ;;  %v4646_v42 = vld [vmem:[%s6965_s5 + $0x8] sm:$0xff]  ;;  %v4653_v43 = vld [vmem:[%s6965_s5 + $0x10] sm:$0xff] }
  0x12   :  { %268 = vmatpush.msrb.mxu1 %v4557_v26  ;;  %250 = vmatpush.msra.mxu3 %v4598_v33  ;;  %7070 = vst [vmem:[#allocation10_spill] sm:$0xff] %v4653_v43  ;;  %v4658_v44 = vld [vmem:[%s6965_s5 + $0x18] sm:$0xff]  ;;  %v4665_v45 = vld [vmem:[%s6965_s5 + $0x1e0] sm:$0xff]  ;;  %v4670_v46 = vld [vmem:[%s6965_s5 + $0x1e8] sm:$0xff] }
  0x13   :  { %229 = vmatpush.msra.mxu2 %v4569_v28  ;;  %289 = vmatpush.msrb.mxu0 %v4586_v31  ;;  %v4677_v47 = vld [vmem:[%s6965_s5 + $0x1f8] sm:$0xff]  ;;  %v4684_v48 = vld [vmem:[%s6965_s5 + $0x1a0] sm:$0xff]  ;;  %v4689_v49 = vld [vmem:[%s6965_s5 + $0x1a8] sm:$0xff] }
  0x14   :  { %269 = vmatpush.msrb.mxu1 %v4581_v30  ;;  %251 = vmatpush.msra.mxu3 %v4622_v37  ;;  %7071 = vst [vmem:[#allocation11_spill] sm:$0xff] %v4689_v49  ;;  %v4696_v50 = vld [vmem:[%s6965_s5 + $0x1b8] sm:$0xff]  ;;  %v4702_v51 = vld [vmem:[%s6965_s5 + $0x160] sm:$0xff]  ;;  %v4707_v52 = vld [vmem:[%s6965_s5 + $0x168] sm:$0xff] }
  0x15   :  { %230 = vmatpush.msra.mxu2 %v4593_v32  ;;  %290 = vmatpush.msrb.mxu0 %v4610_v35  ;;  %7072 = vst [vmem:[#allocation12_spill] sm:$0xff] %v4702_v51  ;;  %v4714_v54 = vld [vmem:[%s6965_s5 + $0x178] sm:$0xff]  ;;  %v4724_v1 = vld [vmem:[%s6965_s5 + $0x1f0] sm:$0xff] }
  0x16   :  { %270 = vmatpush.msrb.mxu1 %v4605_v34  ;;  %252 = vmatpush.msra.mxu3 %v4646_v42  ;;  %7073 = vst [vmem:[#allocation13_spill] sm:$0xff] %v4707_v52  ;;  %v4784_v11 = vld [vmem:[%s6965_s5 + $0xf8] sm:$0xff] }
  0x17   :  { %231 = vmatpush.msra.mxu2 %v4617_v36  ;;  %291 = vmatpush.msrb.mxu0 %v4634_v39  ;;  %7074 = vst [vmem:[#allocation14_spill] sm:$0xff] %v4724_v1 }
  0x18   :  { %271 = vmatpush.msrb.mxu1 %v4629_v38  ;;  %325 = vmatpush.msrb.mxu3 %v4670_v46  ;;  %7083 = vst [vmem:[#allocation23_spill] sm:$0xff] %v4784_v11 }
  0x19   :  { %232 = vmatpush.msra.mxu2 %v4641_v41  ;;  %292 = vmatpush.msrb.mxu0 %v4658_v44 }
  0x1a   :  { %272 = vmatpush.msrb.mxu1 %v4653_v43  ;;  %326 = vmatpush.msrb.mxu3 %v4689_v49 }
  0x1b   :  { %305 = vmatpush.msrb.mxu2 %v4665_v45  ;;  %365 = vmatpush.msra.mxu0 %v4677_v47 }
  0x1c   :  { %327 = vmatpush.msrb.mxu3 %v4707_v52 }
  0x1d   :  { %306 = vmatpush.msrb.mxu2 %v4684_v48  ;;  %366 = vmatpush.msra.mxu0 %v4696_v50 }
  0x1f   :  { %307 = vmatpush.msrb.mxu2 %v4702_v51  ;;  %367 = vmatpush.msra.mxu0 %v4714_v54 }
  0x87   :  { %v163_v3 = vpop.f32.mrf.mxu0 }
  0x88   :  { %v164_v4 = vadd.f32 %v4185_v2, %v163_v3  ;;  %v4730_v2 = vld [vmem:[%s6965_s5 + $0x1b0] sm:$0xff] }
  0x89   :  { %7075 = vst [vmem:[#allocation15_spill] sm:$0xff] %v4730_v2  ;;  %v4736_v3 = vld [vmem:[%s6965_s5 + $0x170] sm:$0xff] }
  0x8a   :  { %v167_v5 = vsel %vm166_vm1, %v164_v4, -inf  ;;  %7076 = vst [vmem:[#allocation16_spill] sm:$0xff] %v4736_v3 }
  0x8b   :  { %168 = vmax.xlane.f32.xlu0 %v167_v5  ;;  %v4748_v5 = vld [vmem:[%s6965_s5 + $0x128] sm:$0xff] }
  0x8c   :  { %7078 = vst [vmem:[#allocation18_spill] sm:$0xff] %v4748_v5  ;;  %328 = vmatpush.msrb.mxu3 %v4748_v5 }
  0xfe   :  { %v169_v6 = vpop.xlane.xlu0 %168 }
  0xff   :  { %v170_v7 = vsub.f32 %v164_v4, %v169_v6  ;;  %v4743_v4 = vld [vmem:[%s6965_s5 + $0x120] sm:$0xff]  ;;  %v4753_v6 = vld [vmem:[%s6965_s5 + $0x130] sm:$0xff] }
 0x100   :  { %7077 = vst [vmem:[#allocation17_spill] sm:$0xff] %v4743_v4  ;;  %308 = vmatpush.msrb.mxu2 %v4743_v4 }
 0x101   :  { %v171_v8 = vmul.f32 1.442695, %v170_v7  ;;  %7079 = vst [vmem:[#allocation19_spill] sm:$0xff] %v4753_v6  ;;  %v4760_v7 = vld [vmem:[%s6965_s5 + $0x138] sm:$0xff] }
 0x102   :  { %368 = vmatpush.msra.mxu0 %v4760_v7 }
 0x103   :  { %4193 = vpow2.f32 %v171_v8  ;;  %v4767_v8 = vld [vmem:[%s6965_s5 + $0xe0] sm:$0xff] }
 0x104   :  { %7080 = vst [vmem:[#allocation20_spill] sm:$0xff] %v4767_v8  ;;  %309 = vmatpush.msrb.mxu2 %v4767_v8  ;;  %369 = vmatpush.msra.mxu0 %v4784_v11  ;;  %v4076_v11 = vld [vmem:[%s6962_s2 + $0x8] sm:$0xff] }
 0x109   :  { %v4467_v9 = vpop.eup %4193 }
 0x10a   :  { %v173_v10 = vsel %vm166_vm1, %v4467_v9, 0.0 }
 0x10b   :  { %174 = vadd.xlane.f32.xlu0 %v173_v10  ;;  %v4777_v10 = vld [vmem:[%s6965_s5 + $0xf0] sm:$0xff] }
 0x10c   :  { %7082 = vst [vmem:[#allocation22_spill] sm:$0xff] %v4777_v10 }
 0x17e   :  { %v175_v40 = vpop.xlane.xlu0 %174 }
 0x17f   :  { %4195 = vrcp.f32 %v175_v40  ;;  %v187_v57 = vand.u32 2147483648, %v175_v40  ;;  %v185_v59 = vand.u32 2147483647, %v175_v40  ;;  %vm181_vm3 = vweird.f32 %v175_v40 }
 0x181   :  { %v188_v61 = vor.u32 1.1754944e-38, %v187_v57  ;;  %vm186_vm5 = vcmp.eq.f32.partialorder %v185_v59, 8.507059e+37  ;;  %v4811_v57 = vld [vmem:[%s6965_s5 + $0x60] sm:$0xff]  ;;  %v4823_v59 = vld [vmem:[%s6965_s5 + $0x70] sm:$0xff] }
 0x182   :  { %7088 = vst [vmem:[#allocation28_spill] sm:$0xff] %v4811_v57 }
 0x183   :  { %7090 = vst [vmem:[#allocation30_spill] sm:$0xff] %v4823_v59 }
 0x185   :  { %v4196_v53 = vpop.eup %4195 }
 0x186   :  { %v177_v55 = vmul.f32 %v4196_v53, %v175_v40  ;;  %vm182_vm2 = vweird.f32 %v4196_v53  ;;  %v4789_v40 = vld [vmem:[%s6965_s5 + $0xa0] sm:$0xff] }
 0x187   :  { %vm183_vm4 = vmor %vm181_vm3, %vm182_vm2  ;;  %7084 = vst [vmem:[#allocation24_spill] sm:$0xff] %v4789_v40  ;;  %310 = vmatpush.msrb.mxu2 %v4789_v40 }
 0x188   :  { %v178_v56 = vsub.f32 1.0, %v177_v55  ;;  %v4801_v55 = vld [vmem:[%s6965_s5 + $0xb0] sm:$0xff] }
 0x189   :  { %7086 = vst [vmem:[#allocation26_spill] sm:$0xff] %v4801_v55  ;;  %311 = vmatpush.msrb.mxu2 %v4811_v57 }
 0x18a   :  { %v179_v58 = vmul.f32 %v4196_v53, %v178_v56  ;;  %v4806_v56 = vld [vmem:[%s6965_s5 + $0xb8] sm:$0xff] }
 0x18b   :  { %7087 = vst [vmem:[#allocation27_spill] sm:$0xff] %v4806_v56  ;;  %370 = vmatpush.msra.mxu0 %v4806_v56 }
 0x18c   :  { %v180_v60 = vadd.f32 %v4196_v53, %v179_v58  ;;  %v4818_v58 = vld [vmem:[%s6965_s5 + $0x68] sm:$0xff] }
 0x18d   :  { %7089 = vst [vmem:[#allocation29_spill] sm:$0xff] %v4818_v58 }
 0x18e   :  { %v184_v62 = vsel %vm183_vm4, %v4196_v53, %v180_v60  ;;  %v4794_v53 = vld [vmem:[%s6965_s5 + $0xa8] sm:$0xff]  ;;  %v4828_v60 = vld [vmem:[%s6965_s5 + $0x78] sm:$0xff] }
 0x18f   :  { %v189_v63 = vsel %vm186_vm5, %v188_v61, %v184_v62  ;;  %7085 = vst [vmem:[#allocation25_spill] sm:$0xff] %v4794_v53  ;;  %v4835_v61 = vld [vmem:[%s6965_s5 + $0x20] sm:$0xff]  ;;  %v4840_v62 = vld [vmem:[%s6965_s5 + $0x28] sm:$0xff]  ;;  %371 = vmatpush.msra.mxu0 %v4828_v60 }
 0x190   :  { %v190_v0 = vmul.f32 %v4467_v9, %v189_v63  ;;  %v4772_v9 = vld [vmem:[%s6965_s5 + $0xe8] sm:$0xff]  ;;  %7091 = vst [vmem:[#allocation31_spill] sm:$0xff] %v4835_v61  ;;  %v4847_v63 = vld [vmem:[%s6965_s5 + $0x30] sm:$0xff]  ;;  %312 = vmatpush.msrb.mxu2 %v4835_v61 }
 0x191   :  { %7081 = vst [vmem:[#allocation21_spill] sm:$0xff] %v4772_v9  ;;  %329 = vmatpush.msrb.mxu3 %v4772_v9 }
 0x192   :  { %4066 = vmatmul.msk.f32.vlgmr.msra.gmra.mxu1 %vm166_vm1, %v190_v0  ;;  %7092 = vst [vmem:[#allocation32_spill] sm:$0xff] %v4840_v62  ;;  %v4852_v0 = vld [vmem:[%s6965_s5 + $0x38] sm:$0xff] }
 0x193   :  { %345 = vmatpush.msra.mxu1 %v4724_v1  ;;  %330 = vmatpush.msrb.mxu3 %v4794_v53  ;;  %7093 = vst [vmem:[#allocation33_spill] sm:$0xff] %v4847_v63 }
 0x194   :  { %372 = vmatpush.msra.mxu0 %v4852_v0 }
 0x195   :  { %346 = vmatpush.msra.mxu1 %v4730_v2  ;;  %331 = vmatpush.msrb.mxu3 %v4818_v58 }
 0x197   :  { %347 = vmatpush.msra.mxu1 %v4736_v3  ;;  %332 = vmatpush.msrb.mxu3 %v4840_v62 }
 0x199   :  { %348 = vmatpush.msra.mxu1 %v4753_v6 }
 0x19b   :  { %349 = vmatpush.msra.mxu1 %v4777_v10 }
 0x19d   :  { %350 = vmatpush.msra.mxu1 %v4801_v55 }
 0x19f   :  { %351 = vmatpush.msra.mxu1 %v4823_v59 }
 0x1a1   :  { %352 = vmatpush.msra.mxu1 %v4847_v63 }
 0x20f   :  { %v211_v56 = vpop.f32.mrf.mxu1 }
 0x210   :  { %4067 = vmatmul.msk.f32.vlgmr.msra.gmra.mxu2 %vm139_vm0, %v211_v56  ;;  %4068 = vmatmul.msk.f32.vlgmr.msra.gmra.mxu3 %vm139_vm0, %v211_v56 }
 0x211   :  { %4069 = vmatmul.msk.f32.vlgmr.msrb.gmra.mxu1 %vm139_vm0, %v211_v56  ;;  %4070 = vmatmul.msk.f32.vlgmr.msrb.gmra.mxu0 %vm139_vm0, %v211_v56 }
 0x212   :  { %4079 = vmatpush.xpose.msk.msra.mxu2 %vm139_vm0, %v4076_v11  ;;  %536 = vmatpush.msrb.mxu1 %v4477_v12  ;;  %v4075_v11 = vld [vmem:[%s6961_s1 + $0x8] sm:$0xff] }
 0x213   :  { %556 = vmatpush.msrb.mxu0 %v4482_v13 }
 0x214   :  { %537 = vmatpush.msrb.mxu1 %v4499_v16 }
 0x215   :  { %557 = vmatpush.msrb.mxu0 %v4504_v17 }
 0x216   :  { %538 = vmatpush.msrb.mxu1 %v4521_v20 }
 0x217   :  { %558 = vmatpush.msrb.mxu0 %v4528_v21 }
 0x218   :  { %4071 = vmatmul.msk.f32.vlgmr.msrb.gmra.mxu2 %vm139_vm0, %v211_v56  ;;  %4072 = vmatmul.msk.f32.vlgmr.msrb.gmra.mxu3 %vm139_vm0, %v211_v56 }
 0x219   :  { %4073 = vmatmul.msk.f32.vlgmr.msra.gmra.mxu1 %vm139_vm0, %v211_v56  ;;  %4074 = vmatmul.msk.f32.vlgmr.msra.gmra.mxu0 %vm139_vm0, %v211_v56 }
 0x21a   :  { %576 = vmatpush.msrb.mxu2 %v4487_v14  ;;  %539 = vmatpush.msrb.mxu1 %v4545_v24 }
 0x21b   :  { %559 = vmatpush.msrb.mxu0 %v4550_v25 }
 0x21c   :  { %577 = vmatpush.msrb.mxu2 %v4511_v18  ;;  %540 = vmatpush.msrb.mxu1 %v4569_v28 }
 0x21d   :  { %560 = vmatpush.msrb.mxu0 %v4574_v29 }
 0x21e   :  { %578 = vmatpush.msrb.mxu2 %v4533_v22  ;;  %541 = vmatpush.msrb.mxu1 %v4593_v32 }
 0x21f   :  { %561 = vmatpush.msrb.mxu0 %v4598_v33 }
 0x220   :  { %4080 = vmatmul.msk.f32.vlgmr.msra.gmra.mxu2 %vm139_vm0, %v4075_v11  ;;  %542 = vmatpush.msrb.mxu1 %v4617_v36 }
 0x221   :  { %579 = vmatpush.msrb.mxu2 %v4557_v26  ;;  %562 = vmatpush.msrb.mxu0 %v4622_v37 }
 0x222   :  { %543 = vmatpush.msrb.mxu1 %v4641_v41 }
 0x223   :  { %580 = vmatpush.msrb.mxu2 %v4581_v30  ;;  %563 = vmatpush.msrb.mxu0 %v4646_v42 }
 0x224   :  { %616 = vmatpush.msra.mxu1 %v4665_v45 }
 0x225   :  { %636 = vmatpush.msra.mxu0 %v4670_v46  ;;  %581 = vmatpush.msrb.mxu2 %v4605_v34 }
 0x226   :  { %617 = vmatpush.msra.mxu1 %v4684_v48 }
 0x227   :  { %637 = vmatpush.msra.mxu0 %v4689_v49  ;;  %582 = vmatpush.msrb.mxu2 %v4629_v38 }
 0x228   :  { %618 = vmatpush.msra.mxu1 %v4702_v51 }
 0x229   :  { %638 = vmatpush.msra.mxu0 %v4707_v52  ;;  %583 = vmatpush.msrb.mxu2 %v4653_v43  ;;  %v2801_v52 = vld [vmem:[%s6969_s9 + $0x3d0] sm:$0xff] }
 0x22a   :  { %619 = vmatpush.msra.mxu1 %v4743_v4  ;;  %v408_v4 = vlaneseq }
 0x22b   :  { %656 = vmatpush.msra.mxu2 %v4724_v1  ;;  %639 = vmatpush.msra.mxu0 %v4748_v5 }
 0x22c   :  { %620 = vmatpush.msra.mxu1 %v4767_v8  ;;  %vm4935_vm7 = vcmp.lt.s32.totalorder %v408_v4, 256 }
 0x22d   :  { %657 = vmatpush.msra.mxu2 %v4730_v2  ;;  %640 = vmatpush.msra.mxu0 %v4772_v9 }
 0x22e   :  { %621 = vmatpush.msra.mxu1 %v4789_v40 }
 0x22f   :  { %658 = vmatpush.msra.mxu2 %v4736_v3  ;;  %641 = vmatpush.msra.mxu0 %v4794_v53 }
 0x230   :  { %622 = vmatpush.msra.mxu1 %v4811_v57 }
 0x231   :  { %659 = vmatpush.msra.mxu2 %v4753_v6  ;;  %642 = vmatpush.msra.mxu0 %v4818_v58 }
 0x232   :  { %623 = vmatpush.msra.mxu1 %v4835_v61 }
 0x233   :  { %660 = vmatpush.msra.mxu2 %v4777_v10  ;;  %643 = vmatpush.msra.mxu0 %v4840_v62 }
 0x235   :  { %661 = vmatpush.msra.mxu2 %v4801_v55  ;;  %v4186_v55 = vld [vmem:[%s6964_s4 + $0x1] ss:$0 sm:$0xff] }
 0x237   :  { %662 = vmatpush.msra.mxu2 %v4823_v59 }
 0x239   :  { %663 = vmatpush.msra.mxu2 %v4847_v63  ;;  %v4930_v63 = vld [vmem:[%s6966_s6] sm:$0x3] }
 0x28e   :  { %v274_v56 = vpop.f32.mrf.mxu1  ;;  %v294_v11 = vpop.f32.mrf.mxu0 }
 0x28f   :  { %386 = vst [vmem:[#allocation1] sm:$0xff] %v274_v56 }
 0x290   :  { %387 = vst [vmem:[#allocation1 + $0x9] sm:$0xff] %v294_v11 }
 0x293   :  { %v234_v6 = vpop.f32.mrf.mxu2  ;;  %v254_v57 = vpop.f32.mrf.mxu3 }
 0x294   :  { %v379_v61 = vrot.slane %v254_v57, 7 }
 0x296   :  { %v381_v59 = vsel %vm380_vm6, %v234_v6, %v379_v61  ;;  %v354_v10 = vpop.f32.mrf.mxu1  ;;  %v374_v8 = vpop.f32.mrf.mxu0 }
 0x297   :  { %v389_v53 = vld [vmem:[#allocation1 + $0x1] ss:$9 sm:$0xff]  ;;  %v383_v2 = vadd.f32 %v381_v59, %v4930_v63 }
 0x299   :  { %v391_v1 = vadd.f32 %v389_v53, %v383_v2 }
 0x29b   :  { %v314_v58 = vpop.f32.mrf.mxu2  ;;  %v334_v40 = vpop.f32.mrf.mxu3 }
 0x29c   :  { %394 = vst [vmem:[#allocation1] sm:$0xff] %v314_v58 }
 0x29d   :  { %395 = vst [vmem:[#allocation1 + $0x9] sm:$0xff] %v334_v40 }
 0x2a3   :  { %v475_v62 = vpop.f32.mrf.mxu2 }
 0x2a4   :  { %v397_v3 = vld [vmem:[#allocation1 + $0x2] ss:$9 sm:$0xff]  ;;  %v476_v9 = vadd.f32 %v4186_v55, %v475_v62 }
 0x2a5   :  { %402 = vst [vmem:[#allocation1] sm:$0xff] %v354_v10  ;;  %v399_v43 = vadd.f32 %v397_v3, %v391_v1 }
 0x2a6   :  { %403 = vst [vmem:[#allocation1 + $0x9] sm:$0xff] %v374_v8  ;;  %v478_v5 = vsel %vm166_vm1, %v476_v9, -inf }
 0x2a7   :  { %479 = vmax.xlane.f32.xlu1 %v478_v5 }
 0x2ad   :  { %v405_v61 = vld [vmem:[#allocation1 + $0x3] ss:$9 sm:$0xff] }
 0x2ae   :  { %414 = vst [vmem:[#allocation1] sm:$0xff] %v234_v6  ;;  %v407_v51 = vadd.f32 %v405_v61, %v399_v43 }
 0x2af   :  { %415 = vst [vmem:[#allocation1 + $0x9] sm:$0xff] %v254_v57 }
 0x2b0   :  { %412 = vst.msk [vmem:[#allocation2] ss:$8 sm:$0x3] %vm4935_vm7, %v407_v51 }
 0x2b6   :  { %v417_v55 = vld [vmem:[#allocation1 + $0x4] ss:$9 sm:$0xff] }
 0x2b7   :  { %420 = vst [vmem:[#allocation1] sm:$0xff] %v274_v56  ;;  %v419_v1 = vadd.f32 %v417_v55, %v4930_v63 }
 0x2b8   :  { %421 = vst [vmem:[#allocation1 + $0x9] sm:$0xff] %v294_v11 }
 0x2bf   :  { %v423_v59 = vld [vmem:[#allocation1 + $0x5] ss:$9 sm:$0xff] }
 0x2c0   :  { %426 = vst [vmem:[#allocation1] sm:$0xff] %v314_v58  ;;  %v425_v2 = vadd.f32 %v423_v59, %v419_v1 }
 0x2c1   :  { %427 = vst [vmem:[#allocation1 + $0x9] sm:$0xff] %v334_v40 }
 0x2c8   :  { %v429_v5 = vld [vmem:[#allocation1 + $0x6] ss:$9 sm:$0xff] }
 0x2c9   :  { %432 = vst [vmem:[#allocation1] sm:$0xff] %v354_v10  ;;  %v431_v3 = vadd.f32 %v429_v5, %v425_v2 }
 0x2ca   :  { %433 = vst [vmem:[#allocation1 + $0x9] sm:$0xff] %v374_v8  ;;  %v4077_v8 = vld [vmem:[%s6963_s3 + $0x8] sm:$0xff] }
 0x2cb   :  { %520 = vmatpush.msra.mxu3 %v4077_v8  ;;  %v7101_v8 = vld [vmem:[#allocation14_spill] sm:$0xff] }
 0x2cd   :  { %596 = vmatpush.msrb.mxu3 %v4494_v15 }
 0x2cf   :  { %597 = vmatpush.msrb.mxu3 %v4516_v19 }
 0x2d1   :  { %v435_v4 = vld [vmem:[#allocation1 + $0x7] ss:$9 sm:$0xff]  ;;  %598 = vmatpush.msrb.mxu3 %v4538_v23 }
 0x2d2   :  { %v437_v6 = vadd.f32 %v435_v4, %v431_v3  ;;  %v7096_v3 = vld [vmem:[#allocation23_spill] sm:$0xff] }
 0x2d3   :  { %599 = vmatpush.msrb.mxu3 %v4562_v27  ;;  %v7097_v4 = vld [vmem:[#allocation27_spill] sm:$0xff] }
 0x2d4   :  { %439 = vst.msk [vmem:[#allocation2 + $0x1] ss:$8 sm:$0x3] %vm4935_vm7, %v437_v6 }
 0x2d5   :  { %600 = vmatpush.msrb.mxu3 %v4586_v31 }
 0x2d7   :  { %601 = vmatpush.msrb.mxu3 %v4610_v35 }
 0x2d9   :  { %602 = vmatpush.msrb.mxu3 %v4634_v39 }
 0x2db   :  { %603 = vmatpush.msrb.mxu3 %v4658_v44 }
 0x31a   :  { %v480_v43 = vpop.xlane.xlu1 %479 }
 0x31b   :  { %v481_v51 = vsub.f32 %v476_v9, %v480_v43  ;;  %v4091_v43 = vld [vmem:[%s6962_s2 + $0x10] sm:$0xff] }
 0x31d   :  { %v482_v53 = vmul.f32 1.442695, %v481_v51  ;;  %v4090_v51 = vld [vmem:[%s6961_s1 + $0x10] sm:$0xff] }
 0x31f   :  { %4197 = vpow2.f32 %v482_v53  ;;  %v7098_v53 = vld [vmem:[#allocation12_spill] sm:$0xff] }
 0x325   :  { %v4198_v57 = vpop.eup %4197 }
 0x326   :  { %v484_v58 = vsel %vm166_vm1, %v4198_v57, 0.0 }
 0x327   :  { %485 = vadd.xlane.f32.xlu1 %v484_v58  ;;  %v7100_v58 = vld [vmem:[#allocation10_spill] sm:$0xff] }
 0x39a   :  { %v486_v9 = vpop.xlane.xlu1 %485 }
 0x39b   :  { %4199 = vrcp.f32 %v486_v9  ;;  %v498_v56 = vand.u32 2147483648, %v486_v9  ;;  %v496_v61 = vand.u32 2147483647, %v486_v9  ;;  %vm492_vm9 = vweird.f32 %v486_v9 }
 0x39d   :  { %v499_v59 = vor.u32 1.1754944e-38, %v498_v56  ;;  %vm497_vm11 = vcmp.eq.f32.partialorder %v496_v61, 8.507059e+37  ;;  %v7106_v56 = vld [vmem:[#allocation21_spill] sm:$0xff]  ;;  %v7108_v61 = vld [vmem:[#allocation24_spill] sm:$0xff] }
 0x3a1   :  { %v4200_v10 = vpop.eup %4199 }
 0x3a2   :  { %v488_v40 = vmul.f32 %v4200_v10, %v486_v9  ;;  %vm493_vm8 = vweird.f32 %v4200_v10  ;;  %v7102_v9 = vld [vmem:[#allocation17_spill] sm:$0xff] }
 0x3a3   :  { %vm494_vm10 = vmor %vm492_vm9, %vm493_vm8 }
 0x3a4   :  { %v489_v62 = vsub.f32 1.0, %v488_v40  ;;  %v7104_v40 = vld [vmem:[#allocation15_spill] sm:$0xff] }
 0x3a6   :  { %v490_v11 = vmul.f32 %v4200_v10, %v489_v62  ;;  %v7105_v62 = vld [vmem:[#allocation20_spill] sm:$0xff] }
 0x3a8   :  { %v491_v55 = vadd.f32 %v4200_v10, %v490_v11  ;;  %v7107_v11 = vld [vmem:[#allocation16_spill] sm:$0xff] }
 0x3aa   :  { %v495_v5 = vsel %vm494_vm10, %v4200_v10, %v491_v55  ;;  %v7103_v10 = vld [vmem:[#allocation18_spill] sm:$0xff]  ;;  %v7109_v55 = vld [vmem:[#allocation25_spill] sm:$0xff] }
 0x3ab   :  { %v500_v1 = vsel %vm497_vm11, %v499_v59, %v495_v5  ;;  %v7110_v59 = vld [vmem:[#allocation19_spill] sm:$0xff]  ;;  %v7111_v5 = vld [vmem:[#allocation28_spill] sm:$0xff] }
 0x3ac   :  { %v501_v2 = vmul.f32 %v4198_v57, %v500_v1  ;;  %v7099_v57 = vld [vmem:[#allocation13_spill] sm:$0xff] }
 0x3ad   :  { %v7112_v1 = vld [vmem:[#allocation29_spill] sm:$0xff] }
 0x3ae   :  { %4081 = vmatmul.msk.f32.vlgmr.msra.gmra.mxu3 %vm166_vm1, %v501_v2  ;;  %v7113_v2 = vld [vmem:[#allocation22_spill] sm:$0xff] }
 0x3af   :  { %676 = vmatpush.msra.mxu3 %v4677_v47 }
 0x3b1   :  { %677 = vmatpush.msra.mxu3 %v4696_v50 }
 0x3b3   :  { %678 = vmatpush.msra.mxu3 %v4714_v54 }
 0x3b5   :  { %679 = vmatpush.msra.mxu3 %v4760_v7 }
 0x3b7   :  { %680 = vmatpush.msra.mxu3 %v7096_v3 }
 0x3b9   :  { %681 = vmatpush.msra.mxu3 %v7097_v4 }
 0x3bb   :  { %682 = vmatpush.msra.mxu3 %v4828_v60 }
 0x3bd   :  { %683 = vmatpush.msra.mxu3 %v4852_v0 }
 0x431   :  { %v522_v6 = vpop.f32.mrf.mxu3 }
 0x432   :  { %4082 = vmatmul.msk.f32.vlgmr.msrb.gmra.mxu1 %vm139_vm0, %v522_v6  ;;  %4083 = vmatmul.msk.f32.vlgmr.msrb.gmra.mxu0 %vm139_vm0, %v522_v6 }
 0x433   :  { %4084 = vmatmul.msk.f32.vlgmr.msrb.gmra.mxu2 %vm139_vm0, %v522_v6  ;;  %4085 = vmatmul.msk.f32.vlgmr.msrb.gmra.mxu3 %vm139_vm0, %v522_v6 }
 0x434   :  { %4094 = vmatpush.xpose.msk.msrb.mxu1 %vm139_vm0, %v4091_v43  ;;  %843 = vmatpush.msrb.mxu2 %v4477_v12  ;;  %v7115_v43 = vld [vmem:[#allocation32_spill] sm:$0xff] }
 0x435   :  { %863 = vmatpush.msrb.mxu3 %v4482_v13 }
 0x436   :  { %844 = vmatpush.msrb.mxu2 %v4499_v16 }
 0x437   :  { %864 = vmatpush.msrb.mxu3 %v4504_v17 }
 0x438   :  { %845 = vmatpush.msrb.mxu2 %v4521_v20 }
 0x439   :  { %865 = vmatpush.msrb.mxu3 %v4528_v21 }
 0x43a   :  { %4086 = vmatmul.msk.f32.vlgmr.msra.gmra.mxu1 %vm139_vm0, %v522_v6  ;;  %4087 = vmatmul.msk.f32.vlgmr.msra.gmra.mxu0 %vm139_vm0, %v522_v6 }
 0x43b   :  { %4088 = vmatmul.msk.f32.vlgmr.msra.gmra.mxu2 %vm139_vm0, %v522_v6  ;;  %4089 = vmatmul.msk.f32.vlgmr.msra.gmra.mxu3 %vm139_vm0, %v522_v6  ;;  %v7114_v6 = vld [vmem:[#allocation31_spill] sm:$0xff] }
 0x43c   :  { %883 = vmatpush.msra.mxu1 %v4487_v14  ;;  %846 = vmatpush.msrb.mxu2 %v4545_v24 }
 0x43d   :  { %866 = vmatpush.msrb.mxu3 %v4550_v25 }
 0x43e   :  { %884 = vmatpush.msra.mxu1 %v4511_v18  ;;  %847 = vmatpush.msrb.mxu2 %v4569_v28 }
 0x43f   :  { %867 = vmatpush.msrb.mxu3 %v4574_v29 }
 0x440   :  { %885 = vmatpush.msra.mxu1 %v4533_v22  ;;  %848 = vmatpush.msrb.mxu2 %v4593_v32 }
 0x441   :  { %868 = vmatpush.msrb.mxu3 %v4598_v33 }
 0x442   :  { %4095 = vmatmul.msk.f32.vlgmr.msrb.gmra.mxu1 %vm139_vm0, %v4090_v51  ;;  %849 = vmatpush.msrb.mxu2 %v4617_v36  ;;  %v7116_v51 = vld [vmem:[#allocation26_spill] sm:$0xff] }
 0x443   :  { %886 = vmatpush.msra.mxu1 %v4557_v26  ;;  %869 = vmatpush.msrb.mxu3 %v4622_v37 }
 0x444   :  { %850 = vmatpush.msrb.mxu2 %v4641_v41 }
 0x445   :  { %887 = vmatpush.msra.mxu1 %v4581_v30  ;;  %870 = vmatpush.msrb.mxu3 %v4646_v42 }
 0x446   :  { %923 = vmatpush.msra.mxu2 %v4665_v45 }
 0x447   :  { %943 = vmatpush.msra.mxu3 %v4670_v46  ;;  %888 = vmatpush.msra.mxu1 %v4605_v34 }
 0x448   :  { %924 = vmatpush.msra.mxu2 %v4684_v48 }
 0x449   :  { %944 = vmatpush.msra.mxu3 %v4689_v49  ;;  %889 = vmatpush.msra.mxu1 %v4629_v38 }
 0x44a   :  { %925 = vmatpush.msra.mxu2 %v7098_v53 }
 0x44b   :  { %945 = vmatpush.msra.mxu3 %v7099_v57  ;;  %890 = vmatpush.msra.mxu1 %v7100_v58 }
 0x44c   :  { %926 = vmatpush.msra.mxu2 %v7102_v9 }
 0x44d   :  { %963 = vmatpush.msrb.mxu1 %v7101_v8  ;;  %946 = vmatpush.msra.mxu3 %v7103_v10 }
 0x44e   :  { %927 = vmatpush.msra.mxu2 %v7105_v62 }
 0x44f   :  { %964 = vmatpush.msrb.mxu1 %v7104_v40  ;;  %947 = vmatpush.msra.mxu3 %v7106_v56  ;;  %v7117_v56 = vld [vmem:[#allocation30_spill] sm:$0xff] }
 0x450   :  { %928 = vmatpush.msra.mxu2 %v7108_v61 }
 0x451   :  { %965 = vmatpush.msrb.mxu1 %v7107_v11  ;;  %948 = vmatpush.msra.mxu3 %v7109_v55  ;;  %v7118_v11 = vld [vmem:[#allocation33_spill] sm:$0xff] }
 0x452   :  { %929 = vmatpush.msra.mxu2 %v7111_v5 }
 0x453   :  { %966 = vmatpush.msrb.mxu1 %v7110_v59  ;;  %949 = vmatpush.msra.mxu3 %v7112_v1 }
 0x454   :  { %930 = vmatpush.msra.mxu2 %v7114_v6 }
 0x455   :  { %967 = vmatpush.msrb.mxu1 %v7113_v2  ;;  %950 = vmatpush.msra.mxu3 %v7115_v43  ;;  %v4187_v2 = vld [vmem:[%s6964_s4 + $0x2] ss:$0 sm:$0xff] }
 0x457   :  { %968 = vmatpush.msrb.mxu1 %v7116_v51 }
 0x459   :  { %969 = vmatpush.msrb.mxu1 %v7117_v56 }
 0x45b   :  { %970 = vmatpush.msrb.mxu1 %v7118_v11 }
 0x4af   :  { %v545_v61 = vpop.f32.mrf.mxu1  ;;  %v565_v55 = vpop.f32.mrf.mxu0 }
 0x4b0   :  { %v690_v11 = vrot.slane %v565_v55, 7 }
 0x4b2   :  { %v691_v9 = vsel %vm380_vm6, %v545_v61, %v690_v11 }
 0x4b3   :  { %v693_v58 = vadd.f32 %v691_v9, %v4930_v63 }
 0x4b6   :  { %v585_v62 = vpop.f32.mrf.mxu2  ;;  %v605_v59 = vpop.f32.mrf.mxu3 }
 0x4b7   :  { %696 = vst [vmem:[#allocation1] sm:$0xff] %v585_v62  ;;  %v625_v5 = vpop.f32.mrf.mxu1  ;;  %v645_v43 = vpop.f32.mrf.mxu0 }
 0x4b8   :  { %697 = vst [vmem:[#allocation1 + $0x9] sm:$0xff] %v605_v59 }
 0x4be   :  { %v665_v10 = vpop.f32.mrf.mxu2  ;;  %v685_v8 = vpop.f32.mrf.mxu3 }
 0x4bf   :  { %v699_v6 = vld [vmem:[#allocation1 + $0x1] ss:$9 sm:$0xff]  ;;  %v782_v1 = vpop.f32.mrf.mxu1 }
 0x4c0   :  { %704 = vst [vmem:[#allocation1] sm:$0xff] %v625_v5  ;;  %v783_v51 = vadd.f32 %v4187_v2, %v782_v1  ;;  %v701_v57 = vadd.f32 %v699_v6, %v693_v58 }
 0x4c1   :  { %705 = vst [vmem:[#allocation1 + $0x9] sm:$0xff] %v645_v43 }
 0x4c2   :  { %v785_v56 = vsel %vm166_vm1, %v783_v51, -inf }
 0x4c3   :  { %786 = vmax.xlane.f32.xlu2 %v785_v56 }
 0x4c8   :  { %v707_v40 = vld [vmem:[#allocation1 + $0x2] ss:$9 sm:$0xff] }
 0x4c9   :  { %712 = vst [vmem:[#allocation1] sm:$0xff] %v665_v10  ;;  %v709_v53 = vadd.f32 %v707_v40, %v701_v57 }
 0x4ca   :  { %713 = vst [vmem:[#allocation1 + $0x9] sm:$0xff] %v685_v8 }
 0x4d1   :  { %v715_v38 = vld [vmem:[#allocation1 + $0x3] ss:$9 sm:$0xff] }
 0x4d2   :  { %721 = vst [vmem:[#allocation1] sm:$0xff] %v545_v61  ;;  %v717_v49 = vadd.f32 %v715_v38, %v709_v53 }
 0x4d3   :  { %722 = vst [vmem:[#allocation1 + $0x9] sm:$0xff] %v565_v55 }
 0x4d4   :  { %719 = vst.msk [vmem:[#allocation2 + $0x2] ss:$8 sm:$0x3] %vm4935_vm7, %v717_v49 }
 0x4da   :  { %v724_v56 = vld [vmem:[#allocation1 + $0x4] ss:$9 sm:$0xff] }
 0x4db   :  { %727 = vst [vmem:[#allocation1] sm:$0xff] %v585_v62  ;;  %v726_v9 = vadd.f32 %v724_v56, %v4930_v63 }
 0x4dc   :  { %728 = vst [vmem:[#allocation1 + $0x9] sm:$0xff] %v605_v59 }
 0x4e3   :  { %v730_v1 = vld [vmem:[#allocation1 + $0x5] ss:$9 sm:$0xff] }
 0x4e4   :  { %733 = vst [vmem:[#allocation1] sm:$0xff] %v625_v5  ;;  %v732_v58 = vadd.f32 %v730_v1, %v726_v9  ;;  %v4188_v9 = vld [vmem:[%s6964_s4 + $0x3] ss:$0 sm:$0xff] }
 0x4e5   :  { %734 = vst [vmem:[#allocation1 + $0x9] sm:$0xff] %v645_v43 }
 0x4ec   :  { %v736_v11 = vld [vmem:[#allocation1 + $0x6] ss:$9 sm:$0xff] }
 0x4ed   :  { %739 = vst [vmem:[#allocation1] sm:$0xff] %v665_v10  ;;  %v738_v57 = vadd.f32 %v736_v11, %v732_v58 }
 0x4ee   :  { %740 = vst [vmem:[#allocation1 + $0x9] sm:$0xff] %v685_v8  ;;  %v4092_v8 = vld [vmem:[%s6963_s3 + $0x10] sm:$0xff] }
 0x4ef   :  { %827 = vmatpush.msrb.mxu0 %v4092_v8 }
 0x4f1   :  { %903 = vmatpush.msra.mxu0 %v4494_v15 }
 0x4f3   :  { %904 = vmatpush.msra.mxu0 %v4516_v19 }
 0x4f5   :  { %v742_v40 = vld [vmem:[#allocation1 + $0x7] ss:$9 sm:$0xff]  ;;  %905 = vmatpush.msra.mxu0 %v4538_v23 }
 0x4f6   :  { %v744_v61 = vadd.f32 %v742_v40, %v738_v57 }
 0x4f7   :  { %906 = vmatpush.msra.mxu0 %v4562_v27 }
 0x4f8   :  { %746 = vst.msk [vmem:[#allocation2 + $0x3] ss:$8 sm:$0x3] %vm4935_vm7, %v744_v61 }
 0x4f9   :  { %907 = vmatpush.msra.mxu0 %v4586_v31 }
 0x4fb   :  { %908 = vmatpush.msra.mxu0 %v4610_v35 }
 0x4fd   :  { %909 = vmatpush.msra.mxu0 %v4634_v39 }
 0x4ff   :  { %910 = vmatpush.msra.mxu0 %v4658_v44  ;;  %v4106_v44 = vld [vmem:[%s6962_s2 + $0x18] sm:$0xff] }
 0x536   :  { %v787_v38 = vpop.xlane.xlu2 %786 }
 0x537   :  { %v788_v49 = vsub.f32 %v783_v51, %v787_v38 }
 0x539   :  { %v789_v53 = vmul.f32 1.442695, %v788_v49 }
 0x53b   :  { %4201 = vpow2.f32 %v789_v53 }
 0x541   :  { %v4202_v62 = vpop.eup %4201 }
 0x542   :  { %v791_v55 = vsel %vm166_vm1, %v4202_v62, 0.0 }
 0x543   :  { %792 = vadd.xlane.f32.xlu2 %v791_v55 }
 0x5b6   :  { %v793_v10 = vpop.xlane.xlu2 %792 }
 0x5b7   :  { %4203 = vrcp.f32 %v793_v10  ;;  %v805_v15 = vand.u32 2147483648, %v793_v10  ;;  %v803_v19 = vand.u32 2147483647, %v793_v10  ;;  %vm799_vm13 = vweird.f32 %v793_v10 }
 0x5b9   :  { %v806_v27 = vor.u32 1.1754944e-38, %v805_v15  ;;  %vm804_vm15 = vcmp.eq.f32.partialorder %v803_v19, 8.507059e+37 }
 0x5bd   :  { %v4204_v59 = vpop.eup %4203 }
 0x5be   :  { %v795_v5 = vmul.f32 %v4204_v59, %v793_v10  ;;  %vm800_vm12 = vweird.f32 %v4204_v59 }
 0x5bf   :  { %vm801_vm14 = vmor %vm799_vm13, %vm800_vm12 }
 0x5c0   :  { %v796_v2 = vsub.f32 1.0, %v795_v5 }
 0x5c2   :  { %v797_v6 = vmul.f32 %v4204_v59, %v796_v2 }
 0x5c4   :  { %v798_v23 = vadd.f32 %v4204_v59, %v797_v6 }
 0x5c6   :  { %v802_v31 = vsel %vm801_vm14, %v4204_v59, %v798_v23 }
 0x5c7   :  { %v807_v35 = vsel %vm804_vm15, %v806_v27, %v802_v31 }
 0x5c8   :  { %v808_v43 = vmul.f32 %v4202_v62, %v807_v35 }
 0x5ca   :  { %4096 = vmatmul.msk.f32.vlgmr.msrb.gmra.mxu0 %vm166_vm1, %v808_v43 }
 0x5cb   :  { %983 = vmatpush.msrb.mxu0 %v4677_v47 }
 0x5cd   :  { %984 = vmatpush.msrb.mxu0 %v4696_v50 }
 0x5cf   :  { %985 = vmatpush.msrb.mxu0 %v4714_v54 }
 0x5d1   :  { %986 = vmatpush.msrb.mxu0 %v4760_v7 }
 0x5d3   :  { %987 = vmatpush.msrb.mxu0 %v7096_v3 }
 0x5d5   :  { %988 = vmatpush.msrb.mxu0 %v7097_v4 }
 0x5d7   :  { %989 = vmatpush.msrb.mxu0 %v4828_v60 }
 0x5d9   :  { %990 = vmatpush.msrb.mxu0 %v4852_v0 }
 0x647   :  { %v829_v39 = vpop.f32.mrf.mxu0 }
 0x648   :  { %4097 = vmatmul.msk.f32.vlgmr.msrb.gmra.mxu2 %vm139_vm0, %v829_v39  ;;  %4098 = vmatmul.msk.f32.vlgmr.msrb.gmra.mxu3 %vm139_vm0, %v829_v39 }
 0x649   :  { %4099 = vmatmul.msk.f32.vlgmr.msra.gmra.mxu1 %vm139_vm0, %v829_v39  ;;  %4100 = vmatmul.msk.f32.vlgmr.msra.gmra.mxu0 %vm139_vm0, %v829_v39 }
 0x64a   :  { %4109 = vmatpush.xpose.msk.msrb.mxu2 %vm139_vm0, %v4106_v44  ;;  %1150 = vmatpush.msra.mxu1 %v4477_v12  ;;  %v4105_v12 = vld [vmem:[%s6961_s1 + $0x18] sm:$0xff] }
 0x64b   :  { %1170 = vmatpush.msra.mxu0 %v4482_v13  ;;  %v7119_v13 = vld [vmem:[#allocation11_spill] sm:$0xff] }
 0x64c   :  { %1151 = vmatpush.msra.mxu1 %v4499_v16  ;;  %v7121_v16 = vld [vmem:[#allocation12_spill] sm:$0xff] }
 0x64d   :  { %1171 = vmatpush.msra.mxu0 %v4504_v17  ;;  %v7122_v17 = vld [vmem:[#allocation13_spill] sm:$0xff] }
 0x64e   :  { %1152 = vmatpush.msra.mxu1 %v4521_v20  ;;  %v7124_v20 = vld [vmem:[#allocation14_spill] sm:$0xff] }
 0x64f   :  { %1172 = vmatpush.msra.mxu0 %v4528_v21  ;;  %v7125_v21 = vld [vmem:[#allocation17_spill] sm:$0xff] }
 0x650   :  { %4101 = vmatmul.msk.f32.vlgmr.msra.gmra.mxu2 %vm139_vm0, %v829_v39  ;;  %4102 = vmatmul.msk.f32.vlgmr.msra.gmra.mxu3 %vm139_vm0, %v829_v39 }
 0x651   :  { %4103 = vmatmul.msk.f32.vlgmr.msrb.gmra.mxu1 %vm139_vm0, %v829_v39  ;;  %4104 = vmatmul.msk.f32.vlgmr.msrb.gmra.mxu0 %vm139_vm0, %v829_v39 }
 0x652   :  { %1190 = vmatpush.msra.mxu2 %v4487_v14  ;;  %1153 = vmatpush.msra.mxu1 %v4545_v24  ;;  %v7120_v14 = vld [vmem:[#allocation9_spill] sm:$0xff]  ;;  %v7127_v24 = vld [vmem:[#allocation15_spill] sm:$0xff] }
 0x653   :  { %1173 = vmatpush.msra.mxu0 %v4550_v25  ;;  %v7128_v25 = vld [vmem:[#allocation20_spill] sm:$0xff] }
 0x654   :  { %1191 = vmatpush.msra.mxu2 %v4511_v18  ;;  %1154 = vmatpush.msra.mxu1 %v4569_v28  ;;  %v7123_v18 = vld [vmem:[#allocation10_spill] sm:$0xff]  ;;  %v7130_v28 = vld [vmem:[#allocation16_spill] sm:$0xff] }
 0x655   :  { %1174 = vmatpush.msra.mxu0 %v4574_v29  ;;  %v7131_v29 = vld [vmem:[#allocation24_spill] sm:$0xff] }
 0x656   :  { %1192 = vmatpush.msra.mxu2 %v4533_v22  ;;  %1155 = vmatpush.msra.mxu1 %v4593_v32  ;;  %v7126_v22 = vld [vmem:[#allocation18_spill] sm:$0xff]  ;;  %v7133_v32 = vld [vmem:[#allocation19_spill] sm:$0xff] }
 0x657   :  { %1175 = vmatpush.msra.mxu0 %v4598_v33  ;;  %v7134_v33 = vld [vmem:[#allocation28_spill] sm:$0xff] }
 0x658   :  { %4110 = vmatmul.msk.f32.vlgmr.msrb.gmra.mxu2 %vm139_vm0, %v4105_v12  ;;  %1156 = vmatpush.msra.mxu1 %v4617_v36  ;;  %v7136_v36 = vld [vmem:[#allocation22_spill] sm:$0xff] }
 0x659   :  { %1193 = vmatpush.msra.mxu2 %v4557_v26  ;;  %1176 = vmatpush.msra.mxu0 %v4622_v37  ;;  %v7129_v26 = vld [vmem:[#allocation21_spill] sm:$0xff]  ;;  %v7137_v37 = vld [vmem:[#allocation31_spill] sm:$0xff] }
 0x65a   :  { %1157 = vmatpush.msra.mxu1 %v4641_v41  ;;  %v7138_v41 = vld [vmem:[#allocation32_spill] sm:$0xff] }
 0x65b   :  { %1194 = vmatpush.msra.mxu2 %v4581_v30  ;;  %1177 = vmatpush.msra.mxu0 %v4646_v42  ;;  %v7132_v30 = vld [vmem:[#allocation25_spill] sm:$0xff]  ;;  %v7139_v42 = vld [vmem:[#allocation26_spill] sm:$0xff] }
 0x65c   :  { %1230 = vmatpush.msrb.mxu1 %v4665_v45  ;;  %v7140_v45 = vld [vmem:[#allocation30_spill] sm:$0xff] }
 0x65d   :  { %1250 = vmatpush.msrb.mxu0 %v4670_v46  ;;  %1195 = vmatpush.msra.mxu2 %v4605_v34  ;;  %v7135_v34 = vld [vmem:[#allocation29_spill] sm:$0xff] }
 0x65e   :  { %1231 = vmatpush.msrb.mxu1 %v4684_v48  ;;  %v7141_v46 = vld [vmem:[#allocation33_spill] sm:$0xff] }
 0x65f   :  { %1251 = vmatpush.msrb.mxu0 %v7119_v13  ;;  %1196 = vmatpush.msra.mxu2 %v7120_v14  ;;  %v4107_v13 = vld [vmem:[%s6963_s3 + $0x18] sm:$0xff] }
 0x660   :  { %1232 = vmatpush.msrb.mxu1 %v7121_v16  ;;  %1134 = vmatpush.msrb.mxu3 %v4107_v13  ;;  %v5143_v14 = vld [vmem:[%s6965_s5 + $0x1d8] sm:$0xff]  ;;  %v5441_v13 = vld [vmem:[%s6965_s5 + $0xe8] sm:$0xff] }
 0x661   :  { %1252 = vmatpush.msrb.mxu0 %v7122_v17  ;;  %1197 = vmatpush.msra.mxu2 %v7123_v18  ;;  %v5149_v16 = vld [vmem:[%s6965_s5 + $0x198] sm:$0xff]  ;;  %7152 = vst [vmem:[#allocation15_spill] sm:$0xff] %v5441_v13 }
 0x662   :  { %1233 = vmatpush.msrb.mxu1 %v7125_v21  ;;  %1210 = vmatpush.msra.mxu3 %v5143_v14  ;;  %v5155_v17 = vld [vmem:[%s6965_s5 + $0x158] sm:$0xff] }
 0x663   :  { %1270 = vmatpush.msrb.mxu2 %v7124_v20  ;;  %1253 = vmatpush.msrb.mxu0 %v7126_v22  ;;  %v5161_v18 = vld [vmem:[%s6965_s5 + $0x118] sm:$0xff] }
 0x664   :  { %1234 = vmatpush.msrb.mxu1 %v7128_v25  ;;  %1211 = vmatpush.msra.mxu3 %v5149_v16  ;;  %v5167_v20 = vld [vmem:[%s6965_s5 + $0xd8] sm:$0xff] }
 0x665   :  { %1271 = vmatpush.msrb.mxu2 %v7127_v24  ;;  %1254 = vmatpush.msrb.mxu0 %v7129_v26  ;;  %v5173_v21 = vld [vmem:[%s6965_s5 + $0x98] sm:$0xff] }
 0x666   :  { %1235 = vmatpush.msrb.mxu1 %v7131_v29  ;;  %1212 = vmatpush.msra.mxu3 %v5155_v17  ;;  %v5179_v22 = vld [vmem:[%s6965_s5 + $0x58] sm:$0xff] }
 0x667   :  { %1272 = vmatpush.msrb.mxu2 %v7130_v28  ;;  %1255 = vmatpush.msrb.mxu0 %v7132_v30  ;;  %v5185_v25 = vld [vmem:[%s6965_s5 + $0x18] sm:$0xff] }
 0x668   :  { %1236 = vmatpush.msrb.mxu1 %v7134_v33  ;;  %1213 = vmatpush.msra.mxu3 %v5161_v18 }
 0x669   :  { %1273 = vmatpush.msrb.mxu2 %v7133_v32  ;;  %1256 = vmatpush.msrb.mxu0 %v7135_v34 }
 0x66a   :  { %1237 = vmatpush.msrb.mxu1 %v7137_v37  ;;  %1214 = vmatpush.msra.mxu3 %v5167_v20 }
 0x66b   :  { %1274 = vmatpush.msrb.mxu2 %v7136_v36  ;;  %1257 = vmatpush.msrb.mxu0 %v7138_v41 }
 0x66c   :  { %1215 = vmatpush.msra.mxu3 %v5173_v21 }
 0x66d   :  { %1275 = vmatpush.msrb.mxu2 %v7139_v42 }
 0x66e   :  { %1216 = vmatpush.msra.mxu3 %v5179_v22 }
 0x66f   :  { %1276 = vmatpush.msrb.mxu2 %v7140_v45  ;;  %v5192_v45 = vld [vmem:[%s6965_s5 + $0x1f8] sm:$0xff] }
 0x670   :  { %1217 = vmatpush.msra.mxu3 %v5185_v25 }
 0x671   :  { %1277 = vmatpush.msrb.mxu2 %v7141_v46  ;;  %v5198_v46 = vld [vmem:[%s6965_s5 + $0x1b8] sm:$0xff] }
 0x6c6   :  { %v892_v47 = vpop.f32.mrf.mxu1  ;;  %v912_v48 = vpop.f32.mrf.mxu0 }
 0x6c7   :  { %1003 = vst [vmem:[#allocation1] sm:$0xff] %v892_v47 }
 0x6c8   :  { %1004 = vst [vmem:[#allocation1 + $0x9] sm:$0xff] %v912_v48 }
 0x6cb   :  { %v852_v50 = vpop.f32.mrf.mxu2  ;;  %v872_v54 = vpop.f32.mrf.mxu3 }
 0x6cc   :  { %v997_v11 = vrot.slane %v872_v54, 7 }
 0x6ce   :  { %v998_v58 = vsel %vm380_vm6, %v852_v50, %v997_v11  ;;  %v972_v40 = vpop.f32.mrf.mxu1  ;;  %v992_v49 = vpop.f32.mrf.mxu0  ;;  %v5281_v11 = vld [vmem:[%s6965_s5 + $0x190] sm:$0xff] }
 0x6cf   :  { %v1006_v51 = vld [vmem:[#allocation1 + $0x1] ss:$9 sm:$0xff]  ;;  %v1000_v53 = vadd.f32 %v998_v58, %v4930_v63 }
 0x6d0   :  { %v4120_v58 = vld [vmem:[%s6961_s1 + $0x20] sm:$0xff] }
 0x6d1   :  { %v1008_v55 = vadd.f32 %v1006_v51, %v1000_v53  ;;  %v5263_v51 = vld [vmem:[%s6965_s5 + $0x1d0] sm:$0xff] }
 0x6d2   :  { %v5327_v53 = vld [vmem:[%s6965_s5 + $0x110] sm:$0xff] }
 0x6d3   :  { %v932_v56 = vpop.f32.mrf.mxu2  ;;  %v952_v1 = vpop.f32.mrf.mxu3 }
 0x6d4   :  { %1011 = vst [vmem:[#allocation1] sm:$0xff] %v932_v56 }
 0x6d5   :  { %1012 = vst [vmem:[#allocation1 + $0x9] sm:$0xff] %v952_v1 }
 0x6db   :  { %v1089_v57 = vpop.f32.mrf.mxu2 }
 0x6dc   :  { %v1014_v61 = vld [vmem:[#allocation1 + $0x2] ss:$9 sm:$0xff]  ;;  %v1090_v38 = vadd.f32 %v4188_v9, %v1089_v57 }
 0x6dd   :  { %1019 = vst [vmem:[#allocation1] sm:$0xff] %v972_v40  ;;  %v1016_v8 = vadd.f32 %v1014_v61, %v1008_v55  ;;  %v5287_v9 = vld [vmem:[%s6965_s5 + $0xc0] sm:$0xff]  ;;  %v5296_v57 = vld [vmem:[%s6965_s5 + $0xc8] sm:$0xff] }
 0x6de   :  { %1020 = vst [vmem:[#allocation1 + $0x9] sm:$0xff] %v992_v49  ;;  %v1092_v62 = vsel %vm166_vm1, %v1090_v38, -inf  ;;  %v5308_v61 = vld [vmem:[%s6965_s5 + $0x80] sm:$0xff] }
 0x6df   :  { %1093 = vmax.xlane.f32.xlu0 %v1092_v62  ;;  %v5333_v62 = vld [vmem:[%s6965_s5 + $0x48] sm:$0xff]  ;;  %v5339_v55 = vld [vmem:[%s6965_s5] sm:$0xff] }
 0x6e5   :  { %v1022_v10 = vld [vmem:[#allocation1 + $0x3] ss:$9 sm:$0xff] }
 0x6e6   :  { %1028 = vst [vmem:[#allocation1] sm:$0xff] %v852_v50  ;;  %v1024_v59 = vadd.f32 %v1022_v10, %v1016_v8  ;;  %v4121_v50 = vld [vmem:[%s6962_s2 + $0x20] sm:$0xff]  ;;  %v5345_v8 = vld [vmem:[%s6965_s5 + $0xd0] sm:$0xff]  ;;  %v5351_v10 = vld [vmem:[%s6965_s5 + $0x8] sm:$0xff] }
 0x6e7   :  { %1029 = vst [vmem:[#allocation1 + $0x9] sm:$0xff] %v872_v54  ;;  %v5253_v54 = vld [vmem:[%s6965_s5 + $0x148] sm:$0xff] }
 0x6e8   :  { %1026 = vst.msk [vmem:[#allocation2 + $0x4] ss:$8 sm:$0x3] %vm4935_vm7, %v1024_v59  ;;  %v5357_v59 = vld [vmem:[%s6965_s5 + $0x1e0] sm:$0xff] }
 0x6ee   :  { %v1031_v5 = vld [vmem:[#allocation1 + $0x4] ss:$9 sm:$0xff] }
 0x6ef   :  { %1034 = vst [vmem:[#allocation1] sm:$0xff] %v892_v47  ;;  %v1033_v6 = vadd.f32 %v1031_v5, %v4930_v63  ;;  %v5204_v47 = vld [vmem:[%s6965_s5 + $0x178] sm:$0xff]  ;;  %v5363_v5 = vld [vmem:[%s6965_s5 + $0x1e8] sm:$0xff] }
 0x6f0   :  { %1035 = vst [vmem:[#allocation1 + $0x9] sm:$0xff] %v912_v48 }
 0x6f7   :  { %v1037_v2 = vld [vmem:[#allocation1 + $0x5] ss:$9 sm:$0xff] }
 0x6f8   :  { %1040 = vst [vmem:[#allocation1] sm:$0xff] %v932_v56  ;;  %v1039_v19 = vadd.f32 %v1037_v2, %v1033_v6  ;;  %v5269_v56 = vld [vmem:[%s6965_s5 + $0x100] sm:$0xff]  ;;  %v5369_v2 = vld [vmem:[%s6965_s5 + $0x90] sm:$0xff]  ;;  %v5381_v6 = vld [vmem:[%s6965_s5 + $0x1a8] sm:$0xff] }
 0x6f9   :  { %1041 = vst [vmem:[#allocation1 + $0x9] sm:$0xff] %v952_v1  ;;  %v5275_v1 = vld [vmem:[%s6965_s5 + $0x108] sm:$0xff] }
 0x6fa   :  { %7142 = vst [vmem:[#allocation23_spill] sm:$0xff] %v5381_v6 }
 0x700   :  { %v1043_v15 = vld [vmem:[#allocation1 + $0x6] ss:$9 sm:$0xff] }
 0x701   :  { %1046 = vst [vmem:[#allocation1] sm:$0xff] %v972_v40  ;;  %v1045_v23 = vadd.f32 %v1043_v15, %v1039_v19  ;;  %v5302_v40 = vld [vmem:[%s6965_s5 + $0x150] sm:$0xff]  ;;  %v5375_v15 = vld [vmem:[%s6965_s5 + $0x1a0] sm:$0xff] }
 0x702   :  { %1047 = vst [vmem:[#allocation1 + $0x9] sm:$0xff] %v992_v49  ;;  %v5321_v49 = vld [vmem:[%s6965_s5 + $0x40] sm:$0xff]  ;;  %v5387_v19 = vld [vmem:[%s6965_s5 + $0x50] sm:$0xff] }
 0x703   :  { %7143 = vst [vmem:[#allocation27_spill] sm:$0xff] %v5387_v19 }
 0x709   :  { %v1049_v27 = vld [vmem:[#allocation1 + $0x7] ss:$9 sm:$0xff] }
 0x70a   :  { %v1051_v31 = vadd.f32 %v1049_v27, %v1045_v23  ;;  %v5393_v23 = vld [vmem:[%s6965_s5 + $0x160] sm:$0xff]  ;;  %v5399_v27 = vld [vmem:[%s6965_s5 + $0x168] sm:$0xff] }
 0x70b   :  { %7144 = vst [vmem:[#allocation11_spill] sm:$0xff] %v5393_v23 }
 0x70c   :  { %1053 = vst.msk [vmem:[#allocation2 + $0x5] ss:$8 sm:$0x3] %vm4935_vm7, %v1051_v31  ;;  %v5405_v31 = vld [vmem:[%s6965_s5 + $0x10] sm:$0xff] }
 0x70d   :  { %7145 = vst [vmem:[#allocation9_spill] sm:$0xff] %v5399_v27 }
 0x70e   :  { %7146 = vst [vmem:[#allocation12_spill] sm:$0xff] %v5405_v31 }
 0x752   :  { %v1094_v35 = vpop.xlane.xlu0 %1093 }
 0x753   :  { %v1095_v43 = vsub.f32 %v1090_v38, %v1094_v35  ;;  %v5314_v38 = vld [vmem:[%s6965_s5 + $0x88] sm:$0xff]  ;;  %v5411_v35 = vld [vmem:[%s6965_s5 + $0x1f0] sm:$0xff] }
 0x754   :  { %7147 = vst [vmem:[#allocation13_spill] sm:$0xff] %v5411_v35 }
 0x755   :  { %v1096_v39 = vmul.f32 1.442695, %v1095_v43  ;;  %v5417_v43 = vld [vmem:[%s6965_s5 + $0x120] sm:$0xff] }
 0x756   :  { %7148 = vst [vmem:[#allocation10_spill] sm:$0xff] %v5417_v43 }
 0x757   :  { %4205 = vpow2.f32 %v1096_v39  ;;  %v5423_v39 = vld [vmem:[%s6965_s5 + $0x128] sm:$0xff] }
 0x758   :  { %7149 = vst [vmem:[#allocation14_spill] sm:$0xff] %v5423_v39 }
 0x75d   :  { %v4206_v44 = vpop.eup %4205 }
 0x75e   :  { %v1098_v12 = vsel %vm166_vm1, %v4206_v44, 0.0 }
 0x75f   :  { %1099 = vadd.xlane.f32.xlu1 %v1098_v12  ;;  %v5435_v12 = vld [vmem:[%s6965_s5 + $0xe0] sm:$0xff] }
 0x760   :  { %7151 = vst [vmem:[#allocation18_spill] sm:$0xff] %v5435_v12 }
 0x7d2   :  { %v1100_v24 = vpop.xlane.xlu1 %1099 }
 0x7d3   :  { %4207 = vrcp.f32 %v1100_v24  ;;  %v1112_v30 = vand.u32 2147483648, %v1100_v24  ;;  %v1110_v33 = vand.u32 2147483647, %v1100_v24  ;;  %vm1106_vm3 = vweird.f32 %v1100_v24 }
 0x7d5   :  { %v1113_v36 = vor.u32 1.1754944e-38, %v1112_v30  ;;  %vm1111_vm5 = vcmp.eq.f32.partialorder %v1110_v33, 8.507059e+37  ;;  %v5471_v30 = vld [vmem:[%s6965_s5 + $0x60] sm:$0xff]  ;;  %v5483_v33 = vld [vmem:[%s6965_s5 + $0xf0] sm:$0xff] }
 0x7d6   :  { %7157 = vst [vmem:[#allocation25_spill] sm:$0xff] %v5471_v30 }
 0x7d7   :  { %7159 = vst [vmem:[#allocation28_spill] sm:$0xff] %v5483_v33 }
 0x7d9   :  { %v4208_v26 = vpop.eup %4207 }
 0x7da   :  { %v1102_v28 = vmul.f32 %v4208_v26, %v1100_v24  ;;  %vm1107_vm2 = vweird.f32 %v4208_v26  ;;  %v5447_v24 = vld [vmem:[%s6965_s5 + $0x170] sm:$0xff] }
 0x7db   :  { %vm1108_vm4 = vmor %vm1106_vm3, %vm1107_vm2  ;;  %7153 = vst [vmem:[#allocation20_spill] sm:$0xff] %v5447_v24 }
 0x7dc   :  { %v1103_v29 = vsub.f32 1.0, %v1102_v28  ;;  %v5459_v28 = vld [vmem:[%s6965_s5 + $0xa8] sm:$0xff] }
 0x7dd   :  { %7155 = vst [vmem:[#allocation16_spill] sm:$0xff] %v5459_v28 }
 0x7de   :  { %v1104_v32 = vmul.f32 %v4208_v26, %v1103_v29  ;;  %v5465_v29 = vld [vmem:[%s6965_s5 + $0x130] sm:$0xff] }
 0x7df   :  { %7156 = vst [vmem:[#allocation24_spill] sm:$0xff] %v5465_v29 }
 0x7e0   :  { %v1105_v34 = vadd.f32 %v4208_v26, %v1104_v32  ;;  %v5477_v32 = vld [vmem:[%s6965_s5 + $0x68] sm:$0xff] }
 0x7e1   :  { %7158 = vst [vmem:[#allocation19_spill] sm:$0xff] %v5477_v32 }
 0x7e2   :  { %v1109_v37 = vsel %vm1108_vm4, %v4208_v26, %v1105_v34  ;;  %v5453_v26 = vld [vmem:[%s6965_s5 + $0xa0] sm:$0xff] }
 0x7e3   :  { %v1114_v41 = vsel %vm1111_vm5, %v1113_v36, %v1109_v37  ;;  %7154 = vst [vmem:[#allocation21_spill] sm:$0xff] %v5453_v26  ;;  %v5489_v34 = vld [vmem:[%s6965_s5 + $0x20] sm:$0xff]  ;;  %v5495_v36 = vld [vmem:[%s6965_s5 + $0x28] sm:$0xff]  ;;  %v5501_v37 = vld [vmem:[%s6965_s5 + $0xb0] sm:$0xff] }
 0x7e4   :  { %v1115_v42 = vmul.f32 %v4206_v44, %v1114_v41  ;;  %v5429_v44 = vld [vmem:[%s6965_s5 + $0x1b0] sm:$0xff]  ;;  %7160 = vst [vmem:[#allocation29_spill] sm:$0xff] %v5489_v34 }
 0x7e5   :  { %7150 = vst [vmem:[#allocation17_spill] sm:$0xff] %v5429_v44  ;;  %v5507_v41 = vld [vmem:[%s6965_s5 + $0x70] sm:$0xff] }
 0x7e6   :  { %4111 = vmatmul.msk.f32.vlgmr.msrb.gmra.mxu3 %vm166_vm1, %v1115_v42  ;;  %7161 = vst [vmem:[#allocation22_spill] sm:$0xff] %v5495_v36  ;;  %v5513_v42 = vld [vmem:[%s6965_s5 + $0x30] sm:$0xff] }
 0x7e7   :  { %1290 = vmatpush.msrb.mxu3 %v5192_v45  ;;  %7162 = vst [vmem:[#allocation31_spill] sm:$0xff] %v5501_v37 }
 0x7e8   :  { %7163 = vst [vmem:[#allocation32_spill] sm:$0xff] %v5507_v41 }
 0x7e9   :  { %1291 = vmatpush.msrb.mxu3 %v5198_v46  ;;  %7164 = vst [vmem:[#allocation26_spill] sm:$0xff] %v5513_v42 }
 0x7eb   :  { %1292 = vmatpush.msrb.mxu3 %v5204_v47 }
 0x7ed   :  { %1293 = vmatpush.msrb.mxu3 %v4760_v7  ;;  %v5223_v7 = vld [vmem:[%s6965_s5 + $0x1c0] sm:$0xff] }
 0x7ef   :  { %1294 = vmatpush.msrb.mxu3 %v7096_v3  ;;  %v5241_v3 = vld [vmem:[%s6965_s5 + $0x188] sm:$0xff] }
 0x7f1   :  { %1295 = vmatpush.msrb.mxu3 %v7097_v4  ;;  %v5247_v4 = vld [vmem:[%s6965_s5 + $0x140] sm:$0xff] }
 0x7f3   :  { %1296 = vmatpush.msrb.mxu3 %v4828_v60  ;;  %v5229_v60 = vld [vmem:[%s6965_s5 + $0x1c8] sm:$0xff] }
 0x7f5   :  { %1297 = vmatpush.msrb.mxu3 %v4852_v0  ;;  %v5235_v0 = vld [vmem:[%s6965_s5 + $0x180] sm:$0xff] }
 0x869   :  { %v1136_v48 = vpop.f32.mrf.mxu3 }
 0x86a   :  { %4112 = vmatmul.msk.f32.vlgmr.msra.gmra.mxu1 %vm139_vm0, %v1136_v48  ;;  %4113 = vmatmul.msk.f32.vlgmr.msra.gmra.mxu0 %vm139_vm0, %v1136_v48 }
 0x86b   :  { %4114 = vmatmul.msk.f32.vlgmr.msra.gmra.mxu2 %vm139_vm0, %v1136_v48  ;;  %4115 = vmatmul.msk.f32.vlgmr.msra.gmra.mxu3 %vm139_vm0, %v1136_v48 }
 0x86c   :  { %4124 = vmatpush.xpose.msk.msra.mxu1 %vm139_vm0, %v4121_v50  ;;  %1457 = vmatpush.msra.mxu2 %v5223_v7 }
 0x86d   :  { %1477 = vmatpush.msra.mxu3 %v5229_v60 }
 0x86e   :  { %1458 = vmatpush.msra.mxu2 %v5235_v0 }
 0x86f   :  { %1478 = vmatpush.msra.mxu3 %v5241_v3 }
 0x870   :  { %1459 = vmatpush.msra.mxu2 %v5247_v4 }
 0x871   :  { %1479 = vmatpush.msra.mxu3 %v5253_v54 }
 0x872   :  { %4116 = vmatmul.msk.f32.vlgmr.msrb.gmra.mxu1 %vm139_vm0, %v1136_v48  ;;  %4117 = vmatmul.msk.f32.vlgmr.msrb.gmra.mxu0 %vm139_vm0, %v1136_v48 }
 0x873   :  { %4118 = vmatmul.msk.f32.vlgmr.msrb.gmra.mxu2 %vm139_vm0, %v1136_v48  ;;  %4119 = vmatmul.msk.f32.vlgmr.msrb.gmra.mxu3 %vm139_vm0, %v1136_v48 }
 0x874   :  { %1497 = vmatpush.msrb.mxu1 %v5263_v51  ;;  %1460 = vmatpush.msra.mxu2 %v5269_v56 }
 0x875   :  { %1480 = vmatpush.msra.mxu3 %v5275_v1 }
 0x876   :  { %1498 = vmatpush.msrb.mxu1 %v5281_v11  ;;  %1461 = vmatpush.msra.mxu2 %v5287_v9 }
 0x877   :  { %1481 = vmatpush.msra.mxu3 %v5296_v57 }
 0x878   :  { %1499 = vmatpush.msrb.mxu1 %v5302_v40  ;;  %1462 = vmatpush.msra.mxu2 %v5308_v61 }
 0x879   :  { %1482 = vmatpush.msra.mxu3 %v5314_v38 }
 0x87a   :  { %4125 = vmatmul.msk.f32.vlgmr.msra.gmra.mxu1 %vm139_vm0, %v4120_v58  ;;  %1463 = vmatpush.msra.mxu2 %v5321_v49 }
 0x87b   :  { %1500 = vmatpush.msrb.mxu1 %v5327_v53  ;;  %1483 = vmatpush.msra.mxu3 %v5333_v62 }
 0x87c   :  { %1464 = vmatpush.msra.mxu2 %v5339_v55 }
 0x87d   :  { %1501 = vmatpush.msrb.mxu1 %v5345_v8  ;;  %1484 = vmatpush.msra.mxu3 %v5351_v10 }
 0x87e   :  { %1537 = vmatpush.msrb.mxu2 %v5357_v59 }
 0x87f   :  { %1557 = vmatpush.msrb.mxu3 %v5363_v5  ;;  %1502 = vmatpush.msrb.mxu1 %v5369_v2 }
 0x880   :  { %1538 = vmatpush.msrb.mxu2 %v5375_v15 }
 0x881   :  { %1558 = vmatpush.msrb.mxu3 %v5381_v6  ;;  %1503 = vmatpush.msrb.mxu1 %v5387_v19 }
 0x882   :  { %1539 = vmatpush.msrb.mxu2 %v5393_v23 }
 0x883   :  { %1559 = vmatpush.msrb.mxu3 %v5399_v27  ;;  %1504 = vmatpush.msrb.mxu1 %v5405_v31 }
 0x884   :  { %1540 = vmatpush.msrb.mxu2 %v5417_v43 }
 0x885   :  { %1577 = vmatpush.msra.mxu1 %v5411_v35  ;;  %1560 = vmatpush.msrb.mxu3 %v5423_v39 }
 0x886   :  { %1541 = vmatpush.msrb.mxu2 %v5435_v12 }
 0x887   :  { %1578 = vmatpush.msra.mxu1 %v5429_v44  ;;  %1561 = vmatpush.msrb.mxu3 %v5441_v13 }
 0x888   :  { %1542 = vmatpush.msrb.mxu2 %v5453_v26 }
 0x889   :  { %1579 = vmatpush.msra.mxu1 %v5447_v24  ;;  %1562 = vmatpush.msrb.mxu3 %v5459_v28 }
 0x88a   :  { %1543 = vmatpush.msrb.mxu2 %v5471_v30 }
 0x88b   :  { %1580 = vmatpush.msra.mxu1 %v5465_v29  ;;  %1563 = vmatpush.msrb.mxu3 %v5477_v32 }
 0x88c   :  { %1544 = vmatpush.msrb.mxu2 %v5489_v34  ;;  %v4189_v34 = vld [vmem:[%s6964_s4 + $0x4] ss:$0 sm:$0xff] }
 0x88d   :  { %1581 = vmatpush.msra.mxu1 %v5483_v33  ;;  %1564 = vmatpush.msrb.mxu3 %v5495_v36 }
 0x88f   :  { %1582 = vmatpush.msra.mxu1 %v5501_v37 }
 0x891   :  { %1583 = vmatpush.msra.mxu1 %v5507_v41 }
 0x893   :  { %1584 = vmatpush.msra.mxu1 %v5513_v42 }
 0x8e7   :  { %v1159_v48 = vpop.f32.mrf.mxu1  ;;  %v1179_v50 = vpop.f32.mrf.mxu0 }
 0x8e8   :  { %v1304_v42 = vrot.slane %v1179_v50, 7 }
 0x8ea   :  { %v1305_v24 = vsel %vm380_vm6, %v1159_v48, %v1304_v42 }
 0x8eb   :  { %v1307_v12 = vadd.f32 %v1305_v24, %v4930_v63 }
 0x8ee   :  { %v1199_v58 = vpop.f32.mrf.mxu2  ;;  %v1219_v36 = vpop.f32.mrf.mxu3 }
 0x8ef   :  { %1310 = vst [vmem:[#allocation1] sm:$0xff] %v1199_v58  ;;  %v1239_v37 = vpop.f32.mrf.mxu1  ;;  %v1259_v32 = vpop.f32.mrf.mxu0 }
 0x8f0   :  { %1311 = vst [vmem:[#allocation1 + $0x9] sm:$0xff] %v1219_v36 }
 0x8f6   :  { %v1279_v26 = vpop.f32.mrf.mxu2  ;;  %v1299_v13 = vpop.f32.mrf.mxu3 }
 0x8f7   :  { %v1313_v33 = vld [vmem:[#allocation1 + $0x1] ss:$9 sm:$0xff]  ;;  %v1396_v41 = vpop.f32.mrf.mxu1 }
 0x8f8   :  { %1318 = vst [vmem:[#allocation1] sm:$0xff] %v1239_v37  ;;  %v1397_v30 = vadd.f32 %v4189_v34, %v1396_v41  ;;  %v1315_v44 = vadd.f32 %v1313_v33, %v1307_v12 }
 0x8f9   :  { %1319 = vst [vmem:[#allocation1 + $0x9] sm:$0xff] %v1259_v32 }
 0x8fa   :  { %v1399_v29 = vsel %vm166_vm1, %v1397_v30, -inf }
 0x8fb   :  { %1400 = vmax.xlane.f32.xlu2 %v1399_v29 }
 0x900   :  { %v1321_v28 = vld [vmem:[#allocation1 + $0x2] ss:$9 sm:$0xff] }
 0x901   :  { %1326 = vst [vmem:[#allocation1] sm:$0xff] %v1279_v26  ;;  %v1323_v39 = vadd.f32 %v1321_v28, %v1315_v44 }
 0x902   :  { %1327 = vst [vmem:[#allocation1 + $0x9] sm:$0xff] %v1299_v13 }
 0x909   :  { %v1329_v43 = vld [vmem:[#allocation1 + $0x3] ss:$9 sm:$0xff] }
 0x90a   :  { %1335 = vst [vmem:[#allocation1] sm:$0xff] %v1159_v48  ;;  %v1331_v35 = vadd.f32 %v1329_v43, %v1323_v39 }
 0x90b   :  { %1336 = vst [vmem:[#allocation1 + $0x9] sm:$0xff] %v1179_v50 }
 0x90c   :  { %1333 = vst.msk [vmem:[#allocation2 + $0x6] ss:$8 sm:$0x3] %vm4935_vm7, %v1331_v35 }
 0x912   :  { %v1338_v29 = vld [vmem:[#allocation1 + $0x4] ss:$9 sm:$0xff] }
 0x913   :  { %1341 = vst [vmem:[#allocation1] sm:$0xff] %v1199_v58  ;;  %v1340_v24 = vadd.f32 %v1338_v29, %v4930_v63 }
 0x914   :  { %1342 = vst [vmem:[#allocation1 + $0x9] sm:$0xff] %v1219_v36 }
 0x91b   :  { %v1344_v34 = vld [vmem:[#allocation1 + $0x5] ss:$9 sm:$0xff] }
 0x91c   :  { %1347 = vst [vmem:[#allocation1] sm:$0xff] %v1239_v37  ;;  %v1346_v12 = vadd.f32 %v1344_v34, %v1340_v24 }
 0x91d   :  { %1348 = vst [vmem:[#allocation1 + $0x9] sm:$0xff] %v1259_v32 }
 0x924   :  { %v1350_v41 = vld [vmem:[#allocation1 + $0x6] ss:$9 sm:$0xff] }
 0x925   :  { %1353 = vst [vmem:[#allocation1] sm:$0xff] %v1279_v26  ;;  %v1352_v44 = vadd.f32 %v1350_v41, %v1346_v12  ;;  %v5546_v12 = vld [vmem:[%s6965_s5 + $0x138] sm:$0xff] }
 0x926   :  { %1354 = vst [vmem:[#allocation1 + $0x9] sm:$0xff] %v1299_v13  ;;  %v4122_v13 = vld [vmem:[%s6963_s3 + $0x20] sm:$0xff] }
 0x927   :  { %1441 = vmatpush.msra.mxu0 %v4122_v13  ;;  %v7166_v13 = vld [vmem:[#allocation10_spill] sm:$0xff] }
 0x929   :  { %1517 = vmatpush.msrb.mxu0 %v5143_v14 }
 0x92b   :  { %1518 = vmatpush.msrb.mxu0 %v5149_v16 }
 0x92d   :  { %v1356_v28 = vld [vmem:[#allocation1 + $0x7] ss:$9 sm:$0xff]  ;;  %1519 = vmatpush.msrb.mxu0 %v5155_v17 }
 0x92e   :  { %v1358_v33 = vadd.f32 %v1356_v28, %v1352_v44  ;;  %v5552_v44 = vld [vmem:[%s6965_s5 + $0xf8] sm:$0xff] }
 0x92f   :  { %1520 = vmatpush.msrb.mxu0 %v5161_v18  ;;  %v5558_v28 = vld [vmem:[%s6965_s5 + $0xb8] sm:$0xff] }
 0x930   :  { %1360 = vst.msk [vmem:[#allocation2 + $0x7] ss:$8 sm:$0x3] %vm4935_vm7, %v1358_v33  ;;  %v5564_v33 = vld [vmem:[%s6965_s5 + $0x78] sm:$0xff] }
 0x931   :  { %1521 = vmatpush.msrb.mxu0 %v5167_v20 }
 0x933   :  { %1522 = vmatpush.msrb.mxu0 %v5173_v21 }
 0x935   :  { %1523 = vmatpush.msrb.mxu0 %v5179_v22 }
 0x937   :  { %1524 = vmatpush.msrb.mxu0 %v5185_v25 }
 0x96e   :  { %v1401_v43 = vpop.xlane.xlu2 %1400 }
 0x96f   :  { %v1402_v35 = vsub.f32 %v1397_v30, %v1401_v43  ;;  %v5570_v43 = vld [vmem:[%s6965_s5 + $0x38] sm:$0xff] }
 0x971   :  { %v1403_v39 = vmul.f32 1.442695, %v1402_v35 }
 0x973   :  { %4209 = vpow2.f32 %v1403_v39  ;;  %v4136_v39 = vld [vmem:[%s6962_s2 + $0x28] sm:$0xff] }
 0x979   :  { %v4210_v36 = vpop.eup %4209 }
 0x97a   :  { %v1405_v37 = vsel %vm166_vm1, %v4210_v36, 0.0 }
 0x97b   :  { %1406 = vadd.xlane.f32.xlu0 %v1405_v37  ;;  %v7165_v37 = vld [vmem:[#allocation13_spill] sm:$0xff] }
 0x9ee   :  { %v1407_v63 = vpop.xlane.xlu0 %1406 }
 0x9ef   :  { %4211 = vrcp.f32 %v1407_v63  ;;  %v1419_v42 = vand.u32 2147483648, %v1407_v63  ;;  %v1417_v50 = vand.u32 2147483647, %v1407_v63  ;;  %vm1413_vm9 = vweird.f32 %v1407_v63 }
 0x9f1   :  { %v1420_v29 = vor.u32 1.1754944e-38, %v1419_v42  ;;  %vm1418_vm11 = vcmp.eq.f32.partialorder %v1417_v50, 8.507059e+37  ;;  %v7171_v42 = vld [vmem:[#allocation20_spill] sm:$0xff] }
 0x9f2   :  { %v7173_v50 = vld [vmem:[#allocation16_spill] sm:$0xff] }
 0x9f5   :  { %v4212_v26 = vpop.eup %4211 }
 0x9f6   :  { %v1409_v30 = vmul.f32 %v4212_v26, %v1407_v63  ;;  %vm1414_vm8 = vweird.f32 %v4212_v26  ;;  %v7167_v63 = vld [vmem:[#allocation14_spill] sm:$0xff] }
 0x9f7   :  { %vm1415_vm10 = vmor %vm1413_vm9, %vm1414_vm8 }
 0x9f8   :  { %v1410_v32 = vsub.f32 1.0, %v1409_v30  ;;  %v7169_v30 = vld [vmem:[#allocation18_spill] sm:$0xff] }
 0x9fa   :  { %v1411_v48 = vmul.f32 %v4212_v26, %v1410_v32  ;;  %v7170_v32 = vld [vmem:[#allocation15_spill] sm:$0xff] }
 0x9fc   :  { %v1412_v58 = vadd.f32 %v4212_v26, %v1411_v48  ;;  %v7172_v48 = vld [vmem:[#allocation21_spill] sm:$0xff] }
 0x9fe   :  { %v1416_v34 = vsel %vm1415_vm10, %v4212_v26, %v1412_v58  ;;  %v7168_v26 = vld [vmem:[#allocation17_spill] sm:$0xff]  ;;  %v7174_v58 = vld [vmem:[#allocation24_spill] sm:$0xff] }
 0x9ff   :  { %v1421_v41 = vsel %vm1418_vm11, %v1420_v29, %v1416_v34  ;;  %v7175_v29 = vld [vmem:[#allocation25_spill] sm:$0xff]  ;;  %v7176_v34 = vld [vmem:[#allocation19_spill] sm:$0xff] }
 0xa00   :  { %v1422_v24 = vmul.f32 %v4210_v36, %v1421_v41  ;;  %v4135_v36 = vld [vmem:[%s6961_s1 + $0x28] sm:$0xff]  ;;  %v7177_v41 = vld [vmem:[#allocation28_spill] sm:$0xff] }
 0xa02   :  { %4126 = vmatmul.msk.f32.vlgmr.msra.gmra.mxu0 %vm166_vm1, %v1422_v24  ;;  %v7178_v24 = vld [vmem:[#allocation29_spill] sm:$0xff] }
 0xa03   :  { %1597 = vmatpush.msra.mxu0 %v5192_v45 }
 0xa05   :  { %1598 = vmatpush.msra.mxu0 %v5198_v46 }
 0xa07   :  { %1599 = vmatpush.msra.mxu0 %v5204_v47 }
 0xa09   :  { %1600 = vmatpush.msra.mxu0 %v5546_v12 }
 0xa0b   :  { %1601 = vmatpush.msra.mxu0 %v5552_v44 }
 0xa0d   :  { %1602 = vmatpush.msra.mxu0 %v5558_v28 }
 0xa0f   :  { %1603 = vmatpush.msra.mxu0 %v5564_v33 }
 0xa11   :  { %1604 = vmatpush.msra.mxu0 %v5570_v43 }
 0xa7f   :  { %v1443_v35 = vpop.f32.mrf.mxu0 }
 0xa80   :  { %4127 = vmatmul.msk.f32.vlgmr.msra.gmra.mxu2 %vm139_vm0, %v1443_v35  ;;  %4128 = vmatmul.msk.f32.vlgmr.msra.gmra.mxu3 %vm139_vm0, %v1443_v35 }
 0xa81   :  { %4129 = vmatmul.msk.f32.vlgmr.msrb.gmra.mxu1 %vm139_vm0, %v1443_v35  ;;  %4130 = vmatmul.msk.f32.vlgmr.msrb.gmra.mxu0 %vm139_vm0, %v1443_v35 }
 0xa82   :  { %4139 = vmatpush.xpose.msk.msra.mxu2 %vm139_vm0, %v4136_v39  ;;  %1764 = vmatpush.msrb.mxu1 %v5223_v7  ;;  %v7180_v39 = vld [vmem:[#allocation31_spill] sm:$0xff] }
 0xa83   :  { %1784 = vmatpush.msrb.mxu0 %v5229_v60 }
 0xa84   :  { %1765 = vmatpush.msrb.mxu1 %v5235_v0 }
 0xa85   :  { %1785 = vmatpush.msrb.mxu0 %v5241_v3 }
 0xa86   :  { %1766 = vmatpush.msrb.mxu1 %v5247_v4 }
 0xa87   :  { %1786 = vmatpush.msrb.mxu0 %v5253_v54 }
 0xa88   :  { %4131 = vmatmul.msk.f32.vlgmr.msrb.gmra.mxu2 %vm139_vm0, %v1443_v35  ;;  %4132 = vmatmul.msk.f32.vlgmr.msrb.gmra.mxu3 %vm139_vm0, %v1443_v35 }
 0xa89   :  { %4133 = vmatmul.msk.f32.vlgmr.msra.gmra.mxu1 %vm139_vm0, %v1443_v35  ;;  %4134 = vmatmul.msk.f32.vlgmr.msra.gmra.mxu0 %vm139_vm0, %v1443_v35  ;;  %v7179_v35 = vld [vmem:[#allocation22_spill] sm:$0xff] }
 0xa8a   :  { %1804 = vmatpush.msrb.mxu2 %v5263_v51  ;;  %1767 = vmatpush.msrb.mxu1 %v5269_v56 }
 0xa8b   :  { %1787 = vmatpush.msrb.mxu0 %v5275_v1 }
 0xa8c   :  { %1805 = vmatpush.msrb.mxu2 %v5281_v11  ;;  %1768 = vmatpush.msrb.mxu1 %v5287_v9 }
 0xa8d   :  { %1788 = vmatpush.msrb.mxu0 %v5296_v57 }
 0xa8e   :  { %1806 = vmatpush.msrb.mxu2 %v5302_v40  ;;  %1769 = vmatpush.msrb.mxu1 %v5308_v61 }
 0xa8f   :  { %1789 = vmatpush.msrb.mxu0 %v5314_v38 }
 0xa90   :  { %4140 = vmatmul.msk.f32.vlgmr.msra.gmra.mxu2 %vm139_vm0, %v4135_v36  ;;  %1770 = vmatpush.msrb.mxu1 %v5321_v49  ;;  %v7181_v36 = vld [vmem:[#allocation32_spill] sm:$0xff] }
 0xa91   :  { %1807 = vmatpush.msrb.mxu2 %v5327_v53  ;;  %1790 = vmatpush.msrb.mxu0 %v5333_v62 }
 0xa92   :  { %1771 = vmatpush.msrb.mxu1 %v5339_v55 }
 0xa93   :  { %1808 = vmatpush.msrb.mxu2 %v5345_v8  ;;  %1791 = vmatpush.msrb.mxu0 %v5351_v10 }
 0xa94   :  { %1844 = vmatpush.msra.mxu1 %v5357_v59 }
 0xa95   :  { %1864 = vmatpush.msra.mxu0 %v5363_v5  ;;  %1809 = vmatpush.msrb.mxu2 %v5369_v2 }
 0xa96   :  { %1845 = vmatpush.msra.mxu1 %v5375_v15 }
 0xa97   :  { %1865 = vmatpush.msra.mxu0 %v5381_v6  ;;  %1810 = vmatpush.msrb.mxu2 %v5387_v19 }
 0xa98   :  { %1846 = vmatpush.msra.mxu1 %v5393_v23 }
 0xa99   :  { %1866 = vmatpush.msra.mxu0 %v5399_v27  ;;  %1811 = vmatpush.msrb.mxu2 %v5405_v31 }
 0xa9a   :  { %1847 = vmatpush.msra.mxu1 %v7166_v13  ;;  %v5644_v13 = vld [vmem:[%s6966_s6] sm:$0x3] }
 0xa9b   :  { %1884 = vmatpush.msra.mxu2 %v7165_v37  ;;  %1867 = vmatpush.msra.mxu0 %v7167_v63 }
 0xa9c   :  { %1848 = vmatpush.msra.mxu1 %v7169_v30 }
 0xa9d   :  { %1885 = vmatpush.msra.mxu2 %v7168_v26  ;;  %1868 = vmatpush.msra.mxu0 %v7170_v32 }
 0xa9e   :  { %1849 = vmatpush.msra.mxu1 %v7172_v48 }
 0xa9f   :  { %1886 = vmatpush.msra.mxu2 %v7171_v42  ;;  %1869 = vmatpush.msra.mxu0 %v7173_v50  ;;  %v7182_v42 = vld [vmem:[#allocation26_spill] sm:$0xff] }
 0xaa0   :  { %1850 = vmatpush.msra.mxu1 %v7175_v29 }
 0xaa1   :  { %1887 = vmatpush.msra.mxu2 %v7174_v58  ;;  %1870 = vmatpush.msra.mxu0 %v7176_v34 }
 0xaa2   :  { %1851 = vmatpush.msra.mxu1 %v7178_v24 }
 0xaa3   :  { %1888 = vmatpush.msra.mxu2 %v7177_v41  ;;  %1871 = vmatpush.msra.mxu0 %v7179_v35 }
 0xaa5   :  { %1889 = vmatpush.msra.mxu2 %v7180_v39  ;;  %v4190_v39 = vld [vmem:[%s6964_s4 + $0x5] ss:$0 sm:$0xff] }
 0xaa7   :  { %1890 = vmatpush.msra.mxu2 %v7181_v36 }
 0xaa9   :  { %1891 = vmatpush.msra.mxu2 %v7182_v42 }
 0xafe   :  { %v1506_v48 = vpop.f32.mrf.mxu1  ;;  %v1526_v50 = vpop.f32.mrf.mxu0 }
 0xaff   :  { %1617 = vst [vmem:[#allocation1] sm:$0xff] %v1506_v48 }
 0xb00   :  { %1618 = vst [vmem:[#allocation1 + $0x9] sm:$0xff] %v1526_v50 }
 0xb03   :  { %v1466_v58 = vpop.f32.mrf.mxu2  ;;  %v1486_v29 = vpop.f32.mrf.mxu3 }
 0xb04   :  { %v1611_v24 = vrot.slane %v1486_v29, 7 }
 0xb06   :  { %v1612_v36 = vsel %vm380_vm6, %v1466_v58, %v1611_v24  ;;  %v1586_v42 = vpop.f32.mrf.mxu1  ;;  %v1606_v63 = vpop.f32.mrf.mxu0 }
 0xb07   :  { %v1620_v32 = vld [vmem:[#allocation1 + $0x1] ss:$9 sm:$0xff]  ;;  %v1614_v37 = vadd.f32 %v5644_v13, %v1612_v36 }
 0xb09   :  { %v1622_v27 = vadd.f32 %v1620_v32, %v1614_v37 }
 0xb0b   :  { %v1546_v34 = vpop.f32.mrf.mxu2  ;;  %v1566_v30 = vpop.f32.mrf.mxu3 }
 0xb0c   :  { %1625 = vst [vmem:[#allocation1] sm:$0xff] %v1546_v34 }
 0xb0d   :  { %1626 = vst [vmem:[#allocation1 + $0x9] sm:$0xff] %v1566_v30 }
 0xb13   :  { %v1703_v35 = vpop.f32.mrf.mxu2 }
 0xb14   :  { %v1628_v41 = vld [vmem:[#allocation1 + $0x2] ss:$9 sm:$0xff]  ;;  %v1704_v26 = vadd.f32 %v4190_v39, %v1703_v35 }
 0xb15   :  { %1633 = vst [vmem:[#allocation1] sm:$0xff] %v1586_v42  ;;  %v1630_v23 = vadd.f32 %v1628_v41, %v1622_v27 }
 0xb16   :  { %1634 = vst [vmem:[#allocation1 + $0x9] sm:$0xff] %v1606_v63  ;;  %v1706_v31 = vsel %vm166_vm1, %v1704_v26, -inf }
 0xb17   :  { %1707 = vmax.xlane.f32.xlu1 %v1706_v31 }
 0xb1d   :  { %v1636_v24 = vld [vmem:[#allocation1 + $0x3] ss:$9 sm:$0xff] }
 0xb1e   :  { %1642 = vst [vmem:[#allocation1] sm:$0xff] %v1466_v58  ;;  %v1638_v19 = vadd.f32 %v1636_v24, %v1630_v23 }
 0xb1f   :  { %1643 = vst [vmem:[#allocation1 + $0x9] sm:$0xff] %v1486_v29 }
 0xb20   :  { %1640 = vst.msk [vmem:[#allocation2 + $0x10] ss:$8 sm:$0x3] %vm4935_vm7, %v1638_v19 }
 0xb26   :  { %v1645_v35 = vld [vmem:[#allocation1 + $0x4] ss:$9 sm:$0xff] }
 0xb27   :  { %1648 = vst [vmem:[#allocation1] sm:$0xff] %v1506_v48  ;;  %v1647_v31 = vadd.f32 %v5644_v13, %v1645_v35 }
 0xb28   :  { %1649 = vst [vmem:[#allocation1 + $0x9] sm:$0xff] %v1526_v50 }
 0xb2f   :  { %v1651_v39 = vld [vmem:[#allocation1 + $0x5] ss:$9 sm:$0xff] }
 0xb30   :  { %1654 = vst [vmem:[#allocation1] sm:$0xff] %v1546_v34  ;;  %v1653_v37 = vadd.f32 %v1651_v39, %v1647_v31 }
 0xb31   :  { %1655 = vst [vmem:[#allocation1 + $0x9] sm:$0xff] %v1566_v30 }
 0xb38   :  { %v1657_v36 = vld [vmem:[#allocation1 + $0x6] ss:$9 sm:$0xff] }
 0xb39   :  { %1660 = vst [vmem:[#allocation1] sm:$0xff] %v1586_v42  ;;  %v1659_v27 = vadd.f32 %v1657_v36, %v1653_v37 }
 0xb3a   :  { %1661 = vst [vmem:[#allocation1 + $0x9] sm:$0xff] %v1606_v63  ;;  %v4137_v63 = vld [vmem:[%s6963_s3 + $0x28] sm:$0xff] }
 0xb3b   :  { %1748 = vmatpush.msra.mxu3 %v4137_v63  ;;  %v7187_v63 = vld [vmem:[#allocation13_spill] sm:$0xff] }
 0xb3d   :  { %1824 = vmatpush.msrb.mxu3 %v5143_v14 }
 0xb3f   :  { %1825 = vmatpush.msrb.mxu3 %v5149_v16 }
 0xb41   :  { %v1663_v32 = vld [vmem:[#allocation1 + $0x7] ss:$9 sm:$0xff]  ;;  %1826 = vmatpush.msrb.mxu3 %v5155_v17 }
 0xb42   :  { %v1665_v58 = vadd.f32 %v1663_v32, %v1659_v27 }
 0xb43   :  { %1827 = vmatpush.msrb.mxu3 %v5161_v18 }
 0xb44   :  { %1667 = vst.msk [vmem:[#allocation2 + $0x11] ss:$8 sm:$0x3] %vm4935_vm7, %v1665_v58  ;;  %v4151_v58 = vld [vmem:[%s6962_s2 + $0x30] sm:$0xff] }
 0xb45   :  { %1828 = vmatpush.msrb.mxu3 %v5167_v20 }
 0xb47   :  { %1829 = vmatpush.msrb.mxu3 %v5173_v21 }
 0xb49   :  { %1830 = vmatpush.msrb.mxu3 %v5179_v22 }
 0xb4b   :  { %1831 = vmatpush.msrb.mxu3 %v5185_v25 }
 0xb8a   :  { %v1708_v23 = vpop.xlane.xlu1 %1707 }
 0xb8b   :  { %v1709_v19 = vsub.f32 %v1704_v26, %v1708_v23  ;;  %v4150_v23 = vld [vmem:[%s6961_s1 + $0x30] sm:$0xff] }
 0xb8d   :  { %v1710_v29 = vmul.f32 1.442695, %v1709_v19  ;;  %v7183_v19 = vld [vmem:[#allocation27_spill] sm:$0xff] }
 0xb8f   :  { %4213 = vpow2.f32 %v1710_v29  ;;  %v7184_v29 = vld [vmem:[#allocation11_spill] sm:$0xff] }
 0xb95   :  { %v4214_v48 = vpop.eup %4213 }
 0xb96   :  { %v1712_v50 = vsel %vm166_vm1, %v4214_v48, 0.0 }
 0xb97   :  { %1713 = vadd.xlane.f32.xlu2 %v1712_v50  ;;  %v7186_v50 = vld [vmem:[#allocation12_spill] sm:$0xff] }
 0xc0a   :  { %v1714_v26 = vpop.xlane.xlu2 %1713 }
 0xc0b   :  { %4215 = vrcp.f32 %v1714_v26  ;;  %v1726_v41 = vand.u32 2147483648, %v1714_v26  ;;  %v1724_v35 = vand.u32 2147483647, %v1714_v26  ;;  %vm1720_vm13 = vweird.f32 %v1714_v26 }
 0xc0d   :  { %v1727_v36 = vor.u32 1.1754944e-38, %v1726_v41  ;;  %vm1725_vm15 = vcmp.eq.f32.partialorder %v1724_v35, 8.507059e+37  ;;  %v7192_v41 = vld [vmem:[#allocation15_spill] sm:$0xff]  ;;  %v7194_v35 = vld [vmem:[#allocation21_spill] sm:$0xff] }
 0xc11   :  { %v4216_v30 = vpop.eup %4215 }
 0xc12   :  { %v1716_v42 = vmul.f32 %v4216_v30, %v1714_v26  ;;  %vm1721_vm12 = vweird.f32 %v4216_v30  ;;  %v7188_v26 = vld [vmem:[#allocation10_spill] sm:$0xff] }
 0xc13   :  { %vm1722_vm14 = vmor %vm1720_vm13, %vm1721_vm12 }
 0xc14   :  { %v1717_v34 = vsub.f32 1.0, %v1716_v42  ;;  %v7190_v42 = vld [vmem:[#allocation17_spill] sm:$0xff] }
 0xc16   :  { %v1718_v24 = vmul.f32 %v4216_v30, %v1717_v34  ;;  %v7191_v34 = vld [vmem:[#allocation18_spill] sm:$0xff] }
 0xc18   :  { %v1719_v39 = vadd.f32 %v4216_v30, %v1718_v24  ;;  %v7193_v24 = vld [vmem:[#allocation20_spill] sm:$0xff] }
 0xc1a   :  { %v1723_v31 = vsel %vm1722_vm14, %v4216_v30, %v1719_v39  ;;  %v7189_v30 = vld [vmem:[#allocation14_spill] sm:$0xff]  ;;  %v7195_v39 = vld [vmem:[#allocation16_spill] sm:$0xff] }
 0xc1b   :  { %v1728_v37 = vsel %vm1725_vm15, %v1727_v36, %v1723_v31  ;;  %v7196_v36 = vld [vmem:[#allocation24_spill] sm:$0xff]  ;;  %v7197_v31 = vld [vmem:[#allocation25_spill] sm:$0xff] }
 0xc1c   :  { %v1729_v27 = vmul.f32 %v4214_v48, %v1728_v37  ;;  %v7185_v48 = vld [vmem:[#allocation9_spill] sm:$0xff]  ;;  %v7198_v37 = vld [vmem:[#allocation19_spill] sm:$0xff] }
 0xc1e   :  { %4141 = vmatmul.msk.f32.vlgmr.msra.gmra.mxu3 %vm166_vm1, %v1729_v27  ;;  %v7199_v27 = vld [vmem:[#allocation28_spill] sm:$0xff] }
 0xc1f   :  { %1904 = vmatpush.msra.mxu3 %v5192_v45 }
 0xc21   :  { %1905 = vmatpush.msra.mxu3 %v5198_v46 }
 0xc23   :  { %1906 = vmatpush.msra.mxu3 %v5204_v47 }
 0xc25   :  { %1907 = vmatpush.msra.mxu3 %v5546_v12 }
 0xc27   :  { %1908 = vmatpush.msra.mxu3 %v5552_v44 }
 0xc29   :  { %1909 = vmatpush.msra.mxu3 %v5558_v28 }
 0xc2b   :  { %1910 = vmatpush.msra.mxu3 %v5564_v33 }
 0xc2d   :  { %1911 = vmatpush.msra.mxu3 %v5570_v43 }
 0xca1   :  { %v1750_v32 = vpop.f32.mrf.mxu3 }
 0xca2   :  { %4142 = vmatmul.msk.f32.vlgmr.msrb.gmra.mxu1 %vm139_vm0, %v1750_v32  ;;  %4143 = vmatmul.msk.f32.vlgmr.msrb.gmra.mxu0 %vm139_vm0, %v1750_v32 }
 0xca3   :  { %4144 = vmatmul.msk.f32.vlgmr.msrb.gmra.mxu2 %vm139_vm0, %v1750_v32  ;;  %4145 = vmatmul.msk.f32.vlgmr.msrb.gmra.mxu3 %vm139_vm0, %v1750_v32 }
 0xca4   :  { %4154 = vmatpush.xpose.msk.msrb.mxu1 %vm139_vm0, %v4151_v58  ;;  %2071 = vmatpush.msrb.mxu2 %v5223_v7  ;;  %v7201_v58 = vld [vmem:[#allocation22_spill] sm:$0xff] }
 0xca5   :  { %2091 = vmatpush.msrb.mxu3 %v5229_v60 }
 0xca6   :  { %2072 = vmatpush.msrb.mxu2 %v5235_v0 }
 0xca7   :  { %2092 = vmatpush.msrb.mxu3 %v5241_v3 }
 0xca8   :  { %2073 = vmatpush.msrb.mxu2 %v5247_v4 }
 0xca9   :  { %2093 = vmatpush.msrb.mxu3 %v5253_v54 }
 0xcaa   :  { %4146 = vmatmul.msk.f32.vlgmr.msra.gmra.mxu1 %vm139_vm0, %v1750_v32  ;;  %4147 = vmatmul.msk.f32.vlgmr.msra.gmra.mxu0 %vm139_vm0, %v1750_v32 }
 0xcab   :  { %4148 = vmatmul.msk.f32.vlgmr.msra.gmra.mxu2 %vm139_vm0, %v1750_v32  ;;  %4149 = vmatmul.msk.f32.vlgmr.msra.gmra.mxu3 %vm139_vm0, %v1750_v32  ;;  %v7200_v32 = vld [vmem:[#allocation29_spill] sm:$0xff] }
 0xcac   :  { %2111 = vmatpush.msra.mxu1 %v5263_v51  ;;  %2074 = vmatpush.msrb.mxu2 %v5269_v56 }
 0xcad   :  { %2094 = vmatpush.msrb.mxu3 %v5275_v1 }
 0xcae   :  { %2112 = vmatpush.msra.mxu1 %v5281_v11  ;;  %2075 = vmatpush.msrb.mxu2 %v5287_v9 }
 0xcaf   :  { %2095 = vmatpush.msrb.mxu3 %v5296_v57 }
 0xcb0   :  { %2113 = vmatpush.msra.mxu1 %v5302_v40  ;;  %2076 = vmatpush.msrb.mxu2 %v5308_v61 }
 0xcb1   :  { %2096 = vmatpush.msrb.mxu3 %v5314_v38 }
 0xcb2   :  { %4155 = vmatmul.msk.f32.vlgmr.msrb.gmra.mxu1 %vm139_vm0, %v4150_v23  ;;  %2077 = vmatpush.msrb.mxu2 %v5321_v49  ;;  %v7202_v23 = vld [vmem:[#allocation31_spill] sm:$0xff] }
 0xcb3   :  { %2114 = vmatpush.msra.mxu1 %v5327_v53  ;;  %2097 = vmatpush.msrb.mxu3 %v5333_v62 }
 0xcb4   :  { %2078 = vmatpush.msrb.mxu2 %v5339_v55 }
 0xcb5   :  { %2115 = vmatpush.msra.mxu1 %v5345_v8  ;;  %2098 = vmatpush.msrb.mxu3 %v5351_v10 }
 0xcb6   :  { %2151 = vmatpush.msra.mxu2 %v5357_v59 }
 0xcb7   :  { %2171 = vmatpush.msra.mxu3 %v5363_v5  ;;  %2116 = vmatpush.msra.mxu1 %v5369_v2 }
 0xcb8   :  { %2152 = vmatpush.msra.mxu2 %v5375_v15 }
 0xcb9   :  { %2172 = vmatpush.msra.mxu3 %v5381_v6  ;;  %2117 = vmatpush.msra.mxu1 %v7183_v19 }
 0xcba   :  { %2153 = vmatpush.msra.mxu2 %v7184_v29 }
 0xcbb   :  { %2173 = vmatpush.msra.mxu3 %v7185_v48  ;;  %2118 = vmatpush.msra.mxu1 %v7186_v50 }
 0xcbc   :  { %2154 = vmatpush.msra.mxu2 %v7188_v26 }
 0xcbd   :  { %2191 = vmatpush.msrb.mxu1 %v7187_v63  ;;  %2174 = vmatpush.msra.mxu3 %v7189_v30 }
 0xcbe   :  { %2155 = vmatpush.msra.mxu2 %v7191_v34 }
 0xcbf   :  { %2192 = vmatpush.msrb.mxu1 %v7190_v42  ;;  %2175 = vmatpush.msra.mxu3 %v7192_v41  ;;  %v7203_v41 = vld [vmem:[#allocation32_spill] sm:$0xff] }
 0xcc0   :  { %2156 = vmatpush.msra.mxu2 %v7194_v35 }
 0xcc1   :  { %2193 = vmatpush.msrb.mxu1 %v7193_v24  ;;  %2176 = vmatpush.msra.mxu3 %v7195_v39  ;;  %v7204_v24 = vld [vmem:[#allocation26_spill] sm:$0xff] }
 0xcc2   :  { %2157 = vmatpush.msra.mxu2 %v7197_v31 }
 0xcc3   :  { %2194 = vmatpush.msrb.mxu1 %v7196_v36  ;;  %2177 = vmatpush.msra.mxu3 %v7198_v37 }
 0xcc4   :  { %2158 = vmatpush.msra.mxu2 %v7200_v32 }
 0xcc5   :  { %2195 = vmatpush.msrb.mxu1 %v7199_v27  ;;  %2178 = vmatpush.msra.mxu3 %v7201_v58  ;;  %v4191_v27 = vld [vmem:[%s6964_s4 + $0x6] ss:$0 sm:$0xff] }
 0xcc7   :  { %2196 = vmatpush.msrb.mxu1 %v7202_v23 }
 0xcc9   :  { %2197 = vmatpush.msrb.mxu1 %v7203_v41 }
 0xccb   :  { %2198 = vmatpush.msrb.mxu1 %v7204_v24 }
 0xd1f   :  { %v1773_v35 = vpop.f32.mrf.mxu1  ;;  %v1793_v39 = vpop.f32.mrf.mxu0 }
 0xd20   :  { %v1918_v24 = vrot.slane %v1793_v39, 7 }
 0xd22   :  { %v1919_v26 = vsel %vm380_vm6, %v1773_v35, %v1918_v24 }
 0xd23   :  { %v1921_v50 = vadd.f32 %v5644_v13, %v1919_v26 }
 0xd26   :  { %v1813_v34 = vpop.f32.mrf.mxu2  ;;  %v1833_v36 = vpop.f32.mrf.mxu3 }
 0xd27   :  { %1924 = vst [vmem:[#allocation1] sm:$0xff] %v1813_v34  ;;  %v1853_v31 = vpop.f32.mrf.mxu1  ;;  %v1873_v58 = vpop.f32.mrf.mxu0 }
 0xd28   :  { %1925 = vst [vmem:[#allocation1 + $0x9] sm:$0xff] %v1833_v36 }
 0xd2e   :  { %v1893_v30 = vpop.f32.mrf.mxu2  ;;  %v1913_v63 = vpop.f32.mrf.mxu3 }
 0xd2f   :  { %v1927_v32 = vld [vmem:[#allocation1 + $0x1] ss:$9 sm:$0xff]  ;;  %v2010_v37 = vpop.f32.mrf.mxu1 }
 0xd30   :  { %1932 = vst [vmem:[#allocation1] sm:$0xff] %v1853_v31  ;;  %v2011_v23 = vadd.f32 %v4191_v27, %v2010_v37  ;;  %v1929_v48 = vadd.f32 %v1927_v32, %v1921_v50 }
 0xd31   :  { %1933 = vst [vmem:[#allocation1 + $0x9] sm:$0xff] %v1873_v58 }
 0xd32   :  { %v2013_v41 = vsel %vm166_vm1, %v2011_v23, -inf }
 0xd33   :  { %2014 = vmax.xlane.f32.xlu0 %v2013_v41 }
 0xd38   :  { %v1935_v42 = vld [vmem:[#allocation1 + $0x2] ss:$9 sm:$0xff] }
 0xd39   :  { %1940 = vst [vmem:[#allocation1] sm:$0xff] %v1893_v30  ;;  %v1937_v29 = vadd.f32 %v1935_v42, %v1929_v48 }
 0xd3a   :  { %1941 = vst [vmem:[#allocation1 + $0x9] sm:$0xff] %v1913_v63 }
 0xd41   :  { %v1943_v19 = vld [vmem:[#allocation1 + $0x3] ss:$9 sm:$0xff] }
 0xd42   :  { %1949 = vst [vmem:[#allocation1] sm:$0xff] %v1773_v35  ;;  %v1945_v6 = vadd.f32 %v1943_v19, %v1937_v29 }
 0xd43   :  { %1950 = vst [vmem:[#allocation1 + $0x9] sm:$0xff] %v1793_v39  ;;  %v2590_v39 = vld [vmem:[%s6960_s0] sm:$0xff] }
 0xd44   :  { %1947 = vst.msk [vmem:[#allocation2 + $0x12] ss:$8 sm:$0x3] %vm4935_vm7, %v1945_v6 }
 0xd4a   :  { %v1952_v41 = vld [vmem:[#allocation1 + $0x4] ss:$9 sm:$0xff] }
 0xd4b   :  { %1955 = vst [vmem:[#allocation1] sm:$0xff] %v1813_v34  ;;  %v1954_v26 = vadd.f32 %v5644_v13, %v1952_v41 }
 0xd4c   :  { %1956 = vst [vmem:[#allocation1 + $0x9] sm:$0xff] %v1833_v36  ;;  %v2594_v36 = vld [vmem:[#allocation2] sm:$0xff] }
 0xd4d   :  { %v5756_v27 = vadd.f32 %v2594_v36, %v2590_v39 }
 0xd53   :  { %v1958_v37 = vld [vmem:[#allocation1 + $0x5] ss:$9 sm:$0xff] }
 0xd54   :  { %1961 = vst [vmem:[#allocation1] sm:$0xff] %v1853_v31  ;;  %v1960_v50 = vadd.f32 %v1958_v37, %v1954_v26  ;;  %v2595_v31 = vld [vmem:[#allocation2 + $0x8] sm:$0xff] }
 0xd55   :  { %1962 = vst [vmem:[#allocation1 + $0x9] sm:$0xff] %v1873_v58 }
 0xd5c   :  { %v1964_v24 = vld [vmem:[#allocation1 + $0x6] ss:$9 sm:$0xff] }
 0xd5d   :  { %1967 = vst [vmem:[#allocation1] sm:$0xff] %v1893_v30  ;;  %v1966_v48 = vadd.f32 %v1964_v24, %v1960_v50  ;;  %v2591_v30 = vld [vmem:[%s6960_s0 + $0x8] sm:$0xff] }
 0xd5e   :  { %1968 = vst [vmem:[#allocation1 + $0x9] sm:$0xff] %v1913_v63  ;;  %v5758_v32 = vadd.f32 %v2595_v31, %v2591_v30 }
 0xd60   :  { %v2602_v58 = vadd.f32 %v5758_v32, %v5756_v27 }
 0xd65   :  { %v1970_v42 = vld [vmem:[#allocation1 + $0x7] ss:$9 sm:$0xff] }
 0xd66   :  { %v1972_v35 = vadd.f32 %v1970_v42, %v1966_v48 }
 0xd68   :  { %1974 = vst.msk [vmem:[#allocation2 + $0x13] ss:$8 sm:$0x3] %vm4935_vm7, %v1972_v35 }
 0xda6   :  { %v2015_v19 = vpop.xlane.xlu0 %2014 }
 0xda7   :  { %v2016_v6 = vsub.f32 %v2011_v23, %v2015_v19  ;;  %v4152_v23 = vld [vmem:[%s6963_s3 + $0x30] sm:$0xff] }
 0xda8   :  { %2055 = vmatpush.msrb.mxu0 %v4152_v23 }
 0xda9   :  { %v2017_v29 = vmul.f32 1.442695, %v2016_v6 }
 0xdaa   :  { %2131 = vmatpush.msra.mxu0 %v5143_v14 }
 0xdab   :  { %4217 = vpow2.f32 %v2017_v29  ;;  %v4192_v29 = vld [vmem:[%s6964_s4 + $0x7] ss:$0 sm:$0xff] }
 0xdac   :  { %2132 = vmatpush.msra.mxu0 %v5149_v16 }
 0xdae   :  { %2133 = vmatpush.msra.mxu0 %v5155_v17 }
 0xdb0   :  { %2134 = vmatpush.msra.mxu0 %v5161_v18 }
 0xdb1   :  { %v4218_v34 = vpop.eup %4217 }
 0xdb2   :  { %v2019_v63 = vsel %vm166_vm1, %v4218_v34, 0.0  ;;  %2135 = vmatpush.msra.mxu0 %v5167_v20 }
 0xdb3   :  { %2020 = vadd.xlane.f32.xlu1 %v2019_v63 }
 0xdb4   :  { %2136 = vmatpush.msra.mxu0 %v5173_v21 }
 0xdb6   :  { %2137 = vmatpush.msra.mxu0 %v5179_v22 }
 0xdb8   :  { %2138 = vmatpush.msra.mxu0 %v5185_v25  ;;  %v4166_v25 = vld [vmem:[%s6962_s2 + $0x38] sm:$0xff] }
 0xdbb   :  { %2603 = vadd.xlane.f32.xlu1 %v2602_v58 }
 0xe26   :  { %v2021_v41 = vpop.xlane.xlu1 %2020 }
 0xe27   :  { %4219 = vrcp.f32 %v2021_v41  ;;  %v2033_v14 = vand.u32 2147483648, %v2021_v41  ;;  %v2031_v16 = vand.u32 2147483647, %v2021_v41  ;;  %vm2027_vm3 = vweird.f32 %v2021_v41 }
 0xe29   :  { %v2034_v18 = vor.u32 1.1754944e-38, %v2033_v14  ;;  %vm2032_vm5 = vcmp.eq.f32.partialorder %v2031_v16, 8.507059e+37 }
 0xe2d   :  { %v4220_v37 = vpop.eup %4219 }
 0xe2e   :  { %v2023_v24 = vmul.f32 %v4220_v37, %v2021_v41  ;;  %vm2028_vm2 = vweird.f32 %v4220_v37 }
 0xe2f   :  { %vm2029_vm4 = vmor %vm2027_vm3, %vm2028_vm2 }
 0xe30   :  { %v2024_v26 = vsub.f32 1.0, %v2023_v24 }
 0xe32   :  { %v2025_v50 = vmul.f32 %v4220_v37, %v2024_v26 }
 0xe34   :  { %v2026_v17 = vadd.f32 %v4220_v37, %v2025_v50 }
 0xe36   :  { %v2030_v20 = vsel %vm2029_vm4, %v4220_v37, %v2026_v17 }
 0xe37   :  { %v2035_v21 = vsel %vm2032_vm5, %v2034_v18, %v2030_v20 }
 0xe38   :  { %v2036_v48 = vmul.f32 %v4218_v34, %v2035_v21 }
 0xe3a   :  { %4156 = vmatmul.msk.f32.vlgmr.msrb.gmra.mxu0 %vm166_vm1, %v2036_v48 }
 0xe3b   :  { %2211 = vmatpush.msrb.mxu0 %v5192_v45  ;;  %v4165_v45 = vld [vmem:[%s6961_s1 + $0x38] sm:$0xff] }
 0xe3d   :  { %2212 = vmatpush.msrb.mxu0 %v5198_v46  ;;  %v7205_v46 = vld [vmem:[#allocation23_spill] sm:$0xff] }
 0xe3f   :  { %2213 = vmatpush.msrb.mxu0 %v5204_v47  ;;  %v7206_v47 = vld [vmem:[#allocation27_spill] sm:$0xff] }
 0xe41   :  { %2214 = vmatpush.msrb.mxu0 %v5546_v12 }
 0xe43   :  { %2215 = vmatpush.msrb.mxu0 %v5552_v44 }
 0xe45   :  { %2216 = vmatpush.msrb.mxu0 %v5558_v28 }
 0xe47   :  { %2217 = vmatpush.msrb.mxu0 %v5564_v33 }
 0xe49   :  { %2218 = vmatpush.msrb.mxu0 %v5570_v43 }
 0xeb7   :  { %v2057_v22 = vpop.f32.mrf.mxu0 }
 0xeb8   :  { %4157 = vmatmul.msk.f32.vlgmr.msrb.gmra.mxu2 %vm139_vm0, %v2057_v22  ;;  %4158 = vmatmul.msk.f32.vlgmr.msrb.gmra.mxu3 %vm139_vm0, %v2057_v22 }
 0xeb9   :  { %4159 = vmatmul.msk.f32.vlgmr.msra.gmra.mxu1 %vm139_vm0, %v2057_v22  ;;  %4160 = vmatmul.msk.f32.vlgmr.msra.gmra.mxu0 %vm139_vm0, %v2057_v22 }
 0xeba   :  { %4169 = vmatpush.xpose.msk.msrb.mxu2 %vm139_vm0, %v4166_v25  ;;  %2378 = vmatpush.msra.mxu1 %v5223_v7  ;;  %v7207_v7 = vld [vmem:[#allocation11_spill] sm:$0xff] }
 0xebb   :  { %2398 = vmatpush.msra.mxu0 %v5229_v60  ;;  %v7208_v60 = vld [vmem:[#allocation9_spill] sm:$0xff] }
 0xebc   :  { %2379 = vmatpush.msra.mxu1 %v5235_v0  ;;  %v7209_v0 = vld [vmem:[#allocation12_spill] sm:$0xff] }
 0xebd   :  { %2399 = vmatpush.msra.mxu0 %v5241_v3  ;;  %v7210_v3 = vld [vmem:[#allocation13_spill] sm:$0xff] }
 0xebe   :  { %2380 = vmatpush.msra.mxu1 %v5247_v4  ;;  %v7211_v4 = vld [vmem:[#allocation10_spill] sm:$0xff] }
 0xebf   :  { %2400 = vmatpush.msra.mxu0 %v5253_v54  ;;  %v7212_v54 = vld [vmem:[#allocation14_spill] sm:$0xff] }
 0xec0   :  { %4161 = vmatmul.msk.f32.vlgmr.msra.gmra.mxu2 %vm139_vm0, %v2057_v22  ;;  %4162 = vmatmul.msk.f32.vlgmr.msra.gmra.mxu3 %vm139_vm0, %v2057_v22 }
 0xec1   :  { %4163 = vmatmul.msk.f32.vlgmr.msrb.gmra.mxu1 %vm139_vm0, %v2057_v22  ;;  %4164 = vmatmul.msk.f32.vlgmr.msrb.gmra.mxu0 %vm139_vm0, %v2057_v22  ;;  %v4367_v22 = vmov 256.0  }
 0xec2   :  { %2418 = vmatpush.msra.mxu2 %v5263_v51  ;;  %2381 = vmatpush.msra.mxu1 %v5269_v56  ;;  %v7213_v51 = vld [vmem:[#allocation17_spill] sm:$0xff]  ;;  %v7214_v56 = vld [vmem:[#allocation18_spill] sm:$0xff]  ;;  %4221 = vrcp.f32 %v4367_v22 }
 0xec3   :  { %2401 = vmatpush.msra.mxu0 %v5275_v1  ;;  %v7215_v1 = vld [vmem:[#allocation15_spill] sm:$0xff]  ;;  %v2776_v22 = vld [vmem:[%s6969_s9 + $0x308] sm:$0xff] }
 0xec4   :  { %2419 = vmatpush.msra.mxu2 %v5281_v11  ;;  %2382 = vmatpush.msra.mxu1 %v5287_v9  ;;  %v7216_v11 = vld [vmem:[#allocation20_spill] sm:$0xff]  ;;  %v7217_v9 = vld [vmem:[#allocation21_spill] sm:$0xff] }
 0xec5   :  { %2402 = vmatpush.msra.mxu0 %v5296_v57  ;;  %v7218_v57 = vld [vmem:[#allocation16_spill] sm:$0xff] }
 0xec6   :  { %2420 = vmatpush.msra.mxu2 %v5302_v40  ;;  %2383 = vmatpush.msra.mxu1 %v5308_v61  ;;  %v7219_v40 = vld [vmem:[#allocation24_spill] sm:$0xff]  ;;  %v7220_v61 = vld [vmem:[#allocation25_spill] sm:$0xff] }
 0xec7   :  { %2403 = vmatpush.msra.mxu0 %v5314_v38  ;;  %v7221_v38 = vld [vmem:[#allocation19_spill] sm:$0xff] }
 0xec8   :  { %4170 = vmatmul.msk.f32.vlgmr.msrb.gmra.mxu2 %vm139_vm0, %v4165_v45  ;;  %2384 = vmatpush.msra.mxu1 %v5321_v49  ;;  %v7222_v49 = vld [vmem:[#allocation28_spill] sm:$0xff]  ;;  %v4222_v25 = vpop.eup %4221 }
 0xec9   :  { %2421 = vmatpush.msra.mxu2 %v5327_v53  ;;  %2404 = vmatpush.msra.mxu0 %v5333_v62  ;;  %v7223_v53 = vld [vmem:[#allocation29_spill] sm:$0xff]  ;;  %v7224_v62 = vld [vmem:[#allocation22_spill] sm:$0xff]  ;;  %v2609_v45 = vmul.f32 256.0, %v4222_v25  ;;  %vm2613_vm8 = vweird.f32 %v4222_v25 }
 0xeca   :  { %2385 = vmatpush.msra.mxu1 %v5339_v55  ;;  %v7225_v55 = vld [vmem:[#allocation31_spill] sm:$0xff] }
 0xecb   :  { %2422 = vmatpush.msra.mxu2 %v5345_v8  ;;  %2405 = vmatpush.msra.mxu0 %v5351_v10  ;;  %v7226_v8 = vld [vmem:[#allocation32_spill] sm:$0xff]  ;;  %v7227_v10 = vld [vmem:[#allocation26_spill] sm:$0xff] }
 0xecc   :  { %2458 = vmatpush.msrb.mxu1 %v5357_v59 }
 0xecd   :  { %2478 = vmatpush.msrb.mxu0 %v5363_v5  ;;  %2423 = vmatpush.msra.mxu2 %v5369_v2 }
 0xece   :  { %2459 = vmatpush.msrb.mxu1 %v5375_v15 }
 0xecf   :  { %2479 = vmatpush.msrb.mxu0 %v7205_v46  ;;  %2424 = vmatpush.msra.mxu2 %v7206_v47  ;;  %v2610_v46 = vsub.f32 1.0, %v2609_v45 }
 0xed0   :  { %2460 = vmatpush.msrb.mxu1 %v7207_v7 }
 0xed1   :  { %2480 = vmatpush.msrb.mxu0 %v7208_v60  ;;  %2425 = vmatpush.msra.mxu2 %v7209_v0  ;;  %v2611_v47 = vmul.f32 %v4222_v25, %v2610_v46  ;;  %v2767_v46 = vld [vmem:[%s6969_s9 + $0x2c0] sm:$0xff] }
 0xed2   :  { %2461 = vmatpush.msrb.mxu1 %v7211_v4 }
 0xed3   :  { %2498 = vmatpush.msrb.mxu2 %v7210_v3  ;;  %2481 = vmatpush.msrb.mxu0 %v7212_v54  ;;  %v2612_v7 = vadd.f32 %v4222_v25, %v2611_v47  ;;  %v2895_v47 = vld [vmem:[%s6969_s9 + $0x6c0] sm:$0xff] }
 0xed4   :  { %2462 = vmatpush.msrb.mxu1 %v7214_v56 }
 0xed5   :  { %2499 = vmatpush.msrb.mxu2 %v7213_v51  ;;  %2482 = vmatpush.msrb.mxu0 %v7215_v1  ;;  %v5857_v4 = vsel %vm2613_vm8, %v4222_v25, %v2612_v7  ;;  %v2904_v25 = vld [vmem:[%s6969_s9 + $0x708] sm:$0xff] }
 0xed6   :  { %2463 = vmatpush.msrb.mxu1 %v7217_v9  ;;  %v2768_v7 = vld [vmem:[%s6969_s9 + $0x2c8] sm:$0xff] }
 0xed7   :  { %2500 = vmatpush.msrb.mxu2 %v7216_v11  ;;  %2483 = vmatpush.msrb.mxu0 %v7218_v57 }
 0xed8   :  { %2464 = vmatpush.msrb.mxu1 %v7220_v61  ;;  %v4167_v61 = vld [vmem:[%s6963_s3 + $0x38] sm:$0xff] }
 0xed9   :  { %2501 = vmatpush.msrb.mxu2 %v7219_v40  ;;  %2484 = vmatpush.msrb.mxu0 %v7221_v38 }
 0xeda   :  { %2465 = vmatpush.msrb.mxu1 %v7223_v53  ;;  %2362 = vmatpush.msrb.mxu3 %v4167_v61  ;;  %v4303_v53 = vld [vmem:[%s6965_s5 + $0x118] sm:$0xff] }
 0xedb   :  { %2502 = vmatpush.msrb.mxu2 %v7222_v49  ;;  %2485 = vmatpush.msrb.mxu0 %v7224_v62  ;;  %v4302_v49 = vld [vmem:[%s6965_s5 + $0x158] sm:$0xff] }
 0xedc   :  { %v4304_v62 = vld [vmem:[%s6965_s5 + $0xd8] sm:$0xff] }
 0xedd   :  { %2503 = vmatpush.msrb.mxu2 %v7225_v55  ;;  %v4305_v55 = vld [vmem:[%s6965_s5 + $0x98] sm:$0xff] }
 0xedf   :  { %2504 = vmatpush.msrb.mxu2 %v7226_v8 }
 0xee1   :  { %2505 = vmatpush.msrb.mxu2 %v7227_v10 }
 0xf36   :  { %v2120_v59 = vpop.f32.mrf.mxu1  ;;  %v2140_v5 = vpop.f32.mrf.mxu0 }
 0xf37   :  { %2231 = vst [vmem:[#allocation1] sm:$0xff] %v2120_v59 }
 0xf38   :  { %2232 = vst [vmem:[#allocation1 + $0x9] sm:$0xff] %v2140_v5 }
 0xf3b   :  { %v2080_v2 = vpop.f32.mrf.mxu2  ;;  %v2100_v15 = vpop.f32.mrf.mxu3 }
 0xf3c   :  { %v2225_v6 = vrot.slane %v2100_v15, 7 }
 0xf3e   :  { %v2226_v34 = vsel %vm380_vm6, %v2080_v2, %v2225_v6  ;;  %v2200_v63 = vpop.f32.mrf.mxu1  ;;  %v2220_v31 = vpop.f32.mrf.mxu0 }
 0xf3f   :  { %v2234_v42 = vld [vmem:[#allocation1 + $0x1] ss:$9 sm:$0xff]  ;;  %v2228_v58 = vadd.f32 %v5644_v13, %v2226_v34 }
 0xf41   :  { %v2236_v41 = vadd.f32 %v2234_v42, %v2228_v58 }
 0xf43   :  { %v2160_v35 = vpop.f32.mrf.mxu2  ;;  %v2180_v19 = vpop.f32.mrf.mxu3 }
 0xf44   :  { %2239 = vst [vmem:[#allocation1] sm:$0xff] %v2160_v35 }
 0xf45   :  { %2240 = vst [vmem:[#allocation1 + $0x9] sm:$0xff] %v2180_v19 }
 0xf4b   :  { %v2317_v39 = vpop.f32.mrf.mxu2 }
 0xf4c   :  { %v2318_v30 = vadd.f32 %v4192_v29, %v2317_v39  ;;  %v2242_v36 = vld [vmem:[#allocation1 + $0x2] ss:$9 sm:$0xff] }
 0xf4d   :  { %2247 = vst [vmem:[#allocation1] sm:$0xff] %v2200_v63  ;;  %v2244_v37 = vadd.f32 %v2242_v36, %v2236_v41  ;;  %v4310_v36 = vld [vmem:[%s6965_s5 + $0x178] sm:$0xff] }
 0xf4e   :  { %v2320_v23 = vsel %vm166_vm1, %v2318_v30, -inf  ;;  %2248 = vst [vmem:[#allocation1 + $0x9] sm:$0xff] %v2220_v31 }
 0xf4f   :  { %2321 = vmax.xlane.f32.xlu2 %v2320_v23 }
 0xf55   :  { %v2250_v24 = vld [vmem:[#allocation1 + $0x3] ss:$9 sm:$0xff] }
 0xf56   :  { %v2252_v26 = vadd.f32 %v2250_v24, %v2244_v37  ;;  %2256 = vst [vmem:[#allocation1] sm:$0xff] %v2080_v2  ;;  %v4307_v2 = vld [vmem:[%s6965_s5 + $0x18] sm:$0xff]  ;;  %v2791_v37 = vld [vmem:[%s6969_s9 + $0x380] sm:$0xff] }
 0xf57   :  { %2257 = vst [vmem:[#allocation1 + $0x9] sm:$0xff] %v2100_v15  ;;  %v2919_v24 = vld [vmem:[%s6969_s9 + $0x780] sm:$0xff] }
 0xf58   :  { %2254 = vst.msk [vmem:[#allocation2 + $0x14] ss:$8 sm:$0x3] %vm4935_vm7, %v2252_v26  ;;  %v2792_v26 = vld [vmem:[%s6969_s9 + $0x388] sm:$0xff] }
 0xf5e   :  { %v2259_v14 = vld [vmem:[#allocation1 + $0x4] ss:$9 sm:$0xff] }
 0xf5f   :  { %2262 = vst [vmem:[#allocation1] sm:$0xff] %v2120_v59  ;;  %v2261_v17 = vadd.f32 %v5644_v13, %v2259_v14  ;;  %v2604_v13 = vpop.xlane.xlu1 %2603  ;;  %v4306_v59 = vld [vmem:[%s6965_s5 + $0x58] sm:$0xff]  ;;  %v2920_v14 = vld [vmem:[%s6969_s9 + $0x788] sm:$0xff] }
 0xf60   :  { %2263 = vst [vmem:[#allocation1 + $0x9] sm:$0xff] %v2140_v5  ;;  %v2615_v54 = vmul.f32 %v5857_v4, %v2604_v13  ;;  %v2887_v13 = vld [vmem:[%s6969_s9 + $0x680] sm:$0xff] }
 0xf62   :  { %v5861_v56 = vsub.f32 %v5756_v27, %v2615_v54  ;;  %v5864_v1 = vsub.f32 %v5758_v32, %v2615_v54  ;;  %v4300_v27 = vld [vmem:[%s6965_s5 + $0x1d8] sm:$0xff]  ;;  %v2760_v54 = vld [vmem:[%s6969_s9 + $0x288] sm:$0xff] }
 0xf63   :  { %2438 = vmatpush.msra.mxu3 %v4300_v27  ;;  %v4301_v32 = vld [vmem:[%s6965_s5 + $0x198] sm:$0xff]  ;;  %v2743_v27 = vld [vmem:[%s6969_s9 + $0x200] sm:$0xff] }
 0xf64   :  { %v2621_v9 = vmul.f32 %v5861_v56, %v5861_v56  ;;  %v2622_v57 = vmul.f32 %v5864_v1, %v5864_v1 }
 0xf65   :  { %2439 = vmatpush.msra.mxu3 %v4301_v32  ;;  %v2871_v32 = vld [vmem:[%s6969_s9 + $0x600] sm:$0xff] }
 0xf66   :  { %v2625_v40 = vadd.f32 %v2622_v57, %v2621_v9  ;;  %v2879_v9 = vld [vmem:[%s6969_s9 + $0x640] sm:$0xff]  ;;  %v2752_v57 = vld [vmem:[%s6969_s9 + $0x248] sm:$0xff] }
 0xf67   :  { %v2265_v50 = vld [vmem:[#allocation1 + $0x5] ss:$9 sm:$0xff]  ;;  %2440 = vmatpush.msra.mxu3 %v4302_v49 }
 0xf68   :  { %2268 = vst [vmem:[#allocation1] sm:$0xff] %v2160_v35  ;;  %v2267_v18 = vadd.f32 %v2265_v50, %v2261_v17  ;;  %v2911_v17 = vld [vmem:[%s6969_s9 + $0x740] sm:$0xff]  ;;  %v2872_v49 = vld [vmem:[%s6969_s9 + $0x608] sm:$0xff] }
 0xf69   :  { %2269 = vst [vmem:[#allocation1 + $0x9] sm:$0xff] %v2180_v19  ;;  %2441 = vmatpush.msra.mxu3 %v4303_v53  ;;  %v2735_v53 = vld [vmem:[%s6969_s9 + $0x1c0] sm:$0xff] }
 0xf6b   :  { %2442 = vmatpush.msra.mxu3 %v4304_v62  ;;  %v2863_v62 = vld [vmem:[%s6969_s9 + $0x5c0] sm:$0xff] }
 0xf6d   :  { %2443 = vmatpush.msra.mxu3 %v4305_v55  ;;  %v2736_v55 = vld [vmem:[%s6969_s9 + $0x1c8] sm:$0xff] }
 0xf6f   :  { %2444 = vmatpush.msra.mxu3 %v4306_v59  ;;  %v2727_v59 = vld [vmem:[%s6969_s9 + $0x180] sm:$0xff] }
 0xf70   :  { %v2271_v16 = vld [vmem:[#allocation1 + $0x6] ss:$9 sm:$0xff] }
 0xf71   :  { %2274 = vst [vmem:[#allocation1] sm:$0xff] %v2200_v63  ;;  %v2273_v20 = vadd.f32 %v2271_v16, %v2267_v18  ;;  %2445 = vmatpush.msra.mxu3 %v4307_v2  ;;  %v4308_v63 = vld [vmem:[%s6965_s5 + $0x1f8] sm:$0xff]  ;;  %v2783_v16 = vld [vmem:[%s6969_s9 + $0x340] sm:$0xff]  ;;  %v2784_v18 = vld [vmem:[%s6969_s9 + $0x348] sm:$0xff] }
 0xf72   :  { %2275 = vst [vmem:[#allocation1 + $0x9] sm:$0xff] %v2220_v31  ;;  %v2728_v2 = vld [vmem:[%s6969_s9 + $0x188] sm:$0xff] }
 0xf79   :  { %v2277_v21 = vld [vmem:[#allocation1 + $0x7] ss:$9 sm:$0xff] }
 0xf7a   :  { %v2279_v48 = vadd.f32 %v2277_v21, %v2273_v20  ;;  %v2912_v20 = vld [vmem:[%s6969_s9 + $0x748] sm:$0xff]  ;;  %v2775_v21 = vld [vmem:[%s6969_s9 + $0x300] sm:$0xff] }
 0xf7c   :  { %2281 = vst.msk [vmem:[#allocation2 + $0x15] ss:$8 sm:$0x3] %vm4935_vm7, %v2279_v48  ;;  %v2903_v48 = vld [vmem:[%s6969_s9 + $0x700] sm:$0xff] }
 0xfc2   :  { %v2322_v60 = vpop.xlane.xlu2 %2321 }
 0xfc3   :  { %v2323_v0 = vsub.f32 %v2318_v30, %v2322_v60  ;;  %v4309_v30 = vld [vmem:[%s6965_s5 + $0x1b8] sm:$0xff]  ;;  %v2896_v60 = vld [vmem:[%s6969_s9 + $0x6c8] sm:$0xff] }
 0xfc5   :  { %v2324_v3 = vmul.f32 1.442695, %v2323_v0 }
 0xfc7   :  { %4223 = vpow2.f32 %v2324_v3  ;;  %v2759_v3 = vld [vmem:[%s6969_s9 + $0x280] sm:$0xff] }
 0xfcd   :  { %v4224_v51 = vpop.eup %4223 }
 0xfce   :  { %v2326_v11 = vsel %vm166_vm1, %v4224_v51, 0.0 }
 0xfcf   :  { %2327 = vadd.xlane.f32.xlu0 %v2326_v11  ;;  %v2751_v11 = vld [vmem:[%s6969_s9 + $0x240] sm:$0xff] }
 0xfd7   :  { %2626 = vadd.xlane.f32.xlu0 %v2625_v40  ;;  %v2880_v40 = vld [vmem:[%s6969_s9 + $0x648] sm:$0xff] }
0x1042   :  { %v2328_v38 = vpop.xlane.xlu0 %2327 }
0x1043   :  { %4225 = vrcp.f32 %v2328_v38  ;;  %v2340_v15 = vand.u32 2147483648, %v2328_v38  ;;  %v2338_v35 = vand.u32 2147483647, %v2328_v38  ;;  %vm2334_vm10 = vweird.f32 %v2328_v38 }
0x1045   :  { %v2341_v6 = vor.u32 1.1754944e-38, %v2340_v15  ;;  %vm2339_vm12 = vcmp.eq.f32.partialorder %v2338_v35, 8.507059e+37  ;;  %v2856_v15 = vld [vmem:[%s6969_s9 + $0x588] sm:$0xff]  ;;  %v2847_v35 = vld [vmem:[%s6969_s9 + $0x540] sm:$0xff] }
0x1049   :  { %v4226_v8 = vpop.eup %4225 }
0x104a   :  { %v2330_v10 = vmul.f32 %v4226_v8, %v2328_v38  ;;  %vm2335_vm9 = vweird.f32 %v4226_v8  ;;  %v2627_v31 = vpop.xlane.xlu0 %2626  ;;  %v2744_v38 = vld [vmem:[%s6969_s9 + $0x208] sm:$0xff] }
0x104b   :  { %vm2336_vm11 = vmor %vm2334_vm10, %vm2335_vm9  ;;  %v2631_v58 = vmul.f32 %v2627_v31, %v5857_v4  ;;  %v2703_v31 = vld [vmem:[%s6969_s9 + $0xc0] sm:$0xff] }
0x104c   :  { %v2331_v5 = vsub.f32 1.0, %v2330_v10 }
0x104d   :  { %v5914_v23 = vadd.f32 1e-05, %v2631_v58  ;;  %v2831_v58 = vld [vmem:[%s6969_s9 + $0x4c0] sm:$0xff] }
0x104e   :  { %v2332_v42 = vmul.f32 %v4226_v8, %v2331_v5  ;;  %v2855_v5 = vld [vmem:[%s6969_s9 + $0x580] sm:$0xff] }
0x104f   :  { %4227 = vrsqrt.f32 %v5914_v23 }
0x1050   :  { %v2333_v19 = vadd.f32 %v4226_v8, %v2332_v42  ;;  %v2719_v42 = vld [vmem:[%s6969_s9 + $0x140] sm:$0xff] }
0x1052   :  { %v2337_v29 = vsel %vm2336_vm11, %v4226_v8, %v2333_v19  ;;  %v2864_v8 = vld [vmem:[%s6969_s9 + $0x5c8] sm:$0xff] }
0x1053   :  { %v2342_v34 = vsel %vm2339_vm12, %v2341_v6, %v2337_v29  ;;  %v2720_v19 = vld [vmem:[%s6969_s9 + $0x148] sm:$0xff]  ;;  %v6068_v29 = vld [vmem:[%s6967_s7] sm:$0x3] }
0x1054   :  { %v2343_v39 = vmul.f32 %v4224_v51, %v2342_v34  ;;  %v2888_v51 = vld [vmem:[%s6969_s9 + $0x688] sm:$0xff] }
0x1055   :  { %v2848_v6 = vld [vmem:[%s6969_s9 + $0x548] sm:$0xff] }
0x1056   :  { %4171 = vmatmul.msk.f32.vlgmr.msrb.gmra.mxu3 %vm166_vm1, %v2343_v39  ;;  %vm2641_vm1 = vweird.f32 %v5914_v23  ;;  %v2711_v39 = vld [vmem:[%s6969_s9 + $0x100] sm:$0xff] }
0x1057   :  { %2518 = vmatpush.msrb.mxu3 %v4308_v63  ;;  %v2839_v63 = vld [vmem:[%s6969_s9 + $0x500] sm:$0xff] }
0x1059   :  { %2519 = vmatpush.msrb.mxu3 %v4309_v30  ;;  %v2712_v30 = vld [vmem:[%s6969_s9 + $0x108] sm:$0xff] }
0x105b   :  { %2520 = vmatpush.msrb.mxu3 %v4310_v36  ;;  %v2840_v36 = vld [vmem:[%s6969_s9 + $0x508] sm:$0xff] }
0x105d   :  { %2521 = vmatpush.msrb.mxu3 %v5546_v12  ;;  %v2799_v12 = vld [vmem:[%s6969_s9 + $0x3c0] sm:$0xff] }
0x105f   :  { %2522 = vmatpush.msrb.mxu3 %v5552_v44  ;;  %v2927_v44 = vld [vmem:[%s6969_s9 + $0x7c0] sm:$0xff] }
0x1061   :  { %2523 = vmatpush.msrb.mxu3 %v5558_v28  ;;  %v5923_v28 = vpop.eup %4227 }
0x1062   :  { %v2636_v50 = vmul.f32 %v5923_v28, %v5914_v23  ;;  %v2661_v23 = vperm.slane %v6068_v29, 0 }
0x1063   :  { %2524 = vmatpush.msrb.mxu3 %v5564_v33  ;;  %v2800_v33 = vld [vmem:[%s6969_s9 + $0x3c8] sm:$0xff] }
0x1064   :  { %v2637_v45 = vmul.f32 %v5923_v28, %v2636_v50 }
0x1065   :  { %2525 = vmatpush.msrb.mxu3 %v5570_v43  ;;  %v2928_v43 = vld [vmem:[%s6969_s9 + $0x7c8] sm:$0xff] }
0x1066   :  { %v2638_v0 = vmul.f32 0.5, %v2637_v45  ;;  %v2808_v45 = vld [vmem:[%s6969_s9 + $0x408] sm:$0xff] }
0x1068   :  { %v2639_v61 = vsub.f32 1.5, %v2638_v0 }
0x106a   :  { %v2640_v10 = vmul.f32 %v5923_v28, %v2639_v61 }
0x10d9   :  { %v2364_v41 = vpop.f32.mrf.mxu3 }
0x10da   :  { %4172 = vmatmul.msk.f32.vlgmr.msra.gmra.mxu1 %vm139_vm0, %v2364_v41  ;;  %4173 = vmatmul.msk.f32.vlgmr.msra.gmra.mxu0 %vm139_vm0, %v2364_v41 }
0x10db   :  { %4174 = vmatmul.msk.f32.vlgmr.msra.gmra.mxu2 %vm139_vm0, %v2364_v41  ;;  %4175 = vmatmul.msk.f32.vlgmr.msra.gmra.mxu3 %vm139_vm0, %v2364_v41 }
0x10dc   :  { %2953 = vmatpush.msra.mxu1 %v2799_v12  ;;  %2976 = vmatpush.msra.mxu0 %v2927_v44 }
0x10dd   :  { %2999 = vmatpush.msra.mxu2 %v2800_v33  ;;  %3022 = vmatpush.msra.mxu3 %v2928_v43  ;;  %v2832_v33 = vld [vmem:[%s6969_s9 + $0x4c8] sm:$0xff]  ;;  %v6102_v43 = vld [vmem:[%s6968_s8] sm:$0x3]  ;;  %s4051_s8 = sshll.u32 %s6975_s15, 4  ;;  %s4052_s8 = int_to_ptr.hbm [resolvable:$true] %s4051_s8 }
0x10de   :  { %2954 = vmatpush.msra.mxu1 %v2791_v37  ;;  %2977 = vmatpush.msra.mxu0 %v2919_v24  ;;  %v2696_v37 = vld [vmem:[%s6969_s9 + $0x88] sm:$0xff]  ;;  %v2671_v50 = vperm.slane %v6102_v43, 0 }
0x10df   :  { %3000 = vmatpush.msra.mxu2 %v2792_v26  ;;  %3023 = vmatpush.msra.mxu3 %v2920_v14  ;;  %v2824_v24 = vld [vmem:[%s6969_s9 + $0x488] sm:$0xff]  ;;  %v2687_v26 = vld [vmem:[%s6969_s9 + $0x40] sm:$0xff] }
0x10e0   :  { %2955 = vmatpush.msra.mxu1 %v2783_v16  ;;  %2978 = vmatpush.msra.mxu0 %v2911_v17  ;;  %v2815_v14 = vld [vmem:[%s6969_s9 + $0x440] sm:$0xff]  ;;  %v2672_v16 = vperm.slane %v6102_v43, 1  ;;  %v2934_v43 = vld [vmem:[%s6969_s9 + $0x7f8] sm:$0xff] }
0x10e1   :  { %3001 = vmatpush.msra.mxu2 %v2784_v18  ;;  %3024 = vmatpush.msra.mxu3 %v2912_v20  ;;  %v2688_v20 = vld [vmem:[%s6969_s9 + $0x48] sm:$0xff] }
0x10e2   :  { %2956 = vmatpush.msra.mxu1 %v2775_v21  ;;  %2979 = vmatpush.msra.mxu0 %v2903_v48  ;;  %v2816_v21 = vld [vmem:[%s6969_s9 + $0x448] sm:$0xff]  ;;  %v2679_v48 = vld [vmem:[%s6969_s9] sm:$0xff] }
0x10e3   :  { %3002 = vmatpush.msra.mxu2 %v2776_v22  ;;  %3025 = vmatpush.msra.mxu3 %v2904_v25  ;;  %v2807_v22 = vld [vmem:[%s6969_s9 + $0x400] sm:$0xff]  ;;  %v2680_v25 = vld [vmem:[%s6969_s9 + $0x8] sm:$0xff] }
0x10e4   :  { %4176 = vmatmul.msk.f32.vlgmr.msrb.gmra.mxu1 %vm139_vm0, %v2364_v41  ;;  %4177 = vmatmul.msk.f32.vlgmr.msrb.gmra.mxu0 %vm139_vm0, %v2364_v41 }
0x10e5   :  { %4178 = vmatmul.msk.f32.vlgmr.msrb.gmra.mxu2 %vm139_vm0, %v2364_v41  ;;  %4179 = vmatmul.msk.f32.vlgmr.msrb.gmra.mxu3 %vm139_vm0, %v2364_v41  ;;  %vm2642_vm0 = vweird.f32 %v5923_v28  ;;  %v2662_v41 = vperm.slane %v6068_v29, 1  ;;  %v2805_v29 = vld [vmem:[%s6969_s9 + $0x3f0] sm:$0xff] }
0x10e6   :  { %2957 = vmatpush.msra.mxu1 %v2767_v46  ;;  %2980 = vmatpush.msra.mxu0 %v2895_v47  ;;  %vm2643_vm13 = vmor %vm2641_vm1, %vm2642_vm0 }
0x10e7   :  { %3003 = vmatpush.msra.mxu2 %v2768_v7  ;;  %3026 = vmatpush.msra.mxu3 %v2896_v60  ;;  %v2644_v34 = vsel %vm2643_vm13, %v5923_v28, %v2640_v10  ;;  %v2704_v28 = vld [vmem:[%s6969_s9 + $0xc8] sm:$0xff] }
0x10e8   :  { %2958 = vmatpush.msra.mxu1 %v2759_v3  ;;  %2981 = vmatpush.msra.mxu0 %v2887_v13  ;;  %v2655_v12 = vmul.f32 %v2644_v34, %v5861_v56  ;;  %v2656_v44 = vmul.f32 %v2644_v34, %v5864_v1  ;;  %v2695_v56 = vld [vmem:[%s6969_s9 + $0x80] sm:$0xff] }
0x10e9   :  { %3004 = vmatpush.msra.mxu2 %v2760_v54  ;;  %3027 = vmatpush.msra.mxu3 %v2888_v51  ;;  %v2823_v1 = vld [vmem:[%s6969_s9 + $0x480] sm:$0xff] }
0x10ea   :  { %2959 = vmatpush.msra.mxu1 %v2751_v11  ;;  %2982 = vmatpush.msra.mxu0 %v2879_v9  ;;  %v2665_v17 = vmul.f32 %v2661_v23, %v2655_v12  ;;  %v2666_v18 = vmul.f32 %v2662_v41, %v2656_v44  ;;  %v2793_v12 = vld [vmem:[%s6969_s9 + $0x390] sm:$0xff] }
0x10eb   :  { %3005 = vmatpush.msra.mxu2 %v2752_v57  ;;  %3028 = vmatpush.msra.mxu3 %v2880_v40  ;;  %v2921_v44 = vld [vmem:[%s6969_s9 + $0x790] sm:$0xff] }
0x10ec   :  { %2960 = vmatpush.msra.mxu1 %v2743_v27  ;;  %2983 = vmatpush.msra.mxu0 %v2871_v32  ;;  %v6148_v46 = vadd.f32 %v2671_v50, %v2665_v17  ;;  %v6152_v47 = vadd.f32 %v2672_v16, %v2666_v18  ;;  %v4311_v27 = vld [vmem:[%s6966_s6] sm:$0x3]  ;;  %v2778_v17 = vld [vmem:[%s6969_s9 + $0x318] sm:$0xff] }
0x10ed   :  { %3006 = vmatpush.msra.mxu2 %v2744_v38  ;;  %3029 = vmatpush.msra.mxu3 %v2872_v49  ;;  %v2906_v18 = vld [vmem:[%s6969_s9 + $0x718] sm:$0xff] }
0x10ee   :  { %2961 = vmatpush.msra.mxu1 %v2735_v53  ;;  %2984 = vmatpush.msra.mxu0 %v2863_v62 }
0x10ef   :  { %3007 = vmatpush.msra.mxu2 %v2736_v55  ;;  %3030 = vmatpush.msra.mxu3 %v2864_v8 }
0x10f0   :  { %2962 = vmatpush.msra.mxu1 %v2727_v59  ;;  %2985 = vmatpush.msra.mxu0 %v2855_v5 }
0x10f1   :  { %3008 = vmatpush.msra.mxu2 %v2728_v2  ;;  %3031 = vmatpush.msra.mxu3 %v2856_v15 }
0x10f2   :  { %2963 = vmatpush.msra.mxu1 %v2719_v42  ;;  %2986 = vmatpush.msra.mxu0 %v2847_v35  ;;  %v2592_v35 = vld [vmem:[%s6960_s0 + $0x10] sm:$0xff] }
0x10f3   :  { %3009 = vmatpush.msra.mxu2 %v2720_v19  ;;  %3032 = vmatpush.msra.mxu3 %v2848_v6  ;;  %v2593_v19 = vld [vmem:[%s6960_s0 + $0x18] sm:$0xff] }
0x10f4   :  { %2964 = vmatpush.msra.mxu1 %v2711_v39  ;;  %2987 = vmatpush.msra.mxu0 %v2839_v63 }
0x10f5   :  { %3010 = vmatpush.msra.mxu2 %v2712_v30  ;;  %3033 = vmatpush.msra.mxu3 %v2840_v36  ;;  %v2929_v36 = vld [vmem:[%s6969_s9 + $0x7d0] sm:$0xff] }
0x10f6   :  { %2965 = vmatpush.msra.mxu1 %v2703_v31  ;;  %2988 = vmatpush.msra.mxu0 %v2831_v58  ;;  %v2802_v31 = vld [vmem:[%s6969_s9 + $0x3d8] sm:$0xff] }
0x10f7   :  { %3011 = vmatpush.msra.mxu2 %v2704_v28  ;;  %3034 = vmatpush.msra.mxu3 %v2832_v33  ;;  %v2930_v58 = vld [vmem:[%s6969_s9 + $0x7d8] sm:$0xff] }
0x10f8   :  { %2966 = vmatpush.msra.mxu1 %v2695_v56  ;;  %2989 = vmatpush.msra.mxu0 %v2823_v1  ;;  %v2794_v28 = vld [vmem:[%s6969_s9 + $0x398] sm:$0xff]  ;;  %v2785_v56 = vld [vmem:[%s6969_s9 + $0x350] sm:$0xff] }
0x10f9   :  { %3012 = vmatpush.msra.mxu2 %v2696_v37  ;;  %3035 = vmatpush.msra.mxu3 %v2824_v24  ;;  %v2922_v33 = vld [vmem:[%s6969_s9 + $0x798] sm:$0xff]  ;;  %v2913_v1 = vld [vmem:[%s6969_s9 + $0x750] sm:$0xff] }
0x10fa   :  { %2967 = vmatpush.msra.mxu1 %v2687_v26  ;;  %2990 = vmatpush.msra.mxu0 %v2815_v14  ;;  %v2786_v37 = vld [vmem:[%s6969_s9 + $0x358] sm:$0xff]  ;;  %v2777_v26 = vld [vmem:[%s6969_s9 + $0x310] sm:$0xff] }
0x10fb   :  { %3013 = vmatpush.msra.mxu2 %v2688_v20  ;;  %3036 = vmatpush.msra.mxu3 %v2816_v21  ;;  %v2914_v24 = vld [vmem:[%s6969_s9 + $0x758] sm:$0xff]  ;;  %v2905_v14 = vld [vmem:[%s6969_s9 + $0x710] sm:$0xff] }
0x10fc   :  { %2968 = vmatpush.msra.mxu1 %v2679_v48  ;;  %2991 = vmatpush.msra.mxu0 %v2807_v22  ;;  %v2769_v20 = vld [vmem:[%s6969_s9 + $0x2d0] sm:$0xff]  ;;  %v2770_v48 = vld [vmem:[%s6969_s9 + $0x2d8] sm:$0xff] }
0x10fd   :  { %3014 = vmatpush.msra.mxu2 %v2680_v25  ;;  %3037 = vmatpush.msra.mxu3 %v2808_v45  ;;  %v2897_v21 = vld [vmem:[%s6969_s9 + $0x6d0] sm:$0xff]  ;;  %v2898_v22 = vld [vmem:[%s6969_s9 + $0x6d8] sm:$0xff] }
0x10fe   :  { %2969 = vmatmul.f32.vlgmr.msra.gmra.mxu1 %v6148_v46  ;;  %2992 = vmatmul.f32.vlgmr.msra.gmra.mxu0 %v6152_v47  ;;  %v2761_v25 = vld [vmem:[%s6969_s9 + $0x290] sm:$0xff] }
0x10ff   :  { %3015 = vmatmul.f32.vlgmr.msra.gmra.mxu2 %v6148_v46  ;;  %3038 = vmatmul.f32.vlgmr.msra.gmra.mxu3 %v6152_v47  ;;  %v2889_v45 = vld [vmem:[%s6969_s9 + $0x690] sm:$0xff] }
0x1100   :  { %3045 = vmatpush.msrb.mxu1 %v2801_v52  ;;  %3068 = vmatpush.msrb.mxu0 %v2929_v36 }
0x1101   :  { %3091 = vmatpush.msrb.mxu2 %v2802_v31  ;;  %3114 = vmatpush.msrb.mxu3 %v2930_v58 }
0x1102   :  { %3046 = vmatpush.msrb.mxu1 %v2793_v12  ;;  %3069 = vmatpush.msrb.mxu0 %v2921_v44 }
0x1103   :  { %3092 = vmatpush.msrb.mxu2 %v2794_v28  ;;  %3115 = vmatpush.msrb.mxu3 %v2922_v33  ;;  %v2697_v28 = vld [vmem:[%s6969_s9 + $0x90] sm:$0xff]  ;;  %v2826_v33 = vld [vmem:[%s6969_s9 + $0x498] sm:$0xff] }
0x1104   :  { %3047 = vmatpush.msrb.mxu1 %v2785_v56  ;;  %3070 = vmatpush.msrb.mxu0 %v2913_v1  ;;  %v2689_v56 = vld [vmem:[%s6969_s9 + $0x50] sm:$0xff] }
0x1105   :  { %3093 = vmatpush.msrb.mxu2 %v2786_v37  ;;  %3116 = vmatpush.msrb.mxu3 %v2914_v24  ;;  %v2817_v1 = vld [vmem:[%s6969_s9 + $0x450] sm:$0xff]  ;;  %v2690_v37 = vld [vmem:[%s6969_s9 + $0x58] sm:$0xff] }
0x1106   :  { %3048 = vmatpush.msrb.mxu1 %v2777_v26  ;;  %3071 = vmatpush.msrb.mxu0 %v2905_v14  ;;  %v2818_v24 = vld [vmem:[%s6969_s9 + $0x458] sm:$0xff]  ;;  %v2681_v26 = vld [vmem:[%s6969_s9 + $0x10] sm:$0xff] }
0x1107   :  { %3094 = vmatpush.msrb.mxu2 %v2778_v17  ;;  %3117 = vmatpush.msrb.mxu3 %v2906_v18  ;;  %v2809_v14 = vld [vmem:[%s6969_s9 + $0x410] sm:$0xff]  ;;  %v2682_v17 = vld [vmem:[%s6969_s9 + $0x18] sm:$0xff] }
0x1108   :  { %3049 = vmatpush.msrb.mxu1 %v2769_v20  ;;  %3072 = vmatpush.msrb.mxu0 %v2897_v21  ;;  %v2810_v18 = vld [vmem:[%s6969_s9 + $0x418] sm:$0xff]  ;;  %v2803_v20 = vld [vmem:[%s6969_s9 + $0x3e0] sm:$0xff] }
0x1109   :  { %3095 = vmatpush.msrb.mxu2 %v2770_v48  ;;  %3118 = vmatpush.msrb.mxu3 %v2898_v22  ;;  %v2931_v21 = vld [vmem:[%s6969_s9 + $0x7e0] sm:$0xff]  ;;  %v2804_v48 = vld [vmem:[%s6969_s9 + $0x3e8] sm:$0xff] }
0x110a   :  { %3050 = vmatpush.msrb.mxu1 %v2761_v25  ;;  %3073 = vmatpush.msrb.mxu0 %v2889_v45  ;;  %v2932_v22 = vld [vmem:[%s6969_s9 + $0x7e8] sm:$0xff]  ;;  %v2795_v25 = vld [vmem:[%s6969_s9 + $0x3a0] sm:$0xff] }
0x110b   :  { %v2923_v45 = vld [vmem:[%s6969_s9 + $0x7a0] sm:$0xff] }
0x1157   :  { %v2387_v7 = vpop.f32.mrf.mxu1  ;;  %v2407_v60 = vpop.f32.mrf.mxu0 }
0x1158   :  { %v2532_v11 = vrot.slane %v2407_v60, 7 }
0x115a   :  { %v2533_v40 = vsel %vm380_vm6, %v2387_v7, %v2532_v11  ;;  %v2873_v11 = vld [vmem:[%s6969_s9 + $0x610] sm:$0xff] }
0x115b   :  { %v2535_v32 = vadd.f32 %v4311_v27, %v2533_v40  ;;  %v2737_v40 = vld [vmem:[%s6969_s9 + $0x1d0] sm:$0xff] }
0x115e   :  { %v2427_v0 = vpop.f32.mrf.mxu2  ;;  %v2447_v3 = vpop.f32.mrf.mxu3 }
0x115f   :  { %2538 = vst [vmem:[#allocation1] sm:$0xff] %v2427_v0 }
0x1160   :  { %2539 = vst [vmem:[#allocation1 + $0x9] sm:$0xff] %v2447_v3 }
0x1161   :  { %v2467_v13 = vpop.f32.mrf.mxu1  ;;  %v2487_v51 = vpop.f32.mrf.mxu0 }
0x1167   :  { %v2541_v54 = vld [vmem:[#allocation1 + $0x1] ss:$9 sm:$0xff] }
0x1168   :  { %2546 = vst [vmem:[#allocation1] sm:$0xff] %v2467_v13  ;;  %v2507_v9 = vpop.f32.mrf.mxu2  ;;  %v2527_v61 = vpop.f32.mrf.mxu3  ;;  %v2543_v38 = vadd.f32 %v2541_v54, %v2535_v32  ;;  %v2882_v54 = vld [vmem:[%s6969_s9 + $0x658] sm:$0xff] }
0x1169   :  { %2547 = vst [vmem:[#allocation1 + $0x9] sm:$0xff] %v2487_v51  ;;  %v2866_v32 = vld [vmem:[%s6969_s9 + $0x5d8] sm:$0xff] }
0x1170   :  { %v2549_v57 = vld [vmem:[#allocation1 + $0x2] ss:$9 sm:$0xff] }
0x1171   :  { %2554 = vst [vmem:[#allocation1] sm:$0xff] %v2507_v9  ;;  %v2551_v49 = vadd.f32 %v2549_v57, %v2543_v38  ;;  %v2874_v57 = vld [vmem:[%s6969_s9 + $0x618] sm:$0xff]  ;;  %v2729_v38 = vld [vmem:[%s6969_s9 + $0x190] sm:$0xff] }
0x1172   :  { %2555 = vst [vmem:[#allocation1 + $0x9] sm:$0xff] %v2527_v61 }
0x1179   :  { %v2557_v53 = vld [vmem:[#allocation1 + $0x3] ss:$9 sm:$0xff] }
0x117a   :  { %v2559_v62 = vadd.f32 %v2557_v53, %v2551_v49  ;;  %2563 = vst [vmem:[#allocation1] sm:$0xff] %v2387_v7  ;;  %v2762_v7 = vld [vmem:[%s6969_s9 + $0x298] sm:$0xff]  ;;  %v2857_v49 = vld [vmem:[%s6969_s9 + $0x590] sm:$0xff] }
0x117b   :  { %2564 = vst [vmem:[#allocation1 + $0x9] sm:$0xff] %v2407_v60  ;;  %v2890_v60 = vld [vmem:[%s6969_s9 + $0x698] sm:$0xff]  ;;  %3096 = vmatpush.msrb.mxu2 %v2762_v7  ;;  %v2796_v7 = vld [vmem:[%s6969_s9 + $0x3a8] sm:$0xff] }
0x117c   :  { %2561 = vst.msk [vmem:[#allocation2 + $0x16] ss:$8 sm:$0x3] %vm4935_vm7, %v2559_v62  ;;  %3119 = vmatpush.msrb.mxu3 %v2890_v60  ;;  %v2730_v53 = vld [vmem:[%s6969_s9 + $0x198] sm:$0xff]  ;;  %v2924_v60 = vld [vmem:[%s6969_s9 + $0x7a8] sm:$0xff] }
0x117d   :  { %v2858_v62 = vld [vmem:[%s6969_s9 + $0x598] sm:$0xff] }
0x117e   :  { %3120 = vmatpush.msrb.mxu3 %v2882_v54  ;;  %v2916_v54 = vld [vmem:[%s6969_s9 + $0x768] sm:$0xff] }
0x1180   :  { %3121 = vmatpush.msrb.mxu3 %v2874_v57  ;;  %v2908_v57 = vld [vmem:[%s6969_s9 + $0x728] sm:$0xff] }
0x1182   :  { %v2566_v55 = vld [vmem:[#allocation1 + $0x4] ss:$9 sm:$0xff]  ;;  %3122 = vmatpush.msrb.mxu3 %v2866_v32 }
0x1183   :  { %2569 = vst [vmem:[#allocation1] sm:$0xff] %v2427_v0  ;;  %v2568_v59 = vadd.f32 %v4311_v27, %v2566_v55  ;;  %v2753_v0 = vld [vmem:[%s6969_s9 + $0x250] sm:$0xff]  ;;  %v2738_v27 = vld [vmem:[%s6969_s9 + $0x1d8] sm:$0xff]  ;;  %v2900_v32 = vld [vmem:[%s6969_s9 + $0x6e8] sm:$0xff] }
0x1184   :  { %2570 = vst [vmem:[#allocation1 + $0x9] sm:$0xff] %v2447_v3  ;;  %v2881_v3 = vld [vmem:[%s6969_s9 + $0x650] sm:$0xff]  ;;  %3051 = vmatpush.msrb.mxu1 %v2753_v0  ;;  %3123 = vmatpush.msrb.mxu3 %v2858_v62  ;;  %v2787_v0 = vld [vmem:[%s6969_s9 + $0x360] sm:$0xff]  ;;  %v2892_v62 = vld [vmem:[%s6969_s9 + $0x6a8] sm:$0xff] }
0x1185   :  { %3074 = vmatpush.msrb.mxu0 %v2881_v3  ;;  %v2721_v55 = vld [vmem:[%s6969_s9 + $0x150] sm:$0xff]  ;;  %v2915_v3 = vld [vmem:[%s6969_s9 + $0x760] sm:$0xff] }
0x1187   :  { %3075 = vmatpush.msrb.mxu0 %v2873_v11  ;;  %v2907_v11 = vld [vmem:[%s6969_s9 + $0x720] sm:$0xff] }
0x118b   :  { %v2572_v8 = vld [vmem:[#allocation1 + $0x5] ss:$9 sm:$0xff] }
0x118c   :  { %2575 = vst [vmem:[#allocation1] sm:$0xff] %v2467_v13  ;;  %v2574_v5 = vadd.f32 %v2572_v8, %v2568_v59  ;;  %v2754_v13 = vld [vmem:[%s6969_s9 + $0x258] sm:$0xff]  ;;  %v2849_v8 = vld [vmem:[%s6969_s9 + $0x550] sm:$0xff] }
0x118d   :  { %2576 = vst [vmem:[#allocation1 + $0x9] sm:$0xff] %v2487_v51  ;;  %v2745_v51 = vld [vmem:[%s6969_s9 + $0x210] sm:$0xff]  ;;  %3097 = vmatpush.msrb.mxu2 %v2754_v13  ;;  %v2850_v59 = vld [vmem:[%s6969_s9 + $0x558] sm:$0xff]  ;;  %v2788_v13 = vld [vmem:[%s6969_s9 + $0x368] sm:$0xff] }
0x118e   :  { %3052 = vmatpush.msrb.mxu1 %v2745_v51  ;;  %3124 = vmatpush.msrb.mxu3 %v2850_v59  ;;  %v2779_v51 = vld [vmem:[%s6969_s9 + $0x320] sm:$0xff]  ;;  %v2884_v59 = vld [vmem:[%s6969_s9 + $0x668] sm:$0xff] }
0x1190   :  { %3053 = vmatpush.msrb.mxu1 %v2737_v40  ;;  %v2771_v40 = vld [vmem:[%s6969_s9 + $0x2e0] sm:$0xff] }
0x1192   :  { %3054 = vmatpush.msrb.mxu1 %v2729_v38  ;;  %v2763_v38 = vld [vmem:[%s6969_s9 + $0x2a0] sm:$0xff] }
0x1194   :  { %v2578_v10 = vld [vmem:[#allocation1 + $0x6] ss:$9 sm:$0xff]  ;;  %3055 = vmatpush.msrb.mxu1 %v2721_v55 }
0x1195   :  { %2581 = vst [vmem:[#allocation1] sm:$0xff] %v2507_v9  ;;  %v2580_v2 = vadd.f32 %v2578_v10, %v2574_v5  ;;  %v2746_v9 = vld [vmem:[%s6969_s9 + $0x218] sm:$0xff]  ;;  %v2713_v5 = vld [vmem:[%s6969_s9 + $0x110] sm:$0xff]  ;;  %v2755_v55 = vld [vmem:[%s6969_s9 + $0x260] sm:$0xff] }
0x1196   :  { %2582 = vst [vmem:[#allocation1 + $0x9] sm:$0xff] %v2527_v61  ;;  %v2865_v61 = vld [vmem:[%s6969_s9 + $0x5d0] sm:$0xff]  ;;  %3098 = vmatpush.msrb.mxu2 %v2746_v9  ;;  %v2722_v10 = vld [vmem:[%s6969_s9 + $0x158] sm:$0xff]  ;;  %3056 = vmatpush.msrb.mxu1 %v2713_v5  ;;  %v2780_v9 = vld [vmem:[%s6969_s9 + $0x328] sm:$0xff] }
0x1197   :  { %3076 = vmatpush.msrb.mxu0 %v2865_v61  ;;  %v2899_v61 = vld [vmem:[%s6969_s9 + $0x6e0] sm:$0xff] }
0x1198   :  { %3099 = vmatpush.msrb.mxu2 %v2738_v27  ;;  %v2772_v27 = vld [vmem:[%s6969_s9 + $0x2e8] sm:$0xff]  ;;  %v2747_v5 = vld [vmem:[%s6969_s9 + $0x220] sm:$0xff] }
0x1199   :  { %3077 = vmatpush.msrb.mxu0 %v2857_v49  ;;  %v2891_v49 = vld [vmem:[%s6969_s9 + $0x6a0] sm:$0xff] }
0x119a   :  { %3100 = vmatpush.msrb.mxu2 %v2730_v53  ;;  %v2764_v53 = vld [vmem:[%s6969_s9 + $0x2a8] sm:$0xff] }
0x119b   :  { %3078 = vmatpush.msrb.mxu0 %v2849_v8  ;;  %v2883_v8 = vld [vmem:[%s6969_s9 + $0x660] sm:$0xff] }
0x119c   :  { %3101 = vmatpush.msrb.mxu2 %v2722_v10  ;;  %v2756_v10 = vld [vmem:[%s6969_s9 + $0x268] sm:$0xff] }
0x119d   :  { %v2584_v15 = vld [vmem:[#allocation1 + $0x7] ss:$9 sm:$0xff] }
0x119e   :  { %v2586_v42 = vadd.f32 %v2584_v15, %v2580_v2  ;;  %v2841_v2 = vld [vmem:[%s6969_s9 + $0x510] sm:$0xff]  ;;  %v2714_v15 = vld [vmem:[%s6969_s9 + $0x118] sm:$0xff] }
0x119f   :  { %3079 = vmatpush.msrb.mxu0 %v2841_v2  ;;  %3102 = vmatpush.msrb.mxu2 %v2714_v15  ;;  %v2875_v2 = vld [vmem:[%s6969_s9 + $0x620] sm:$0xff]  ;;  %v2748_v15 = vld [vmem:[%s6969_s9 + $0x228] sm:$0xff] }
0x11a0   :  { %2588 = vst.msk [vmem:[#allocation2 + $0x17] ss:$8 sm:$0x3] %vm4935_vm7, %v2586_v42  ;;  %v2842_v42 = vld [vmem:[%s6969_s9 + $0x518] sm:$0xff] }
0x11a1   :  { %3125 = vmatpush.msrb.mxu3 %v2842_v42  ;;  %v2876_v42 = vld [vmem:[%s6969_s9 + $0x628] sm:$0xff] }
0x11a7   :  { %v2596_v6 = vld [vmem:[#allocation2 + $0x10] sm:$0xff]  ;;  %v2597_v34 = vld [vmem:[#allocation2 + $0x18] sm:$0xff] }
0x11a8   :  { %v6172_v39 = vadd.f32 %v2596_v6, %v2592_v35  ;;  %v6174_v63 = vadd.f32 %v2597_v34, %v2593_v19  ;;  %v2705_v35 = vld [vmem:[%s6969_s9 + $0xd0] sm:$0xff]  ;;  %v2706_v34 = vld [vmem:[%s6969_s9 + $0xd8] sm:$0xff] }
0x11a9   :  { %v2833_v19 = vld [vmem:[%s6969_s9 + $0x4d0] sm:$0xff]  ;;  %3057 = vmatpush.msrb.mxu1 %v2705_v35  ;;  %3103 = vmatpush.msrb.mxu2 %v2706_v34  ;;  %v2739_v35 = vld [vmem:[%s6969_s9 + $0x1e0] sm:$0xff]  ;;  %v2868_v34 = vld [vmem:[%s6969_s9 + $0x5e8] sm:$0xff] }
0x11aa   :  { %v2605_v30 = vadd.f32 %v6174_v63, %v6172_v39  ;;  %3080 = vmatpush.msrb.mxu0 %v2833_v19  ;;  %v2867_v19 = vld [vmem:[%s6969_s9 + $0x5e0] sm:$0xff] }
0x11ab   :  { %3058 = vmatpush.msrb.mxu1 %v2697_v28  ;;  %v2851_v28 = vld [vmem:[%s6969_s9 + $0x560] sm:$0xff] }
0x11ac   :  { %2606 = vadd.xlane.f32.xlu2 %v2605_v30  ;;  %v2834_v30 = vld [vmem:[%s6969_s9 + $0x4d8] sm:$0xff] }
0x11ad   :  { %3126 = vmatpush.msrb.mxu3 %v2834_v30  ;;  %3059 = vmatpush.msrb.mxu1 %v2689_v56  ;;  %v2731_v30 = vld [vmem:[%s6969_s9 + $0x1a0] sm:$0xff] }
0x11ae   :  { %v2843_v56 = vld [vmem:[%s6969_s9 + $0x520] sm:$0xff] }
0x11af   :  { %3127 = vmatpush.msrb.mxu3 %v2826_v33  ;;  %3060 = vmatpush.msrb.mxu1 %v2681_v26  ;;  %v2715_v33 = vld [vmem:[%s6969_s9 + $0x120] sm:$0xff] }
0x11b0   :  { %v2835_v26 = vld [vmem:[%s6969_s9 + $0x4e0] sm:$0xff] }
0x11b1   :  { %3128 = vmatpush.msrb.mxu3 %v2818_v24  ;;  %3137 = vmatpush.msra.mxu1 %v2803_v20  ;;  %v2707_v24 = vld [vmem:[%s6969_s9 + $0xe0] sm:$0xff] }
0x11b2   :  { %v2827_v20 = vld [vmem:[%s6969_s9 + $0x4a0] sm:$0xff] }
0x11b3   :  { %3129 = vmatpush.msrb.mxu3 %v2810_v18  ;;  %3138 = vmatpush.msra.mxu1 %v2795_v25  ;;  %v2699_v18 = vld [vmem:[%s6969_s9 + $0xa0] sm:$0xff] }
0x11b4   :  { %v2691_v25 = vld [vmem:[%s6969_s9 + $0x60] sm:$0xff] }
0x11b5   :  { %3206 = vmatpush.msra.mxu3 %v2932_v22  ;;  %3139 = vmatpush.msra.mxu1 %v2787_v0  ;;  %v2828_v22 = vld [vmem:[%s6969_s9 + $0x4a8] sm:$0xff] }
0x11b6   :  { %v2820_v0 = vld [vmem:[%s6969_s9 + $0x468] sm:$0xff] }
0x11b7   :  { %3207 = vmatpush.msra.mxu3 %v2924_v60  ;;  %3140 = vmatpush.msra.mxu1 %v2779_v51  ;;  %v2692_v60 = vld [vmem:[%s6969_s9 + $0x68] sm:$0xff] }
0x11b8   :  { %v2684_v51 = vld [vmem:[%s6969_s9 + $0x28] sm:$0xff] }
0x11b9   :  { %3208 = vmatpush.msra.mxu3 %v2916_v54  ;;  %3141 = vmatpush.msra.mxu1 %v2771_v40 }
0x11bb   :  { %3209 = vmatpush.msra.mxu3 %v2908_v57  ;;  %3142 = vmatpush.msra.mxu1 %v2763_v38 }
0x11bd   :  { %3210 = vmatpush.msra.mxu3 %v2900_v32  ;;  %3143 = vmatpush.msra.mxu1 %v2755_v55 }
0x11bf   :  { %3211 = vmatpush.msra.mxu3 %v2892_v62  ;;  %3144 = vmatpush.msra.mxu1 %v2747_v5  ;;  %v2917_v5 = vld [vmem:[%s6969_s9 + $0x770] sm:$0xff] }
0x11c1   :  { %3212 = vmatpush.msra.mxu3 %v2884_v59  ;;  %3145 = vmatpush.msra.mxu1 %v2739_v35  ;;  %v2789_v59 = vld [vmem:[%s6969_s9 + $0x370] sm:$0xff] }
0x11c2   :  { %v2909_v35 = vld [vmem:[%s6969_s9 + $0x730] sm:$0xff] }
0x11c3   :  { %3213 = vmatpush.msra.mxu3 %v2876_v42  ;;  %3146 = vmatpush.msra.mxu1 %v2731_v30  ;;  %v2781_v42 = vld [vmem:[%s6969_s9 + $0x330] sm:$0xff] }
0x11c4   :  { %v2901_v30 = vld [vmem:[%s6969_s9 + $0x6f0] sm:$0xff] }
0x11c5   :  { %3214 = vmatpush.msra.mxu3 %v2868_v34  ;;  %v2773_v34 = vld [vmem:[%s6969_s9 + $0x2f0] sm:$0xff] }
0x121f   :  { %v2607_v6 = vpop.xlane.xlu2 %2606 }
0x1220   :  { %v2616_v52 = vmul.f32 %v5857_v4, %v2607_v6  ;;  %v2740_v6 = vld [vmem:[%s6969_s9 + $0x1e8] sm:$0xff] }
0x1222   :  { %v6336_v36 = vsub.f32 %v6172_v39, %v2616_v52  ;;  %v6339_v31 = vsub.f32 %v6174_v63, %v2616_v52  ;;  %v2825_v39 = vld [vmem:[%s6969_s9 + $0x490] sm:$0xff]  ;;  %v2698_v63 = vld [vmem:[%s6969_s9 + $0x98] sm:$0xff]  ;;  %v2859_v52 = vld [vmem:[%s6969_s9 + $0x5a0] sm:$0xff] }
0x1223   :  { %3081 = vmatpush.msrb.mxu0 %v2825_v39  ;;  %3104 = vmatpush.msrb.mxu2 %v2698_v63  ;;  %v2724_v39 = vld [vmem:[%s6969_s9 + $0x168] sm:$0xff] }
0x1224   :  { %v2623_v58 = vmul.f32 %v6336_v36, %v6336_v36  ;;  %v2624_v12 = vmul.f32 %v6339_v31, %v6339_v31  ;;  %v2852_v63 = vld [vmem:[%s6969_s9 + $0x568] sm:$0xff] }
0x1225   :  { %3082 = vmatpush.msrb.mxu0 %v2817_v1  ;;  %3105 = vmatpush.msrb.mxu2 %v2690_v37  ;;  %v2716_v1 = vld [vmem:[%s6969_s9 + $0x128] sm:$0xff] }
0x1226   :  { %v2628_v44 = vadd.f32 %v2624_v12, %v2623_v58  ;;  %v2732_v58 = vld [vmem:[%s6969_s9 + $0x1a8] sm:$0xff] }
0x1227   :  { %3083 = vmatpush.msrb.mxu0 %v2809_v14  ;;  %3106 = vmatpush.msrb.mxu2 %v2682_v17  ;;  %v2860_v12 = vld [vmem:[%s6969_s9 + $0x5a8] sm:$0xff] }
0x1228   :  { %2629 = vadd.xlane.f32.xlu1 %v2628_v44  ;;  %v2723_v44 = vld [vmem:[%s6969_s9 + $0x160] sm:$0xff]  ;;  %3215 = vmatpush.msra.mxu3 %v2860_v12  ;;  %v2844_v37 = vld [vmem:[%s6969_s9 + $0x528] sm:$0xff]  ;;  %v2765_v12 = vld [vmem:[%s6969_s9 + $0x2b0] sm:$0xff] }
0x1229   :  { %3160 = vmatpush.msra.mxu0 %v2931_v21  ;;  %3183 = vmatpush.msra.mxu2 %v2804_v48  ;;  %v2708_v14 = vld [vmem:[%s6969_s9 + $0xe8] sm:$0xff] }
0x122a   :  { %3147 = vmatpush.msra.mxu1 %v2723_v44  ;;  %3216 = vmatpush.msra.mxu3 %v2852_v63  ;;  %v2836_v17 = vld [vmem:[%s6969_s9 + $0x4e8] sm:$0xff]  ;;  %v2893_v44 = vld [vmem:[%s6969_s9 + $0x6b0] sm:$0xff] }
0x122b   :  { %3161 = vmatpush.msra.mxu0 %v2923_v45  ;;  %3184 = vmatpush.msra.mxu2 %v2796_v7  ;;  %v2700_v48 = vld [vmem:[%s6969_s9 + $0xa8] sm:$0xff]  ;;  %v2819_v7 = vld [vmem:[%s6969_s9 + $0x460] sm:$0xff]  ;;  %v2757_v63 = vld [vmem:[%s6969_s9 + $0x270] sm:$0xff] }
0x122c   :  { %3148 = vmatpush.msra.mxu1 %v2715_v33  ;;  %3217 = vmatpush.msra.mxu3 %v2844_v37  ;;  %v2885_v33 = vld [vmem:[%s6969_s9 + $0x670] sm:$0xff] }
0x122d   :  { %3162 = vmatpush.msra.mxu0 %v2915_v3  ;;  %3185 = vmatpush.msra.mxu2 %v2788_v13  ;;  %v2683_v3 = vld [vmem:[%s6969_s9 + $0x20] sm:$0xff]  ;;  %v2749_v37 = vld [vmem:[%s6969_s9 + $0x230] sm:$0xff] }
0x122e   :  { %3149 = vmatpush.msra.mxu1 %v2707_v24  ;;  %3218 = vmatpush.msra.mxu3 %v2836_v17  ;;  %v2811_v13 = vld [vmem:[%s6969_s9 + $0x420] sm:$0xff]  ;;  %v2877_v24 = vld [vmem:[%s6969_s9 + $0x630] sm:$0xff] }
0x122f   :  { %3163 = vmatpush.msra.mxu0 %v2907_v11  ;;  %3186 = vmatpush.msra.mxu2 %v2780_v9  ;;  %v2812_v11 = vld [vmem:[%s6969_s9 + $0x428] sm:$0xff]  ;;  %v2741_v17 = vld [vmem:[%s6969_s9 + $0x1f0] sm:$0xff] }
0x1230   :  { %3150 = vmatpush.msra.mxu1 %v2699_v18  ;;  %3219 = vmatpush.msra.mxu3 %v2828_v22  ;;  %v2869_v18 = vld [vmem:[%s6969_s9 + $0x5f0] sm:$0xff] }
0x1231   :  { %3164 = vmatpush.msra.mxu0 %v2899_v61  ;;  %3187 = vmatpush.msra.mxu2 %v2772_v27  ;;  %v2861_v22 = vld [vmem:[%s6969_s9 + $0x5b0] sm:$0xff] }
0x1232   :  { %3151 = vmatpush.msra.mxu1 %v2691_v25  ;;  %3220 = vmatpush.msra.mxu3 %v2820_v0  ;;  %v2734_v25 = vld [vmem:[%s6969_s9 + $0x1b8] sm:$0xff] }
0x1233   :  { %3165 = vmatpush.msra.mxu0 %v2891_v49  ;;  %3188 = vmatpush.msra.mxu2 %v2764_v53  ;;  %v2726_v0 = vld [vmem:[%s6969_s9 + $0x178] sm:$0xff] }
0x1234   :  { %3152 = vmatpush.msra.mxu1 %v2683_v3  ;;  %3221 = vmatpush.msra.mxu3 %v2812_v11  ;;  %v2854_v3 = vld [vmem:[%s6969_s9 + $0x578] sm:$0xff] }
0x1235   :  { %3166 = vmatpush.msra.mxu0 %v2883_v8  ;;  %3189 = vmatpush.msra.mxu2 %v2756_v10  ;;  %v2846_v11 = vld [vmem:[%s6969_s9 + $0x538] sm:$0xff] }
0x1237   :  { %3167 = vmatpush.msra.mxu0 %v2875_v2  ;;  %3190 = vmatpush.msra.mxu2 %v2748_v15  ;;  %v2790_v2 = vld [vmem:[%s6969_s9 + $0x378] sm:$0xff] }
0x1238   :  { %v2918_v15 = vld [vmem:[%s6969_s9 + $0x778] sm:$0xff] }
0x1239   :  { %3168 = vmatpush.msra.mxu0 %v2867_v19  ;;  %3191 = vmatpush.msra.mxu2 %v2740_v6  ;;  %v2782_v19 = vld [vmem:[%s6969_s9 + $0x338] sm:$0xff] }
0x123a   :  { %v2910_v6 = vld [vmem:[%s6969_s9 + $0x738] sm:$0xff] }
0x123b   :  { %3169 = vmatpush.msra.mxu0 %v2859_v52  ;;  %3192 = vmatpush.msra.mxu2 %v2732_v58  ;;  %v2774_v52 = vld [vmem:[%s6969_s9 + $0x2f8] sm:$0xff] }
0x123c   :  { %v2902_v58 = vld [vmem:[%s6969_s9 + $0x6f8] sm:$0xff] }
0x123d   :  { %3170 = vmatpush.msra.mxu0 %v2851_v28  ;;  %3193 = vmatpush.msra.mxu2 %v2724_v39  ;;  %v2766_v28 = vld [vmem:[%s6969_s9 + $0x2b8] sm:$0xff] }
0x123e   :  { %v2894_v39 = vld [vmem:[%s6969_s9 + $0x6b8] sm:$0xff] }
0x123f   :  { %3171 = vmatpush.msra.mxu0 %v2843_v56  ;;  %3194 = vmatpush.msra.mxu2 %v2716_v1  ;;  %v2758_v56 = vld [vmem:[%s6969_s9 + $0x278] sm:$0xff] }
0x1240   :  { %v2886_v1 = vld [vmem:[%s6969_s9 + $0x678] sm:$0xff] }
0x1241   :  { %3172 = vmatpush.msra.mxu0 %v2835_v26  ;;  %3195 = vmatpush.msra.mxu2 %v2708_v14  ;;  %v2750_v26 = vld [vmem:[%s6969_s9 + $0x238] sm:$0xff] }
0x1242   :  { %v2878_v14 = vld [vmem:[%s6969_s9 + $0x638] sm:$0xff] }
0x1243   :  { %3173 = vmatpush.msra.mxu0 %v2827_v20  ;;  %3196 = vmatpush.msra.mxu2 %v2700_v48  ;;  %v2742_v20 = vld [vmem:[%s6969_s9 + $0x1f8] sm:$0xff]  ;;  %v2733_v48 = vld [vmem:[%s6969_s9 + $0x1b0] sm:$0xff] }
0x1245   :  { %3174 = vmatpush.msra.mxu0 %v2819_v7  ;;  %3197 = vmatpush.msra.mxu2 %v2692_v60  ;;  %v2725_v7 = vld [vmem:[%s6969_s9 + $0x170] sm:$0xff] }
0x1246   :  { %v2853_v60 = vld [vmem:[%s6969_s9 + $0x570] sm:$0xff] }
0x1247   :  { %3175 = vmatpush.msra.mxu0 %v2811_v13  ;;  %3198 = vmatpush.msra.mxu2 %v2684_v51  ;;  %v2717_v13 = vld [vmem:[%s6969_s9 + $0x130] sm:$0xff]  ;;  %v2718_v51 = vld [vmem:[%s6969_s9 + $0x138] sm:$0xff] }
0x129b   :  { %v2630_v21 = vpop.xlane.xlu1 %2629 }
0x129c   :  { %v2632_v45 = vmul.f32 %v2630_v21, %v5857_v4  ;;  %v2870_v21 = vld [vmem:[%s6969_s9 + $0x5f8] sm:$0xff] }
0x129e   :  { %v2634_v54 = vadd.f32 1e-05, %v2632_v45  ;;  %v2862_v45 = vld [vmem:[%s6969_s9 + $0x5b8] sm:$0xff] }
0x12a0   :  { %4229 = vrsqrt.f32 %v2634_v54  ;;  %vm2651_vm7 = vweird.f32 %v2634_v54 }
0x12a6   :  { %v4230_v9 = vpop.eup %4229 }
0x12a7   :  { %v2646_v57 = vmul.f32 %v4230_v9, %v2634_v54  ;;  %vm2652_vm6 = vweird.f32 %v4230_v9  ;;  %v2845_v54 = vld [vmem:[%s6969_s9 + $0x530] sm:$0xff] }
0x12a8   :  { %vm2653_vm14 = vmor %vm2651_vm7, %vm2652_vm6 }
0x12a9   :  { %v2647_v40 = vmul.f32 %v4230_v9, %v2646_v57  ;;  %v2837_v57 = vld [vmem:[%s6969_s9 + $0x4f0] sm:$0xff] }
0x12ab   :  { %v2648_v61 = vmul.f32 0.5, %v2647_v40  ;;  %v2710_v40 = vld [vmem:[%s6969_s9 + $0xf8] sm:$0xff] }
0x12ad   :  { %v2649_v27 = vsub.f32 1.5, %v2648_v61  ;;  %v2838_v61 = vld [vmem:[%s6969_s9 + $0x4f8] sm:$0xff] }
0x12af   :  { %v2650_v32 = vmul.f32 %v4230_v9, %v2649_v27  ;;  %v2701_v27 = vld [vmem:[%s6969_s9 + $0xb0] sm:$0xff] }
0x12b1   :  { %v2654_v38 = vsel %vm2653_vm14, %v4230_v9, %v2650_v32  ;;  %v2709_v9 = vld [vmem:[%s6969_s9 + $0xf0] sm:$0xff] }
0x12b2   :  { %v2657_v49 = vmul.f32 %v2654_v38, %v6336_v36  ;;  %v2658_v53 = vmul.f32 %v2654_v38, %v6339_v31  ;;  %v2798_v36 = vld [vmem:[%s6969_s9 + $0x3b8] sm:$0xff]  ;;  %v2829_v32 = vld [vmem:[%s6969_s9 + $0x4b0] sm:$0xff] }
0x12b3   :  { %v2926_v31 = vld [vmem:[%s6969_s9 + $0x7b8] sm:$0xff] }
0x12b4   :  { %v2667_v62 = vmul.f32 %v2661_v23, %v2657_v49  ;;  %v2668_v55 = vmul.f32 %v2662_v41, %v2658_v53  ;;  %v2933_v23 = vld [vmem:[%s6969_s9 + $0x7f0] sm:$0xff]  ;;  %v2806_v41 = vld [vmem:[%s6969_s9 + $0x3f8] sm:$0xff] }
0x12b5   :  { %v2702_v38 = vld [vmem:[%s6969_s9 + $0xb8] sm:$0xff]  ;;  %v2693_v53 = vld [vmem:[%s6969_s9 + $0x70] sm:$0xff] }
0x12b6   :  { %v6582_v8 = vadd.f32 %v2671_v50, %v2667_v62  ;;  %v6586_v10 = vadd.f32 %v2672_v16, %v2668_v55  ;;  %v2797_v50 = vld [vmem:[%s6969_s9 + $0x3b0] sm:$0xff]  ;;  %v2830_v49 = vld [vmem:[%s6969_s9 + $0x4b8] sm:$0xff] }
0x12b7   :  { %v2925_v16 = vld [vmem:[%s6969_s9 + $0x7b0] sm:$0xff]  ;;  %v2694_v55 = vld [vmem:[%s6969_s9 + $0x78] sm:$0xff] }
0x12b8   :  { %2972 = vmatmul.f32.gmra.mxu1 %v6582_v8  ;;  %2995 = vmatmul.f32.gmra.mxu0 %v6586_v10  ;;  %v2821_v62 = vld [vmem:[%s6969_s9 + $0x470] sm:$0xff] }
0x12b9   :  { %3018 = vmatmul.f32.gmra.mxu2 %v6582_v8  ;;  %3041 = vmatmul.f32.gmra.mxu3 %v6586_v10 }
0x12c0   :  { %3061 = vmatmul.f32.vlgmr.msrb.gmra.mxu1 %v6148_v46  ;;  %3084 = vmatmul.f32.vlgmr.msrb.gmra.mxu0 %v6152_v47 }
0x12c1   :  { %3107 = vmatmul.f32.vlgmr.msrb.gmra.mxu2 %v6148_v46  ;;  %3130 = vmatmul.f32.vlgmr.msrb.gmra.mxu3 %v6152_v47 }
0x12c2   :  { %3229 = vmatpush.msrb.mxu1 %v2805_v29  ;;  %3252 = vmatpush.msrb.mxu0 %v2933_v23  ;;  %v2822_v29 = vld [vmem:[%s6969_s9 + $0x478] sm:$0xff]  ;;  %v2685_v23 = vld [vmem:[%s6969_s9 + $0x30] sm:$0xff] }
0x12c3   :  { %3275 = vmatpush.msrb.mxu2 %v2806_v41  ;;  %3298 = vmatpush.msrb.mxu3 %v2934_v43  ;;  %v2813_v41 = vld [vmem:[%s6969_s9 + $0x430] sm:$0xff]  ;;  %v2686_v43 = vld [vmem:[%s6969_s9 + $0x38] sm:$0xff] }
0x12c4   :  { %3230 = vmatpush.msrb.mxu1 %v2797_v50  ;;  %3253 = vmatpush.msrb.mxu0 %v2925_v16  ;;  %v2814_v50 = vld [vmem:[%s6969_s9 + $0x438] sm:$0xff] }
0x12c5   :  { %3276 = vmatpush.msrb.mxu2 %v2798_v36  ;;  %3299 = vmatpush.msrb.mxu3 %v2926_v31  ;;  %v3367_v16 = vld [vmem:[#allocation3 + $0xf0] sm:$0xff]  ;;  %v3365_v31 = vld [vmem:[#allocation3 + $0xe0] sm:$0xff] }
0x12c6   :  { %3231 = vmatpush.msrb.mxu1 %v2789_v59  ;;  %3254 = vmatpush.msrb.mxu0 %v2917_v5  ;;  %v3399_v36 = vld [vmem:[#allocation3 + $0x1f0] sm:$0xff]  ;;  %v3397_v59 = vld [vmem:[#allocation3 + $0x1e0] sm:$0xff] }
0x12c7   :  { %3277 = vmatpush.msrb.mxu2 %v2790_v2  ;;  %3300 = vmatpush.msrb.mxu3 %v2918_v15  ;;  %v3431_v5 = vld [vmem:[#allocation3 + $0x2f0] sm:$0xff] }
0x12c8   :  { %3232 = vmatpush.msrb.mxu1 %v2781_v42  ;;  %3255 = vmatpush.msrb.mxu0 %v2909_v35  ;;  %v3363_v2 = vld [vmem:[#allocation3 + $0xd0] sm:$0xff]  ;;  %v3429_v35 = vld [vmem:[#allocation3 + $0x2e0] sm:$0xff] }
0x12c9   :  { %3278 = vmatpush.msrb.mxu2 %v2782_v19  ;;  %3301 = vmatpush.msrb.mxu3 %v2910_v6  ;;  %v3395_v15 = vld [vmem:[#allocation3 + $0x1d0] sm:$0xff]  ;;  %v3461_v19 = vld [vmem:[#allocation3 + $0x3e0] sm:$0xff] }
0x12ca   :  { %3064 = vmatmul.f32.gmra.mxu1 %v6582_v8  ;;  %3087 = vmatmul.f32.gmra.mxu0 %v6586_v10  ;;  %v3463_v42 = vld [vmem:[#allocation3 + $0x3f0] sm:$0xff]  ;;  %v3361_v6 = vld [vmem:[#allocation3 + $0xc0] sm:$0xff] }
0x12cb   :  { %3110 = vmatmul.f32.gmra.mxu2 %v6582_v8  ;;  %3133 = vmatmul.f32.gmra.mxu3 %v6586_v10 }
0x12cc   :  { %3233 = vmatpush.msrb.mxu1 %v2773_v34  ;;  %3256 = vmatpush.msrb.mxu0 %v2901_v30  ;;  %v3393_v34 = vld [vmem:[#allocation3 + $0x1c0] sm:$0xff]  ;;  %v3427_v30 = vld [vmem:[#allocation3 + $0x2d0] sm:$0xff] }
0x12cd   :  { %3279 = vmatpush.msrb.mxu2 %v2774_v52  ;;  %3302 = vmatpush.msrb.mxu3 %v2902_v58  ;;  %v3459_v52 = vld [vmem:[#allocation3 + $0x3d0] sm:$0xff] }
0x12ce   :  { %3234 = vmatpush.msrb.mxu1 %v2765_v12  ;;  %3257 = vmatpush.msrb.mxu0 %v2893_v44  ;;  %v3359_v58 = vld [vmem:[#allocation3 + $0xb0] sm:$0xff]  ;;  %v3357_v44 = vld [vmem:[#allocation3 + $0xa0] sm:$0xff] }
0x12cf   :  { %3280 = vmatpush.msrb.mxu2 %v2766_v28  ;;  %3303 = vmatpush.msrb.mxu3 %v2894_v39  ;;  %v3391_v12 = vld [vmem:[#allocation3 + $0x1b0] sm:$0xff]  ;;  %v3389_v28 = vld [vmem:[#allocation3 + $0x1a0] sm:$0xff] }
0x12d0   :  { %3235 = vmatpush.msrb.mxu1 %v2757_v63  ;;  %3258 = vmatpush.msrb.mxu0 %v2885_v33  ;;  %v3425_v39 = vld [vmem:[#allocation3 + $0x2c0] sm:$0xff]  ;;  %v3355_v33 = vld [vmem:[#allocation3 + $0x90] sm:$0xff] }
0x12d1   :  { %3281 = vmatpush.msrb.mxu2 %v2758_v56  ;;  %3304 = vmatpush.msrb.mxu3 %v2886_v1  ;;  %v3457_v63 = vld [vmem:[#allocation3 + $0x3c0] sm:$0xff]  ;;  %v3387_v56 = vld [vmem:[#allocation3 + $0x190] sm:$0xff] }
0x12d2   :  { %3236 = vmatpush.msrb.mxu1 %v2749_v37  ;;  %3259 = vmatpush.msrb.mxu0 %v2877_v24  ;;  %v3423_v1 = vld [vmem:[#allocation3 + $0x2b0] sm:$0xff]  ;;  %v3353_v24 = vld [vmem:[#allocation3 + $0x80] sm:$0xff] }
0x12d3   :  { %3282 = vmatpush.msrb.mxu2 %v2750_v26  ;;  %3305 = vmatpush.msrb.mxu3 %v2878_v14  ;;  %v3455_v37 = vld [vmem:[#allocation3 + $0x3b0] sm:$0xff]  ;;  %v3385_v26 = vld [vmem:[#allocation3 + $0x180] sm:$0xff] }
0x12d4   :  { %3153 = vmatmul.f32.vlgmr.msra.gmra.mxu1 %v6148_v46  ;;  %3176 = vmatmul.f32.vlgmr.msra.gmra.mxu0 %v6152_v47  ;;  %v3421_v14 = vld [vmem:[#allocation3 + $0x2a0] sm:$0xff] }
0x12d5   :  { %3199 = vmatmul.f32.vlgmr.msra.gmra.mxu2 %v6148_v46  ;;  %3222 = vmatmul.f32.vlgmr.msra.gmra.mxu3 %v6152_v47 }
0x12d6   :  { %3237 = vmatpush.msrb.mxu1 %v2741_v17  ;;  %3260 = vmatpush.msrb.mxu0 %v2869_v18  ;;  %v3453_v17 = vld [vmem:[#allocation3 + $0x3a0] sm:$0xff]  ;;  %v3351_v18 = vld [vmem:[#allocation3 + $0x70] sm:$0xff] }
0x12d7   :  { %3283 = vmatpush.msrb.mxu2 %v2742_v20  ;;  %3306 = vmatpush.msrb.mxu3 %v2870_v21  ;;  %v3383_v20 = vld [vmem:[#allocation3 + $0x170] sm:$0xff]  ;;  %v6811_v21 = vld [vmem:[%s6970_s10] sm:$0xff] }
0x12d8   :  { %3238 = vmatpush.msrb.mxu1 %v2733_v48  ;;  %3261 = vmatpush.msrb.mxu0 %v2861_v22  ;;  %v3419_v48 = vld [vmem:[#allocation3 + $0x290] sm:$0xff] }
0x12d9   :  { %3284 = vmatpush.msrb.mxu2 %v2734_v25  ;;  %3307 = vmatpush.msrb.mxu3 %v2862_v45  ;;  %v3451_v22 = vld [vmem:[#allocation3 + $0x390] sm:$0xff]  ;;  %v3349_v25 = vld [vmem:[#allocation3 + $0x60] sm:$0xff] }
0x12da   :  { %3239 = vmatpush.msrb.mxu1 %v2725_v7  ;;  %3262 = vmatpush.msrb.mxu0 %v2853_v60  ;;  %v3381_v45 = vld [vmem:[#allocation3 + $0x160] sm:$0xff] }
0x12db   :  { %3285 = vmatpush.msrb.mxu2 %v2726_v0  ;;  %3308 = vmatpush.msrb.mxu3 %v2854_v3  ;;  %v3417_v7 = vld [vmem:[#allocation3 + $0x280] sm:$0xff]  ;;  %v2937_v0 = vperm.slane %v6811_v21, 0  ;;  %v2938_v3 = vperm.slane %v6811_v21, 1 }
0x12dc   :  { %3240 = vmatpush.msrb.mxu1 %v2717_v13  ;;  %3263 = vmatpush.msrb.mxu0 %v2845_v54  ;;  %v3449_v60 = vld [vmem:[#allocation3 + $0x380] sm:$0xff]  ;;  %v3347_v13 = vld [vmem:[#allocation3 + $0x50] sm:$0xff] }
0x12dd   :  { %3286 = vmatpush.msrb.mxu2 %v2718_v51  ;;  %3309 = vmatpush.msrb.mxu3 %v2846_v11  ;;  %v3379_v54 = vld [vmem:[#allocation3 + $0x150] sm:$0xff]  ;;  %v2970_v51 = vpop.f32.mrf.mxu1  ;;  %v3016_v11 = vpop.f32.mrf.mxu2 }
0x12de   :  { %3156 = vmatmul.f32.gmra.mxu1 %v6582_v8  ;;  %3179 = vmatmul.f32.gmra.mxu0 %v6586_v10 }
0x12df   :  { %3202 = vmatmul.f32.gmra.mxu2 %v6582_v8  ;;  %3225 = vmatmul.f32.gmra.mxu3 %v6586_v10 }
0x12e0   :  { %3241 = vmatpush.msrb.mxu1 %v2709_v9  ;;  %3264 = vmatpush.msrb.mxu0 %v2837_v57  ;;  %v3415_v9 = vld [vmem:[#allocation3 + $0x270] sm:$0xff] }
0x12e1   :  { %3287 = vmatpush.msrb.mxu2 %v2710_v40  ;;  %3310 = vmatpush.msrb.mxu3 %v2838_v61  ;;  %v3447_v57 = vld [vmem:[#allocation3 + $0x370] sm:$0xff]  ;;  %v3345_v40 = vld [vmem:[#allocation3 + $0x40] sm:$0xff] }
0x12e2   :  { %3242 = vmatpush.msrb.mxu1 %v2701_v27  ;;  %3265 = vmatpush.msrb.mxu0 %v2829_v32  ;;  %v3377_v61 = vld [vmem:[#allocation3 + $0x140] sm:$0xff] }
0x12e3   :  { %3288 = vmatpush.msrb.mxu2 %v2702_v38  ;;  %3311 = vmatpush.msrb.mxu3 %v2830_v49  ;;  %v3413_v27 = vld [vmem:[#allocation3 + $0x260] sm:$0xff]  ;;  %v2971_v38 = vadd.f32 %v2970_v51, %v2937_v0  ;;  %v3017_v49 = vadd.f32 %v3016_v11, %v2938_v3 }
0x12e4   :  { %3243 = vmatpush.msrb.mxu1 %v2693_v53  ;;  %3266 = vmatpush.msrb.mxu0 %v2821_v62  ;;  %v3445_v32 = vld [vmem:[#allocation3 + $0x360] sm:$0xff]  ;;  %v3343_v53 = vld [vmem:[#allocation3 + $0x30] sm:$0xff] }
0x12e5   :  { %3289 = vmatpush.msrb.mxu2 %v2694_v55  ;;  %3312 = vmatpush.msrb.mxu3 %v2822_v29  ;;  %v3375_v62 = vld [vmem:[#allocation3 + $0x130] sm:$0xff]  ;;  %v3553_v51 = vld [vmem:[#allocation3 + $0x6c0] sm:$0xff] }
0x12e6   :  { %3244 = vmatpush.msrb.mxu1 %v2685_v23  ;;  %3267 = vmatpush.msrb.mxu0 %v2813_v41  ;;  %v3411_v55 = vld [vmem:[#allocation3 + $0x250] sm:$0xff]  ;;  %v3341_v23 = vld [vmem:[#allocation3 + $0x20] sm:$0xff] }
0x12e7   :  { %3290 = vmatpush.msrb.mxu2 %v2686_v43  ;;  %3313 = vmatpush.msrb.mxu3 %v2814_v50  ;;  %v3443_v29 = vld [vmem:[#allocation3 + $0x350] sm:$0xff]  ;;  %v3373_v41 = vld [vmem:[#allocation3 + $0x120] sm:$0xff]  ;;  %v2993_v43 = vpop.f32.mrf.mxu0  ;;  %v3039_v50 = vpop.f32.mrf.mxu3 }
0x12e8   :  { %3599 = vmatpush.msra.mxu1 %v3367_v16  ;;  %3622 = vmatpush.msra.mxu0 %v3399_v36  ;;  %v3409_v16 = vld [vmem:[#allocation3 + $0x240] sm:$0xff] }
0x12e9   :  { %3245 = vmatmul.f32.vlgmr.msrb.gmra.mxu1 %v6148_v46  ;;  %3268 = vmatmul.f32.vlgmr.msrb.gmra.mxu0 %v6152_v47  ;;  %v3441_v36 = vld [vmem:[#allocation3 + $0x340] sm:$0xff] }
0x12ea   :  { %3291 = vmatmul.f32.vlgmr.msrb.gmra.mxu2 %v6148_v46  ;;  %3314 = vmatmul.f32.vlgmr.msrb.gmra.mxu3 %v6152_v47  ;;  %v3585_v11 = vld [vmem:[#allocation3 + $0x7c0] sm:$0xff] }
0x12eb   :  { %3600 = vmatpush.msra.mxu1 %v3365_v31  ;;  %3623 = vmatpush.msra.mxu0 %v3397_v59  ;;  %v6819_v31 = vadd.f32 %v2993_v43, %v2971_v38  ;;  %v6821_v59 = vadd.f32 %v3039_v50, %v3017_v49  ;;  %v3477_v38 = vld [vmem:[#allocation3 + $0x460] sm:$0xff] }
0x12ec   :  { %3645 = vmatpush.msra.mxu2 %v3431_v5  ;;  %3668 = vmatpush.msra.mxu3 %v3463_v42  ;;  %v3339_v5 = vld [vmem:[#allocation3 + $0x10] sm:$0xff]  ;;  %v3509_v49 = vld [vmem:[#allocation3 + $0x560] sm:$0xff] }
0x12ed   :  { %3601 = vmatpush.msra.mxu1 %v3363_v2  ;;  %3624 = vmatpush.msra.mxu0 %v3395_v15  ;;  %v3371_v2 = vld [vmem:[#allocation3 + $0x110] sm:$0xff]  ;;  %v3473_v43 = vld [vmem:[#allocation3 + $0x440] sm:$0xff] }
0x12ee   :  { %3646 = vmatpush.msra.mxu2 %v3429_v35  ;;  %3669 = vmatpush.msra.mxu3 %v3461_v19  ;;  %v3407_v15 = vld [vmem:[#allocation3 + $0x230] sm:$0xff]  ;;  %v3337_v35 = vld [vmem:[#allocation3] sm:$0xff] }
0x12ef   :  { %3602 = vmatpush.msra.mxu1 %v3361_v6  ;;  %3625 = vmatpush.msra.mxu0 %v3393_v34  ;;  %v3439_v42 = vld [vmem:[#allocation3 + $0x330] sm:$0xff]  ;;  %v3369_v19 = vld [vmem:[#allocation3 + $0x100] sm:$0xff]  ;;  %v3321_v6 = vmax.f32 %v6819_v31, 0.0  ;;  %v3322_v34 = vmax.f32 %v6821_v59, 0.0  ;;  %v3552_v59 = vld [vmem:[#allocation3 + $0x6b8] sm:$0xff] }
0x12f0   :  { %3647 = vmatpush.msra.mxu2 %v3427_v30  ;;  %3670 = vmatpush.msra.mxu3 %v3459_v52  ;;  %v3495_v30 = vld [vmem:[#allocation3 + $0x4f0] sm:$0xff]  ;;  %v3505_v50 = vld [vmem:[#allocation3 + $0x540] sm:$0xff] }
0x12f1   :  { %3603 = vmatpush.msra.mxu1 %v3359_v58  ;;  %3626 = vmatpush.msra.mxu0 %v3391_v12  ;;  %v3527_v52 = vld [vmem:[#allocation3 + $0x5f0] sm:$0xff]  ;;  %v3405_v58 = vld [vmem:[#allocation3 + $0x220] sm:$0xff] }
0x12f2   :  { %3248 = vmatmul.f32.gmra.mxu1 %v6582_v8  ;;  %3271 = vmatmul.f32.gmra.mxu0 %v6586_v10  ;;  %v3437_v12 = vld [vmem:[#allocation3 + $0x320] sm:$0xff] }
0x12f3   :  { %3294 = vmatmul.f32.gmra.mxu2 %v6582_v8  ;;  %3317 = vmatmul.f32.gmra.mxu3 %v6586_v10 }
0x12f4   :  { %3604 = vmatpush.msra.mxu1 %v3357_v44  ;;  %3627 = vmatpush.msra.mxu0 %v3389_v28  ;;  %v3493_v44 = vld [vmem:[#allocation3 + $0x4e0] sm:$0xff] }
0x12f5   :  { %3648 = vmatpush.msra.mxu2 %v3425_v39  ;;  %3671 = vmatpush.msra.mxu3 %v3457_v63  ;;  %v3525_v28 = vld [vmem:[#allocation3 + $0x5e0] sm:$0xff]  ;;  %v3403_v39 = vld [vmem:[#allocation3 + $0x210] sm:$0xff] }
0x12f6   :  { %3605 = vmatpush.msra.mxu1 %v3355_v33  ;;  %3628 = vmatpush.msra.mxu0 %v3387_v56  ;;  %v3435_v63 = vld [vmem:[#allocation3 + $0x310] sm:$0xff] }
0x12f7   :  { %3649 = vmatpush.msra.mxu2 %v3423_v1  ;;  %3672 = vmatpush.msra.mxu3 %v3455_v37  ;;  %v3491_v33 = vld [vmem:[#allocation3 + $0x4d0] sm:$0xff]  ;;  %v3401_v1 = vld [vmem:[#allocation3 + $0x200] sm:$0xff] }
0x12f8   :  { %3606 = vmatpush.msra.mxu1 %v3353_v24  ;;  %3629 = vmatpush.msra.mxu0 %v3385_v26  ;;  %v3523_v56 = vld [vmem:[#allocation3 + $0x5d0] sm:$0xff]  ;;  %v3433_v37 = vld [vmem:[#allocation3 + $0x300] sm:$0xff] }
0x12f9   :  { %3650 = vmatpush.msra.mxu2 %v3421_v14  ;;  %3673 = vmatpush.msra.mxu3 %v3453_v17  ;;  %v3489_v24 = vld [vmem:[#allocation3 + $0x4c0] sm:$0xff]  ;;  %v3559_v14 = vld [vmem:[#allocation3 + $0x6f0] sm:$0xff] }
0x12fa   :  { %3607 = vmatpush.msra.mxu1 %v3351_v18  ;;  %3630 = vmatpush.msra.mxu0 %v3383_v20  ;;  %v3521_v26 = vld [vmem:[#allocation3 + $0x5c0] sm:$0xff]  ;;  %v3591_v17 = vld [vmem:[#allocation3 + $0x7f0] sm:$0xff] }
0x12fb   :  { %3651 = vmatpush.msra.mxu2 %v3419_v48  ;;  %3674 = vmatpush.msra.mxu3 %v3451_v22  ;;  %v3487_v18 = vld [vmem:[#allocation3 + $0x4b0] sm:$0xff]  ;;  %v3557_v48 = vld [vmem:[#allocation3 + $0x6e0] sm:$0xff] }
0x12fc   :  { %3608 = vmatpush.msra.mxu1 %v3349_v25  ;;  %3631 = vmatpush.msra.mxu0 %v3381_v45  ;;  %v3519_v20 = vld [vmem:[#allocation3 + $0x5b0] sm:$0xff]  ;;  %v3589_v22 = vld [vmem:[#allocation3 + $0x7e0] sm:$0xff] }
0x12fd   :  { %3652 = vmatpush.msra.mxu2 %v3417_v7  ;;  %3675 = vmatpush.msra.mxu3 %v3449_v60  ;;  %v3485_v25 = vld [vmem:[#allocation3 + $0x4a0] sm:$0xff]  ;;  %v3555_v7 = vld [vmem:[#allocation3 + $0x6d0] sm:$0xff] }
0x12fe   :  { %3609 = vmatpush.msra.mxu1 %v3347_v13  ;;  %3632 = vmatpush.msra.mxu0 %v3379_v54  ;;  %v3517_v45 = vld [vmem:[#allocation3 + $0x5a0] sm:$0xff]  ;;  %v3587_v60 = vld [vmem:[#allocation3 + $0x7d0] sm:$0xff] }
0x12ff   :  { %3653 = vmatpush.msra.mxu2 %v3415_v9  ;;  %3676 = vmatpush.msra.mxu3 %v3447_v57  ;;  %v3483_v13 = vld [vmem:[#allocation3 + $0x490] sm:$0xff]  ;;  %v3481_v9 = vld [vmem:[#allocation3 + $0x480] sm:$0xff] }
0x1300   :  { %3610 = vmatpush.msra.mxu1 %v3345_v40  ;;  %3633 = vmatpush.msra.mxu0 %v3377_v61  ;;  %v3515_v54 = vld [vmem:[#allocation3 + $0x590] sm:$0xff]  ;;  %v3513_v57 = vld [vmem:[#allocation3 + $0x580] sm:$0xff] }
0x1301   :  { %3654 = vmatpush.msra.mxu2 %v3413_v27  ;;  %3677 = vmatpush.msra.mxu3 %v3445_v32  ;;  %v3551_v40 = vld [vmem:[#allocation3 + $0x6b0] sm:$0xff]  ;;  %v3549_v32 = vld [vmem:[#allocation3 + $0x6a0] sm:$0xff] }
0x1302   :  { %3611 = vmatpush.msra.mxu1 %v3343_v53  ;;  %3634 = vmatpush.msra.mxu0 %v3375_v62  ;;  %v3479_v61 = vld [vmem:[#allocation3 + $0x470] sm:$0xff] }
0x1303   :  { %3655 = vmatpush.msra.mxu2 %v3411_v55  ;;  %3678 = vmatpush.msra.mxu3 %v3443_v29  ;;  %v3511_v27 = vld [vmem:[#allocation3 + $0x570] sm:$0xff] }
0x1304   :  { %3612 = vmatpush.msra.mxu1 %v3341_v23  ;;  %3635 = vmatpush.msra.mxu0 %v3373_v41  ;;  %v3547_v53 = vld [vmem:[#allocation3 + $0x690] sm:$0xff]  ;;  %v3545_v23 = vld [vmem:[#allocation3 + $0x680] sm:$0xff] }
0x1305   :  { %3656 = vmatpush.msra.mxu2 %v3409_v16  ;;  %3679 = vmatpush.msra.mxu3 %v3441_v36  ;;  %v3475_v62 = vld [vmem:[#allocation3 + $0x450] sm:$0xff]  ;;  %v3581_v41 = vld [vmem:[#allocation3 + $0x7a0] sm:$0xff] }
0x1306   :  { %3613 = vmatpush.msra.mxu1 %v3339_v5  ;;  %3636 = vmatpush.msra.mxu0 %v3371_v2  ;;  %v3507_v55 = vld [vmem:[#allocation3 + $0x550] sm:$0xff] }
0x1307   :  { %3657 = vmatpush.msra.mxu2 %v3407_v15  ;;  %3680 = vmatpush.msra.mxu3 %v3439_v42  ;;  %v3583_v29 = vld [vmem:[#allocation3 + $0x7b0] sm:$0xff]  ;;  %v3541_v15 = vld [vmem:[#allocation3 + $0x660] sm:$0xff] }
0x1308   :  { %3614 = vmatpush.msra.mxu1 %v3337_v35  ;;  %3637 = vmatpush.msra.mxu0 %v3369_v19  ;;  %v3543_v16 = vld [vmem:[#allocation3 + $0x670] sm:$0xff]  ;;  %v3469_v42 = vld [vmem:[#allocation3 + $0x420] sm:$0xff] }
0x1309   :  { %3615 = vmatmul.f32.vlgmr.msra.gmra.mxu1 %v3321_v6  ;;  %3638 = vmatmul.f32.vlgmr.msra.gmra.mxu0 %v3322_v34  ;;  %v3579_v36 = vld [vmem:[#allocation3 + $0x790] sm:$0xff]  ;;  %v3501_v35 = vld [vmem:[#allocation3 + $0x520] sm:$0xff] }
0x130a   :  { %3691 = vmatpush.msrb.mxu1 %v3495_v30  ;;  %3714 = vmatpush.msrb.mxu0 %v3527_v52  ;;  %v3471_v5 = vld [vmem:[#allocation3 + $0x430] sm:$0xff]  ;;  %v3577_v19 = vld [vmem:[#allocation3 + $0x780] sm:$0xff] }
0x130b   :  { %3658 = vmatpush.msra.mxu2 %v3405_v58  ;;  %3681 = vmatpush.msra.mxu3 %v3437_v12  ;;  %v3503_v2 = vld [vmem:[#allocation3 + $0x530] sm:$0xff] }
0x130c   :  { %3692 = vmatpush.msrb.mxu1 %v3493_v44  ;;  %3715 = vmatpush.msrb.mxu0 %v3525_v28  ;;  %v3539_v30 = vld [vmem:[#allocation3 + $0x650] sm:$0xff]  ;;  %v3537_v44 = vld [vmem:[#allocation3 + $0x640] sm:$0xff] }
0x130d   :  { %3659 = vmatpush.msra.mxu2 %v3403_v39  ;;  %3682 = vmatpush.msra.mxu3 %v3435_v63  ;;  %v3467_v52 = vld [vmem:[#allocation3 + $0x410] sm:$0xff]  ;;  %v3573_v28 = vld [vmem:[#allocation3 + $0x760] sm:$0xff] }
0x130e   :  { %3693 = vmatpush.msrb.mxu1 %v3491_v33  ;;  %3716 = vmatpush.msrb.mxu0 %v3523_v56  ;;  %v3499_v58 = vld [vmem:[#allocation3 + $0x510] sm:$0xff]  ;;  %v3465_v39 = vld [vmem:[#allocation3 + $0x400] sm:$0xff]  ;;  %v3368_v33 = vld [vmem:[#allocation3 + $0xf8] sm:$0xff] }
0x130f   :  { %3660 = vmatpush.msra.mxu2 %v3401_v1  ;;  %3683 = vmatpush.msra.mxu3 %v3433_v37  ;;  %v3575_v12 = vld [vmem:[#allocation3 + $0x770] sm:$0xff]  ;;  %v3497_v63 = vld [vmem:[#allocation3 + $0x500] sm:$0xff]  ;;  %v3400_v56 = vld [vmem:[#allocation3 + $0x1f8] sm:$0xff] }
0x1310   :  { %3694 = vmatpush.msrb.mxu1 %v3489_v24  ;;  %3717 = vmatpush.msrb.mxu0 %v3521_v26  ;;  %v3535_v1 = vld [vmem:[#allocation3 + $0x630] sm:$0xff]  ;;  %v3366_v24 = vld [vmem:[#allocation3 + $0xe8] sm:$0xff] }
0x1311   :  { %3737 = vmatpush.msrb.mxu2 %v3559_v14  ;;  %3760 = vmatpush.msrb.mxu3 %v3591_v17  ;;  %v3571_v37 = vld [vmem:[#allocation3 + $0x750] sm:$0xff]  ;;  %v3398_v26 = vld [vmem:[#allocation3 + $0x1e8] sm:$0xff]  ;;  %v3533_v14 = vld [vmem:[#allocation3 + $0x620] sm:$0xff] }
0x1312   :  { %3695 = vmatpush.msrb.mxu1 %v3487_v18  ;;  %3718 = vmatpush.msrb.mxu0 %v3519_v20  ;;  %v3569_v17 = vld [vmem:[#allocation3 + $0x740] sm:$0xff]  ;;  %v3364_v18 = vld [vmem:[#allocation3 + $0xd8] sm:$0xff] }
0x1313   :  { %3738 = vmatpush.msrb.mxu2 %v3557_v48  ;;  %3761 = vmatpush.msrb.mxu3 %v3589_v22  ;;  %v3396_v20 = vld [vmem:[#allocation3 + $0x1d8] sm:$0xff]  ;;  %v3531_v48 = vld [vmem:[#allocation3 + $0x610] sm:$0xff]  ;;  %v3362_v22 = vld [vmem:[#allocation3 + $0xc8] sm:$0xff] }
0x1314   :  { %3696 = vmatpush.msrb.mxu1 %v3485_v25  ;;  %3719 = vmatpush.msrb.mxu0 %v3517_v45  ;;  %v3394_v25 = vld [vmem:[#allocation3 + $0x1c8] sm:$0xff]  ;;  %v3567_v45 = vld [vmem:[#allocation3 + $0x730] sm:$0xff] }
0x1315   :  { %3739 = vmatpush.msrb.mxu2 %v3555_v7  ;;  %3762 = vmatpush.msrb.mxu3 %v3587_v60  ;;  %v3529_v7 = vld [vmem:[#allocation3 + $0x600] sm:$0xff] }
0x1316   :  { %3697 = vmatpush.msrb.mxu1 %v3483_v13  ;;  %3720 = vmatpush.msrb.mxu0 %v3515_v54  ;;  %v3565_v60 = vld [vmem:[#allocation3 + $0x720] sm:$0xff]  ;;  %v3360_v13 = vld [vmem:[#allocation3 + $0xb8] sm:$0xff] }
0x1317   :  { %3740 = vmatpush.msrb.mxu2 %v3553_v51  ;;  %3763 = vmatpush.msrb.mxu3 %v3585_v11  ;;  %v3392_v54 = vld [vmem:[#allocation3 + $0x1b8] sm:$0xff]  ;;  %v3563_v51 = vld [vmem:[#allocation3 + $0x710] sm:$0xff]  ;;  %v3358_v11 = vld [vmem:[#allocation3 + $0xa8] sm:$0xff] }
0x1318   :  { %3698 = vmatpush.msrb.mxu1 %v3481_v9  ;;  %3721 = vmatpush.msrb.mxu0 %v3513_v57  ;;  %v3390_v9 = vld [vmem:[#allocation3 + $0x1a8] sm:$0xff]  ;;  %v3356_v57 = vld [vmem:[#allocation3 + $0x98] sm:$0xff] }
0x1319   :  { %3741 = vmatpush.msrb.mxu2 %v3551_v40  ;;  %3764 = vmatpush.msrb.mxu3 %v3583_v29  ;;  %v3388_v40 = vld [vmem:[#allocation3 + $0x198] sm:$0xff] }
0x131a   :  { %3699 = vmatpush.msrb.mxu1 %v3479_v61  ;;  %3722 = vmatpush.msrb.mxu0 %v3511_v27  ;;  %v3561_v61 = vld [vmem:[#allocation3 + $0x700] sm:$0xff]  ;;  %v3354_v27 = vld [vmem:[#allocation3 + $0x88] sm:$0xff] }
0x131b   :  { %3742 = vmatpush.msrb.mxu2 %v3549_v32  ;;  %3765 = vmatpush.msrb.mxu3 %v3581_v41  ;;  %v3386_v32 = vld [vmem:[#allocation3 + $0x188] sm:$0xff] }
0x131c   :  { %3700 = vmatpush.msrb.mxu1 %v3477_v38  ;;  %3723 = vmatpush.msrb.mxu0 %v3509_v49  ;;  %v3382_v41 = vld [vmem:[#allocation3 + $0x168] sm:$0xff] }
0x131d   :  { %3743 = vmatpush.msrb.mxu2 %v3547_v53  ;;  %3766 = vmatpush.msrb.mxu3 %v3579_v36  ;;  %v3380_v36 = vld [vmem:[#allocation3 + $0x158] sm:$0xff] }
0x131e   :  { %3701 = vmatpush.msrb.mxu1 %v3475_v62  ;;  %3724 = vmatpush.msrb.mxu0 %v3507_v55  ;;  %v3352_v62 = vld [vmem:[#allocation3 + $0x78] sm:$0xff] }
0x131f   :  { %3744 = vmatpush.msrb.mxu2 %v3545_v23  ;;  %3767 = vmatpush.msrb.mxu3 %v3577_v19  ;;  %v3384_v55 = vld [vmem:[#allocation3 + $0x178] sm:$0xff]  ;;  %v3350_v23 = vld [vmem:[#allocation3 + $0x68] sm:$0xff] }
0x1320   :  { %3702 = vmatpush.msrb.mxu1 %v3473_v43  ;;  %3725 = vmatpush.msrb.mxu0 %v3505_v50  ;;  %v2939_v50 = vperm.slane %v6811_v21, 2 }
0x1321   :  { %3745 = vmatpush.msrb.mxu2 %v3543_v16  ;;  %3768 = vmatpush.msrb.mxu3 %v3575_v12  ;;  %v3348_v16 = vld [vmem:[#allocation3 + $0x58] sm:$0xff] }
0x1322   :  { %3703 = vmatpush.msrb.mxu1 %v3471_v5  ;;  %3726 = vmatpush.msrb.mxu0 %v3503_v2  ;;  %v3346_v2 = vld [vmem:[#allocation3 + $0x48] sm:$0xff] }
0x1323   :  { %3746 = vmatpush.msrb.mxu2 %v3541_v15  ;;  %3769 = vmatpush.msrb.mxu3 %v3573_v28  ;;  %v3378_v15 = vld [vmem:[#allocation3 + $0x148] sm:$0xff] }
0x1324   :  { %3704 = vmatpush.msrb.mxu1 %v3469_v42  ;;  %3727 = vmatpush.msrb.mxu0 %v3501_v35  ;;  %v3342_v28 = vld [vmem:[#allocation3 + $0x28] sm:$0xff] }
0x1325   :  { %3747 = vmatpush.msrb.mxu2 %v3539_v30  ;;  %3770 = vmatpush.msrb.mxu3 %v3571_v37  ;;  %v3344_v30 = vld [vmem:[#allocation3 + $0x38] sm:$0xff] }
0x1326   :  { %3705 = vmatpush.msrb.mxu1 %v3467_v52  ;;  %3728 = vmatpush.msrb.mxu0 %v3499_v58  ;;  %v3376_v52 = vld [vmem:[#allocation3 + $0x138] sm:$0xff] }
0x1327   :  { %3748 = vmatpush.msrb.mxu2 %v3537_v44  ;;  %3771 = vmatpush.msrb.mxu3 %v3569_v17  ;;  %v3372_v37 = vld [vmem:[#allocation3 + $0x118] sm:$0xff] }
0x1328   :  { %3706 = vmatpush.msrb.mxu1 %v3465_v39  ;;  %3729 = vmatpush.msrb.mxu0 %v3497_v63  ;;  %v2940_v63 = vperm.slane %v6811_v21, 3 }
0x1329   :  { %3749 = vmatpush.msrb.mxu2 %v3535_v1  ;;  %3772 = vmatpush.msrb.mxu3 %v3567_v45  ;;  %v3340_v1 = vld [vmem:[#allocation3 + $0x18] sm:$0xff] }
0x132a   :  { %3783 = vmatpush.msra.mxu1 %v3368_v33  ;;  %3806 = vmatpush.msra.mxu0 %v3400_v56  ;;  %v3432_v56 = vld [vmem:[#allocation3 + $0x2f8] sm:$0xff] }
0x132b   :  { %3750 = vmatpush.msrb.mxu2 %v3533_v14  ;;  %3773 = vmatpush.msrb.mxu3 %v3565_v60  ;;  %v3338_v14 = vld [vmem:[#allocation3 + $0x8] sm:$0xff] }
0x132c   :  { %3784 = vmatpush.msra.mxu1 %v3366_v24  ;;  %3807 = vmatpush.msra.mxu0 %v3398_v26  ;;  %v3430_v26 = vld [vmem:[#allocation3 + $0x2e8] sm:$0xff] }
0x132d   :  { %3751 = vmatpush.msrb.mxu2 %v3531_v48  ;;  %3774 = vmatpush.msrb.mxu3 %v3563_v51  ;;  %v3428_v48 = vld [vmem:[#allocation3 + $0x2d8] sm:$0xff] }
0x132e   :  { %3785 = vmatpush.msra.mxu1 %v3364_v18  ;;  %3808 = vmatpush.msra.mxu0 %v3396_v20  ;;  %v3370_v18 = vld [vmem:[#allocation3 + $0x108] sm:$0xff] }
0x132f   :  { %3752 = vmatpush.msrb.mxu2 %v3529_v7  ;;  %3775 = vmatpush.msrb.mxu3 %v3561_v61  ;;  %v3426_v7 = vld [vmem:[#allocation3 + $0x2c8] sm:$0xff]  ;;  %v3460_v61 = vld [vmem:[#allocation3 + $0x3d8] sm:$0xff] }
0x1330   :  { %3786 = vmatpush.msra.mxu1 %v3362_v22  ;;  %3809 = vmatpush.msra.mxu0 %v3394_v25 }
0x1332   :  { %3787 = vmatpush.msra.mxu1 %v3360_v13  ;;  %3810 = vmatpush.msra.mxu0 %v3392_v54  ;;  %v3464_v54 = vld [vmem:[#allocation3 + $0x3f8] sm:$0xff] }
0x1334   :  { %3788 = vmatpush.msra.mxu1 %v3358_v11  ;;  %3811 = vmatpush.msra.mxu0 %v3390_v9  ;;  %v3424_v11 = vld [vmem:[#allocation3 + $0x2b8] sm:$0xff]  ;;  %v3462_v9 = vld [vmem:[#allocation3 + $0x3e8] sm:$0xff] }
0x1335   :  { %v2973_v38 = vpop.f32.mrf.mxu1  ;;  %v2996_v49 = vpop.f32.mrf.mxu0 }
0x1336   :  { %3789 = vmatpush.msra.mxu1 %v3356_v57  ;;  %3812 = vmatpush.msra.mxu0 %v3388_v40  ;;  %v2974_v53 = vadd.f32 %v2973_v38, %v2937_v0  ;;  %v3422_v40 = vld [vmem:[#allocation3 + $0x2a8] sm:$0xff]  ;;  %v3420_v38 = vld [vmem:[#allocation3 + $0x298] sm:$0xff] }
0x1338   :  { %3790 = vmatpush.msra.mxu1 %v3354_v27  ;;  %3813 = vmatpush.msra.mxu0 %v3386_v32  ;;  %v6831_v29 = vadd.f32 %v2996_v49, %v2974_v53  ;;  %v2941_v32 = vperm.slane %v6811_v21, 4  ;;  %v3458_v53 = vld [vmem:[#allocation3 + $0x3c8] sm:$0xff] }
0x133a   :  { %3791 = vmatpush.msra.mxu1 %v3352_v62  ;;  %3814 = vmatpush.msra.mxu0 %v3384_v55  ;;  %v3329_v43 = vmax.f32 %v6831_v29, 0.0  ;;  %v3418_v55 = vld [vmem:[#allocation3 + $0x288] sm:$0xff] }
0x133b   :  { %v3550_v29 = vld [vmem:[#allocation3 + $0x6a8] sm:$0xff] }
0x133c   :  { %3792 = vmatpush.msra.mxu1 %v3350_v23  ;;  %3815 = vmatpush.msra.mxu0 %v3382_v41  ;;  %v3019_v5 = vpop.f32.mrf.mxu2  ;;  %v3042_v0 = vpop.f32.mrf.mxu3 }
0x133d   :  { %3618 = vmatmul.f32.gmra.mxu1 %v3329_v43  ;;  %v3020_v42 = vadd.f32 %v3019_v5, %v2938_v3  ;;  %v3062_v35 = vpop.f32.mrf.mxu1  ;;  %v3085_v12 = vpop.f32.mrf.mxu0  ;;  %v3374_v3 = vld [vmem:[#allocation3 + $0x128] sm:$0xff] }
0x133e   :  { %3793 = vmatpush.msra.mxu1 %v3348_v16  ;;  %3816 = vmatpush.msra.mxu0 %v3380_v36  ;;  %v3063_v19 = vadd.f32 %v3062_v35, %v2939_v50  ;;  %v3416_v36 = vld [vmem:[#allocation3 + $0x278] sm:$0xff]  ;;  %v2942_v35 = vperm.slane %v6811_v21, 5 }
0x133f   :  { %v6839_v58 = vadd.f32 %v3042_v0, %v3020_v42  ;;  %v3414_v42 = vld [vmem:[#allocation3 + $0x268] sm:$0xff] }
0x1340   :  { %3794 = vmatpush.msra.mxu1 %v3346_v2  ;;  %3817 = vmatpush.msra.mxu0 %v3378_v15  ;;  %v6841_v44 = vadd.f32 %v3085_v12, %v3063_v19  ;;  %v3454_v2 = vld [vmem:[#allocation3 + $0x3a8] sm:$0xff]  ;;  %v3452_v19 = vld [vmem:[#allocation3 + $0x398] sm:$0xff] }
0x1341   :  { %v3330_v39 = vmax.f32 %v6839_v58, 0.0  ;;  %v3412_v12 = vld [vmem:[#allocation3 + $0x258] sm:$0xff] }
0x1342   :  { %3795 = vmatpush.msra.mxu1 %v3344_v30  ;;  %3818 = vmatpush.msra.mxu0 %v3376_v52  ;;  %v3323_v33 = vmax.f32 %v6841_v44, 0.0  ;;  %v3496_v52 = vld [vmem:[#allocation3 + $0x4f8] sm:$0xff] }
0x1343   :  { %3641 = vmatmul.f32.gmra.mxu0 %v3330_v39  ;;  %v3500_v58 = vld [vmem:[#allocation3 + $0x518] sm:$0xff] }
0x1344   :  { %3796 = vmatpush.msra.mxu1 %v3342_v28  ;;  %v3108_v24 = vpop.f32.mrf.mxu2  ;;  %3661 = vmatmul.f32.vlgmr.msra.gmra.mxu2 %v3323_v33  ;;  %v3131_v20 = vpop.f32.mrf.mxu3  ;;  %v3450_v28 = vld [vmem:[#allocation3 + $0x388] sm:$0xff]  ;;  %v3576_v44 = vld [vmem:[#allocation3 + $0x778] sm:$0xff] }
0x1345   :  { %3819 = vmatpush.msra.mxu0 %v3374_v3  ;;  %v3109_v17 = vadd.f32 %v3108_v24, %v2940_v63  ;;  %3829 = vmatpush.msra.mxu2 %v3432_v56  ;;  %v3494_v3 = vld [vmem:[#allocation3 + $0x4e8] sm:$0xff] }
0x1346   :  { %3797 = vmatpush.msra.mxu1 %v3340_v1  ;;  %v3410_v56 = vld [vmem:[#allocation3 + $0x248] sm:$0xff] }
0x1347   :  { %3820 = vmatpush.msra.mxu0 %v3372_v37  ;;  %v6850_v22 = vadd.f32 %v3131_v20, %v3109_v17  ;;  %v3065_v25 = vpop.f32.mrf.mxu1  ;;  %3830 = vmatpush.msra.mxu2 %v3430_v26  ;;  %v3088_v13 = vpop.f32.mrf.mxu0  ;;  %v3448_v37 = vld [vmem:[#allocation3 + $0x378] sm:$0xff]  ;;  %v3446_v20 = vld [vmem:[#allocation3 + $0x368] sm:$0xff] }
0x1348   :  { %3798 = vmatpush.msra.mxu1 %v3338_v14  ;;  %v3066_v45 = vadd.f32 %v3065_v25, %v2939_v50  ;;  %v3456_v50 = vld [vmem:[#allocation3 + $0x3b8] sm:$0xff]  ;;  %v3490_v25 = vld [vmem:[#allocation3 + $0x4c8] sm:$0xff] }
0x1349   :  { %3821 = vmatpush.msra.mxu0 %v3370_v18  ;;  %v3324_v60 = vmax.f32 %v6850_v22, 0.0  ;;  %3831 = vmatpush.msra.mxu2 %v3428_v48  ;;  %v3492_v26 = vld [vmem:[#allocation3 + $0x4d8] sm:$0xff]  ;;  %v3566_v22 = vld [vmem:[#allocation3 + $0x728] sm:$0xff] }
0x134a   :  { %v6853_v51 = vadd.f32 %v3088_v13, %v3066_v45  ;;  %v3408_v14 = vld [vmem:[#allocation3 + $0x238] sm:$0xff] }
0x134b   :  { %3684 = vmatmul.f32.vlgmr.msra.gmra.mxu3 %v3324_v60  ;;  %3832 = vmatpush.msra.mxu2 %v3426_v7  ;;  %v3528_v13 = vld [vmem:[#allocation3 + $0x5f8] sm:$0xff] }
0x134c   :  { %v3331_v57 = vmax.f32 %v6853_v51, 0.0  ;;  %3852 = vmatpush.msra.mxu3 %v3464_v54  ;;  %v3406_v54 = vld [vmem:[#allocation3 + $0x228] sm:$0xff] }
0x134d   :  { %3833 = vmatpush.msra.mxu2 %v3424_v11  ;;  %v3562_v51 = vld [vmem:[#allocation3 + $0x708] sm:$0xff] }
0x134e   :  { %v3111_v27 = vpop.f32.mrf.mxu2  ;;  %3664 = vmatmul.f32.gmra.mxu2 %v3331_v57  ;;  %3853 = vmatpush.msra.mxu3 %v3462_v9  ;;  %v3134_v62 = vpop.f32.mrf.mxu3  ;;  %v3488_v9 = vld [vmem:[#allocation3 + $0x4b8] sm:$0xff] }
0x134f   :  { %v3112_v49 = vadd.f32 %v3111_v27, %v2940_v63  ;;  %3834 = vmatpush.msra.mxu2 %v3422_v40  ;;  %v3444_v40 = vld [vmem:[#allocation3 + $0x358] sm:$0xff] }
0x1350   :  { %3854 = vmatpush.msra.mxu3 %v3460_v61  ;;  %v3526_v61 = vld [vmem:[#allocation3 + $0x5e8] sm:$0xff] }
0x1351   :  { %v6861_v23 = vadd.f32 %v3134_v62, %v3112_v49  ;;  %v3154_v41 = vpop.f32.mrf.mxu1  ;;  %3835 = vmatpush.msra.mxu2 %v3420_v38  ;;  %v3177_v0 = vpop.f32.mrf.mxu0  ;;  %v3404_v38 = vld [vmem:[#allocation3 + $0x218] sm:$0xff] }
0x1352   :  { %v3155_v16 = vadd.f32 %v3154_v41, %v2941_v32  ;;  %3855 = vmatpush.msra.mxu3 %v3458_v53  ;;  %v3524_v49 = vld [vmem:[#allocation3 + $0x5d8] sm:$0xff]  ;;  %v3442_v53 = vld [vmem:[#allocation3 + $0x348] sm:$0xff] }
0x1353   :  { %v3332_v5 = vmax.f32 %v6861_v23, 0.0  ;;  %3836 = vmatpush.msra.mxu2 %v3418_v55  ;;  %v3484_v55 = vld [vmem:[#allocation3 + $0x498] sm:$0xff]  ;;  %v3402_v41 = vld [vmem:[#allocation3 + $0x208] sm:$0xff] }
0x1354   :  { %v6864_v15 = vadd.f32 %v3177_v0, %v3155_v16  ;;  %3856 = vmatpush.msra.mxu3 %v3456_v50  ;;  %v2943_v16 = vperm.slane %v6811_v21, 6  ;;  %v3440_v0 = vld [vmem:[#allocation3 + $0x338] sm:$0xff] }
0x1355   :  { %3687 = vmatmul.f32.gmra.mxu3 %v3332_v5  ;;  %3837 = vmatpush.msra.mxu2 %v3416_v36  ;;  %v3522_v36 = vld [vmem:[#allocation3 + $0x5c8] sm:$0xff] }
0x1356   :  { %v3325_v30 = vmax.f32 %v6864_v15, 0.0  ;;  %3857 = vmatpush.msra.mxu3 %v3454_v2  ;;  %v3580_v15 = vld [vmem:[#allocation3 + $0x798] sm:$0xff] }
0x1357   :  { %3838 = vmatpush.msra.mxu2 %v3414_v42  ;;  %v3482_v42 = vld [vmem:[#allocation3 + $0x488] sm:$0xff] }
0x1358   :  { %v3200_v63 = vpop.f32.mrf.mxu2  ;;  %3707 = vmatmul.f32.vlgmr.msrb.gmra.mxu1 %v3325_v30  ;;  %3858 = vmatpush.msra.mxu3 %v3452_v19  ;;  %v3223_v24 = vpop.f32.mrf.mxu3 }
0x1359   :  { %v3201_v1 = vadd.f32 %v3200_v63, %v2942_v35  ;;  %3875 = vmatpush.msrb.mxu1 %v3496_v52  ;;  %3839 = vmatpush.msra.mxu2 %v3412_v12  ;;  %v3520_v52 = vld [vmem:[#allocation3 + $0x5b8] sm:$0xff]  ;;  %v3438_v12 = vld [vmem:[#allocation3 + $0x328] sm:$0xff] }
0x135a   :  { %3859 = vmatpush.msra.mxu3 %v3450_v28 }
0x135b   :  { %v6872_v17 = vadd.f32 %v3223_v24, %v3201_v1  ;;  %v3157_v18 = vpop.f32.mrf.mxu1  ;;  %3876 = vmatpush.msrb.mxu1 %v3494_v3  ;;  %3840 = vmatpush.msra.mxu2 %v3410_v56  ;;  %v3180_v7 = vpop.f32.mrf.mxu0  ;;  %v3518_v1 = vld [vmem:[#allocation3 + $0x5a8] sm:$0xff]  ;;  %v3436_v24 = vld [vmem:[#allocation3 + $0x318] sm:$0xff] }
0x135c   :  { %v3158_v48 = vadd.f32 %v3157_v18, %v2941_v32  ;;  %3860 = vmatpush.msra.mxu3 %v3448_v37  ;;  %v3486_v32 = vld [vmem:[#allocation3 + $0x4a8] sm:$0xff]  ;;  %v2944_v18 = vperm.slane %v6811_v21, 7  ;;  %v3512_v21 = vld [vmem:[#allocation3 + $0x578] sm:$0xff] }
0x135d   :  { %v3326_v45 = vmax.f32 %v6872_v17, 0.0  ;;  %3877 = vmatpush.msrb.mxu1 %v3492_v26  ;;  %3841 = vmatpush.msra.mxu2 %v3408_v14  ;;  %v3478_v37 = vld [vmem:[#allocation3 + $0x468] sm:$0xff]  ;;  %v3516_v14 = vld [vmem:[#allocation3 + $0x598] sm:$0xff] }
0x135e   :  { %v6875_v11 = vadd.f32 %v3180_v7, %v3158_v48  ;;  %3861 = vmatpush.msra.mxu3 %v3446_v20  ;;  %v3476_v20 = vld [vmem:[#allocation3 + $0x458] sm:$0xff]  ;;  %v3514_v7 = vld [vmem:[#allocation3 + $0x588] sm:$0xff] }
0x135f   :  { %3730 = vmatmul.f32.vlgmr.msrb.gmra.mxu0 %v3326_v45  ;;  %3878 = vmatpush.msrb.mxu1 %v3490_v25  ;;  %v3560_v25 = vld [vmem:[#allocation3 + $0x6f8] sm:$0xff]  ;;  %v3530_v17 = vld [vmem:[#allocation3 + $0x608] sm:$0xff] }
0x1360   :  { %v3333_v27 = vmax.f32 %v6875_v11, 0.0  ;;  %3898 = vmatpush.msrb.mxu0 %v3528_v13  ;;  %3842 = vmatpush.msra.mxu2 %v3406_v54  ;;  %v3434_v13 = vld [vmem:[#allocation3 + $0x308] sm:$0xff]  ;;  %v3572_v11 = vld [vmem:[#allocation3 + $0x758] sm:$0xff] }
0x1361   :  { %3879 = vmatpush.msrb.mxu1 %v3488_v9  ;;  %3862 = vmatpush.msra.mxu3 %v3444_v40  ;;  %v3474_v54 = vld [vmem:[#allocation3 + $0x448] sm:$0xff] }
0x1362   :  { %v3203_v62 = vpop.f32.mrf.mxu2  ;;  %3710 = vmatmul.f32.gmra.mxu1 %v3333_v27  ;;  %3899 = vmatpush.msrb.mxu0 %v3526_v61  ;;  %v3226_v2 = vpop.f32.mrf.mxu3  ;;  %v3558_v40 = vld [vmem:[#allocation3 + $0x6e8] sm:$0xff]  ;;  %v3472_v61 = vld [vmem:[#allocation3 + $0x438] sm:$0xff] }
0x1363   :  { %v3204_v50 = vadd.f32 %v3203_v62, %v2942_v35  ;;  %3880 = vmatpush.msrb.mxu1 %v3486_v32  ;;  %3843 = vmatpush.msra.mxu2 %v3404_v38  ;;  %v3480_v35 = vld [vmem:[#allocation3 + $0x478] sm:$0xff]  ;;  %v3510_v62 = vld [vmem:[#allocation3 + $0x568] sm:$0xff] }
0x1364   :  { %3900 = vmatpush.msrb.mxu0 %v3524_v49  ;;  %3863 = vmatpush.msra.mxu3 %v3442_v53  ;;  %v3556_v38 = vld [vmem:[#allocation3 + $0x6d8] sm:$0xff] }
0x1365   :  { %v6883_v19 = vadd.f32 %v3226_v2, %v3204_v50  ;;  %3881 = vmatpush.msrb.mxu1 %v3484_v55  ;;  %3844 = vmatpush.msra.mxu2 %v3402_v41  ;;  %v3470_v55 = vld [vmem:[#allocation3 + $0x428] sm:$0xff]  ;;  %v3592_v2 = vld [vmem:[#allocation3 + $0x7f8] sm:$0xff] }
0x1366   :  { %v3246_v28 = vpop.f32.mrf.mxu1  ;;  %3901 = vmatpush.msrb.mxu0 %v3522_v36  ;;  %3864 = vmatpush.msra.mxu3 %v3440_v0  ;;  %v3269_v56 = vpop.f32.mrf.mxu0  ;;  %v3554_v50 = vld [vmem:[#allocation3 + $0x6c8] sm:$0xff] }
0x1367   :  { %v3334_v63 = vmax.f32 %v6883_v19, 0.0  ;;  %v3247_v3 = vadd.f32 %v3246_v28, %v2943_v16  ;;  %3882 = vmatpush.msrb.mxu1 %v3482_v42  ;;  %v3468_v42 = vld [vmem:[#allocation3 + $0x418] sm:$0xff]  ;;  %v3466_v28 = vld [vmem:[#allocation3 + $0x408] sm:$0xff] }
0x1368   :  { %3902 = vmatpush.msrb.mxu0 %v3520_v52  ;;  %3865 = vmatpush.msra.mxu3 %v3438_v12  ;;  %v3506_v12 = vld [vmem:[#allocation3 + $0x548] sm:$0xff] }
0x1369   :  { %v6886_v26 = vadd.f32 %v3269_v56, %v3247_v3  ;;  %3733 = vmatmul.f32.gmra.mxu0 %v3334_v63  ;;  %3883 = vmatpush.msrb.mxu1 %v3480_v35 }
0x136a   :  { %3799 = vmatmul.f32.vlgmr.msra.gmra.mxu1 %v3321_v6  ;;  %3903 = vmatpush.msrb.mxu0 %v3518_v1  ;;  %v3548_v1 = vld [vmem:[#allocation3 + $0x698] sm:$0xff] }
0x136b   :  { %v3327_v48 = vmax.f32 %v6886_v26, 0.0  ;;  %3884 = vmatpush.msrb.mxu1 %v3478_v37  ;;  %3866 = vmatpush.msra.mxu3 %v3436_v24  ;;  %v3586_v37 = vld [vmem:[#allocation3 + $0x7c8] sm:$0xff] }
0x136c   :  { %3904 = vmatpush.msrb.mxu0 %v3516_v14  ;;  %v3504_v14 = vld [vmem:[#allocation3 + $0x538] sm:$0xff] }
0x136d   :  { %v3292_v9 = vpop.f32.mrf.mxu2  ;;  %3753 = vmatmul.f32.vlgmr.msrb.gmra.mxu2 %v3327_v48  ;;  %3885 = vmatpush.msrb.mxu1 %v3476_v20  ;;  %v3315_v6 = vpop.f32.mrf.mxu3  ;;  %v3546_v20 = vld [vmem:[#allocation3 + $0x688] sm:$0xff] }
0x136e   :  { %v3293_v31 = vadd.f32 %v3292_v9, %v2944_v18  ;;  %3921 = vmatpush.msrb.mxu2 %v3560_v25  ;;  %3905 = vmatpush.msrb.mxu0 %v3514_v7  ;;  %v3584_v25 = vld [vmem:[#allocation3 + $0x7b8] sm:$0xff]  ;;  %v3502_v7 = vld [vmem:[#allocation3 + $0x528] sm:$0xff] }
0x136f   :  { %v3249_v32 = vpop.f32.mrf.mxu1  ;;  %3867 = vmatpush.msra.mxu3 %v3434_v13  ;;  %3886 = vmatpush.msrb.mxu1 %v3474_v54  ;;  %v3272_v41 = vpop.f32.mrf.mxu0  ;;  %v3544_v13 = vld [vmem:[#allocation3 + $0x678] sm:$0xff]  ;;  %v3582_v54 = vld [vmem:[#allocation3 + $0x7a8] sm:$0xff] }
0x1370   :  { %v6896_v49 = vadd.f32 %v3315_v6, %v3293_v31  ;;  %v3250_v53 = vadd.f32 %v3249_v32, %v2943_v16  ;;  %3922 = vmatpush.msrb.mxu2 %v3558_v40  ;;  %3906 = vmatpush.msrb.mxu0 %v3512_v21  ;;  %v3508_v16 = vld [vmem:[#allocation3 + $0x558] sm:$0xff]  ;;  %v3578_v40 = vld [vmem:[#allocation3 + $0x788] sm:$0xff] }
0x1371   :  { %3822 = vmatmul.f32.vlgmr.msra.gmra.mxu0 %v3322_v34  ;;  %3887 = vmatpush.msrb.mxu1 %v3472_v61  ;;  %v3590_v34 = vld [vmem:[#allocation3 + $0x7e8] sm:$0xff]  ;;  %v3540_v9 = vld [vmem:[#allocation3 + $0x658] sm:$0xff] }
0x1372   :  { %v3328_v36 = vmax.f32 %v6896_v49, 0.0  ;;  %v6901_v0 = vadd.f32 %v3272_v41, %v3250_v53  ;;  %3923 = vmatpush.msrb.mxu2 %v3556_v38  ;;  %3802 = vmatmul.f32.gmra.mxu1 %v3329_v43  ;;  %v3588_v43 = vld [vmem:[#allocation3 + $0x7d8] sm:$0xff]  ;;  %v3538_v21 = vld [vmem:[#allocation3 + $0x648] sm:$0xff] }
0x1373   :  { %3907 = vmatpush.msrb.mxu0 %v3510_v62  ;;  %3888 = vmatpush.msrb.mxu1 %v3470_v55  ;;  %v3574_v31 = vld [vmem:[#allocation3 + $0x768] sm:$0xff] }
0x1374   :  { %v3335_v52 = vmax.f32 %v6901_v0, 0.0  ;;  %3776 = vmatmul.f32.vlgmr.msrb.gmra.mxu3 %v3328_v36  ;;  %3924 = vmatpush.msrb.mxu2 %v3554_v50  ;;  %v3534_v6 = vld [vmem:[#allocation3 + $0x628] sm:$0xff]  ;;  %v3593_v0 = vld [vmem:[%s6972_s12] sm:$0x3] }
0x1375   :  { %3944 = vmatpush.msrb.mxu3 %v3592_v2  ;;  %3908 = vmatpush.msrb.mxu0 %v3508_v16  ;;  %v3570_v61 = vld [vmem:[#allocation3 + $0x748] sm:$0xff] }
0x1376   :  { %v3295_v35 = vpop.f32.mrf.mxu2  ;;  %3756 = vmatmul.f32.gmra.mxu2 %v3335_v52  ;;  %3889 = vmatpush.msrb.mxu1 %v3468_v42  ;;  %v3318_v56 = vpop.f32.mrf.mxu3 }
0x1377   :  { %v3296_v3 = vadd.f32 %v3295_v35, %v2944_v18  ;;  %3925 = vmatpush.msrb.mxu2 %v3552_v59  ;;  %3945 = vmatpush.msrb.mxu3 %v3590_v34  ;;  %v3596_v59 = vperm.slane %v3593_v0, 1 }
0x1378   :  { %3909 = vmatpush.msrb.mxu0 %v3506_v12  ;;  %3890 = vmatpush.msrb.mxu1 %v3466_v28 }
0x1379   :  { %v6910_v24 = vadd.f32 %v3318_v56, %v3296_v3  ;;  %3926 = vmatpush.msrb.mxu2 %v3550_v29  ;;  %3946 = vmatpush.msrb.mxu3 %v3588_v43 }
0x137a   :  { %3825 = vmatmul.f32.gmra.mxu0 %v3330_v39  ;;  %3891 = vmatmul.f32.vlgmr.msrb.gmra.mxu1 %v3325_v30  ;;  %v3542_v39 = vld [vmem:[#allocation3 + $0x668] sm:$0xff] }
0x137b   :  { %v3336_v18 = vmax.f32 %v6910_v24, 0.0  ;;  %3927 = vmatpush.msrb.mxu2 %v3548_v1  ;;  %3947 = vmatpush.msrb.mxu3 %v3586_v37  ;;  %v3498_v30 = vld [vmem:[#allocation3 + $0x508] sm:$0xff] }
0x137c   :  { %3910 = vmatpush.msrb.mxu0 %v3504_v14 }
0x137d   :  { %3779 = vmatmul.f32.gmra.mxu3 %v3336_v18  ;;  %3928 = vmatpush.msrb.mxu2 %v3546_v20 }
0x137e   :  { %3948 = vmatpush.msrb.mxu3 %v3584_v25  ;;  %3845 = vmatmul.f32.vlgmr.msra.gmra.mxu2 %v3323_v33  ;;  %v3536_v33 = vld [vmem:[#allocation3 + $0x638] sm:$0xff] }
0x137f   :  { %3911 = vmatpush.msrb.mxu0 %v3502_v7  ;;  %3929 = vmatpush.msrb.mxu2 %v3544_v13 }
0x1380   :  { %3949 = vmatpush.msrb.mxu3 %v3582_v54 }
0x1381   :  { %3912 = vmatpush.msrb.mxu0 %v3500_v58  ;;  %3930 = vmatpush.msrb.mxu2 %v3542_v39 }
0x1382   :  { %3950 = vmatpush.msrb.mxu3 %v3580_v15  ;;  %3894 = vmatmul.f32.gmra.mxu1 %v3333_v27  ;;  %v3532_v27 = vld [vmem:[#allocation3 + $0x618] sm:$0xff] }
0x1383   :  { %3913 = vmatpush.msrb.mxu0 %v3498_v30  ;;  %3931 = vmatpush.msrb.mxu2 %v3540_v9 }
0x1384   :  { %3951 = vmatpush.msrb.mxu3 %v3578_v40  ;;  %3914 = vmatmul.f32.vlgmr.msrb.gmra.mxu0 %v3326_v45  ;;  %v3568_v45 = vld [vmem:[#allocation3 + $0x738] sm:$0xff] }
0x1385   :  { %3868 = vmatmul.f32.vlgmr.msra.gmra.mxu3 %v3324_v60  ;;  %3932 = vmatpush.msrb.mxu2 %v3538_v21  ;;  %v3564_v60 = vld [vmem:[#allocation3 + $0x718] sm:$0xff] }
0x1386   :  { %3952 = vmatpush.msrb.mxu3 %v3576_v44  ;;  %3848 = vmatmul.f32.gmra.mxu2 %v3331_v57  ;;  %v3616_v57 = vpop.f32.mrf.mxu1  ;;  %v3639_v23 = vpop.f32.mrf.mxu0 }
0x1387   :  { %3933 = vmatpush.msrb.mxu2 %v3536_v33 }
0x1388   :  { %3953 = vmatpush.msrb.mxu3 %v3574_v31 }
0x1389   :  { %3934 = vmatpush.msrb.mxu2 %v3534_v6 }
0x138a   :  { %3954 = vmatpush.msrb.mxu3 %v3572_v11 }
0x138b   :  { %3935 = vmatpush.msrb.mxu2 %v3532_v27 }
0x138c   :  { %3955 = vmatpush.msrb.mxu3 %v3570_v61  ;;  %3917 = vmatmul.f32.gmra.mxu0 %v3334_v63 }
0x138d   :  { %3871 = vmatmul.f32.gmra.mxu3 %v3332_v5  ;;  %3936 = vmatpush.msrb.mxu2 %v3530_v17 }
0x138e   :  { %3956 = vmatpush.msrb.mxu3 %v3568_v45  ;;  %3937 = vmatmul.f32.vlgmr.msrb.gmra.mxu2 %v3327_v48 }
0x1390   :  { %3957 = vmatpush.msrb.mxu3 %v3566_v22 }
0x1392   :  { %3958 = vmatpush.msrb.mxu3 %v3564_v60 }
0x1394   :  { %3959 = vmatpush.msrb.mxu3 %v3562_v51 }
0x1395   :  { %3960 = vmatmul.f32.vlgmr.msrb.gmra.mxu3 %v3328_v36 }
0x1396   :  { %3940 = vmatmul.f32.gmra.mxu2 %v3335_v52  ;;  %v3595_v52 = vperm.slane %v3593_v0, 0 }
0x1398   :  { %v3617_v12 = vadd.f32 %v3616_v57, %v3595_v52 }
0x139a   :  { %v3640_v56 = vadd.f32 %v3639_v23, %v3617_v12 }
0x139d   :  { %3963 = vmatmul.f32.gmra.mxu3 %v3336_v18 }
0x13ba   :  { %v3619_v5 = vpop.f32.mrf.mxu1 }
0x13bb   :  { %v3620_v7 = vadd.f32 %v3619_v5, %v3595_v52 }
0x13c0   :  { %v3642_v63 = vpop.f32.mrf.mxu0 }
0x13c1   :  { %v3643_v30 = vadd.f32 %v3642_v63, %v3620_v7 }
0x13c7   :  { %v3662_v19 = vpop.f32.mrf.mxu2 }
0x13c8   :  { %v3663_v37 = vadd.f32 %v3662_v19, %v3640_v56 }
0x13ce   :  { %v3685_v32 = vpop.f32.mrf.mxu3 }
0x13cf   :  { %v3686_v20 = vadd.f32 %v3685_v32, %v3663_v37 }
0x13d1   :  { %v3665_v48 = vpop.f32.mrf.mxu2 }
0x13d2   :  { %v3666_v21 = vadd.f32 %v3665_v48, %v3643_v30 }
0x13d5   :  { %v3708_v26 = vpop.f32.mrf.mxu1 }
0x13d6   :  { %v3709_v13 = vadd.f32 %v3708_v26, %v3686_v20  ;;  %v4021_v20 = vld [vmem:[%s6973_s13] sm:$0x3]  ;;  %s4368_s13 = smov [#allocation6]  }
0x13d8   :  { %v3688_v53 = vpop.f32.mrf.mxu3 }
0x13d9   :  { %v3689_v6 = vadd.f32 %v3688_v53, %v3666_v21 }
0x13dc   :  { %v3731_v38 = vpop.f32.mrf.mxu0 }
0x13dd   :  { %v3732_v9 = vadd.f32 %v3731_v38, %v3709_v13 }
0x13df   :  { %v3711_v62 = vpop.f32.mrf.mxu1 }
0x13e0   :  { %v3712_v45 = vadd.f32 %v3711_v62, %v3689_v6 }
0x13e6   :  { %v3734_v41 = vpop.f32.mrf.mxu0 }
0x13e7   :  { %v3800_v36 = vpop.f32.mrf.mxu1  ;;  %v3735_v51 = vadd.f32 %v3734_v41, %v3712_v45 }
0x13e8   :  { %v3801_v28 = vadd.f32 %v3800_v36, %v3596_v59 }
0x13ee   :  { %v3823_v2 = vpop.f32.mrf.mxu0 }
0x13ef   :  { %v3803_v34 = vpop.f32.mrf.mxu1  ;;  %v3824_v43 = vadd.f32 %v3823_v2, %v3801_v28 }
0x13f0   :  { %v3754_v55 = vpop.f32.mrf.mxu2  ;;  %v3804_v18 = vadd.f32 %v3803_v34, %v3596_v59 }
0x13f1   :  { %v3755_v44 = vadd.f32 %v3754_v55, %v3732_v9 }
0x13f7   :  { %v3777_v50 = vpop.f32.mrf.mxu3  ;;  %v3826_v35 = vpop.f32.mrf.mxu0 }
0x13f8   :  { %v3892_v14 = vpop.f32.mrf.mxu1  ;;  %v3827_v54 = vadd.f32 %v3826_v35, %v3804_v18  ;;  %v3778_v11 = vadd.f32 %v3777_v50, %v3755_v44 }
0x13f9   :  { %v3757_v49 = vpop.f32.mrf.mxu2 }
0x13fa   :  { %v3967_v57 = vadd.f32 %v3778_v11, %v6148_v46  ;;  %v3758_v63 = vadd.f32 %v3757_v49, %v3735_v51 }
0x1400   :  { %v3780_v16 = vpop.f32.mrf.mxu3  ;;  %v3895_v61 = vpop.f32.mrf.mxu1 }
0x1401   :  { %v3846_v42 = vpop.f32.mrf.mxu2  ;;  %v3915_v39 = vpop.f32.mrf.mxu0  ;;  %v3781_v48 = vadd.f32 %v3780_v16, %v3758_v63 }
0x1402   :  { %v3847_v1 = vadd.f32 %v3846_v42, %v3824_v43 }
0x1403   :  { %v3969_v50 = vadd.f32 %v3781_v48, %v6582_v8 }
0x1408   :  { %v3869_v29 = vpop.f32.mrf.mxu3 }
0x1409   :  { %v3849_v3 = vpop.f32.mrf.mxu2  ;;  %v3870_v24 = vadd.f32 %v3869_v29, %v3847_v1  ;;  %v3918_v5 = vpop.f32.mrf.mxu0 }
0x140a   :  { %v3850_v40 = vadd.f32 %v3849_v3, %v3827_v54  ;;  %v4023_v54 = vperm.slane %v4021_v20, 0 }
0x140b   :  { %v3893_v58 = vadd.f32 %v3892_v14, %v3870_v24 }
0x140d   :  { %v3916_v31 = vadd.f32 %v3915_v39, %v3893_v58  ;;  %v4024_v58 = vperm.slane %v4021_v20, 1 }
0x1410   :  { %v3872_v25 = vpop.f32.mrf.mxu3 }
0x1411   :  { %v3938_v15 = vpop.f32.mrf.mxu2  ;;  %v3873_v33 = vadd.f32 %v3872_v25, %v3850_v40 }
0x1412   :  { %v3939_v27 = vadd.f32 %v3938_v15, %v3916_v31 }
0x1413   :  { %v3896_v22 = vadd.f32 %v3895_v61, %v3873_v33 }
0x1415   :  { %v3919_v32 = vadd.f32 %v3918_v5, %v3896_v22 }
0x1418   :  { %v3961_v17 = vpop.f32.mrf.mxu3 }
0x1419   :  { %v3962_v60 = vadd.f32 %v3961_v17, %v3939_v27  ;;  %v3941_v19 = vpop.f32.mrf.mxu2 }
0x141a   :  { %v3942_v38 = vadd.f32 %v3941_v19, %v3919_v32 }
0x141b   :  { %v3968_v23 = vadd.f32 %v3962_v60, %v6152_v47 }
0x141d   :  { %v3971_v26 = vadd.f32 %v3968_v23, %v3967_v57 }
0x141f   :  { %3972 = vadd.xlane.f32.xlu2 %v3971_v26 }
0x1420   :  { %v3964_v53 = vpop.f32.mrf.mxu3 }
0x1421   :  { %v3965_v55 = vadd.f32 %v3964_v53, %v3942_v38 }
0x1423   :  { %v3970_v62 = vadd.f32 %v3965_v55, %v6586_v10 }
0x1425   :  { %v3974_v36 = vadd.f32 %v3970_v62, %v3969_v50 }
0x1427   :  { %3975 = vadd.xlane.f32.xlu0 %v3974_v36 }
0x1492   :  { %v3973_v41 = vpop.xlane.xlu2 %3972 }
0x1493   :  { %v3977_v46 = vmul.f32 %v3973_v41, %v5857_v4 }
0x1495   :  { %v3979_v47 = vsub.f32 %v3967_v57, %v3977_v46  ;;  %v3980_v2 = vsub.f32 %v3968_v23, %v3977_v46 }
0x1497   :  { %v3983_v0 = vmul.f32 %v3979_v47, %v3979_v47  ;;  %v3984_v49 = vmul.f32 %v3980_v2, %v3980_v2 }
0x1499   :  { %v3987_v42 = vadd.f32 %v3984_v49, %v3983_v0 }
0x149a   :  { %v3976_v52 = vpop.xlane.xlu0 %3975 }
0x149b   :  { %v3978_v16 = vmul.f32 %v3976_v52, %v5857_v4  ;;  %3988 = vadd.xlane.f32.xlu1 %v3987_v42 }
0x149d   :  { %v3981_v59 = vsub.f32 %v3969_v50, %v3978_v16  ;;  %v3982_v34 = vsub.f32 %v3970_v62, %v3978_v16 }
0x149f   :  { %v3985_v12 = vmul.f32 %v3981_v59, %v3981_v59  ;;  %v3986_v8 = vmul.f32 %v3982_v34, %v3982_v34 }
0x14a1   :  { %v3990_v28 = vadd.f32 %v3986_v8, %v3985_v12 }
0x14a3   :  { %3991 = vadd.xlane.f32.xlu2 %v3990_v28 }
0x150e   :  { %v3989_v10 = vpop.xlane.xlu1 %3988 }
0x150f   :  { %v3993_v35 = vmul.f32 %v3989_v10, %v5857_v4 }
0x1511   :  { %v3995_v29 = vadd.f32 1e-05, %v3993_v35 }
0x1513   :  { %4231 = vrsqrt.f32 %v3995_v29  ;;  %vm4003_vm2 = vweird.f32 %v3995_v29 }
0x1516   :  { %v3992_v43 = vpop.xlane.xlu2 %3991 }
0x1517   :  { %v3994_v3 = vmul.f32 %v3992_v43, %v5857_v4  ;;  %v4031_v4 = vld [vmem:[%s6974_s14] sm:$0x3]  ;;  %s4049_s14 = sshll.u32 %s4368_s13, 4  ;;  %s4050_s14 = int_to_ptr.vmem [resolvable:$true] %s4049_s14 }
0x1518   :  { %v4033_v40 = vperm.slane %v4031_v4, 0  ;;  %v4034_v21 = vperm.slane %v4031_v4, 1 }
0x1519   :  { %v4232_v56 = vpop.eup %4231  ;;  %v3996_v1 = vadd.f32 1e-05, %v3994_v3 }
0x151a   :  { %v3998_v37 = vmul.f32 %v4232_v56, %v3995_v29  ;;  %vm4004_vm15 = vweird.f32 %v4232_v56 }
0x151b   :  { %4233 = vrsqrt.f32 %v3996_v1  ;;  %vm4005_vm3 = vmor %vm4003_vm2, %vm4004_vm15  ;;  %vm4013_vm5 = vweird.f32 %v3996_v1 }
0x151c   :  { %v3999_v24 = vmul.f32 %v4232_v56, %v3998_v37 }
0x151e   :  { %v4000_v14 = vmul.f32 0.5, %v3999_v24 }
0x1520   :  { %v4001_v18 = vsub.f32 1.5, %v4000_v14 }
0x1521   :  { %v4234_v25 = vpop.eup %4233 }
0x1522   :  { %v4002_v7 = vmul.f32 %v4232_v56, %v4001_v18  ;;  %v4008_v13 = vmul.f32 %v4234_v25, %v3996_v1  ;;  %vm4014_vm4 = vweird.f32 %v4234_v25 }
0x1523   :  { %vm4015_vm8 = vmor %vm4013_vm5, %vm4014_vm4 }
0x1524   :  { %v4006_v39 = vsel %vm4005_vm3, %v4232_v56, %v4002_v7  ;;  %v4009_v15 = vmul.f32 %v4234_v25, %v4008_v13 }
0x1525   :  { %v4017_v30 = vmul.f32 %v4006_v39, %v3979_v47  ;;  %v4018_v9 = vmul.f32 %v4006_v39, %v3980_v2 }
0x1526   :  { %v4010_v44 = vmul.f32 0.5, %v4009_v15 }
0x1527   :  { %v4027_v33 = vmul.f32 %v4023_v54, %v4017_v30  ;;  %v4028_v31 = vmul.f32 %v4024_v58, %v4018_v9 }
0x1528   :  { %v4011_v6 = vsub.f32 1.5, %v4010_v44 }
0x1529   :  { %v4037_v11 = vadd.f32 %v4033_v40, %v4027_v33  ;;  %v4038_v27 = vadd.f32 %v4034_v21, %v4028_v31 }
0x152a   :  { %v4012_v61 = vmul.f32 %v4234_v25, %v4011_v6 }
0x152b   :  { %4041 = vst [vmem:[#allocation6] sm:$0xff] %v4037_v11 }
0x152c   :  { %v4016_v17 = vsel %vm4015_vm8, %v4234_v25, %v4012_v61  ;;  %4042 = vst [vmem:[#allocation6 + $0x8] sm:$0xff] %v4038_v27 }
0x152d   :  { %v4019_v45 = vmul.f32 %v4016_v17, %v3981_v59  ;;  %v4020_v22 = vmul.f32 %v4016_v17, %v3982_v34 }
0x152f   :  { %v4029_v60 = vmul.f32 %v4023_v54, %v4019_v45  ;;  %v4030_v51 = vmul.f32 %v4024_v58, %v4020_v22 }
0x1531   :  { %v4039_v57 = vadd.f32 %v4033_v40, %v4029_v60  ;;  %v4040_v23 = vadd.f32 %v4034_v21, %v4030_v51 }
0x1533   :  { %4043 = vst [vmem:[#allocation6 + $0x10] sm:$0xff] %v4039_v57 }
0x1534   :  { %4044 = vst [vmem:[#allocation6 + $0x18] sm:$0xff] %v4040_v23 }
0x1535   :  { %4057 = dma.vmem_to_hbm [thread:$0]  %s4050_s14, 512, %s4052_s8, [#allocation5], %s4365_s23, %s4365_s23, %s4366_s24  }
0x1536   :  { %4362 = dma.done.wait [#allocation5], 512  }
0x1537   :  { %4363 = vsyncadd [#allocation5], 4294966784 }
0x1538   :  { %4062 = vsyncpa [#allocation4], 1 }
0x1539   :  { %4063 = vsyncpa [#allocation5], 1 }

</bundles_post_ra>
